<compile_context>
chip_gen: v7x
topology: tpu7x:2x2x1
jax: 0.10.0
libtpu: 0.0.40
codegen_flags: <defaults>
</compile_context>

<pallas_src>
import jax
import jax.numpy as jnp
from jax.experimental import pallas as pl
from jax.experimental.pallas import tpu as pltpu


D_IN = 3072      # 3 * 32 * 32
D_HID = 512
D_OUT = 10
N_PAD = 128      # lane-dense padded fc2 output width
TB_MAX = 512     # max batch tile (multiple of 256 for MXU M; bounds VMEM)


def _round_up(v, m):
    return ((v + m - 1) // m) * m


def _cdiv(a, b):
    return -(-a // b)


def _mlp_kernel(x_ref, w1_ref, b1_ref, w2_ref, b2_ref, o_ref):
    # Cast x to bf16 in-kernel (VPU) so HBM only sees a single f32 read of x.
    x = x_ref[...].astype(jnp.bfloat16)
    # fc1 on the MXU: bf16 x bf16 -> f32 accumulation; bias + ReLU in f32.
    h = jnp.dot(x, w1_ref[...], preferred_element_type=jnp.float32)
    h = jnp.maximum(h + b1_ref[...], 0.0)
    # fc2 (padded to 128 lanes): bf16 x bf16 -> f32 accum; bias + ReLU in f32.
    y = jnp.dot(h.astype(jnp.bfloat16), w2_ref[...],
                preferred_element_type=jnp.float32)
    o_ref[...] = jnp.maximum(y + b2_ref[...], 0.0)


def _const_spec(shape, single_buffer):
    """BlockSpec for a grid-invariant (VMEM-resident) operand.

    Constant index_map keeps the operand resident across grid steps; with
    single_buffer we additionally request one buffer instead of the default
    two (VMEM headroom on v7x).  Falls back if pipeline_mode is unavailable.
    """
    index_map = lambda i: tuple(0 for _ in shape)
    if single_buffer and hasattr(pl, "Buffered"):
        try:
            return pl.BlockSpec(shape, index_map, pipeline_mode=pl.Buffered(1))
        except TypeError:   # older JAX: BlockSpec has no pipeline_mode kwarg
            pass
    return pl.BlockSpec(shape, index_map)


def prepare_params(w1, b1, w2, b2):
    """One-time weight preparation (hoisted out of the per-call path).

    Returns (w1_bf16, b1_f32, w2_padded_bf16, b2_padded_f32) where the fc2
    weight/bias columns are zero-padded 10 -> 128 for lane-dense output.
    """
    w1b = w1.astype(jnp.bfloat16)
    w2b = jnp.pad(w2, ((0, 0), (0, N_PAD - D_OUT))).astype(jnp.bfloat16)
    b1f = b1.astype(jnp.float32)
    b2p = jnp.pad(b2.astype(jnp.float32), ((0, 0), (0, N_PAD - D_OUT)))
    return w1b, b1f, w2b, b2p


def prob2a_forward(x_nchw, prepared_params):
    """x_nchw: (B, 3, 32, 32) f32.  prepared_params from prepare_params().
    Returns (B, 10) f32."""
    w1b, b1f, w2b, b2p = prepared_params

    B = x_nchw.shape[0]
    x = x_nchw.reshape(B, -1)          # == torch.flatten(x, 1) (row-major NCHW)
    assert x.shape[1] == D_IN

    # Balanced batch tiling: pad to sublane granularity, then split into the
    # fewest tiles <= TB_MAX with each tile a multiple of 8.  Avoids padding
    # up to a whole extra tile of ghost rows for ragged batch sizes.
    B8 = max(8, _round_up(B, 8))
    n_tiles = _cdiv(B8, TB_MAX)
    TB = _round_up(_cdiv(B8, n_tiles), 8)
    Bp = TB * n_tiles
    if Bp != B:
        x = jnp.pad(x, ((0, Bp - B), (0, 0)))

    flops = 2 * Bp * D_IN * D_HID + 2 * Bp * D_HID * N_PAD
    bytes_accessed = (Bp * D_IN * 4                 # x (f32, read once)
                      + w1b.size * 2 + w2b.size * 2  # bf16 weights
                      + b1f.size * 4 + b2p.size * 4  # f32 biases
                      + Bp * N_PAD * 4)              # padded f32 output

    vmem_limit = (48 if TB >= 512 else 32) * 1024 * 1024

    def run(single_buffer_weights):
        return pl.pallas_call(
            _mlp_kernel,
            out_shape=jax.ShapeDtypeStruct((Bp, N_PAD), jnp.float32),
            grid=(n_tiles,),
            in_specs=[
                pl.BlockSpec((TB, D_IN), lambda i: (i, 0)),   # x: batch-tiled
                _const_spec((D_IN, D_HID), single_buffer_weights),   # w1
                _const_spec((1, D_HID), single_buffer_weights),       # b1
                _const_spec((D_HID, N_PAD), single_buffer_weights),   # w2
                _const_spec((1, N_PAD), single_buffer_weights),       # b2
            ],
            out_specs=pl.BlockSpec((TB, N_PAD), lambda i: (i, 0)),
            compiler_params=pltpu.CompilerParams(
                dimension_semantics=("parallel",),
                vmem_limit_bytes=vmem_limit,
            ),
            cost_estimate=pl.CostEstimate(
                flops=flops, transcendentals=0,
                bytes_accessed=bytes_accessed),
        )(x, w1b, b1f, w2b, b2p)

    try:
        out = run(single_buffer_weights=True)
    except Exception:
        # pl.Buffered(1) not supported by this JAX/Mosaic build: fall back to
        # the default double-buffered weight specs (functionally identical).
        out = run(single_buffer_weights=False)

    # Strip batch padding and the zero-padded output columns.
    return out[:B, :D_OUT]


def init_params(key):
    """Deterministic init mimicking nn.Linear default (uniform +/- 1/sqrt(fan_in))."""
    k1, k2, k3, k4 = jax.random.split(key, 4)
    bound1 = 1.0 / jnp.sqrt(float(D_IN))
    bound2 = 1.0 / jnp.sqrt(float(D_HID))
    w1 = jax.random.uniform(k1, (D_IN, D_HID), jnp.float32, -bound1, bound1)
    b1 = jax.random.uniform(k2, (1, D_HID), jnp.float32, -bound1, bound1)
    w2 = jax.random.uniform(k3, (D_HID, D_OUT), jnp.float32, -bound2, bound2)
    b2 = jax.random.uniform(k4, (1, D_OUT), jnp.float32, -bound2, bound2)
    return w1, b1, w2, b2


if __name__ == "__main__":
    key = jax.random.PRNGKey(0)
    k_x, k_p = jax.random.split(key)

    # CIFAR-like input: batch=2, NCHW (2, 3, 32, 32) -> 3072 flattened features.
    x = jax.random.normal(k_x, (2, 3, 32, 32), jnp.float32)
    w1, b1, w2, b2 = init_params(k_p)

    # One-time weight prep (bf16 cast + fc2 padding) -- NOT in the per-call path.
    prepared = prepare_params(w1, b1, w2, b2)

    out = prob2a_forward(x, prepared)
    out = jax.block_until_ready(out)

    # Pure-JAX f32 reference.  Tolerance loosened because the kernel feeds the
    # MXU in bf16 (f32 accumulation).
    xf = x.reshape(2, -1)
    ref = jnp.maximum(jnp.maximum(xf @ w1 + b1, 0.0) @ w2 + b2, 0.0)
    assert out.shape == (2, 10)
    max_err = float(jnp.max(jnp.abs(out - ref)))
    assert jnp.allclose(out, ref, atol=5e-2, rtol=5e-2), (
        "max abs err: %f" % max_err)

    print("KERNEL_OK")
</pallas_src>

<mosaic_0001>
module attributes {stable_mosaic.version = 11 : i64} {
  func.func @_mlp_kernel(%arg0: i32, %arg1: memref<8x3072xf32, #tpu.memory_space<vmem>>, %arg2: memref<3072x512xbf16, #tpu.memory_space<vmem>>, %arg3: memref<1x512xf32, #tpu.memory_space<vmem>>, %arg4: memref<512x128xbf16, #tpu.memory_space<vmem>>, %arg5: memref<1x128xf32, #tpu.memory_space<vmem>>, %arg6: memref<8x128xf32, #tpu.memory_space<vmem>>) attributes {dimension_semantics = [#tpu.dimension_semantics<parallel>], iteration_bounds = array<i64: 1>, scalar_prefetch = 0 : i64, scratch_operands = 0 : i64, tpu.core_type = #tpu.core_type<tc>, window_params = [{transform_indices = @transform_0, window_bounds = array<i64: 8, 3072>}, {pipeline_mode = #tpu.pipeline_mode<synchronous>, transform_indices = @transform_1, window_bounds = array<i64: 3072, 512>}, {pipeline_mode = #tpu.pipeline_mode<synchronous>, transform_indices = @transform_2, window_bounds = array<i64: 1, 512>}, {pipeline_mode = #tpu.pipeline_mode<synchronous>, transform_indices = @transform_3, window_bounds = array<i64: 512, 128>}, {pipeline_mode = #tpu.pipeline_mode<synchronous>, transform_indices = @transform_4, window_bounds = array<i64: 1, 128>}, {transform_indices = @transform_5, window_bounds = array<i64: 8, 128>}]} {
    %c0 = arith.constant 0 : index
    %c0_0 = arith.constant 0 : index
    %0 = vector.load %arg1[%c0, %c0_0] : memref<8x3072xf32, #tpu.memory_space<vmem>>, vector<8x3072xf32>
    %1 = arith.truncf %0 : vector<8x3072xf32> to vector<8x3072xbf16>
    %c0_1 = arith.constant 0 : index
    %c0_2 = arith.constant 0 : index
    %2 = vector.load %arg2[%c0_1, %c0_2] : memref<3072x512xbf16, #tpu.memory_space<vmem>>, vector<3072x512xbf16>
    %cst = arith.constant dense<0.000000e+00> : vector<8x512xf32>
    %3 = tpu.matmul %1, %2, %cst {dimension_numbers = #tpu.dot_dimension_numbers<[1], [0], [0], [1], [0, 0, 1, 1], [], []>} : vector<8x3072xbf16>, vector<3072x512xbf16>, vector<8x512xf32> -> vector<8x512xf32>
    %c0_3 = arith.constant 0 : index
    %c0_4 = arith.constant 0 : index
    %4 = vector.load %arg3[%c0_3, %c0_4] : memref<1x512xf32, #tpu.memory_space<vmem>>, vector<1x512xf32>
    %5 = vector.broadcast %4 : vector<1x512xf32> to vector<8x512xf32>
    %6 = arith.addf %3, %5 : vector<8x512xf32>
    %cst_5 = arith.constant 0.000000e+00 : f32
    %7 = vector.broadcast %cst_5 : f32 to vector<8x512xf32>
    %8 = arith.maximumf %6, %7 : vector<8x512xf32>
    %9 = arith.truncf %8 : vector<8x512xf32> to vector<8x512xbf16>
    %c0_6 = arith.constant 0 : index
    %c0_7 = arith.constant 0 : index
    %10 = vector.load %arg4[%c0_6, %c0_7] : memref<512x128xbf16, #tpu.memory_space<vmem>>, vector<512x128xbf16>
    %cst_8 = arith.constant dense<0.000000e+00> : vector<8x128xf32>
    %11 = tpu.matmul %9, %10, %cst_8 {dimension_numbers = #tpu.dot_dimension_numbers<[1], [0], [0], [1], [0, 0, 1, 1], [], []>} : vector<8x512xbf16>, vector<512x128xbf16>, vector<8x128xf32> -> vector<8x128xf32>
    %c0_9 = arith.constant 0 : index
    %c0_10 = arith.constant 0 : index
    %12 = vector.load %arg5[%c0_9, %c0_10] : memref<1x128xf32, #tpu.memory_space<vmem>>, vector<1x128xf32>
    %13 = vector.broadcast %12 : vector<1x128xf32> to vector<8x128xf32>
    %14 = arith.addf %11, %13 : vector<8x128xf32>
    %cst_11 = arith.constant 0.000000e+00 : f32
    %15 = vector.broadcast %cst_11 : f32 to vector<8x128xf32>
    %16 = arith.maximumf %14, %15 : vector<8x128xf32>
    %c0_12 = arith.constant 0 : index
    %c0_13 = arith.constant 0 : index
    %17 = vector.load %arg6[%c0_12, %c0_13] : memref<8x128xf32, #tpu.memory_space<vmem>>, vector<8x128xf32>
    tpu.vector_store %arg6[%c0_12, %c0_13], %16 {strides = array<i32>} : memref<8x128xf32, #tpu.memory_space<vmem>>, vector<8x128xf32>,
    return
  }
  func.func @transform_0(%arg0: i32) -> (i32, i32) {
    %c0_i32 = arith.constant 0 : i32
    %c0_i32_0 = arith.constant 0 : i32
    return %arg0, %c0_i32 : i32, i32
  }
  func.func @transform_1(%arg0: i32) -> (i32, i32) {
    %c0_i32 = arith.constant 0 : i32
    %c0_i32_0 = arith.constant 0 : i32
    %c0_i32_1 = arith.constant 0 : i32
    return %c0_i32, %c0_i32_0 : i32, i32
  }
  func.func @transform_2(%arg0: i32) -> (i32, i32) {
    %c0_i32 = arith.constant 0 : i32
    %c0_i32_0 = arith.constant 0 : i32
    %c0_i32_1 = arith.constant 0 : i32
    return %c0_i32, %c0_i32_0 : i32, i32
  }
  func.func @transform_3(%arg0: i32) -> (i32, i32) {
    %c0_i32 = arith.constant 0 : i32
    %c0_i32_0 = arith.constant 0 : i32
    %c0_i32_1 = arith.constant 0 : i32
    return %c0_i32, %c0_i32_0 : i32, i32
  }
  func.func @transform_4(%arg0: i32) -> (i32, i32) {
    %c0_i32 = arith.constant 0 : i32
    %c0_i32_0 = arith.constant 0 : i32
    %c0_i32_1 = arith.constant 0 : i32
    return %c0_i32, %c0_i32_0 : i32, i32
  }
  func.func @transform_5(%arg0: i32) -> (i32, i32) {
    %c0_i32 = arith.constant 0 : i32
    %c0_i32_0 = arith.constant 0 : i32
    return %arg0, %c0_i32 : i32, i32
  }
}

module attributes {stable_mosaic.version = 11 : i64} {
  func.func @_mlp_kernel(%arg0: i32, %arg1: memref<8x3072xf32, #tpu.memory_space<vmem>>, %arg2: memref<3072x512xbf16, #tpu.memory_space<vmem>>, %arg3: memref<1x512xf32, #tpu.memory_space<vmem>>, %arg4: memref<512x128xbf16, #tpu.memory_space<vmem>>, %arg5: memref<1x128xf32, #tpu.memory_space<vmem>>, %arg6: memref<8x128xf32, #tpu.memory_space<vmem>>) attributes {dimension_semantics = [#tpu.dimension_semantics<parallel>], iteration_bounds = array<i64: 1>, scalar_prefetch = 0 : i64, scratch_operands = 0 : i64, tpu.core_type = #tpu.core_type<tc>, window_params = [{transform_indices = @transform_0, window_bounds = array<i64: 8, 3072>}, {pipeline_mode = #tpu.pipeline_mode<synchronous>, transform_indices = @transform_1, window_bounds = array<i64: 3072, 512>}, {pipeline_mode = #tpu.pipeline_mode<synchronous>, transform_indices = @transform_2, window_bounds = array<i64: 1, 512>}, {pipeline_mode = #tpu.pipeline_mode<synchronous>, transform_indices = @transform_3, window_bounds = array<i64: 512, 128>}, {pipeline_mode = #tpu.pipeline_mode<synchronous>, transform_indices = @transform_4, window_bounds = array<i64: 1, 128>}, {transform_indices = @transform_5, window_bounds = array<i64: 8, 128>}]} {
    %c0 = arith.constant 0 : index
    %c0_0 = arith.constant 0 : index
    %0 = vector.load %arg1[%c0, %c0_0] : memref<8x3072xf32, #tpu.memory_space<vmem>>, vector<8x3072xf32>
    %1 = arith.truncf %0 : vector<8x3072xf32> to vector<8x3072xbf16>
    %c0_1 = arith.constant 0 : index
    %c0_2 = arith.constant 0 : index
    %2 = vector.load %arg2[%c0_1, %c0_2] : memref<3072x512xbf16, #tpu.memory_space<vmem>>, vector<3072x512xbf16>
    %cst = arith.constant dense<0.000000e+00> : vector<8x512xf32>
    %3 = tpu.matmul %1, %2, %cst {dimension_numbers = #tpu.dot_dimension_numbers<[1], [0], [0], [1], [0, 0, 1, 1], [], []>} : vector<8x3072xbf16>, vector<3072x512xbf16>, vector<8x512xf32> -> vector<8x512xf32>
    %c0_3 = arith.constant 0 : index
    %c0_4 = arith.constant 0 : index
    %4 = vector.load %arg3[%c0_3, %c0_4] : memref<1x512xf32, #tpu.memory_space<vmem>>, vector<1x512xf32>
    %5 = vector.broadcast %4 : vector<1x512xf32> to vector<8x512xf32>
    %6 = arith.addf %3, %5 : vector<8x512xf32>
    %cst_5 = arith.constant 0.000000e+00 : f32
    %7 = vector.broadcast %cst_5 : f32 to vector<8x512xf32>
    %8 = arith.maximumf %6, %7 : vector<8x512xf32>
    %9 = arith.truncf %8 : vector<8x512xf32> to vector<8x512xbf16>
    %c0_6 = arith.constant 0 : index
    %c0_7 = arith.constant 0 : index
    %10 = vector.load %arg4[%c0_6, %c0_7] : memref<512x128xbf16, #tpu.memory_space<vmem>>, vector<512x128xbf16>
    %cst_8 = arith.constant dense<0.000000e+00> : vector<8x128xf32>
    %11 = tpu.matmul %9, %10, %cst_8 {dimension_numbers = #tpu.dot_dimension_numbers<[1], [0], [0], [1], [0, 0, 1, 1], [], []>} : vector<8x512xbf16>, vector<512x128xbf16>, vector<8x128xf32> -> vector<8x128xf32>
    %c0_9 = arith.constant 0 : index
    %c0_10 = arith.constant 0 : index
    %12 = vector.load %arg5[%c0_9, %c0_10] : memref<1x128xf32, #tpu.memory_space<vmem>>, vector<1x128xf32>
    %13 = vector.broadcast %12 : vector<1x128xf32> to vector<8x128xf32>
    %14 = arith.addf %11, %13 : vector<8x128xf32>
    %cst_11 = arith.constant 0.000000e+00 : f32
    %15 = vector.broadcast %cst_11 : f32 to vector<8x128xf32>
    %16 = arith.maximumf %14, %15 : vector<8x128xf32>
    %c0_12 = arith.constant 0 : index
    %c0_13 = arith.constant 0 : index
    %17 = vector.load %arg6[%c0_12, %c0_13] : memref<8x128xf32, #tpu.memory_space<vmem>>, vector<8x128xf32>
    tpu.vector_store %arg6[%c0_12, %c0_13], %16 {strides = array<i32>} : memref<8x128xf32, #tpu.memory_space<vmem>>, vector<8x128xf32>,
    return
  }
  func.func @transform_0(%arg0: i32) -> (i32, i32) {
    %c0_i32 = arith.constant 0 : i32
    %c0_i32_0 = arith.constant 0 : i32
    return %arg0, %c0_i32 : i32, i32
  }
  func.func @transform_1(%arg0: i32) -> (i32, i32) {
    %c0_i32 = arith.constant 0 : i32
    %c0_i32_0 = arith.constant 0 : i32
    %c0_i32_1 = arith.constant 0 : i32
    return %c0_i32, %c0_i32_0 : i32, i32
  }
  func.func @transform_2(%arg0: i32) -> (i32, i32) {
    %c0_i32 = arith.constant 0 : i32
    %c0_i32_0 = arith.constant 0 : i32
    %c0_i32_1 = arith.constant 0 : i32
    return %c0_i32, %c0_i32_0 : i32, i32
  }
  func.func @transform_3(%arg0: i32) -> (i32, i32) {
    %c0_i32 = arith.constant 0 : i32
    %c0_i32_0 = arith.constant 0 : i32
    %c0_i32_1 = arith.constant 0 : i32
    return %c0_i32, %c0_i32_0 : i32, i32
  }
  func.func @transform_4(%arg0: i32) -> (i32, i32) {
    %c0_i32 = arith.constant 0 : i32
    %c0_i32_0 = arith.constant 0 : i32
    %c0_i32_1 = arith.constant 0 : i32
    return %c0_i32, %c0_i32_0 : i32, i32
  }
  func.func @transform_5(%arg0: i32) -> (i32, i32) {
    %c0_i32 = arith.constant 0 : i32
    %c0_i32_0 = arith.constant 0 : i32
    return %arg0, %c0_i32 : i32, i32
  }
}

</mosaic_0001>

<bundles_post_ra>
// kernel: tpu_custom_call.1
= control target key start
LH: loop header
LB: loop body
LE: loop exit
PB: predicated region body
PF: predicated region fallthrough
CT: control target
= control target key end

     0   :  { %10 = vsyncpa [#allocation3], 0  ;;  %s8499_s0 = inlined_call_operand.hbm [shape: f32[8,3072], index: 0, kind: input, shape index: {}]   ;;  %s8500_s1 = inlined_call_operand.hbm [shape: bf16[3072,512], index: 1, kind: input, shape index: {}]   ;;  %s8501_s2 = inlined_call_operand.hbm [shape: f32[1,512], index: 2, kind: input, shape index: {}]   ;;  %s8502_s3 = inlined_call_operand.hbm [shape: bf16[512,128], index: 3, kind: input, shape index: {}]   ;;  %s8503_s4 = inlined_call_operand.hbm [shape: f32[1,128], index: 4, kind: input, shape index: {}]   ;;  %s8504_s5 = inlined_call_operand.hbm [shape: f32[8,128], index: 5, kind: output, shape index: {}]  }
   0x1   :  { %11 = vsyncpa [#allocation6], 0 }
   0x2   :  { %12 = vsyncpa [#allocation9], 0 }
   0x3   :  { %13 = vsyncpa [#allocation4], 0  ;;  %s8387_s18 = smov [#allocation5]   ;;  %s8247_s22 = scalar_lea.hbm %s8500_s1, 98304 }
   0x4   :  { %s29_s19 = sshll.u32 %s8387_s18, 4  ;;  %p8248_p0 = scmp.ne.s32.totalorder %s8500_s1, %s8247_s22  ;;  %s30_s19 = int_to_ptr.vmem [resolvable:$true] %s29_s19 }
   0x5   :  { %p8251_p1 = scmp.lt.u32.totalorder %s8247_s22, %s8500_s1 }
   0x7   :  { %p8253_p2 = pnand %p8251_p1, %p8248_p0 }
   0x9   :  { %8256 = shalt.err (!%p8253_p2)
}
   0xa   :  { %s8257_s27 = scalar_lea.vmem %s30_s19, 98304  ;;  %p8262_p4 = scmp.lt.s32.totalorder %s30_s19, %s30_s19 }
   0xb   :  { %p8258_p3 = scmp.ne.s32.totalorder %s30_s19, %s8257_s27  ;;  %p8263_p5 = scmp.lt.s32.totalorder %s8257_s27, %s8257_s27 }
   0xd   :  { %p8264_p6 = por %p8263_p5, %p8262_p4 }
   0xf   :  { %p8265_p7 = pnand %p8264_p6, %p8258_p3 }
  0x11   :  { %8268 = shalt.err (!%p8265_p7)
}
  0x12   :  { %s8388_s28 = smov 256   ;;  %s8389_s29 = smov 16  }
  0x13   :  { %35 = dma.hbm_to_vmem [thread:$0]  %s8500_s1, 98304, %s30_s19, [#allocation6], %s8388_s28, %s8388_s28, %s8389_s29  }
  0x14   :  { %s8390_s7 = smov [#allocation8]   ;;  %s8269_s11 = scalar_lea.hbm %s8502_s3, 4096 }
  0x15   :  { %s51_s8 = sshll.u32 %s8390_s7, 4  ;;  %p8270_p8 = scmp.ne.s32.totalorder %s8502_s3, %s8269_s11  ;;  %s52_s8 = int_to_ptr.vmem [resolvable:$true] %s51_s8 }
  0x16   :  { %p8273_p9 = scmp.lt.u32.totalorder %s8269_s11, %s8502_s3 }
  0x18   :  { %p8275_p10 = pnand %p8273_p9, %p8270_p8 }
  0x1a   :  { %8278 = shalt.err (!%p8275_p10)
}
  0x1b   :  { %s8279_s16 = scalar_lea.vmem %s52_s8, 4096  ;;  %p8284_p12 = scmp.lt.s32.totalorder %s52_s8, %s52_s8 }
  0x1c   :  { %p8280_p11 = scmp.ne.s32.totalorder %s52_s8, %s8279_s16  ;;  %p8285_p13 = scmp.lt.s32.totalorder %s8279_s16, %s8279_s16 }
  0x1e   :  { %p8286_p0 = por %p8285_p13, %p8284_p12 }
  0x20   :  { %p8287_p1 = pnand %p8286_p0, %p8280_p11 }
  0x22   :  { %8290 = shalt.err (!%p8287_p1)
}
  0x23   :  { %s8391_s1 = smov 64   ;;  %s8392_s17 = smov 4  }
  0x24   :  { %57 = dma.hbm_to_vmem [thread:$0]  %s8502_s3, 4096, %s52_s8, [#allocation9], %s8391_s1, %s8391_s1, %s8392_s17  }
  0x25   :  { %s8393_s20 = smov [#allocation2]   ;;  %s8394_s22 = smov [#allocation7]  }
  0x26   :  { %s20_s21 = sshll.u32 %s8393_s20, 4  ;;  %s42_s23 = sshll.u32 %s8394_s22, 4  ;;  %s21_s21 = int_to_ptr.vmem [resolvable:$true] %s20_s21  ;;  %s43_s23 = int_to_ptr.vmem [resolvable:$true] %s42_s23 }
  0x27   :  { %s8291_s26 = scalar_lea.hbm %s8499_s0, 3072 }
  0x28   :  { %p8292_p2 = scmp.ne.s32.totalorder %s8499_s0, %s8291_s26  ;;  %p8295_p3 = scmp.lt.u32.totalorder %s8291_s26, %s8499_s0 }
  0x2a   :  { %p8297_p4 = pnand %p8295_p3, %p8292_p2 }
  0x2c   :  { %8300 = shalt.err (!%p8297_p4)
}
  0x2d   :  { %s8301_s3 = scalar_lea.vmem %s21_s21, 3072  ;;  %p8306_p6 = scmp.lt.s32.totalorder %s21_s21, %s21_s21 }
  0x2e   :  { %p8302_p5 = scmp.ne.s32.totalorder %s21_s21, %s8301_s3  ;;  %p8307_p7 = scmp.lt.s32.totalorder %s8301_s3, %s8301_s3 }
  0x30   :  { %p8308_p8 = por %p8307_p7, %p8306_p6 }
  0x32   :  { %p8309_p9 = pnand %p8308_p8, %p8302_p5 }
  0x34   :  { %8312 = shalt.err (!%p8309_p9)
}
  0x35   :  { %23 = dma.hbm_to_vmem [thread:$0]  %s8499_s0, 3072, %s21_s21, [#allocation3]  }
  0x36   :  { %s8313_s10 = scalar_lea.hbm %s8501_s2, 64 }
  0x37   :  { %p8314_p10 = scmp.ne.s32.totalorder %s8501_s2, %s8313_s10  ;;  %p8317_p11 = scmp.lt.u32.totalorder %s8313_s10, %s8501_s2 }
  0x39   :  { %p8319_p12 = pnand %p8317_p11, %p8314_p10 }
  0x3b   :  { %8322 = shalt.err (!%p8319_p12)
}
  0x3c   :  { %s8323_s15 = scalar_lea.vmem %s43_s23, 64  ;;  %p8328_p0 = scmp.lt.s32.totalorder %s43_s23, %s43_s23 }
  0x3d   :  { %p8324_p13 = scmp.ne.s32.totalorder %s43_s23, %s8323_s15  ;;  %p8329_p1 = scmp.lt.s32.totalorder %s8323_s15, %s8323_s15 }
  0x3f   :  { %p8330_p2 = por %p8329_p1, %p8328_p0 }
  0x41   :  { %p8331_p3 = pnand %p8330_p2, %p8324_p13 }
  0x43   :  { %8334 = shalt.err (!%p8331_p3)
}
  0x44   :  { %45 = dma.hbm_to_vmem [thread:$0]  %s8501_s2, 64, %s43_s23, [#allocation6]  }
  0x45   :  { %s8395_s1 = smov [#allocation10]   ;;  %s8335_s20 = scalar_lea.hbm %s8503_s4, 16 }
  0x46   :  { %s64_s17 = sshll.u32 %s8395_s1, 4  ;;  %p8336_p4 = scmp.ne.s32.totalorder %s8503_s4, %s8335_s20  ;;  %s65_s17 = int_to_ptr.vmem [resolvable:$true] %s64_s17 }
  0x47   :  { %p8339_p5 = scmp.lt.u32.totalorder %s8335_s20, %s8503_s4 }
  0x49   :  { %p8341_p6 = pnand %p8339_p5, %p8336_p4 }
  0x4b   :  { %8344 = shalt.err (!%p8341_p6)
}
  0x4c   :  { %s8345_s26 = scalar_lea.vmem %s65_s17, 16  ;;  %s8349_s2 = scalar_lea.vmem %s65_s17, 32 }
  0x4d   :  { %p8346_p7 = scmp.ne.s32.totalorder %s65_s17, %s8345_s26  ;;  %p8350_p8 = scmp.lt.s32.totalorder %s65_s17, %s65_s17 }
  0x4e   :  { %p8351_p9 = scmp.lt.s32.totalorder %s8349_s2, %s8345_s26 }
  0x50   :  { %p8352_p10 = por %p8351_p9, %p8350_p8 }
  0x52   :  { %p8353_p11 = pnand %p8352_p10, %p8346_p7 }
  0x54   :  { %8356 = shalt.err (!%p8353_p11)
}
  0x55   :  { %67 = dma.hbm_to_vmem [thread:$0]  %s8503_s4, 16, %s65_s17, [#allocation9]  }
  0x56   :  { %8379 = dma.done.wait [#allocation3], 3072  }
  0x57   :  { %8380 = vsyncadd [#allocation3], 4294964224 }
  0x58   :  { %8381 = dma.done.wait [#allocation6], 98368  }
  0x59   :  { %8382 = vsyncadd [#allocation6], 4294868928 }
  0x5a   :  { %8383 = dma.done.wait [#allocation9], 4112  }
  0x5b   :  { %8384 = vsyncadd [#allocation9], 4294963184  ;;  %v7063_v0 = vld [vmem:[#allocation5 + $0x4] ss:$16 sps:$4 sm:$0xff]   ;;  %v7065_v1 = vld [vmem:[#allocation5 + $0xc] ss:$16 sps:$4 sm:$0xff]  }
  0x5c   :  { %4762 = vmatprep.subr.bf16.mxu0 %v7063_v0  ;;  %v7067_v2 = vld [vmem:[#allocation5] ss:$16 sps:$4 sm:$0xff]   ;;  %v7068_v3 = vld [vmem:[#allocation5 + $0x8] ss:$16 sps:$4 sm:$0xff]   ;;  %5254 = vmatprep.subr.bf16.mxu1 %v7065_v1  ;;  %v7069_v4 = vld [vmem:[#allocation5 + $0x24] ss:$16 sps:$4 sm:$0xff]  }
  0x5d   :  { %4763 = vmatpush1.bf16.msra.mxu0 %v7067_v2  ;;  %5255 = vmatpush1.bf16.msra.mxu1 %v7068_v3  ;;  %v7071_v5 = vld [vmem:[#allocation5 + $0x2c] ss:$16 sps:$4 sm:$0xff]   ;;  %v7073_v6 = vld [vmem:[#allocation5 + $0x20] ss:$16 sps:$4 sm:$0xff]   ;;  %v7074_v7 = vld [vmem:[#allocation5 + $0x28] ss:$16 sps:$4 sm:$0xff]  }
  0x5e   :  { %4764 = vmatprep.subr.bf16.mxu0 %v7069_v4  ;;  %5256 = vmatprep.subr.bf16.mxu1 %v7071_v5  ;;  %v7075_v8 = vld [vmem:[#allocation5 + $0x44] ss:$16 sps:$4 sm:$0xff]   ;;  %v7077_v9 = vld [vmem:[#allocation5 + $0x4c] ss:$16 sps:$4 sm:$0xff]   ;;  %v7079_v10 = vld [vmem:[#allocation5 + $0x40] ss:$16 sps:$4 sm:$0xff]  }
  0x5f   :  { %v7080_v11 = vld [vmem:[#allocation5 + $0x48] ss:$16 sps:$4 sm:$0xff]   ;;  %v7081_v12 = vld [vmem:[#allocation5 + $0x64] ss:$16 sps:$4 sm:$0xff]   ;;  %v7083_v13 = vld [vmem:[#allocation5 + $0x6c] ss:$16 sps:$4 sm:$0xff]  }
  0x60   :  { %v7085_v14 = vld [vmem:[#allocation5 + $0x60] ss:$16 sps:$4 sm:$0xff]   ;;  %v7086_v15 = vld [vmem:[#allocation5 + $0x68] ss:$16 sps:$4 sm:$0xff]   ;;  %v7087_v16 = vld [vmem:[#allocation5 + $0x84] ss:$16 sps:$4 sm:$0xff]  }
  0x61   :  { %4765 = vmatpush1.bf16.msra.mxu0 %v7073_v6  ;;  %5257 = vmatpush1.bf16.msra.mxu1 %v7074_v7  ;;  %v7089_v17 = vld [vmem:[#allocation5 + $0x8c] ss:$16 sps:$4 sm:$0xff]   ;;  %v7091_v18 = vld [vmem:[#allocation5 + $0x80] ss:$16 sps:$4 sm:$0xff]   ;;  %v7092_v19 = vld [vmem:[#allocation5 + $0x88] ss:$16 sps:$4 sm:$0xff]  }
  0x62   :  { %4766 = vmatprep.subr.bf16.mxu0 %v7075_v8  ;;  %5258 = vmatprep.subr.bf16.mxu1 %v7077_v9  ;;  %v7093_v20 = vld [vmem:[#allocation5 + $0xa4] ss:$16 sps:$4 sm:$0xff]   ;;  %v7095_v21 = vld [vmem:[#allocation5 + $0xac] ss:$16 sps:$4 sm:$0xff]   ;;  %v7097_v22 = vld [vmem:[#allocation5 + $0xa0] ss:$16 sps:$4 sm:$0xff]  }
  0x63   :  { %v7098_v23 = vld [vmem:[#allocation5 + $0xa8] ss:$16 sps:$4 sm:$0xff]   ;;  %v7099_v24 = vld [vmem:[#allocation5 + $0xc4] ss:$16 sps:$4 sm:$0xff]   ;;  %v7101_v25 = vld [vmem:[#allocation5 + $0xcc] ss:$16 sps:$4 sm:$0xff]  }
  0x64   :  { %v7103_v26 = vld [vmem:[#allocation5 + $0xc0] ss:$16 sps:$4 sm:$0xff]   ;;  %v7104_v27 = vld [vmem:[#allocation5 + $0xc8] ss:$16 sps:$4 sm:$0xff]   ;;  %v7105_v28 = vld [vmem:[#allocation5 + $0xe4] ss:$16 sps:$4 sm:$0xff]  }
  0x65   :  { %4767 = vmatpush1.bf16.msra.mxu0 %v7079_v10  ;;  %5259 = vmatpush1.bf16.msra.mxu1 %v7080_v11  ;;  %v7107_v29 = vld [vmem:[#allocation5 + $0xec] ss:$16 sps:$4 sm:$0xff]   ;;  %v7109_v30 = vld [vmem:[#allocation5 + $0xe0] ss:$16 sps:$4 sm:$0xff]   ;;  %v7110_v31 = vld [vmem:[#allocation5 + $0xe8] ss:$16 sps:$4 sm:$0xff]  }
  0x66   :  { %4768 = vmatprep.subr.bf16.mxu0 %v7081_v12  ;;  %5260 = vmatprep.subr.bf16.mxu1 %v7083_v13  ;;  %v7111_v32 = vld [vmem:[#allocation5 + $0x104] ss:$16 sps:$4 sm:$0xff]   ;;  %v7113_v33 = vld [vmem:[#allocation5 + $0x10c] ss:$16 sps:$4 sm:$0xff]   ;;  %v7115_v34 = vld [vmem:[#allocation5 + $0x100] ss:$16 sps:$4 sm:$0xff]  }
  0x67   :  { %v7116_v35 = vld [vmem:[#allocation5 + $0x108] ss:$16 sps:$4 sm:$0xff]   ;;  %v7117_v36 = vld [vmem:[#allocation5 + $0x124] ss:$16 sps:$4 sm:$0xff]   ;;  %v7119_v37 = vld [vmem:[#allocation5 + $0x12c] ss:$16 sps:$4 sm:$0xff]  }
  0x68   :  { %v7121_v38 = vld [vmem:[#allocation5 + $0x120] ss:$16 sps:$4 sm:$0xff]   ;;  %v7122_v39 = vld [vmem:[#allocation5 + $0x128] ss:$16 sps:$4 sm:$0xff]   ;;  %v7123_v40 = vld [vmem:[#allocation5 + $0x144] ss:$16 sps:$4 sm:$0xff]  }
  0x69   :  { %4769 = vmatpush1.bf16.msra.mxu0 %v7085_v14  ;;  %5261 = vmatpush1.bf16.msra.mxu1 %v7086_v15  ;;  %v7125_v41 = vld [vmem:[#allocation5 + $0x14c] ss:$16 sps:$4 sm:$0xff]   ;;  %v7127_v42 = vld [vmem:[#allocation5 + $0x140] ss:$16 sps:$4 sm:$0xff]   ;;  %v7128_v43 = vld [vmem:[#allocation5 + $0x148] ss:$16 sps:$4 sm:$0xff]  }
  0x6a   :  { %4770 = vmatprep.subr.bf16.mxu0 %v7087_v16  ;;  %5262 = vmatprep.subr.bf16.mxu1 %v7089_v17  ;;  %v7129_v44 = vld [vmem:[#allocation5 + $0x164] ss:$16 sps:$4 sm:$0xff]   ;;  %v7131_v45 = vld [vmem:[#allocation5 + $0x16c] ss:$16 sps:$4 sm:$0xff]   ;;  %v7133_v47 = vld [vmem:[#allocation5 + $0x160] ss:$16 sps:$4 sm:$0xff]  }
  0x6b   :  { %v85_v46 = vld [vmem:[#allocation2 + $0x8] sm:$0xff]  ;;  %v7135_v50 = vld [vmem:[#allocation5 + $0x184] ss:$16 sps:$4 sm:$0xff]   ;;  %v7139_v52 = vld [vmem:[#allocation5 + $0x180] ss:$16 sps:$4 sm:$0xff]   ;;  %s8396_s4 = smov [#allocation11]  }
  0x6c   :  { %v109_v48 = vpack.c.bf16 %v85_v46, %v85_v46  ;;  %v7134_v49 = vld [vmem:[#allocation5 + $0x168] ss:$16 sps:$4 sm:$0xff]   ;;  %v7137_v51 = vld [vmem:[#allocation5 + $0x18c] ss:$16 sps:$4 sm:$0xff]   ;;  %v7141_v54 = vld [vmem:[#allocation5 + $0x1a4] ss:$16 sps:$4 sm:$0xff]  }
  0x6d   :  { %4771 = vmatpush1.bf16.msra.mxu0 %v7091_v18  ;;  %5263 = vmatpush1.bf16.msra.mxu1 %v7092_v19  ;;  %v7140_v53 = vld [vmem:[#allocation5 + $0x188] ss:$16 sps:$4 sm:$0xff]   ;;  %v7143_v55 = vld [vmem:[#allocation5 + $0x1ac] ss:$16 sps:$4 sm:$0xff]   ;;  %v7145_v56 = vld [vmem:[#allocation5 + $0x1a0] ss:$16 sps:$4 sm:$0xff]  }
  0x6e   :  { %4772 = vmatprep.subr.bf16.mxu0 %v7093_v20  ;;  %5264 = vmatprep.subr.bf16.mxu1 %v7095_v21  ;;  %v7146_v57 = vld [vmem:[#allocation5 + $0x1a8] ss:$16 sps:$4 sm:$0xff]   ;;  %v7147_v58 = vld [vmem:[#allocation5 + $0x1c4] ss:$16 sps:$4 sm:$0xff]   ;;  %v7149_v59 = vld [vmem:[#allocation5 + $0x1cc] ss:$16 sps:$4 sm:$0xff]  }
  0x6f   :  { %4794 = vmatprep.mubr.bf16.mxu0 %v109_v48  ;;  %5286 = vmatprep.mubr.bf16.mxu1 %v109_v48  ;;  %v7151_v60 = vld [vmem:[#allocation5 + $0x1c0] ss:$16 sps:$4 sm:$0xff]   ;;  %v7152_v61 = vld [vmem:[#allocation5 + $0x1c8] ss:$16 sps:$4 sm:$0xff]   ;;  %v7153_v62 = vld [vmem:[#allocation5 + $0x1e4] ss:$16 sps:$4 sm:$0xff]  }
  0x70   :  { %v7155_v63 = vld [vmem:[#allocation5 + $0x1ec] ss:$16 sps:$4 sm:$0xff]   ;;  %v7157_v0 = vld [vmem:[#allocation5 + $0x1e0] ss:$16 sps:$4 sm:$0xff]   ;;  %v7158_v1 = vld [vmem:[#allocation5 + $0x1e8] ss:$16 sps:$4 sm:$0xff]  }
  0x71   :  { %4773 = vmatpush1.bf16.msra.mxu0 %v7097_v22  ;;  %5265 = vmatpush1.bf16.msra.mxu1 %v7098_v23  ;;  %v84_v2 = vld [vmem:[#allocation2] sm:$0xff]  ;;  %v7164_v4 = vld [vmem:[#allocation5 + $0x20c] ss:$16 sps:$4 sm:$0xff]   ;;  %v7162_v7 = vld [vmem:[#allocation5 + $0x208] ss:$16 sps:$4 sm:$0xff]   ;;  %s6105_s28 = sshll.u32 %s8396_s4, 4  ;;  %s6106_s28 = int_to_ptr.vmem [resolvable:$true] %s6105_s28 }
  0x72   :  { %4774 = vmatprep.subr.bf16.mxu0 %v7099_v24  ;;  %5266 = vmatprep.subr.bf16.mxu1 %v7101_v25  ;;  %v7161_v3 = vld [vmem:[#allocation5 + $0x204] ss:$16 sps:$4 sm:$0xff]   ;;  %v108_v5 = vpack.c.bf16 %v84_v2, %v84_v2  ;;  %v7159_v6 = vld [vmem:[#allocation5 + $0x200] ss:$16 sps:$4 sm:$0xff]   ;;  %v7170_v9 = vld [vmem:[#allocation5 + $0x22c] ss:$16 sps:$4 sm:$0xff]   ;;  %p8362_p13 = scmp.lt.s32.totalorder %s6106_s28, %s6106_s28 }
  0x73   :  { %v7167_v8 = vld [vmem:[#allocation5 + $0x224] ss:$16 sps:$4 sm:$0xff]   ;;  %v7165_v10 = vld [vmem:[#allocation5 + $0x220] ss:$16 sps:$4 sm:$0xff]   ;;  %v7168_v11 = vld [vmem:[#allocation5 + $0x228] ss:$16 sps:$4 sm:$0xff]  }
  0x74   :  { %v7173_v12 = vld [vmem:[#allocation5 + $0x244] ss:$16 sps:$4 sm:$0xff]   ;;  %v7176_v13 = vld [vmem:[#allocation5 + $0x24c] ss:$16 sps:$4 sm:$0xff]   ;;  %v7171_v14 = vld [vmem:[#allocation5 + $0x240] ss:$16 sps:$4 sm:$0xff]  }
  0x75   :  { %4775 = vmatpush1.bf16.msra.mxu0 %v7103_v26  ;;  %5267 = vmatpush1.bf16.msra.mxu1 %v7104_v27  ;;  %v7174_v15 = vld [vmem:[#allocation5 + $0x248] ss:$16 sps:$4 sm:$0xff]   ;;  %v7179_v16 = vld [vmem:[#allocation5 + $0x264] ss:$16 sps:$4 sm:$0xff]   ;;  %v7182_v17 = vld [vmem:[#allocation5 + $0x26c] ss:$16 sps:$4 sm:$0xff]  }
  0x76   :  { %4776 = vmatprep.subr.bf16.mxu0 %v7105_v28  ;;  %5268 = vmatprep.subr.bf16.mxu1 %v7107_v29  ;;  %v7177_v18 = vld [vmem:[#allocation5 + $0x260] ss:$16 sps:$4 sm:$0xff]   ;;  %v7180_v19 = vld [vmem:[#allocation5 + $0x268] ss:$16 sps:$4 sm:$0xff]   ;;  %v7185_v20 = vld [vmem:[#allocation5 + $0x284] ss:$16 sps:$4 sm:$0xff]  }
  0x77   :  { %v7188_v21 = vld [vmem:[#allocation5 + $0x28c] ss:$16 sps:$4 sm:$0xff]   ;;  %v7183_v22 = vld [vmem:[#allocation5 + $0x280] ss:$16 sps:$4 sm:$0xff]   ;;  %v7186_v23 = vld [vmem:[#allocation5 + $0x288] ss:$16 sps:$4 sm:$0xff]  }
  0x78   :  { %v7191_v24 = vld [vmem:[#allocation5 + $0x2a4] ss:$16 sps:$4 sm:$0xff]   ;;  %v7194_v25 = vld [vmem:[#allocation5 + $0x2ac] ss:$16 sps:$4 sm:$0xff]   ;;  %v7189_v26 = vld [vmem:[#allocation5 + $0x2a0] ss:$16 sps:$4 sm:$0xff]  }
  0x79   :  { %4777 = vmatpush1.bf16.msra.mxu0 %v7109_v30  ;;  %5269 = vmatpush1.bf16.msra.mxu1 %v7110_v31  ;;  %v7192_v27 = vld [vmem:[#allocation5 + $0x2a8] ss:$16 sps:$4 sm:$0xff]   ;;  %v7197_v28 = vld [vmem:[#allocation5 + $0x2c4] ss:$16 sps:$4 sm:$0xff]   ;;  %v7200_v29 = vld [vmem:[#allocation5 + $0x2cc] ss:$16 sps:$4 sm:$0xff]  }
  0x7a   :  { %4778 = vmatprep.subr.bf16.mxu0 %v7111_v32  ;;  %5270 = vmatprep.subr.bf16.mxu1 %v7113_v33  ;;  %v87_v30 = vld [vmem:[#allocation2 + $0x18] sm:$0xff]  ;;  %v7195_v31 = vld [vmem:[#allocation5 + $0x2c0] ss:$16 sps:$4 sm:$0xff]   ;;  %v7221_v46 = vld [vmem:[#allocation5 + $0x344] ss:$16 sps:$4 sm:$0xff]   ;;  %s8357_s29 = scalar_lea.vmem %s6106_s28, 128 }
  0x7b   :  { %v111_v32 = vpack.c.bf16 %v87_v30, %v87_v30  ;;  %v7198_v33 = vld [vmem:[#allocation5 + $0x2c8] ss:$16 sps:$4 sm:$0xff]   ;;  %v7219_v48 = vld [vmem:[#allocation5 + $0x340] ss:$16 sps:$4 sm:$0xff]   ;;  %v7251_v2 = vld [vmem:[#allocation5 + $0x3e4] ss:$16 sps:$4 sm:$0xff]   ;;  %p8358_p12 = scmp.ne.s32.totalorder %s6106_s28, %s8357_s29  ;;  %p8363_p0 = scmp.lt.s32.totalorder %s8357_s29, %s8357_s29 }
  0x7c   :  { %v7287_v30 = vld [vmem:[#allocation5 + $0x4a4] ss:$16 sps:$4 sm:$0xff]  }
  0x7d   :  { %4779 = vmatpush1.bf16.msra.mxu0 %v7115_v34  ;;  %5271 = vmatpush1.bf16.msra.mxu1 %v7116_v35  ;;  %v7203_v34 = vld [vmem:[#allocation5 + $0x2e4] ss:$16 sps:$4 sm:$0xff]   ;;  %v7206_v35 = vld [vmem:[#allocation5 + $0x2ec] ss:$16 sps:$4 sm:$0xff]   ;;  %p8364_p1 = por %p8363_p0, %p8362_p13 }
  0x7e   :  { %4780 = vmatprep.subr.bf16.mxu0 %v7117_v36  ;;  %5272 = vmatprep.subr.bf16.mxu1 %v7119_v37  ;;  %v7201_v36 = vld [vmem:[#allocation5 + $0x2e0] ss:$16 sps:$4 sm:$0xff]   ;;  %v7204_v37 = vld [vmem:[#allocation5 + $0x2e8] ss:$16 sps:$4 sm:$0xff]  }
  0x7f   :  { %p8365_p2 = pnand %p8364_p1, %p8358_p12 }
  0x81   :  { %4781 = vmatpush1.bf16.msra.mxu0 %v7121_v38  ;;  %5273 = vmatpush1.bf16.msra.mxu1 %v7122_v39  ;;  %v7209_v38 = vld [vmem:[#allocation5 + $0x304] ss:$16 sps:$4 sm:$0xff]   ;;  %v7212_v39 = vld [vmem:[#allocation5 + $0x30c] ss:$16 sps:$4 sm:$0xff]  }
  0x82   :  { %4782 = vmatprep.subr.bf16.mxu0 %v7123_v40  ;;  %5274 = vmatprep.subr.bf16.mxu1 %v7125_v41  ;;  %v7207_v40 = vld [vmem:[#allocation5 + $0x300] ss:$16 sps:$4 sm:$0xff]   ;;  %v7210_v41 = vld [vmem:[#allocation5 + $0x308] ss:$16 sps:$4 sm:$0xff]  }
  0x85   :  { %4783 = vmatpush1.bf16.msra.mxu0 %v7127_v42  ;;  %5275 = vmatpush1.bf16.msra.mxu1 %v7128_v43  ;;  %v7215_v42 = vld [vmem:[#allocation5 + $0x324] ss:$16 sps:$4 sm:$0xff]   ;;  %v7218_v43 = vld [vmem:[#allocation5 + $0x32c] ss:$16 sps:$4 sm:$0xff]  }
  0x86   :  { %4784 = vmatprep.subr.bf16.mxu0 %v7129_v44  ;;  %5276 = vmatprep.subr.bf16.mxu1 %v7131_v45  ;;  %v7213_v44 = vld [vmem:[#allocation5 + $0x320] ss:$16 sps:$4 sm:$0xff]   ;;  %v7216_v45 = vld [vmem:[#allocation5 + $0x328] ss:$16 sps:$4 sm:$0xff]  }
  0x89   :  { %4785 = vmatpush1.bf16.msra.mxu0 %v7133_v47  ;;  %5277 = vmatpush1.bf16.msra.mxu1 %v7134_v49  ;;  %v7224_v47 = vld [vmem:[#allocation5 + $0x34c] ss:$16 sps:$4 sm:$0xff]   ;;  %v7222_v49 = vld [vmem:[#allocation5 + $0x348] ss:$16 sps:$4 sm:$0xff]  }
  0x8a   :  { %4786 = vmatprep.subr.bf16.mxu0 %v7135_v50  ;;  %5278 = vmatprep.subr.bf16.mxu1 %v7137_v51  ;;  %v7227_v50 = vld [vmem:[#allocation5 + $0x364] ss:$16 sps:$4 sm:$0xff]   ;;  %v7230_v51 = vld [vmem:[#allocation5 + $0x36c] ss:$16 sps:$4 sm:$0xff]  }
  0x8d   :  { %4787 = vmatpush1.bf16.msra.mxu0 %v7139_v52  ;;  %5279 = vmatpush1.bf16.msra.mxu1 %v7140_v53  ;;  %v7225_v52 = vld [vmem:[#allocation5 + $0x360] ss:$16 sps:$4 sm:$0xff]   ;;  %v7228_v53 = vld [vmem:[#allocation5 + $0x368] ss:$16 sps:$4 sm:$0xff]  }
  0x8e   :  { %4788 = vmatprep.subr.bf16.mxu0 %v7141_v54  ;;  %5280 = vmatprep.subr.bf16.mxu1 %v7143_v55  ;;  %v7233_v54 = vld [vmem:[#allocation5 + $0x384] ss:$16 sps:$4 sm:$0xff]   ;;  %v7236_v55 = vld [vmem:[#allocation5 + $0x38c] ss:$16 sps:$4 sm:$0xff]  }
  0x91   :  { %4789 = vmatpush1.bf16.msra.mxu0 %v7145_v56  ;;  %5281 = vmatpush1.bf16.msra.mxu1 %v7146_v57  ;;  %v7231_v56 = vld [vmem:[#allocation5 + $0x380] ss:$16 sps:$4 sm:$0xff]   ;;  %v7234_v57 = vld [vmem:[#allocation5 + $0x388] ss:$16 sps:$4 sm:$0xff]  }
  0x92   :  { %4790 = vmatprep.subr.bf16.mxu0 %v7147_v58  ;;  %5282 = vmatprep.subr.bf16.mxu1 %v7149_v59  ;;  %v7239_v58 = vld [vmem:[#allocation5 + $0x3a4] ss:$16 sps:$4 sm:$0xff]   ;;  %v7242_v59 = vld [vmem:[#allocation5 + $0x3ac] ss:$16 sps:$4 sm:$0xff]  }
  0x95   :  { %4791 = vmatpush1.bf16.msra.mxu0 %v7151_v60  ;;  %5283 = vmatpush1.bf16.msra.mxu1 %v7152_v61  ;;  %v7237_v60 = vld [vmem:[#allocation5 + $0x3a0] ss:$16 sps:$4 sm:$0xff]   ;;  %v7240_v61 = vld [vmem:[#allocation5 + $0x3a8] ss:$16 sps:$4 sm:$0xff]  }
  0x96   :  { %4792 = vmatprep.subr.bf16.mxu0 %v7153_v62  ;;  %5284 = vmatprep.subr.bf16.mxu1 %v7155_v63  ;;  %v7245_v62 = vld [vmem:[#allocation5 + $0x3c4] ss:$16 sps:$4 sm:$0xff]   ;;  %v7248_v63 = vld [vmem:[#allocation5 + $0x3cc] ss:$16 sps:$4 sm:$0xff]  }
  0x99   :  { %4793 = vmatpush1.bf16.msra.mxu0 %v7157_v0  ;;  %5285 = vmatpush1.bf16.msra.mxu1 %v7158_v1  ;;  %v7243_v0 = vld [vmem:[#allocation5 + $0x3c0] ss:$16 sps:$4 sm:$0xff]   ;;  %v7246_v1 = vld [vmem:[#allocation5 + $0x3c8] ss:$16 sps:$4 sm:$0xff]  }
  0x9a   :  { %4803 = vmatprep.subr.bf16.mxu0 %v7161_v3  ;;  %5295 = vmatprep.subr.bf16.mxu1 %v7164_v4  ;;  %v7254_v3 = vld [vmem:[#allocation5 + $0x3ec] ss:$16 sps:$4 sm:$0xff]   ;;  %v7249_v4 = vld [vmem:[#allocation5 + $0x3e0] ss:$16 sps:$4 sm:$0xff]  }
  0x9c   :  { %4795 = vmatmul.mubr.bf16.vlgmr.msra.gmra.mrb[0].mxu0 %v108_v5  ;;  %5287 = vmatmul.mubr.bf16.vlgmr.msra.gmra.mrb[0].mxu1 %v108_v5  ;;  %v7252_v5 = vld [vmem:[#allocation5 + $0x3e8] ss:$16 sps:$4 sm:$0xff]  }
  0x9d   :  { %4804 = vmatpush1.bf16.msra.mxu0 %v7159_v6  ;;  %5296 = vmatpush1.bf16.msra.mxu1 %v7162_v7  ;;  %v7257_v6 = vld [vmem:[#allocation5 + $0x404] ss:$16 sps:$4 sm:$0xff]  }
  0x9e   :  { %4805 = vmatprep.subr.bf16.mxu0 %v7167_v8  ;;  %5297 = vmatprep.subr.bf16.mxu1 %v7170_v9  ;;  %v86_v7 = vld [vmem:[#allocation2 + $0x10] sm:$0xff]  ;;  %v7260_v8 = vld [vmem:[#allocation5 + $0x40c] ss:$16 sps:$4 sm:$0xff]  }
  0x9f   :  { %4835 = vmatprep.mubr.bf16.mxu0 %v111_v32  ;;  %5327 = vmatprep.mubr.bf16.mxu1 %v111_v32  ;;  %v7255_v9 = vld [vmem:[#allocation5 + $0x400] ss:$16 sps:$4 sm:$0xff]  }
  0xa0   :  { %v7285_v32 = vld [vmem:[#allocation5 + $0x4a0] ss:$16 sps:$4 sm:$0xff]  }
  0xa1   :  { %4806 = vmatpush1.bf16.msra.mxu0 %v7165_v10  ;;  %5298 = vmatpush1.bf16.msra.mxu1 %v7168_v11  ;;  %v7258_v10 = vld [vmem:[#allocation5 + $0x408] ss:$16 sps:$4 sm:$0xff]   ;;  %v110_v11 = vpack.c.bf16 %v86_v7, %v86_v7  ;;  %v7350_v7 = vld [vmem:[#allocation5 + $0x5ec] ss:$16 sps:$4 sm:$0xff]  }
  0xa2   :  { %4807 = vmatprep.subr.bf16.mxu0 %v7173_v12  ;;  %5299 = vmatprep.subr.bf16.mxu1 %v7176_v13  ;;  %v7263_v12 = vld [vmem:[#allocation5 + $0x424] ss:$16 sps:$4 sm:$0xff]   ;;  %v7266_v13 = vld [vmem:[#allocation5 + $0x42c] ss:$16 sps:$4 sm:$0xff]  }
  0xa5   :  { %4808 = vmatpush1.bf16.msra.mxu0 %v7171_v14  ;;  %5300 = vmatpush1.bf16.msra.mxu1 %v7174_v15  ;;  %v89_v14 = vld [vmem:[#allocation2 + $0x28] sm:$0xff] }
  0xa6   :  { %4809 = vmatprep.subr.bf16.mxu0 %v7179_v16  ;;  %5301 = vmatprep.subr.bf16.mxu1 %v7182_v17  ;;  %v113_v15 = vpack.c.bf16 %v89_v14, %v89_v14  ;;  %v7261_v16 = vld [vmem:[#allocation5 + $0x420] ss:$16 sps:$4 sm:$0xff]   ;;  %v7264_v17 = vld [vmem:[#allocation5 + $0x428] ss:$16 sps:$4 sm:$0xff]  }
  0xa7   :  { %v7354_v14 = vld [vmem:[#allocation5 + $0x608] ss:$16 sps:$4 sm:$0xff]  }
  0xa9   :  { %4810 = vmatpush1.bf16.msra.mxu0 %v7177_v18  ;;  %5302 = vmatpush1.bf16.msra.mxu1 %v7180_v19  ;;  %v7269_v18 = vld [vmem:[#allocation5 + $0x444] ss:$16 sps:$4 sm:$0xff]   ;;  %v7272_v19 = vld [vmem:[#allocation5 + $0x44c] ss:$16 sps:$4 sm:$0xff]  }
  0xaa   :  { %4811 = vmatprep.subr.bf16.mxu0 %v7185_v20  ;;  %5303 = vmatprep.subr.bf16.mxu1 %v7188_v21  ;;  %v7267_v20 = vld [vmem:[#allocation5 + $0x440] ss:$16 sps:$4 sm:$0xff]   ;;  %v7270_v21 = vld [vmem:[#allocation5 + $0x448] ss:$16 sps:$4 sm:$0xff]  }
  0xad   :  { %4812 = vmatpush1.bf16.msra.mxu0 %v7183_v22  ;;  %5304 = vmatpush1.bf16.msra.mxu1 %v7186_v23  ;;  %v7275_v22 = vld [vmem:[#allocation5 + $0x464] ss:$16 sps:$4 sm:$0xff]   ;;  %v7278_v23 = vld [vmem:[#allocation5 + $0x46c] ss:$16 sps:$4 sm:$0xff]  }
  0xae   :  { %4813 = vmatprep.subr.bf16.mxu0 %v7191_v24  ;;  %5305 = vmatprep.subr.bf16.mxu1 %v7194_v25  ;;  %v7273_v24 = vld [vmem:[#allocation5 + $0x460] ss:$16 sps:$4 sm:$0xff]   ;;  %v7276_v25 = vld [vmem:[#allocation5 + $0x468] ss:$16 sps:$4 sm:$0xff]  }
  0xb1   :  { %4814 = vmatpush1.bf16.msra.mxu0 %v7189_v26  ;;  %5306 = vmatpush1.bf16.msra.mxu1 %v7192_v27  ;;  %v7281_v26 = vld [vmem:[#allocation5 + $0x484] ss:$16 sps:$4 sm:$0xff]   ;;  %v7284_v27 = vld [vmem:[#allocation5 + $0x48c] ss:$16 sps:$4 sm:$0xff]  }
  0xb2   :  { %4815 = vmatprep.subr.bf16.mxu0 %v7197_v28  ;;  %5307 = vmatprep.subr.bf16.mxu1 %v7200_v29  ;;  %v7279_v28 = vld [vmem:[#allocation5 + $0x480] ss:$16 sps:$4 sm:$0xff]   ;;  %v7282_v29 = vld [vmem:[#allocation5 + $0x488] ss:$16 sps:$4 sm:$0xff]  }
  0xb5   :  { %4816 = vmatpush1.bf16.msra.mxu0 %v7195_v31  ;;  %5308 = vmatpush1.bf16.msra.mxu1 %v7198_v33  ;;  %v7290_v31 = vld [vmem:[#allocation5 + $0x4ac] ss:$16 sps:$4 sm:$0xff]   ;;  %v7288_v33 = vld [vmem:[#allocation5 + $0x4a8] ss:$16 sps:$4 sm:$0xff]  }
  0xb6   :  { %4817 = vmatprep.subr.bf16.mxu0 %v7203_v34  ;;  %5309 = vmatprep.subr.bf16.mxu1 %v7206_v35  ;;  %v7293_v34 = vld [vmem:[#allocation5 + $0x4c4] ss:$16 sps:$4 sm:$0xff]   ;;  %v7296_v35 = vld [vmem:[#allocation5 + $0x4cc] ss:$16 sps:$4 sm:$0xff]  }
  0xb9   :  { %4818 = vmatpush1.bf16.msra.mxu0 %v7201_v36  ;;  %5310 = vmatpush1.bf16.msra.mxu1 %v7204_v37  ;;  %v7291_v36 = vld [vmem:[#allocation5 + $0x4c0] ss:$16 sps:$4 sm:$0xff]   ;;  %v7294_v37 = vld [vmem:[#allocation5 + $0x4c8] ss:$16 sps:$4 sm:$0xff]  }
  0xba   :  { %4819 = vmatprep.subr.bf16.mxu0 %v7209_v38  ;;  %5311 = vmatprep.subr.bf16.mxu1 %v7212_v39  ;;  %v7299_v38 = vld [vmem:[#allocation5 + $0x4e4] ss:$16 sps:$4 sm:$0xff]   ;;  %v7302_v39 = vld [vmem:[#allocation5 + $0x4ec] ss:$16 sps:$4 sm:$0xff]  }
  0xbd   :  { %4820 = vmatpush1.bf16.msra.mxu0 %v7207_v40  ;;  %5312 = vmatpush1.bf16.msra.mxu1 %v7210_v41  ;;  %v7297_v40 = vld [vmem:[#allocation5 + $0x4e0] ss:$16 sps:$4 sm:$0xff]   ;;  %v7300_v41 = vld [vmem:[#allocation5 + $0x4e8] ss:$16 sps:$4 sm:$0xff]  }
  0xbe   :  { %4821 = vmatprep.subr.bf16.mxu0 %v7215_v42  ;;  %5313 = vmatprep.subr.bf16.mxu1 %v7218_v43  ;;  %v7305_v42 = vld [vmem:[#allocation5 + $0x504] ss:$16 sps:$4 sm:$0xff]   ;;  %v7308_v43 = vld [vmem:[#allocation5 + $0x50c] ss:$16 sps:$4 sm:$0xff]  }
  0xc1   :  { %4822 = vmatpush1.bf16.msra.mxu0 %v7213_v44  ;;  %5314 = vmatpush1.bf16.msra.mxu1 %v7216_v45  ;;  %v7303_v44 = vld [vmem:[#allocation5 + $0x500] ss:$16 sps:$4 sm:$0xff]   ;;  %v7306_v45 = vld [vmem:[#allocation5 + $0x508] ss:$16 sps:$4 sm:$0xff]  }
  0xc2   :  { %4823 = vmatprep.subr.bf16.mxu0 %v7221_v46  ;;  %5315 = vmatprep.subr.bf16.mxu1 %v7224_v47  ;;  %v7311_v46 = vld [vmem:[#allocation5 + $0x524] ss:$16 sps:$4 sm:$0xff]   ;;  %v7314_v47 = vld [vmem:[#allocation5 + $0x52c] ss:$16 sps:$4 sm:$0xff]  }
  0xc5   :  { %4824 = vmatpush1.bf16.msra.mxu0 %v7219_v48  ;;  %5316 = vmatpush1.bf16.msra.mxu1 %v7222_v49  ;;  %v7309_v48 = vld [vmem:[#allocation5 + $0x520] ss:$16 sps:$4 sm:$0xff]   ;;  %v7312_v49 = vld [vmem:[#allocation5 + $0x528] ss:$16 sps:$4 sm:$0xff]  }
  0xc6   :  { %4825 = vmatprep.subr.bf16.mxu0 %v7227_v50  ;;  %5317 = vmatprep.subr.bf16.mxu1 %v7230_v51  ;;  %v7317_v50 = vld [vmem:[#allocation5 + $0x544] ss:$16 sps:$4 sm:$0xff]   ;;  %v7320_v51 = vld [vmem:[#allocation5 + $0x54c] ss:$16 sps:$4 sm:$0xff]  }
  0xc9   :  { %4826 = vmatpush1.bf16.msra.mxu0 %v7225_v52  ;;  %5318 = vmatpush1.bf16.msra.mxu1 %v7228_v53  ;;  %v7315_v52 = vld [vmem:[#allocation5 + $0x540] ss:$16 sps:$4 sm:$0xff]   ;;  %v7318_v53 = vld [vmem:[#allocation5 + $0x548] ss:$16 sps:$4 sm:$0xff]  }
  0xca   :  { %4827 = vmatprep.subr.bf16.mxu0 %v7233_v54  ;;  %5319 = vmatprep.subr.bf16.mxu1 %v7236_v55  ;;  %v7323_v54 = vld [vmem:[#allocation5 + $0x564] ss:$16 sps:$4 sm:$0xff]   ;;  %v7326_v55 = vld [vmem:[#allocation5 + $0x56c] ss:$16 sps:$4 sm:$0xff]  }
  0xcd   :  { %4828 = vmatpush1.bf16.msra.mxu0 %v7231_v56  ;;  %5320 = vmatpush1.bf16.msra.mxu1 %v7234_v57  ;;  %v7321_v56 = vld [vmem:[#allocation5 + $0x560] ss:$16 sps:$4 sm:$0xff]   ;;  %v7324_v57 = vld [vmem:[#allocation5 + $0x568] ss:$16 sps:$4 sm:$0xff]  }
  0xce   :  { %4829 = vmatprep.subr.bf16.mxu0 %v7239_v58  ;;  %5321 = vmatprep.subr.bf16.mxu1 %v7242_v59  ;;  %v7329_v58 = vld [vmem:[#allocation5 + $0x584] ss:$16 sps:$4 sm:$0xff]   ;;  %v7332_v59 = vld [vmem:[#allocation5 + $0x58c] ss:$16 sps:$4 sm:$0xff]  }
  0xd1   :  { %4830 = vmatpush1.bf16.msra.mxu0 %v7237_v60  ;;  %5322 = vmatpush1.bf16.msra.mxu1 %v7240_v61  ;;  %v7327_v60 = vld [vmem:[#allocation5 + $0x580] ss:$16 sps:$4 sm:$0xff]   ;;  %v7330_v61 = vld [vmem:[#allocation5 + $0x588] ss:$16 sps:$4 sm:$0xff]  }
  0xd2   :  { %4831 = vmatprep.subr.bf16.mxu0 %v7245_v62  ;;  %5323 = vmatprep.subr.bf16.mxu1 %v7248_v63  ;;  %v7335_v62 = vld [vmem:[#allocation5 + $0x5a4] ss:$16 sps:$4 sm:$0xff]   ;;  %v7338_v63 = vld [vmem:[#allocation5 + $0x5ac] ss:$16 sps:$4 sm:$0xff]  }
  0xd5   :  { %4832 = vmatpush1.bf16.msra.mxu0 %v7243_v0  ;;  %5324 = vmatpush1.bf16.msra.mxu1 %v7246_v1  ;;  %v7333_v0 = vld [vmem:[#allocation5 + $0x5a0] ss:$16 sps:$4 sm:$0xff]   ;;  %v7336_v1 = vld [vmem:[#allocation5 + $0x5a8] ss:$16 sps:$4 sm:$0xff]  }
  0xd6   :  { %4833 = vmatprep.subr.bf16.mxu0 %v7251_v2  ;;  %5325 = vmatprep.subr.bf16.mxu1 %v7254_v3  ;;  %v7341_v2 = vld [vmem:[#allocation5 + $0x5c4] ss:$16 sps:$4 sm:$0xff]   ;;  %v7344_v3 = vld [vmem:[#allocation5 + $0x5cc] ss:$16 sps:$4 sm:$0xff]  }
  0xd9   :  { %4834 = vmatpush1.bf16.msra.mxu0 %v7249_v4  ;;  %5326 = vmatpush1.bf16.msra.mxu1 %v7252_v5  ;;  %v7339_v4 = vld [vmem:[#allocation5 + $0x5c0] ss:$16 sps:$4 sm:$0xff]   ;;  %v7342_v5 = vld [vmem:[#allocation5 + $0x5c8] ss:$16 sps:$4 sm:$0xff]  }
  0xda   :  { %4844 = vmatprep.subr.bf16.mxu0 %v7257_v6  ;;  %5336 = vmatprep.subr.bf16.mxu1 %v7260_v8  ;;  %v7347_v6 = vld [vmem:[#allocation5 + $0x5e4] ss:$16 sps:$4 sm:$0xff]   ;;  %v7345_v8 = vld [vmem:[#allocation5 + $0x5e0] ss:$16 sps:$4 sm:$0xff]  }
  0xdc   :  { %4836 = vmatmul.mubr.bf16.vlgmr.msra.gmra.mrb[0].mxu0 %v110_v11  ;;  %5328 = vmatmul.mubr.bf16.vlgmr.msra.gmra.mrb[0].mxu1 %v110_v11  ;;  %v88_v11 = vld [vmem:[#allocation2 + $0x20] sm:$0xff] }
  0xdd   :  { %4845 = vmatpush1.bf16.msra.mxu0 %v7255_v9  ;;  %5337 = vmatpush1.bf16.msra.mxu1 %v7258_v10  ;;  %v7348_v9 = vld [vmem:[#allocation5 + $0x5e8] ss:$16 sps:$4 sm:$0xff]   ;;  %v7353_v10 = vld [vmem:[#allocation5 + $0x604] ss:$16 sps:$4 sm:$0xff]  }
  0xde   :  { %4846 = vmatprep.subr.bf16.mxu0 %v7263_v12  ;;  %5338 = vmatprep.subr.bf16.mxu1 %v7266_v13  ;;  %v7356_v12 = vld [vmem:[#allocation5 + $0x60c] ss:$16 sps:$4 sm:$0xff]   ;;  %v7351_v13 = vld [vmem:[#allocation5 + $0x600] ss:$16 sps:$4 sm:$0xff]  }
  0xdf   :  { %4876 = vmatprep.mubr.bf16.mxu0 %v113_v15  ;;  %5368 = vmatprep.mubr.bf16.mxu1 %v113_v15  ;;  %v112_v15 = vpack.c.bf16 %v88_v11, %v88_v11  ;;  %v7446_v11 = vld [vmem:[#allocation5 + $0x7ec] ss:$16 sps:$4 sm:$0xff]  }
  0xe1   :  { %4847 = vmatpush1.bf16.msra.mxu0 %v7261_v16  ;;  %5339 = vmatpush1.bf16.msra.mxu1 %v7264_v17  ;;  %v91_v16 = vld [vmem:[#allocation2 + $0x38] sm:$0xff]  ;;  %v7359_v17 = vld [vmem:[#allocation5 + $0x624] ss:$16 sps:$4 sm:$0xff]  }
  0xe2   :  { %4848 = vmatprep.subr.bf16.mxu0 %v7269_v18  ;;  %5340 = vmatprep.subr.bf16.mxu1 %v7272_v19  ;;  %v7362_v18 = vld [vmem:[#allocation5 + $0x62c] ss:$16 sps:$4 sm:$0xff]   ;;  %v115_v19 = vpack.c.bf16 %v91_v16, %v91_v16 }
  0xe3   :  { %v7452_v16 = vld [vmem:[#allocation5 + $0x80c] ss:$16 sps:$4 sm:$0xff]  }
  0xe5   :  { %4849 = vmatpush1.bf16.msra.mxu0 %v7267_v20  ;;  %5341 = vmatpush1.bf16.msra.mxu1 %v7270_v21  ;;  %v7357_v20 = vld [vmem:[#allocation5 + $0x620] ss:$16 sps:$4 sm:$0xff]   ;;  %v7360_v21 = vld [vmem:[#allocation5 + $0x628] ss:$16 sps:$4 sm:$0xff]  }
  0xe6   :  { %4850 = vmatprep.subr.bf16.mxu0 %v7275_v22  ;;  %5342 = vmatprep.subr.bf16.mxu1 %v7278_v23  ;;  %v7365_v22 = vld [vmem:[#allocation5 + $0x644] ss:$16 sps:$4 sm:$0xff]   ;;  %v7368_v23 = vld [vmem:[#allocation5 + $0x64c] ss:$16 sps:$4 sm:$0xff]  }
  0xe9   :  { %4851 = vmatpush1.bf16.msra.mxu0 %v7273_v24  ;;  %5343 = vmatpush1.bf16.msra.mxu1 %v7276_v25  ;;  %v7363_v24 = vld [vmem:[#allocation5 + $0x640] ss:$16 sps:$4 sm:$0xff]   ;;  %v7366_v25 = vld [vmem:[#allocation5 + $0x648] ss:$16 sps:$4 sm:$0xff]  }
  0xea   :  { %4852 = vmatprep.subr.bf16.mxu0 %v7281_v26  ;;  %5344 = vmatprep.subr.bf16.mxu1 %v7284_v27  ;;  %v7371_v26 = vld [vmem:[#allocation5 + $0x664] ss:$16 sps:$4 sm:$0xff]   ;;  %v7374_v27 = vld [vmem:[#allocation5 + $0x66c] ss:$16 sps:$4 sm:$0xff]  }
  0xed   :  { %4853 = vmatpush1.bf16.msra.mxu0 %v7279_v28  ;;  %5345 = vmatpush1.bf16.msra.mxu1 %v7282_v29  ;;  %v7369_v28 = vld [vmem:[#allocation5 + $0x660] ss:$16 sps:$4 sm:$0xff]   ;;  %v7372_v29 = vld [vmem:[#allocation5 + $0x668] ss:$16 sps:$4 sm:$0xff]  }
  0xee   :  { %4854 = vmatprep.subr.bf16.mxu0 %v7287_v30  ;;  %5346 = vmatprep.subr.bf16.mxu1 %v7290_v31  ;;  %v7377_v30 = vld [vmem:[#allocation5 + $0x684] ss:$16 sps:$4 sm:$0xff]   ;;  %v7380_v31 = vld [vmem:[#allocation5 + $0x68c] ss:$16 sps:$4 sm:$0xff]  }
  0xf1   :  { %4855 = vmatpush1.bf16.msra.mxu0 %v7285_v32  ;;  %5347 = vmatpush1.bf16.msra.mxu1 %v7288_v33  ;;  %v7375_v32 = vld [vmem:[#allocation5 + $0x680] ss:$16 sps:$4 sm:$0xff]   ;;  %v7378_v33 = vld [vmem:[#allocation5 + $0x688] ss:$16 sps:$4 sm:$0xff]  }
  0xf2   :  { %4856 = vmatprep.subr.bf16.mxu0 %v7293_v34  ;;  %5348 = vmatprep.subr.bf16.mxu1 %v7296_v35  ;;  %v7383_v34 = vld [vmem:[#allocation5 + $0x6a4] ss:$16 sps:$4 sm:$0xff]   ;;  %v7386_v35 = vld [vmem:[#allocation5 + $0x6ac] ss:$16 sps:$4 sm:$0xff]  }
  0xf5   :  { %4857 = vmatpush1.bf16.msra.mxu0 %v7291_v36  ;;  %5349 = vmatpush1.bf16.msra.mxu1 %v7294_v37  ;;  %v7381_v36 = vld [vmem:[#allocation5 + $0x6a0] ss:$16 sps:$4 sm:$0xff]   ;;  %v7384_v37 = vld [vmem:[#allocation5 + $0x6a8] ss:$16 sps:$4 sm:$0xff]  }
  0xf6   :  { %4858 = vmatprep.subr.bf16.mxu0 %v7299_v38  ;;  %5350 = vmatprep.subr.bf16.mxu1 %v7302_v39  ;;  %v7389_v38 = vld [vmem:[#allocation5 + $0x6c4] ss:$16 sps:$4 sm:$0xff]   ;;  %v7392_v39 = vld [vmem:[#allocation5 + $0x6cc] ss:$16 sps:$4 sm:$0xff]  }
  0xf9   :  { %4859 = vmatpush1.bf16.msra.mxu0 %v7297_v40  ;;  %5351 = vmatpush1.bf16.msra.mxu1 %v7300_v41  ;;  %v7387_v40 = vld [vmem:[#allocation5 + $0x6c0] ss:$16 sps:$4 sm:$0xff]   ;;  %v7390_v41 = vld [vmem:[#allocation5 + $0x6c8] ss:$16 sps:$4 sm:$0xff]  }
  0xfa   :  { %4860 = vmatprep.subr.bf16.mxu0 %v7305_v42  ;;  %5352 = vmatprep.subr.bf16.mxu1 %v7308_v43  ;;  %v7395_v42 = vld [vmem:[#allocation5 + $0x6e4] ss:$16 sps:$4 sm:$0xff]   ;;  %v7398_v43 = vld [vmem:[#allocation5 + $0x6ec] ss:$16 sps:$4 sm:$0xff]  }
  0xfd   :  { %4861 = vmatpush1.bf16.msra.mxu0 %v7303_v44  ;;  %5353 = vmatpush1.bf16.msra.mxu1 %v7306_v45  ;;  %v7393_v44 = vld [vmem:[#allocation5 + $0x6e0] ss:$16 sps:$4 sm:$0xff]   ;;  %v7396_v45 = vld [vmem:[#allocation5 + $0x6e8] ss:$16 sps:$4 sm:$0xff]  }
  0xfe   :  { %4862 = vmatprep.subr.bf16.mxu0 %v7311_v46  ;;  %5354 = vmatprep.subr.bf16.mxu1 %v7314_v47  ;;  %v7401_v46 = vld [vmem:[#allocation5 + $0x704] ss:$16 sps:$4 sm:$0xff]   ;;  %v7404_v47 = vld [vmem:[#allocation5 + $0x70c] ss:$16 sps:$4 sm:$0xff]  }
 0x101   :  { %4863 = vmatpush1.bf16.msra.mxu0 %v7309_v48  ;;  %5355 = vmatpush1.bf16.msra.mxu1 %v7312_v49  ;;  %v7399_v48 = vld [vmem:[#allocation5 + $0x700] ss:$16 sps:$4 sm:$0xff]   ;;  %v7402_v49 = vld [vmem:[#allocation5 + $0x708] ss:$16 sps:$4 sm:$0xff]  }
 0x102   :  { %4864 = vmatprep.subr.bf16.mxu0 %v7317_v50  ;;  %5356 = vmatprep.subr.bf16.mxu1 %v7320_v51  ;;  %v7407_v50 = vld [vmem:[#allocation5 + $0x724] ss:$16 sps:$4 sm:$0xff]   ;;  %v7410_v51 = vld [vmem:[#allocation5 + $0x72c] ss:$16 sps:$4 sm:$0xff]  }
 0x105   :  { %4865 = vmatpush1.bf16.msra.mxu0 %v7315_v52  ;;  %5357 = vmatpush1.bf16.msra.mxu1 %v7318_v53  ;;  %v7405_v52 = vld [vmem:[#allocation5 + $0x720] ss:$16 sps:$4 sm:$0xff]   ;;  %v7408_v53 = vld [vmem:[#allocation5 + $0x728] ss:$16 sps:$4 sm:$0xff]  }
 0x106   :  { %4866 = vmatprep.subr.bf16.mxu0 %v7323_v54  ;;  %5358 = vmatprep.subr.bf16.mxu1 %v7326_v55  ;;  %v7413_v54 = vld [vmem:[#allocation5 + $0x744] ss:$16 sps:$4 sm:$0xff]   ;;  %v7416_v55 = vld [vmem:[#allocation5 + $0x74c] ss:$16 sps:$4 sm:$0xff]  }
 0x109   :  { %4867 = vmatpush1.bf16.msra.mxu0 %v7321_v56  ;;  %5359 = vmatpush1.bf16.msra.mxu1 %v7324_v57  ;;  %v7411_v56 = vld [vmem:[#allocation5 + $0x740] ss:$16 sps:$4 sm:$0xff]   ;;  %v7414_v57 = vld [vmem:[#allocation5 + $0x748] ss:$16 sps:$4 sm:$0xff]  }
 0x10a   :  { %4868 = vmatprep.subr.bf16.mxu0 %v7329_v58  ;;  %5360 = vmatprep.subr.bf16.mxu1 %v7332_v59  ;;  %v7419_v58 = vld [vmem:[#allocation5 + $0x764] ss:$16 sps:$4 sm:$0xff]   ;;  %v7422_v59 = vld [vmem:[#allocation5 + $0x76c] ss:$16 sps:$4 sm:$0xff]  }
 0x10d   :  { %4869 = vmatpush1.bf16.msra.mxu0 %v7327_v60  ;;  %5361 = vmatpush1.bf16.msra.mxu1 %v7330_v61  ;;  %v7417_v60 = vld [vmem:[#allocation5 + $0x760] ss:$16 sps:$4 sm:$0xff]   ;;  %v7420_v61 = vld [vmem:[#allocation5 + $0x768] ss:$16 sps:$4 sm:$0xff]  }
 0x10e   :  { %4870 = vmatprep.subr.bf16.mxu0 %v7335_v62  ;;  %5362 = vmatprep.subr.bf16.mxu1 %v7338_v63  ;;  %v7425_v62 = vld [vmem:[#allocation5 + $0x784] ss:$16 sps:$4 sm:$0xff]   ;;  %v7428_v63 = vld [vmem:[#allocation5 + $0x78c] ss:$16 sps:$4 sm:$0xff]  }
 0x111   :  { %4871 = vmatpush1.bf16.msra.mxu0 %v7333_v0  ;;  %5363 = vmatpush1.bf16.msra.mxu1 %v7336_v1  ;;  %v7423_v0 = vld [vmem:[#allocation5 + $0x780] ss:$16 sps:$4 sm:$0xff]   ;;  %v7426_v1 = vld [vmem:[#allocation5 + $0x788] ss:$16 sps:$4 sm:$0xff]  }
 0x112   :  { %4872 = vmatprep.subr.bf16.mxu0 %v7341_v2  ;;  %5364 = vmatprep.subr.bf16.mxu1 %v7344_v3  ;;  %v7431_v2 = vld [vmem:[#allocation5 + $0x7a4] ss:$16 sps:$4 sm:$0xff]   ;;  %v7434_v3 = vld [vmem:[#allocation5 + $0x7ac] ss:$16 sps:$4 sm:$0xff]  }
 0x115   :  { %4873 = vmatpush1.bf16.msra.mxu0 %v7339_v4  ;;  %5365 = vmatpush1.bf16.msra.mxu1 %v7342_v5  ;;  %v7429_v4 = vld [vmem:[#allocation5 + $0x7a0] ss:$16 sps:$4 sm:$0xff]   ;;  %v7432_v5 = vld [vmem:[#allocation5 + $0x7a8] ss:$16 sps:$4 sm:$0xff]  }
 0x116   :  { %4874 = vmatprep.subr.bf16.mxu0 %v7347_v6  ;;  %5366 = vmatprep.subr.bf16.mxu1 %v7350_v7  ;;  %v7437_v6 = vld [vmem:[#allocation5 + $0x7c4] ss:$16 sps:$4 sm:$0xff]   ;;  %v7440_v7 = vld [vmem:[#allocation5 + $0x7cc] ss:$16 sps:$4 sm:$0xff]  }
 0x119   :  { %4875 = vmatpush1.bf16.msra.mxu0 %v7345_v8  ;;  %5367 = vmatpush1.bf16.msra.mxu1 %v7348_v9  ;;  %v7435_v8 = vld [vmem:[#allocation5 + $0x7c0] ss:$16 sps:$4 sm:$0xff]   ;;  %v7438_v9 = vld [vmem:[#allocation5 + $0x7c8] ss:$16 sps:$4 sm:$0xff]  }
 0x11a   :  { %4885 = vmatprep.subr.bf16.mxu0 %v7353_v10  ;;  %5377 = vmatprep.subr.bf16.mxu1 %v7356_v12  ;;  %v7443_v10 = vld [vmem:[#allocation5 + $0x7e4] ss:$16 sps:$4 sm:$0xff]   ;;  %v7441_v12 = vld [vmem:[#allocation5 + $0x7e0] ss:$16 sps:$4 sm:$0xff]  }
 0x11c   :  { %4877 = vmatmul.mubr.bf16.vlgmr.msra.gmra.mrb[0].mxu0 %v112_v15  ;;  %5369 = vmatmul.mubr.bf16.vlgmr.msra.gmra.mrb[0].mxu1 %v112_v15  ;;  %v7449_v15 = vld [vmem:[#allocation5 + $0x804] ss:$16 sps:$4 sm:$0xff]  }
 0x11d   :  { %4886 = vmatpush1.bf16.msra.mxu0 %v7351_v13  ;;  %5378 = vmatpush1.bf16.msra.mxu1 %v7354_v14  ;;  %v7444_v13 = vld [vmem:[#allocation5 + $0x7e8] ss:$16 sps:$4 sm:$0xff]   ;;  %v90_v14 = vld [vmem:[#allocation2 + $0x30] sm:$0xff] }
 0x11e   :  { %4887 = vmatprep.subr.bf16.mxu0 %v7359_v17  ;;  %5379 = vmatprep.subr.bf16.mxu1 %v7362_v18  ;;  %v114_v17 = vpack.c.bf16 %v90_v14, %v90_v14  ;;  %v93_v18 = vld [vmem:[#allocation2 + $0x48] sm:$0xff]  ;;  %v7539_v14 = vld [vmem:[#allocation5 + $0x9e4] ss:$16 sps:$4 sm:$0xff]  }
 0x11f   :  { %4917 = vmatprep.mubr.bf16.mxu0 %v115_v19  ;;  %5409 = vmatprep.mubr.bf16.mxu1 %v115_v19  ;;  %v7447_v19 = vld [vmem:[#allocation5 + $0x800] ss:$16 sps:$4 sm:$0xff]  }
 0x121   :  { %4888 = vmatpush1.bf16.msra.mxu0 %v7357_v20  ;;  %5380 = vmatpush1.bf16.msra.mxu1 %v7360_v21  ;;  %v7450_v20 = vld [vmem:[#allocation5 + $0x808] ss:$16 sps:$4 sm:$0xff]   ;;  %v7455_v21 = vld [vmem:[#allocation5 + $0x824] ss:$16 sps:$4 sm:$0xff]  }
 0x122   :  { %4889 = vmatprep.subr.bf16.mxu0 %v7365_v22  ;;  %5381 = vmatprep.subr.bf16.mxu1 %v7368_v23  ;;  %v7458_v22 = vld [vmem:[#allocation5 + $0x82c] ss:$16 sps:$4 sm:$0xff]   ;;  %v117_v23 = vpack.c.bf16 %v93_v18, %v93_v18  ;;  %v7545_v18 = vld [vmem:[#allocation5 + $0xa04] ss:$16 sps:$4 sm:$0xff]  }
 0x125   :  { %4890 = vmatpush1.bf16.msra.mxu0 %v7363_v24  ;;  %5382 = vmatpush1.bf16.msra.mxu1 %v7366_v25  ;;  %v7453_v24 = vld [vmem:[#allocation5 + $0x820] ss:$16 sps:$4 sm:$0xff]   ;;  %v7456_v25 = vld [vmem:[#allocation5 + $0x828] ss:$16 sps:$4 sm:$0xff]  }
 0x126   :  { %4891 = vmatprep.subr.bf16.mxu0 %v7371_v26  ;;  %5383 = vmatprep.subr.bf16.mxu1 %v7374_v27  ;;  %v7461_v26 = vld [vmem:[#allocation5 + $0x844] ss:$16 sps:$4 sm:$0xff]   ;;  %v7464_v27 = vld [vmem:[#allocation5 + $0x84c] ss:$16 sps:$4 sm:$0xff]  }
 0x129   :  { %4892 = vmatpush1.bf16.msra.mxu0 %v7369_v28  ;;  %5384 = vmatpush1.bf16.msra.mxu1 %v7372_v29  ;;  %v7459_v28 = vld [vmem:[#allocation5 + $0x840] ss:$16 sps:$4 sm:$0xff]   ;;  %v7462_v29 = vld [vmem:[#allocation5 + $0x848] ss:$16 sps:$4 sm:$0xff]  }
 0x12a   :  { %4893 = vmatprep.subr.bf16.mxu0 %v7377_v30  ;;  %5385 = vmatprep.subr.bf16.mxu1 %v7380_v31  ;;  %v7467_v30 = vld [vmem:[#allocation5 + $0x864] ss:$16 sps:$4 sm:$0xff]   ;;  %v7470_v31 = vld [vmem:[#allocation5 + $0x86c] ss:$16 sps:$4 sm:$0xff]  }
 0x12d   :  { %4894 = vmatpush1.bf16.msra.mxu0 %v7375_v32  ;;  %5386 = vmatpush1.bf16.msra.mxu1 %v7378_v33  ;;  %v7465_v32 = vld [vmem:[#allocation5 + $0x860] ss:$16 sps:$4 sm:$0xff]   ;;  %v7468_v33 = vld [vmem:[#allocation5 + $0x868] ss:$16 sps:$4 sm:$0xff]  }
 0x12e   :  { %4895 = vmatprep.subr.bf16.mxu0 %v7383_v34  ;;  %5387 = vmatprep.subr.bf16.mxu1 %v7386_v35  ;;  %v7473_v34 = vld [vmem:[#allocation5 + $0x884] ss:$16 sps:$4 sm:$0xff]   ;;  %v7476_v35 = vld [vmem:[#allocation5 + $0x88c] ss:$16 sps:$4 sm:$0xff]  }
 0x131   :  { %4896 = vmatpush1.bf16.msra.mxu0 %v7381_v36  ;;  %5388 = vmatpush1.bf16.msra.mxu1 %v7384_v37  ;;  %v7471_v36 = vld [vmem:[#allocation5 + $0x880] ss:$16 sps:$4 sm:$0xff]   ;;  %v7474_v37 = vld [vmem:[#allocation5 + $0x888] ss:$16 sps:$4 sm:$0xff]  }
 0x132   :  { %4897 = vmatprep.subr.bf16.mxu0 %v7389_v38  ;;  %5389 = vmatprep.subr.bf16.mxu1 %v7392_v39  ;;  %v7479_v38 = vld [vmem:[#allocation5 + $0x8a4] ss:$16 sps:$4 sm:$0xff]   ;;  %v7482_v39 = vld [vmem:[#allocation5 + $0x8ac] ss:$16 sps:$4 sm:$0xff]  }
 0x135   :  { %4898 = vmatpush1.bf16.msra.mxu0 %v7387_v40  ;;  %5390 = vmatpush1.bf16.msra.mxu1 %v7390_v41  ;;  %v7477_v40 = vld [vmem:[#allocation5 + $0x8a0] ss:$16 sps:$4 sm:$0xff]   ;;  %v7480_v41 = vld [vmem:[#allocation5 + $0x8a8] ss:$16 sps:$4 sm:$0xff]  }
 0x136   :  { %4899 = vmatprep.subr.bf16.mxu0 %v7395_v42  ;;  %5391 = vmatprep.subr.bf16.mxu1 %v7398_v43  ;;  %v7485_v42 = vld [vmem:[#allocation5 + $0x8c4] ss:$16 sps:$4 sm:$0xff]   ;;  %v7488_v43 = vld [vmem:[#allocation5 + $0x8cc] ss:$16 sps:$4 sm:$0xff]  }
 0x139   :  { %4900 = vmatpush1.bf16.msra.mxu0 %v7393_v44  ;;  %5392 = vmatpush1.bf16.msra.mxu1 %v7396_v45  ;;  %v7483_v44 = vld [vmem:[#allocation5 + $0x8c0] ss:$16 sps:$4 sm:$0xff]   ;;  %v7486_v45 = vld [vmem:[#allocation5 + $0x8c8] ss:$16 sps:$4 sm:$0xff]  }
 0x13a   :  { %4901 = vmatprep.subr.bf16.mxu0 %v7401_v46  ;;  %5393 = vmatprep.subr.bf16.mxu1 %v7404_v47  ;;  %v7491_v46 = vld [vmem:[#allocation5 + $0x8e4] ss:$16 sps:$4 sm:$0xff]   ;;  %v7494_v47 = vld [vmem:[#allocation5 + $0x8ec] ss:$16 sps:$4 sm:$0xff]  }
 0x13d   :  { %4902 = vmatpush1.bf16.msra.mxu0 %v7399_v48  ;;  %5394 = vmatpush1.bf16.msra.mxu1 %v7402_v49  ;;  %v7489_v48 = vld [vmem:[#allocation5 + $0x8e0] ss:$16 sps:$4 sm:$0xff]   ;;  %v7492_v49 = vld [vmem:[#allocation5 + $0x8e8] ss:$16 sps:$4 sm:$0xff]  }
 0x13e   :  { %4903 = vmatprep.subr.bf16.mxu0 %v7407_v50  ;;  %5395 = vmatprep.subr.bf16.mxu1 %v7410_v51  ;;  %v7497_v50 = vld [vmem:[#allocation5 + $0x904] ss:$16 sps:$4 sm:$0xff]   ;;  %v7500_v51 = vld [vmem:[#allocation5 + $0x90c] ss:$16 sps:$4 sm:$0xff]  }
 0x141   :  { %4904 = vmatpush1.bf16.msra.mxu0 %v7405_v52  ;;  %5396 = vmatpush1.bf16.msra.mxu1 %v7408_v53  ;;  %v7495_v52 = vld [vmem:[#allocation5 + $0x900] ss:$16 sps:$4 sm:$0xff]   ;;  %v7498_v53 = vld [vmem:[#allocation5 + $0x908] ss:$16 sps:$4 sm:$0xff]  }
 0x142   :  { %4905 = vmatprep.subr.bf16.mxu0 %v7413_v54  ;;  %5397 = vmatprep.subr.bf16.mxu1 %v7416_v55  ;;  %v7503_v54 = vld [vmem:[#allocation5 + $0x924] ss:$16 sps:$4 sm:$0xff]   ;;  %v7506_v55 = vld [vmem:[#allocation5 + $0x92c] ss:$16 sps:$4 sm:$0xff]  }
 0x145   :  { %4906 = vmatpush1.bf16.msra.mxu0 %v7411_v56  ;;  %5398 = vmatpush1.bf16.msra.mxu1 %v7414_v57  ;;  %v7501_v56 = vld [vmem:[#allocation5 + $0x920] ss:$16 sps:$4 sm:$0xff]   ;;  %v7504_v57 = vld [vmem:[#allocation5 + $0x928] ss:$16 sps:$4 sm:$0xff]  }
 0x146   :  { %4907 = vmatprep.subr.bf16.mxu0 %v7419_v58  ;;  %5399 = vmatprep.subr.bf16.mxu1 %v7422_v59  ;;  %v7509_v58 = vld [vmem:[#allocation5 + $0x944] ss:$16 sps:$4 sm:$0xff]   ;;  %v7512_v59 = vld [vmem:[#allocation5 + $0x94c] ss:$16 sps:$4 sm:$0xff]  }
 0x149   :  { %4908 = vmatpush1.bf16.msra.mxu0 %v7417_v60  ;;  %5400 = vmatpush1.bf16.msra.mxu1 %v7420_v61  ;;  %v7507_v60 = vld [vmem:[#allocation5 + $0x940] ss:$16 sps:$4 sm:$0xff]   ;;  %v7510_v61 = vld [vmem:[#allocation5 + $0x948] ss:$16 sps:$4 sm:$0xff]  }
 0x14a   :  { %4909 = vmatprep.subr.bf16.mxu0 %v7425_v62  ;;  %5401 = vmatprep.subr.bf16.mxu1 %v7428_v63  ;;  %v7515_v62 = vld [vmem:[#allocation5 + $0x964] ss:$16 sps:$4 sm:$0xff]   ;;  %v7518_v63 = vld [vmem:[#allocation5 + $0x96c] ss:$16 sps:$4 sm:$0xff]  }
 0x14d   :  { %4910 = vmatpush1.bf16.msra.mxu0 %v7423_v0  ;;  %5402 = vmatpush1.bf16.msra.mxu1 %v7426_v1  ;;  %v7513_v0 = vld [vmem:[#allocation5 + $0x960] ss:$16 sps:$4 sm:$0xff]   ;;  %v7516_v1 = vld [vmem:[#allocation5 + $0x968] ss:$16 sps:$4 sm:$0xff]  }
 0x14e   :  { %4911 = vmatprep.subr.bf16.mxu0 %v7431_v2  ;;  %5403 = vmatprep.subr.bf16.mxu1 %v7434_v3  ;;  %v7521_v2 = vld [vmem:[#allocation5 + $0x984] ss:$16 sps:$4 sm:$0xff]   ;;  %v7524_v3 = vld [vmem:[#allocation5 + $0x98c] ss:$16 sps:$4 sm:$0xff]  }
 0x151   :  { %4912 = vmatpush1.bf16.msra.mxu0 %v7429_v4  ;;  %5404 = vmatpush1.bf16.msra.mxu1 %v7432_v5  ;;  %v7519_v4 = vld [vmem:[#allocation5 + $0x980] ss:$16 sps:$4 sm:$0xff]   ;;  %v7522_v5 = vld [vmem:[#allocation5 + $0x988] ss:$16 sps:$4 sm:$0xff]  }
 0x152   :  { %4913 = vmatprep.subr.bf16.mxu0 %v7437_v6  ;;  %5405 = vmatprep.subr.bf16.mxu1 %v7440_v7  ;;  %v7527_v6 = vld [vmem:[#allocation5 + $0x9a4] ss:$16 sps:$4 sm:$0xff]   ;;  %v7530_v7 = vld [vmem:[#allocation5 + $0x9ac] ss:$16 sps:$4 sm:$0xff]  }
 0x155   :  { %4914 = vmatpush1.bf16.msra.mxu0 %v7435_v8  ;;  %5406 = vmatpush1.bf16.msra.mxu1 %v7438_v9  ;;  %v7525_v8 = vld [vmem:[#allocation5 + $0x9a0] ss:$16 sps:$4 sm:$0xff]   ;;  %v7528_v9 = vld [vmem:[#allocation5 + $0x9a8] ss:$16 sps:$4 sm:$0xff]  }
 0x156   :  { %4915 = vmatprep.subr.bf16.mxu0 %v7443_v10  ;;  %5407 = vmatprep.subr.bf16.mxu1 %v7446_v11  ;;  %v7533_v10 = vld [vmem:[#allocation5 + $0x9c4] ss:$16 sps:$4 sm:$0xff]   ;;  %v7536_v11 = vld [vmem:[#allocation5 + $0x9cc] ss:$16 sps:$4 sm:$0xff]  }
 0x159   :  { %4916 = vmatpush1.bf16.msra.mxu0 %v7441_v12  ;;  %5408 = vmatpush1.bf16.msra.mxu1 %v7444_v13  ;;  %v7531_v12 = vld [vmem:[#allocation5 + $0x9c0] ss:$16 sps:$4 sm:$0xff]   ;;  %v7534_v13 = vld [vmem:[#allocation5 + $0x9c8] ss:$16 sps:$4 sm:$0xff]  }
 0x15a   :  { %4926 = vmatprep.subr.bf16.mxu0 %v7449_v15  ;;  %5418 = vmatprep.subr.bf16.mxu1 %v7452_v16  ;;  %v7542_v15 = vld [vmem:[#allocation5 + $0x9ec] ss:$16 sps:$4 sm:$0xff]   ;;  %v7537_v16 = vld [vmem:[#allocation5 + $0x9e0] ss:$16 sps:$4 sm:$0xff]  }
 0x15c   :  { %4918 = vmatmul.mubr.bf16.vlgmr.msra.gmra.mrb[0].mxu0 %v114_v17  ;;  %5410 = vmatmul.mubr.bf16.vlgmr.msra.gmra.mrb[0].mxu1 %v114_v17  ;;  %v7540_v17 = vld [vmem:[#allocation5 + $0x9e8] ss:$16 sps:$4 sm:$0xff]  }
 0x15d   :  { %4927 = vmatpush1.bf16.msra.mxu0 %v7447_v19  ;;  %5419 = vmatpush1.bf16.msra.mxu1 %v7450_v20  ;;  %v92_v19 = vld [vmem:[#allocation2 + $0x40] sm:$0xff]  ;;  %v7548_v20 = vld [vmem:[#allocation5 + $0xa0c] ss:$16 sps:$4 sm:$0xff]  }
 0x15e   :  { %4928 = vmatprep.subr.bf16.mxu0 %v7455_v21  ;;  %5420 = vmatprep.subr.bf16.mxu1 %v7458_v22  ;;  %v95_v21 = vld [vmem:[#allocation2 + $0x58] sm:$0xff]  ;;  %v116_v22 = vpack.c.bf16 %v92_v19, %v92_v19 }
 0x15f   :  { %4958 = vmatprep.mubr.bf16.mxu0 %v117_v23  ;;  %5450 = vmatprep.mubr.bf16.mxu1 %v117_v23  ;;  %v7543_v23 = vld [vmem:[#allocation5 + $0xa00] ss:$16 sps:$4 sm:$0xff]   ;;  %v7638_v19 = vld [vmem:[#allocation5 + $0xbec] ss:$16 sps:$4 sm:$0xff]  }
 0x161   :  { %4929 = vmatpush1.bf16.msra.mxu0 %v7453_v24  ;;  %5421 = vmatpush1.bf16.msra.mxu1 %v7456_v25  ;;  %v7546_v24 = vld [vmem:[#allocation5 + $0xa08] ss:$16 sps:$4 sm:$0xff]   ;;  %v7551_v25 = vld [vmem:[#allocation5 + $0xa24] ss:$16 sps:$4 sm:$0xff]  }
 0x162   :  { %4930 = vmatprep.subr.bf16.mxu0 %v7461_v26  ;;  %5422 = vmatprep.subr.bf16.mxu1 %v7464_v27  ;;  %v7554_v26 = vld [vmem:[#allocation5 + $0xa2c] ss:$16 sps:$4 sm:$0xff]   ;;  %v119_v27 = vpack.c.bf16 %v95_v21, %v95_v21  ;;  %v7636_v21 = vld [vmem:[#allocation5 + $0xbe8] ss:$16 sps:$4 sm:$0xff]  }
 0x165   :  { %4931 = vmatpush1.bf16.msra.mxu0 %v7459_v28  ;;  %5423 = vmatpush1.bf16.msra.mxu1 %v7462_v29  ;;  %v7549_v28 = vld [vmem:[#allocation5 + $0xa20] ss:$16 sps:$4 sm:$0xff]   ;;  %v7552_v29 = vld [vmem:[#allocation5 + $0xa28] ss:$16 sps:$4 sm:$0xff]  }
 0x166   :  { %4932 = vmatprep.subr.bf16.mxu0 %v7467_v30  ;;  %5424 = vmatprep.subr.bf16.mxu1 %v7470_v31  ;;  %v7557_v30 = vld [vmem:[#allocation5 + $0xa44] ss:$16 sps:$4 sm:$0xff]   ;;  %v7560_v31 = vld [vmem:[#allocation5 + $0xa4c] ss:$16 sps:$4 sm:$0xff]  }
 0x169   :  { %4933 = vmatpush1.bf16.msra.mxu0 %v7465_v32  ;;  %5425 = vmatpush1.bf16.msra.mxu1 %v7468_v33  ;;  %v7555_v32 = vld [vmem:[#allocation5 + $0xa40] ss:$16 sps:$4 sm:$0xff]   ;;  %v7558_v33 = vld [vmem:[#allocation5 + $0xa48] ss:$16 sps:$4 sm:$0xff]  }
 0x16a   :  { %4934 = vmatprep.subr.bf16.mxu0 %v7473_v34  ;;  %5426 = vmatprep.subr.bf16.mxu1 %v7476_v35  ;;  %v7563_v34 = vld [vmem:[#allocation5 + $0xa64] ss:$16 sps:$4 sm:$0xff]   ;;  %v7566_v35 = vld [vmem:[#allocation5 + $0xa6c] ss:$16 sps:$4 sm:$0xff]  }
 0x16d   :  { %4935 = vmatpush1.bf16.msra.mxu0 %v7471_v36  ;;  %5427 = vmatpush1.bf16.msra.mxu1 %v7474_v37  ;;  %v7561_v36 = vld [vmem:[#allocation5 + $0xa60] ss:$16 sps:$4 sm:$0xff]   ;;  %v7564_v37 = vld [vmem:[#allocation5 + $0xa68] ss:$16 sps:$4 sm:$0xff]  }
 0x16e   :  { %4936 = vmatprep.subr.bf16.mxu0 %v7479_v38  ;;  %5428 = vmatprep.subr.bf16.mxu1 %v7482_v39  ;;  %v7569_v38 = vld [vmem:[#allocation5 + $0xa84] ss:$16 sps:$4 sm:$0xff]   ;;  %v7572_v39 = vld [vmem:[#allocation5 + $0xa8c] ss:$16 sps:$4 sm:$0xff]  }
 0x171   :  { %4937 = vmatpush1.bf16.msra.mxu0 %v7477_v40  ;;  %5429 = vmatpush1.bf16.msra.mxu1 %v7480_v41  ;;  %v7567_v40 = vld [vmem:[#allocation5 + $0xa80] ss:$16 sps:$4 sm:$0xff]   ;;  %v7570_v41 = vld [vmem:[#allocation5 + $0xa88] ss:$16 sps:$4 sm:$0xff]  }
 0x172   :  { %4938 = vmatprep.subr.bf16.mxu0 %v7485_v42  ;;  %5430 = vmatprep.subr.bf16.mxu1 %v7488_v43  ;;  %v7575_v42 = vld [vmem:[#allocation5 + $0xaa4] ss:$16 sps:$4 sm:$0xff]   ;;  %v7578_v43 = vld [vmem:[#allocation5 + $0xaac] ss:$16 sps:$4 sm:$0xff]  }
 0x175   :  { %4939 = vmatpush1.bf16.msra.mxu0 %v7483_v44  ;;  %5431 = vmatpush1.bf16.msra.mxu1 %v7486_v45  ;;  %v7573_v44 = vld [vmem:[#allocation5 + $0xaa0] ss:$16 sps:$4 sm:$0xff]   ;;  %v7576_v45 = vld [vmem:[#allocation5 + $0xaa8] ss:$16 sps:$4 sm:$0xff]  }
 0x176   :  { %4940 = vmatprep.subr.bf16.mxu0 %v7491_v46  ;;  %5432 = vmatprep.subr.bf16.mxu1 %v7494_v47  ;;  %v7581_v46 = vld [vmem:[#allocation5 + $0xac4] ss:$16 sps:$4 sm:$0xff]   ;;  %v7584_v47 = vld [vmem:[#allocation5 + $0xacc] ss:$16 sps:$4 sm:$0xff]  }
 0x179   :  { %4941 = vmatpush1.bf16.msra.mxu0 %v7489_v48  ;;  %5433 = vmatpush1.bf16.msra.mxu1 %v7492_v49  ;;  %v7579_v48 = vld [vmem:[#allocation5 + $0xac0] ss:$16 sps:$4 sm:$0xff]   ;;  %v7582_v49 = vld [vmem:[#allocation5 + $0xac8] ss:$16 sps:$4 sm:$0xff]  }
 0x17a   :  { %4942 = vmatprep.subr.bf16.mxu0 %v7497_v50  ;;  %5434 = vmatprep.subr.bf16.mxu1 %v7500_v51  ;;  %v7587_v50 = vld [vmem:[#allocation5 + $0xae4] ss:$16 sps:$4 sm:$0xff]   ;;  %v7590_v51 = vld [vmem:[#allocation5 + $0xaec] ss:$16 sps:$4 sm:$0xff]  }
 0x17d   :  { %4943 = vmatpush1.bf16.msra.mxu0 %v7495_v52  ;;  %5435 = vmatpush1.bf16.msra.mxu1 %v7498_v53  ;;  %v7585_v52 = vld [vmem:[#allocation5 + $0xae0] ss:$16 sps:$4 sm:$0xff]   ;;  %v7588_v53 = vld [vmem:[#allocation5 + $0xae8] ss:$16 sps:$4 sm:$0xff]  }
 0x17e   :  { %4944 = vmatprep.subr.bf16.mxu0 %v7503_v54  ;;  %5436 = vmatprep.subr.bf16.mxu1 %v7506_v55  ;;  %v7593_v54 = vld [vmem:[#allocation5 + $0xb04] ss:$16 sps:$4 sm:$0xff]   ;;  %v7596_v55 = vld [vmem:[#allocation5 + $0xb0c] ss:$16 sps:$4 sm:$0xff]  }
 0x181   :  { %4945 = vmatpush1.bf16.msra.mxu0 %v7501_v56  ;;  %5437 = vmatpush1.bf16.msra.mxu1 %v7504_v57  ;;  %v7591_v56 = vld [vmem:[#allocation5 + $0xb00] ss:$16 sps:$4 sm:$0xff]   ;;  %v7594_v57 = vld [vmem:[#allocation5 + $0xb08] ss:$16 sps:$4 sm:$0xff]  }
 0x182   :  { %4946 = vmatprep.subr.bf16.mxu0 %v7509_v58  ;;  %5438 = vmatprep.subr.bf16.mxu1 %v7512_v59  ;;  %v7599_v58 = vld [vmem:[#allocation5 + $0xb24] ss:$16 sps:$4 sm:$0xff]   ;;  %v7602_v59 = vld [vmem:[#allocation5 + $0xb2c] ss:$16 sps:$4 sm:$0xff]  }
 0x185   :  { %4947 = vmatpush1.bf16.msra.mxu0 %v7507_v60  ;;  %5439 = vmatpush1.bf16.msra.mxu1 %v7510_v61  ;;  %v7597_v60 = vld [vmem:[#allocation5 + $0xb20] ss:$16 sps:$4 sm:$0xff]   ;;  %v7600_v61 = vld [vmem:[#allocation5 + $0xb28] ss:$16 sps:$4 sm:$0xff]  }
 0x186   :  { %4948 = vmatprep.subr.bf16.mxu0 %v7515_v62  ;;  %5440 = vmatprep.subr.bf16.mxu1 %v7518_v63  ;;  %v7605_v62 = vld [vmem:[#allocation5 + $0xb44] ss:$16 sps:$4 sm:$0xff]   ;;  %v7608_v63 = vld [vmem:[#allocation5 + $0xb4c] ss:$16 sps:$4 sm:$0xff]  }
 0x189   :  { %4949 = vmatpush1.bf16.msra.mxu0 %v7513_v0  ;;  %5441 = vmatpush1.bf16.msra.mxu1 %v7516_v1  ;;  %v7603_v0 = vld [vmem:[#allocation5 + $0xb40] ss:$16 sps:$4 sm:$0xff]   ;;  %v7606_v1 = vld [vmem:[#allocation5 + $0xb48] ss:$16 sps:$4 sm:$0xff]  }
 0x18a   :  { %4950 = vmatprep.subr.bf16.mxu0 %v7521_v2  ;;  %5442 = vmatprep.subr.bf16.mxu1 %v7524_v3  ;;  %v7611_v2 = vld [vmem:[#allocation5 + $0xb64] ss:$16 sps:$4 sm:$0xff]   ;;  %v7614_v3 = vld [vmem:[#allocation5 + $0xb6c] ss:$16 sps:$4 sm:$0xff]  }
 0x18d   :  { %4951 = vmatpush1.bf16.msra.mxu0 %v7519_v4  ;;  %5443 = vmatpush1.bf16.msra.mxu1 %v7522_v5  ;;  %v7609_v4 = vld [vmem:[#allocation5 + $0xb60] ss:$16 sps:$4 sm:$0xff]   ;;  %v7612_v5 = vld [vmem:[#allocation5 + $0xb68] ss:$16 sps:$4 sm:$0xff]  }
 0x18e   :  { %4952 = vmatprep.subr.bf16.mxu0 %v7527_v6  ;;  %5444 = vmatprep.subr.bf16.mxu1 %v7530_v7  ;;  %v7617_v6 = vld [vmem:[#allocation5 + $0xb84] ss:$16 sps:$4 sm:$0xff]   ;;  %v7620_v7 = vld [vmem:[#allocation5 + $0xb8c] ss:$16 sps:$4 sm:$0xff]  }
 0x191   :  { %4953 = vmatpush1.bf16.msra.mxu0 %v7525_v8  ;;  %5445 = vmatpush1.bf16.msra.mxu1 %v7528_v9  ;;  %v7615_v8 = vld [vmem:[#allocation5 + $0xb80] ss:$16 sps:$4 sm:$0xff]   ;;  %v7618_v9 = vld [vmem:[#allocation5 + $0xb88] ss:$16 sps:$4 sm:$0xff]  }
 0x192   :  { %4954 = vmatprep.subr.bf16.mxu0 %v7533_v10  ;;  %5446 = vmatprep.subr.bf16.mxu1 %v7536_v11  ;;  %v7623_v10 = vld [vmem:[#allocation5 + $0xba4] ss:$16 sps:$4 sm:$0xff]   ;;  %v7626_v11 = vld [vmem:[#allocation5 + $0xbac] ss:$16 sps:$4 sm:$0xff]  }
 0x195   :  { %4955 = vmatpush1.bf16.msra.mxu0 %v7531_v12  ;;  %5447 = vmatpush1.bf16.msra.mxu1 %v7534_v13  ;;  %v7621_v12 = vld [vmem:[#allocation5 + $0xba0] ss:$16 sps:$4 sm:$0xff]   ;;  %v7624_v13 = vld [vmem:[#allocation5 + $0xba8] ss:$16 sps:$4 sm:$0xff]  }
 0x196   :  { %4956 = vmatprep.subr.bf16.mxu0 %v7539_v14  ;;  %5448 = vmatprep.subr.bf16.mxu1 %v7542_v15  ;;  %v7629_v14 = vld [vmem:[#allocation5 + $0xbc4] ss:$16 sps:$4 sm:$0xff]   ;;  %v7632_v15 = vld [vmem:[#allocation5 + $0xbcc] ss:$16 sps:$4 sm:$0xff]  }
 0x199   :  { %4957 = vmatpush1.bf16.msra.mxu0 %v7537_v16  ;;  %5449 = vmatpush1.bf16.msra.mxu1 %v7540_v17  ;;  %v7627_v16 = vld [vmem:[#allocation5 + $0xbc0] ss:$16 sps:$4 sm:$0xff]   ;;  %v7630_v17 = vld [vmem:[#allocation5 + $0xbc8] ss:$16 sps:$4 sm:$0xff]  }
 0x19a   :  { %4967 = vmatprep.subr.bf16.mxu0 %v7545_v18  ;;  %5459 = vmatprep.subr.bf16.mxu1 %v7548_v20  ;;  %v7635_v18 = vld [vmem:[#allocation5 + $0xbe4] ss:$16 sps:$4 sm:$0xff]   ;;  %v7633_v20 = vld [vmem:[#allocation5 + $0xbe0] ss:$16 sps:$4 sm:$0xff]  }
 0x19c   :  { %4959 = vmatmul.mubr.bf16.vlgmr.msra.gmra.mrb[0].mxu0 %v116_v22  ;;  %5451 = vmatmul.mubr.bf16.vlgmr.msra.gmra.mrb[0].mxu1 %v116_v22  ;;  %v7641_v22 = vld [vmem:[#allocation5 + $0xc04] ss:$16 sps:$4 sm:$0xff]  }
 0x19d   :  { %4968 = vmatpush1.bf16.msra.mxu0 %v7543_v23  ;;  %5460 = vmatpush1.bf16.msra.mxu1 %v7546_v24  ;;  %v94_v23 = vld [vmem:[#allocation2 + $0x50] sm:$0xff]  ;;  %v7644_v24 = vld [vmem:[#allocation5 + $0xc0c] ss:$16 sps:$4 sm:$0xff]  }
 0x19e   :  { %4969 = vmatprep.subr.bf16.mxu0 %v7551_v25  ;;  %5461 = vmatprep.subr.bf16.mxu1 %v7554_v26  ;;  %v97_v25 = vld [vmem:[#allocation2 + $0x68] sm:$0xff]  ;;  %v118_v26 = vpack.c.bf16 %v94_v23, %v94_v23 }
 0x19f   :  { %4999 = vmatprep.mubr.bf16.mxu0 %v119_v27  ;;  %5491 = vmatprep.mubr.bf16.mxu1 %v119_v27  ;;  %v7639_v27 = vld [vmem:[#allocation5 + $0xc00] ss:$16 sps:$4 sm:$0xff]   ;;  %v7734_v23 = vld [vmem:[#allocation5 + $0xdec] ss:$16 sps:$4 sm:$0xff]  }
 0x1a1   :  { %4970 = vmatpush1.bf16.msra.mxu0 %v7549_v28  ;;  %5462 = vmatpush1.bf16.msra.mxu1 %v7552_v29  ;;  %v7642_v28 = vld [vmem:[#allocation5 + $0xc08] ss:$16 sps:$4 sm:$0xff]   ;;  %v7647_v29 = vld [vmem:[#allocation5 + $0xc24] ss:$16 sps:$4 sm:$0xff]  }
 0x1a2   :  { %4971 = vmatprep.subr.bf16.mxu0 %v7557_v30  ;;  %5463 = vmatprep.subr.bf16.mxu1 %v7560_v31  ;;  %v7650_v30 = vld [vmem:[#allocation5 + $0xc2c] ss:$16 sps:$4 sm:$0xff]   ;;  %v121_v31 = vpack.c.bf16 %v97_v25, %v97_v25  ;;  %v7732_v25 = vld [vmem:[#allocation5 + $0xde8] ss:$16 sps:$4 sm:$0xff]  }
 0x1a5   :  { %4972 = vmatpush1.bf16.msra.mxu0 %v7555_v32  ;;  %5464 = vmatpush1.bf16.msra.mxu1 %v7558_v33  ;;  %v7645_v32 = vld [vmem:[#allocation5 + $0xc20] ss:$16 sps:$4 sm:$0xff]   ;;  %v7648_v33 = vld [vmem:[#allocation5 + $0xc28] ss:$16 sps:$4 sm:$0xff]  }
 0x1a6   :  { %4973 = vmatprep.subr.bf16.mxu0 %v7563_v34  ;;  %5465 = vmatprep.subr.bf16.mxu1 %v7566_v35  ;;  %v7653_v34 = vld [vmem:[#allocation5 + $0xc44] ss:$16 sps:$4 sm:$0xff]   ;;  %v7656_v35 = vld [vmem:[#allocation5 + $0xc4c] ss:$16 sps:$4 sm:$0xff]  }
 0x1a9   :  { %4974 = vmatpush1.bf16.msra.mxu0 %v7561_v36  ;;  %5466 = vmatpush1.bf16.msra.mxu1 %v7564_v37  ;;  %v7651_v36 = vld [vmem:[#allocation5 + $0xc40] ss:$16 sps:$4 sm:$0xff]   ;;  %v7654_v37 = vld [vmem:[#allocation5 + $0xc48] ss:$16 sps:$4 sm:$0xff]  }
 0x1aa   :  { %4975 = vmatprep.subr.bf16.mxu0 %v7569_v38  ;;  %5467 = vmatprep.subr.bf16.mxu1 %v7572_v39  ;;  %v7659_v38 = vld [vmem:[#allocation5 + $0xc64] ss:$16 sps:$4 sm:$0xff]   ;;  %v7662_v39 = vld [vmem:[#allocation5 + $0xc6c] ss:$16 sps:$4 sm:$0xff]  }
 0x1ad   :  { %4976 = vmatpush1.bf16.msra.mxu0 %v7567_v40  ;;  %5468 = vmatpush1.bf16.msra.mxu1 %v7570_v41  ;;  %v7657_v40 = vld [vmem:[#allocation5 + $0xc60] ss:$16 sps:$4 sm:$0xff]   ;;  %v7660_v41 = vld [vmem:[#allocation5 + $0xc68] ss:$16 sps:$4 sm:$0xff]  }
 0x1ae   :  { %4977 = vmatprep.subr.bf16.mxu0 %v7575_v42  ;;  %5469 = vmatprep.subr.bf16.mxu1 %v7578_v43  ;;  %v7665_v42 = vld [vmem:[#allocation5 + $0xc84] ss:$16 sps:$4 sm:$0xff]   ;;  %v7668_v43 = vld [vmem:[#allocation5 + $0xc8c] ss:$16 sps:$4 sm:$0xff]  }
 0x1b1   :  { %4978 = vmatpush1.bf16.msra.mxu0 %v7573_v44  ;;  %5470 = vmatpush1.bf16.msra.mxu1 %v7576_v45  ;;  %v7663_v44 = vld [vmem:[#allocation5 + $0xc80] ss:$16 sps:$4 sm:$0xff]   ;;  %v7666_v45 = vld [vmem:[#allocation5 + $0xc88] ss:$16 sps:$4 sm:$0xff]  }
 0x1b2   :  { %4979 = vmatprep.subr.bf16.mxu0 %v7581_v46  ;;  %5471 = vmatprep.subr.bf16.mxu1 %v7584_v47  ;;  %v7671_v46 = vld [vmem:[#allocation5 + $0xca4] ss:$16 sps:$4 sm:$0xff]   ;;  %v7674_v47 = vld [vmem:[#allocation5 + $0xcac] ss:$16 sps:$4 sm:$0xff]  }
 0x1b5   :  { %4980 = vmatpush1.bf16.msra.mxu0 %v7579_v48  ;;  %5472 = vmatpush1.bf16.msra.mxu1 %v7582_v49  ;;  %v7669_v48 = vld [vmem:[#allocation5 + $0xca0] ss:$16 sps:$4 sm:$0xff]   ;;  %v7672_v49 = vld [vmem:[#allocation5 + $0xca8] ss:$16 sps:$4 sm:$0xff]  }
 0x1b6   :  { %4981 = vmatprep.subr.bf16.mxu0 %v7587_v50  ;;  %5473 = vmatprep.subr.bf16.mxu1 %v7590_v51  ;;  %v7677_v50 = vld [vmem:[#allocation5 + $0xcc4] ss:$16 sps:$4 sm:$0xff]   ;;  %v7680_v51 = vld [vmem:[#allocation5 + $0xccc] ss:$16 sps:$4 sm:$0xff]  }
 0x1b9   :  { %4982 = vmatpush1.bf16.msra.mxu0 %v7585_v52  ;;  %5474 = vmatpush1.bf16.msra.mxu1 %v7588_v53  ;;  %v7675_v52 = vld [vmem:[#allocation5 + $0xcc0] ss:$16 sps:$4 sm:$0xff]   ;;  %v7678_v53 = vld [vmem:[#allocation5 + $0xcc8] ss:$16 sps:$4 sm:$0xff]  }
 0x1ba   :  { %4983 = vmatprep.subr.bf16.mxu0 %v7593_v54  ;;  %5475 = vmatprep.subr.bf16.mxu1 %v7596_v55  ;;  %v7683_v54 = vld [vmem:[#allocation5 + $0xce4] ss:$16 sps:$4 sm:$0xff]   ;;  %v7686_v55 = vld [vmem:[#allocation5 + $0xcec] ss:$16 sps:$4 sm:$0xff]  }
 0x1bd   :  { %4984 = vmatpush1.bf16.msra.mxu0 %v7591_v56  ;;  %5476 = vmatpush1.bf16.msra.mxu1 %v7594_v57  ;;  %v7681_v56 = vld [vmem:[#allocation5 + $0xce0] ss:$16 sps:$4 sm:$0xff]   ;;  %v7684_v57 = vld [vmem:[#allocation5 + $0xce8] ss:$16 sps:$4 sm:$0xff]  }
 0x1be   :  { %4985 = vmatprep.subr.bf16.mxu0 %v7599_v58  ;;  %5477 = vmatprep.subr.bf16.mxu1 %v7602_v59  ;;  %v7689_v58 = vld [vmem:[#allocation5 + $0xd04] ss:$16 sps:$4 sm:$0xff]   ;;  %v7692_v59 = vld [vmem:[#allocation5 + $0xd0c] ss:$16 sps:$4 sm:$0xff]  }
 0x1c1   :  { %4986 = vmatpush1.bf16.msra.mxu0 %v7597_v60  ;;  %5478 = vmatpush1.bf16.msra.mxu1 %v7600_v61  ;;  %v7687_v60 = vld [vmem:[#allocation5 + $0xd00] ss:$16 sps:$4 sm:$0xff]   ;;  %v7690_v61 = vld [vmem:[#allocation5 + $0xd08] ss:$16 sps:$4 sm:$0xff]  }
 0x1c2   :  { %4987 = vmatprep.subr.bf16.mxu0 %v7605_v62  ;;  %5479 = vmatprep.subr.bf16.mxu1 %v7608_v63  ;;  %v7695_v62 = vld [vmem:[#allocation5 + $0xd24] ss:$16 sps:$4 sm:$0xff]   ;;  %v7698_v63 = vld [vmem:[#allocation5 + $0xd2c] ss:$16 sps:$4 sm:$0xff]  }
 0x1c5   :  { %4988 = vmatpush1.bf16.msra.mxu0 %v7603_v0  ;;  %5480 = vmatpush1.bf16.msra.mxu1 %v7606_v1  ;;  %v7693_v0 = vld [vmem:[#allocation5 + $0xd20] ss:$16 sps:$4 sm:$0xff]   ;;  %v7696_v1 = vld [vmem:[#allocation5 + $0xd28] ss:$16 sps:$4 sm:$0xff]  }
 0x1c6   :  { %4989 = vmatprep.subr.bf16.mxu0 %v7611_v2  ;;  %5481 = vmatprep.subr.bf16.mxu1 %v7614_v3  ;;  %v7701_v2 = vld [vmem:[#allocation5 + $0xd44] ss:$16 sps:$4 sm:$0xff]   ;;  %v7704_v3 = vld [vmem:[#allocation5 + $0xd4c] ss:$16 sps:$4 sm:$0xff]  }
 0x1c9   :  { %4990 = vmatpush1.bf16.msra.mxu0 %v7609_v4  ;;  %5482 = vmatpush1.bf16.msra.mxu1 %v7612_v5  ;;  %v7699_v4 = vld [vmem:[#allocation5 + $0xd40] ss:$16 sps:$4 sm:$0xff]   ;;  %v7702_v5 = vld [vmem:[#allocation5 + $0xd48] ss:$16 sps:$4 sm:$0xff]  }
 0x1ca   :  { %4991 = vmatprep.subr.bf16.mxu0 %v7617_v6  ;;  %5483 = vmatprep.subr.bf16.mxu1 %v7620_v7  ;;  %v7707_v6 = vld [vmem:[#allocation5 + $0xd64] ss:$16 sps:$4 sm:$0xff]   ;;  %v7710_v7 = vld [vmem:[#allocation5 + $0xd6c] ss:$16 sps:$4 sm:$0xff]  }
 0x1cd   :  { %4992 = vmatpush1.bf16.msra.mxu0 %v7615_v8  ;;  %5484 = vmatpush1.bf16.msra.mxu1 %v7618_v9  ;;  %v7705_v8 = vld [vmem:[#allocation5 + $0xd60] ss:$16 sps:$4 sm:$0xff]   ;;  %v7708_v9 = vld [vmem:[#allocation5 + $0xd68] ss:$16 sps:$4 sm:$0xff]  }
 0x1ce   :  { %4993 = vmatprep.subr.bf16.mxu0 %v7623_v10  ;;  %5485 = vmatprep.subr.bf16.mxu1 %v7626_v11  ;;  %v7713_v10 = vld [vmem:[#allocation5 + $0xd84] ss:$16 sps:$4 sm:$0xff]   ;;  %v7716_v11 = vld [vmem:[#allocation5 + $0xd8c] ss:$16 sps:$4 sm:$0xff]  }
 0x1d1   :  { %4994 = vmatpush1.bf16.msra.mxu0 %v7621_v12  ;;  %5486 = vmatpush1.bf16.msra.mxu1 %v7624_v13  ;;  %v7711_v12 = vld [vmem:[#allocation5 + $0xd80] ss:$16 sps:$4 sm:$0xff]   ;;  %v7714_v13 = vld [vmem:[#allocation5 + $0xd88] ss:$16 sps:$4 sm:$0xff]  }
 0x1d2   :  { %4995 = vmatprep.subr.bf16.mxu0 %v7629_v14  ;;  %5487 = vmatprep.subr.bf16.mxu1 %v7632_v15  ;;  %v7719_v14 = vld [vmem:[#allocation5 + $0xda4] ss:$16 sps:$4 sm:$0xff]   ;;  %v7722_v15 = vld [vmem:[#allocation5 + $0xdac] ss:$16 sps:$4 sm:$0xff]  }
 0x1d5   :  { %4996 = vmatpush1.bf16.msra.mxu0 %v7627_v16  ;;  %5488 = vmatpush1.bf16.msra.mxu1 %v7630_v17  ;;  %v7717_v16 = vld [vmem:[#allocation5 + $0xda0] ss:$16 sps:$4 sm:$0xff]   ;;  %v7720_v17 = vld [vmem:[#allocation5 + $0xda8] ss:$16 sps:$4 sm:$0xff]  }
 0x1d6   :  { %4997 = vmatprep.subr.bf16.mxu0 %v7635_v18  ;;  %5489 = vmatprep.subr.bf16.mxu1 %v7638_v19  ;;  %v7725_v18 = vld [vmem:[#allocation5 + $0xdc4] ss:$16 sps:$4 sm:$0xff]   ;;  %v7728_v19 = vld [vmem:[#allocation5 + $0xdcc] ss:$16 sps:$4 sm:$0xff]  }
 0x1d9   :  { %4998 = vmatpush1.bf16.msra.mxu0 %v7633_v20  ;;  %5490 = vmatpush1.bf16.msra.mxu1 %v7636_v21  ;;  %v7723_v20 = vld [vmem:[#allocation5 + $0xdc0] ss:$16 sps:$4 sm:$0xff]   ;;  %v7726_v21 = vld [vmem:[#allocation5 + $0xdc8] ss:$16 sps:$4 sm:$0xff]  }
 0x1da   :  { %5008 = vmatprep.subr.bf16.mxu0 %v7641_v22  ;;  %5500 = vmatprep.subr.bf16.mxu1 %v7644_v24  ;;  %v7731_v22 = vld [vmem:[#allocation5 + $0xde4] ss:$16 sps:$4 sm:$0xff]   ;;  %v7729_v24 = vld [vmem:[#allocation5 + $0xde0] ss:$16 sps:$4 sm:$0xff]  }
 0x1dc   :  { %5000 = vmatmul.mubr.bf16.vlgmr.msra.gmra.mrb[0].mxu0 %v118_v26  ;;  %5492 = vmatmul.mubr.bf16.vlgmr.msra.gmra.mrb[0].mxu1 %v118_v26  ;;  %v7737_v26 = vld [vmem:[#allocation5 + $0xe04] ss:$16 sps:$4 sm:$0xff]  }
 0x1dd   :  { %5009 = vmatpush1.bf16.msra.mxu0 %v7639_v27  ;;  %5501 = vmatpush1.bf16.msra.mxu1 %v7642_v28  ;;  %v96_v27 = vld [vmem:[#allocation2 + $0x60] sm:$0xff]  ;;  %v7740_v28 = vld [vmem:[#allocation5 + $0xe0c] ss:$16 sps:$4 sm:$0xff]  }
 0x1de   :  { %5010 = vmatprep.subr.bf16.mxu0 %v7647_v29  ;;  %5502 = vmatprep.subr.bf16.mxu1 %v7650_v30  ;;  %v99_v29 = vld [vmem:[#allocation2 + $0x78] sm:$0xff]  ;;  %v120_v30 = vpack.c.bf16 %v96_v27, %v96_v27 }
 0x1df   :  { %5040 = vmatprep.mubr.bf16.mxu0 %v121_v31  ;;  %5532 = vmatprep.mubr.bf16.mxu1 %v121_v31  ;;  %v7735_v31 = vld [vmem:[#allocation5 + $0xe00] ss:$16 sps:$4 sm:$0xff]   ;;  %v7830_v27 = vld [vmem:[#allocation5 + $0xfec] ss:$16 sps:$4 sm:$0xff]  }
 0x1e1   :  { %5011 = vmatpush1.bf16.msra.mxu0 %v7645_v32  ;;  %5503 = vmatpush1.bf16.msra.mxu1 %v7648_v33  ;;  %v7738_v32 = vld [vmem:[#allocation5 + $0xe08] ss:$16 sps:$4 sm:$0xff]   ;;  %v7743_v33 = vld [vmem:[#allocation5 + $0xe24] ss:$16 sps:$4 sm:$0xff]  }
 0x1e2   :  { %5012 = vmatprep.subr.bf16.mxu0 %v7653_v34  ;;  %5504 = vmatprep.subr.bf16.mxu1 %v7656_v35  ;;  %v7746_v34 = vld [vmem:[#allocation5 + $0xe2c] ss:$16 sps:$4 sm:$0xff]   ;;  %v123_v35 = vpack.c.bf16 %v99_v29, %v99_v29  ;;  %v7828_v29 = vld [vmem:[#allocation5 + $0xfe8] ss:$16 sps:$4 sm:$0xff]  }
 0x1e5   :  { %5013 = vmatpush1.bf16.msra.mxu0 %v7651_v36  ;;  %5505 = vmatpush1.bf16.msra.mxu1 %v7654_v37  ;;  %v7741_v36 = vld [vmem:[#allocation5 + $0xe20] ss:$16 sps:$4 sm:$0xff]   ;;  %v7744_v37 = vld [vmem:[#allocation5 + $0xe28] ss:$16 sps:$4 sm:$0xff]  }
 0x1e6   :  { %5014 = vmatprep.subr.bf16.mxu0 %v7659_v38  ;;  %5506 = vmatprep.subr.bf16.mxu1 %v7662_v39  ;;  %v7749_v38 = vld [vmem:[#allocation5 + $0xe44] ss:$16 sps:$4 sm:$0xff]   ;;  %v7752_v39 = vld [vmem:[#allocation5 + $0xe4c] ss:$16 sps:$4 sm:$0xff]  }
 0x1e9   :  { %5015 = vmatpush1.bf16.msra.mxu0 %v7657_v40  ;;  %5507 = vmatpush1.bf16.msra.mxu1 %v7660_v41  ;;  %v7747_v40 = vld [vmem:[#allocation5 + $0xe40] ss:$16 sps:$4 sm:$0xff]   ;;  %v7750_v41 = vld [vmem:[#allocation5 + $0xe48] ss:$16 sps:$4 sm:$0xff]  }
 0x1ea   :  { %5016 = vmatprep.subr.bf16.mxu0 %v7665_v42  ;;  %5508 = vmatprep.subr.bf16.mxu1 %v7668_v43  ;;  %v7755_v42 = vld [vmem:[#allocation5 + $0xe64] ss:$16 sps:$4 sm:$0xff]   ;;  %v7758_v43 = vld [vmem:[#allocation5 + $0xe6c] ss:$16 sps:$4 sm:$0xff]  }
 0x1ed   :  { %5017 = vmatpush1.bf16.msra.mxu0 %v7663_v44  ;;  %5509 = vmatpush1.bf16.msra.mxu1 %v7666_v45  ;;  %v7753_v44 = vld [vmem:[#allocation5 + $0xe60] ss:$16 sps:$4 sm:$0xff]   ;;  %v7756_v45 = vld [vmem:[#allocation5 + $0xe68] ss:$16 sps:$4 sm:$0xff]  }
 0x1ee   :  { %5018 = vmatprep.subr.bf16.mxu0 %v7671_v46  ;;  %5510 = vmatprep.subr.bf16.mxu1 %v7674_v47  ;;  %v7761_v46 = vld [vmem:[#allocation5 + $0xe84] ss:$16 sps:$4 sm:$0xff]   ;;  %v7764_v47 = vld [vmem:[#allocation5 + $0xe8c] ss:$16 sps:$4 sm:$0xff]  }
 0x1f1   :  { %5019 = vmatpush1.bf16.msra.mxu0 %v7669_v48  ;;  %5511 = vmatpush1.bf16.msra.mxu1 %v7672_v49  ;;  %v7759_v48 = vld [vmem:[#allocation5 + $0xe80] ss:$16 sps:$4 sm:$0xff]   ;;  %v7762_v49 = vld [vmem:[#allocation5 + $0xe88] ss:$16 sps:$4 sm:$0xff]  }
 0x1f2   :  { %5020 = vmatprep.subr.bf16.mxu0 %v7677_v50  ;;  %5512 = vmatprep.subr.bf16.mxu1 %v7680_v51  ;;  %v7767_v50 = vld [vmem:[#allocation5 + $0xea4] ss:$16 sps:$4 sm:$0xff]   ;;  %v7770_v51 = vld [vmem:[#allocation5 + $0xeac] ss:$16 sps:$4 sm:$0xff]  }
 0x1f5   :  { %5021 = vmatpush1.bf16.msra.mxu0 %v7675_v52  ;;  %5513 = vmatpush1.bf16.msra.mxu1 %v7678_v53  ;;  %v7765_v52 = vld [vmem:[#allocation5 + $0xea0] ss:$16 sps:$4 sm:$0xff]   ;;  %v7768_v53 = vld [vmem:[#allocation5 + $0xea8] ss:$16 sps:$4 sm:$0xff]  }
 0x1f6   :  { %5022 = vmatprep.subr.bf16.mxu0 %v7683_v54  ;;  %5514 = vmatprep.subr.bf16.mxu1 %v7686_v55  ;;  %v7773_v54 = vld [vmem:[#allocation5 + $0xec4] ss:$16 sps:$4 sm:$0xff]   ;;  %v7776_v55 = vld [vmem:[#allocation5 + $0xecc] ss:$16 sps:$4 sm:$0xff]  }
 0x1f9   :  { %5023 = vmatpush1.bf16.msra.mxu0 %v7681_v56  ;;  %5515 = vmatpush1.bf16.msra.mxu1 %v7684_v57  ;;  %v7771_v56 = vld [vmem:[#allocation5 + $0xec0] ss:$16 sps:$4 sm:$0xff]   ;;  %v7774_v57 = vld [vmem:[#allocation5 + $0xec8] ss:$16 sps:$4 sm:$0xff]  }
 0x1fa   :  { %5024 = vmatprep.subr.bf16.mxu0 %v7689_v58  ;;  %5516 = vmatprep.subr.bf16.mxu1 %v7692_v59  ;;  %v7779_v58 = vld [vmem:[#allocation5 + $0xee4] ss:$16 sps:$4 sm:$0xff]   ;;  %v7782_v59 = vld [vmem:[#allocation5 + $0xeec] ss:$16 sps:$4 sm:$0xff]  }
 0x1fd   :  { %5025 = vmatpush1.bf16.msra.mxu0 %v7687_v60  ;;  %5517 = vmatpush1.bf16.msra.mxu1 %v7690_v61  ;;  %v7777_v60 = vld [vmem:[#allocation5 + $0xee0] ss:$16 sps:$4 sm:$0xff]   ;;  %v7780_v61 = vld [vmem:[#allocation5 + $0xee8] ss:$16 sps:$4 sm:$0xff]  }
 0x1fe   :  { %5026 = vmatprep.subr.bf16.mxu0 %v7695_v62  ;;  %5518 = vmatprep.subr.bf16.mxu1 %v7698_v63  ;;  %v7785_v62 = vld [vmem:[#allocation5 + $0xf04] ss:$16 sps:$4 sm:$0xff]   ;;  %v7788_v63 = vld [vmem:[#allocation5 + $0xf0c] ss:$16 sps:$4 sm:$0xff]  }
 0x201   :  { %5027 = vmatpush1.bf16.msra.mxu0 %v7693_v0  ;;  %5519 = vmatpush1.bf16.msra.mxu1 %v7696_v1  ;;  %v7783_v0 = vld [vmem:[#allocation5 + $0xf00] ss:$16 sps:$4 sm:$0xff]   ;;  %v7786_v1 = vld [vmem:[#allocation5 + $0xf08] ss:$16 sps:$4 sm:$0xff]  }
 0x202   :  { %5028 = vmatprep.subr.bf16.mxu0 %v7701_v2  ;;  %5520 = vmatprep.subr.bf16.mxu1 %v7704_v3  ;;  %v7791_v2 = vld [vmem:[#allocation5 + $0xf24] ss:$16 sps:$4 sm:$0xff]   ;;  %v7794_v3 = vld [vmem:[#allocation5 + $0xf2c] ss:$16 sps:$4 sm:$0xff]  }
 0x205   :  { %5029 = vmatpush1.bf16.msra.mxu0 %v7699_v4  ;;  %5521 = vmatpush1.bf16.msra.mxu1 %v7702_v5  ;;  %v7789_v4 = vld [vmem:[#allocation5 + $0xf20] ss:$16 sps:$4 sm:$0xff]   ;;  %v7792_v5 = vld [vmem:[#allocation5 + $0xf28] ss:$16 sps:$4 sm:$0xff]  }
 0x206   :  { %5030 = vmatprep.subr.bf16.mxu0 %v7707_v6  ;;  %5522 = vmatprep.subr.bf16.mxu1 %v7710_v7  ;;  %v7797_v6 = vld [vmem:[#allocation5 + $0xf44] ss:$16 sps:$4 sm:$0xff]   ;;  %v7800_v7 = vld [vmem:[#allocation5 + $0xf4c] ss:$16 sps:$4 sm:$0xff]  }
 0x209   :  { %5031 = vmatpush1.bf16.msra.mxu0 %v7705_v8  ;;  %5523 = vmatpush1.bf16.msra.mxu1 %v7708_v9  ;;  %v7795_v8 = vld [vmem:[#allocation5 + $0xf40] ss:$16 sps:$4 sm:$0xff]   ;;  %v7798_v9 = vld [vmem:[#allocation5 + $0xf48] ss:$16 sps:$4 sm:$0xff]  }
 0x20a   :  { %5032 = vmatprep.subr.bf16.mxu0 %v7713_v10  ;;  %5524 = vmatprep.subr.bf16.mxu1 %v7716_v11  ;;  %v7803_v10 = vld [vmem:[#allocation5 + $0xf64] ss:$16 sps:$4 sm:$0xff]   ;;  %v7806_v11 = vld [vmem:[#allocation5 + $0xf6c] ss:$16 sps:$4 sm:$0xff]  }
 0x20d   :  { %5033 = vmatpush1.bf16.msra.mxu0 %v7711_v12  ;;  %5525 = vmatpush1.bf16.msra.mxu1 %v7714_v13  ;;  %v7801_v12 = vld [vmem:[#allocation5 + $0xf60] ss:$16 sps:$4 sm:$0xff]   ;;  %v7804_v13 = vld [vmem:[#allocation5 + $0xf68] ss:$16 sps:$4 sm:$0xff]  }
 0x20e   :  { %5034 = vmatprep.subr.bf16.mxu0 %v7719_v14  ;;  %5526 = vmatprep.subr.bf16.mxu1 %v7722_v15  ;;  %v7809_v14 = vld [vmem:[#allocation5 + $0xf84] ss:$16 sps:$4 sm:$0xff]   ;;  %v7812_v15 = vld [vmem:[#allocation5 + $0xf8c] ss:$16 sps:$4 sm:$0xff]  }
 0x211   :  { %5035 = vmatpush1.bf16.msra.mxu0 %v7717_v16  ;;  %5527 = vmatpush1.bf16.msra.mxu1 %v7720_v17  ;;  %v7807_v16 = vld [vmem:[#allocation5 + $0xf80] ss:$16 sps:$4 sm:$0xff]   ;;  %v7810_v17 = vld [vmem:[#allocation5 + $0xf88] ss:$16 sps:$4 sm:$0xff]  }
 0x212   :  { %5036 = vmatprep.subr.bf16.mxu0 %v7725_v18  ;;  %5528 = vmatprep.subr.bf16.mxu1 %v7728_v19  ;;  %v7815_v18 = vld [vmem:[#allocation5 + $0xfa4] ss:$16 sps:$4 sm:$0xff]   ;;  %v7818_v19 = vld [vmem:[#allocation5 + $0xfac] ss:$16 sps:$4 sm:$0xff]  }
 0x215   :  { %5037 = vmatpush1.bf16.msra.mxu0 %v7723_v20  ;;  %5529 = vmatpush1.bf16.msra.mxu1 %v7726_v21  ;;  %v7813_v20 = vld [vmem:[#allocation5 + $0xfa0] ss:$16 sps:$4 sm:$0xff]   ;;  %v7816_v21 = vld [vmem:[#allocation5 + $0xfa8] ss:$16 sps:$4 sm:$0xff]  }
 0x216   :  { %5038 = vmatprep.subr.bf16.mxu0 %v7731_v22  ;;  %5530 = vmatprep.subr.bf16.mxu1 %v7734_v23  ;;  %v7821_v22 = vld [vmem:[#allocation5 + $0xfc4] ss:$16 sps:$4 sm:$0xff]   ;;  %v7824_v23 = vld [vmem:[#allocation5 + $0xfcc] ss:$16 sps:$4 sm:$0xff]  }
 0x219   :  { %5039 = vmatpush1.bf16.msra.mxu0 %v7729_v24  ;;  %5531 = vmatpush1.bf16.msra.mxu1 %v7732_v25  ;;  %v7819_v24 = vld [vmem:[#allocation5 + $0xfc0] ss:$16 sps:$4 sm:$0xff]   ;;  %v7822_v25 = vld [vmem:[#allocation5 + $0xfc8] ss:$16 sps:$4 sm:$0xff]  }
 0x21a   :  { %5049 = vmatprep.subr.bf16.mxu0 %v7737_v26  ;;  %5541 = vmatprep.subr.bf16.mxu1 %v7740_v28  ;;  %v7827_v26 = vld [vmem:[#allocation5 + $0xfe4] ss:$16 sps:$4 sm:$0xff]   ;;  %v7825_v28 = vld [vmem:[#allocation5 + $0xfe0] ss:$16 sps:$4 sm:$0xff]  }
 0x21c   :  { %5041 = vmatmul.mubr.bf16.vlgmr.msra.gmra.mrb[0].mxu0 %v120_v30  ;;  %5533 = vmatmul.mubr.bf16.vlgmr.msra.gmra.mrb[0].mxu1 %v120_v30  ;;  %v98_v30 = vld [vmem:[#allocation2 + $0x70] sm:$0xff] }
 0x21d   :  { %5050 = vmatpush1.bf16.msra.mxu0 %v7735_v31  ;;  %5542 = vmatpush1.bf16.msra.mxu1 %v7738_v32  ;;  %v7833_v31 = vld [vmem:[#allocation5 + $0x1004] ss:$16 sps:$4 sm:$0xff]   ;;  %v7836_v32 = vld [vmem:[#allocation5 + $0x100c] ss:$16 sps:$4 sm:$0xff]  }
 0x21e   :  { %5051 = vmatprep.subr.bf16.mxu0 %v7743_v33  ;;  %5543 = vmatprep.subr.bf16.mxu1 %v7746_v34  ;;  %v122_v33 = vpack.c.bf16 %v98_v30, %v98_v30  ;;  %v101_v34 = vld [vmem:[#allocation2 + $0x88] sm:$0xff]  ;;  %v7923_v30 = vld [vmem:[#allocation5 + $0x11e4] ss:$16 sps:$4 sm:$0xff]  }
 0x21f   :  { %5081 = vmatprep.mubr.bf16.mxu0 %v123_v35  ;;  %5573 = vmatprep.mubr.bf16.mxu1 %v123_v35  ;;  %v7831_v35 = vld [vmem:[#allocation5 + $0x1000] ss:$16 sps:$4 sm:$0xff]  }
 0x221   :  { %5052 = vmatpush1.bf16.msra.mxu0 %v7741_v36  ;;  %5544 = vmatpush1.bf16.msra.mxu1 %v7744_v37  ;;  %v7834_v36 = vld [vmem:[#allocation5 + $0x1008] ss:$16 sps:$4 sm:$0xff]   ;;  %v7839_v37 = vld [vmem:[#allocation5 + $0x1024] ss:$16 sps:$4 sm:$0xff]  }
 0x222   :  { %5053 = vmatprep.subr.bf16.mxu0 %v7749_v38  ;;  %5545 = vmatprep.subr.bf16.mxu1 %v7752_v39  ;;  %v7842_v38 = vld [vmem:[#allocation5 + $0x102c] ss:$16 sps:$4 sm:$0xff]   ;;  %v125_v39 = vpack.c.bf16 %v101_v34, %v101_v34  ;;  %v100_v34 = vld [vmem:[#allocation2 + $0x80] sm:$0xff] }
 0x225   :  { %5054 = vmatpush1.bf16.msra.mxu0 %v7747_v40  ;;  %5546 = vmatpush1.bf16.msra.mxu1 %v7750_v41  ;;  %v7837_v40 = vld [vmem:[#allocation5 + $0x1020] ss:$16 sps:$4 sm:$0xff]   ;;  %v7840_v41 = vld [vmem:[#allocation5 + $0x1028] ss:$16 sps:$4 sm:$0xff]  }
 0x226   :  { %5055 = vmatprep.subr.bf16.mxu0 %v7755_v42  ;;  %5547 = vmatprep.subr.bf16.mxu1 %v7758_v43  ;;  %v7845_v42 = vld [vmem:[#allocation5 + $0x1044] ss:$16 sps:$4 sm:$0xff]   ;;  %v7848_v43 = vld [vmem:[#allocation5 + $0x104c] ss:$16 sps:$4 sm:$0xff]  }
 0x229   :  { %5056 = vmatpush1.bf16.msra.mxu0 %v7753_v44  ;;  %5548 = vmatpush1.bf16.msra.mxu1 %v7756_v45  ;;  %v7843_v44 = vld [vmem:[#allocation5 + $0x1040] ss:$16 sps:$4 sm:$0xff]   ;;  %v7846_v45 = vld [vmem:[#allocation5 + $0x1048] ss:$16 sps:$4 sm:$0xff]  }
 0x22a   :  { %5057 = vmatprep.subr.bf16.mxu0 %v7761_v46  ;;  %5549 = vmatprep.subr.bf16.mxu1 %v7764_v47  ;;  %v7851_v46 = vld [vmem:[#allocation5 + $0x1064] ss:$16 sps:$4 sm:$0xff]   ;;  %v7854_v47 = vld [vmem:[#allocation5 + $0x106c] ss:$16 sps:$4 sm:$0xff]  }
 0x22d   :  { %5058 = vmatpush1.bf16.msra.mxu0 %v7759_v48  ;;  %5550 = vmatpush1.bf16.msra.mxu1 %v7762_v49  ;;  %v7849_v48 = vld [vmem:[#allocation5 + $0x1060] ss:$16 sps:$4 sm:$0xff]   ;;  %v7852_v49 = vld [vmem:[#allocation5 + $0x1068] ss:$16 sps:$4 sm:$0xff]  }
 0x22e   :  { %5059 = vmatprep.subr.bf16.mxu0 %v7767_v50  ;;  %5551 = vmatprep.subr.bf16.mxu1 %v7770_v51  ;;  %v7857_v50 = vld [vmem:[#allocation5 + $0x1084] ss:$16 sps:$4 sm:$0xff]   ;;  %v7860_v51 = vld [vmem:[#allocation5 + $0x108c] ss:$16 sps:$4 sm:$0xff]  }
 0x231   :  { %5060 = vmatpush1.bf16.msra.mxu0 %v7765_v52  ;;  %5552 = vmatpush1.bf16.msra.mxu1 %v7768_v53  ;;  %v7855_v52 = vld [vmem:[#allocation5 + $0x1080] ss:$16 sps:$4 sm:$0xff]   ;;  %v7858_v53 = vld [vmem:[#allocation5 + $0x1088] ss:$16 sps:$4 sm:$0xff]  }
 0x232   :  { %5061 = vmatprep.subr.bf16.mxu0 %v7773_v54  ;;  %5553 = vmatprep.subr.bf16.mxu1 %v7776_v55  ;;  %v7863_v54 = vld [vmem:[#allocation5 + $0x10a4] ss:$16 sps:$4 sm:$0xff]   ;;  %v7866_v55 = vld [vmem:[#allocation5 + $0x10ac] ss:$16 sps:$4 sm:$0xff]  }
 0x235   :  { %5062 = vmatpush1.bf16.msra.mxu0 %v7771_v56  ;;  %5554 = vmatpush1.bf16.msra.mxu1 %v7774_v57  ;;  %v7861_v56 = vld [vmem:[#allocation5 + $0x10a0] ss:$16 sps:$4 sm:$0xff]   ;;  %v7864_v57 = vld [vmem:[#allocation5 + $0x10a8] ss:$16 sps:$4 sm:$0xff]  }
 0x236   :  { %5063 = vmatprep.subr.bf16.mxu0 %v7779_v58  ;;  %5555 = vmatprep.subr.bf16.mxu1 %v7782_v59  ;;  %v7869_v58 = vld [vmem:[#allocation5 + $0x10c4] ss:$16 sps:$4 sm:$0xff]   ;;  %v7872_v59 = vld [vmem:[#allocation5 + $0x10cc] ss:$16 sps:$4 sm:$0xff]  }
 0x239   :  { %5064 = vmatpush1.bf16.msra.mxu0 %v7777_v60  ;;  %5556 = vmatpush1.bf16.msra.mxu1 %v7780_v61  ;;  %v7867_v60 = vld [vmem:[#allocation5 + $0x10c0] ss:$16 sps:$4 sm:$0xff]   ;;  %v7870_v61 = vld [vmem:[#allocation5 + $0x10c8] ss:$16 sps:$4 sm:$0xff]  }
 0x23a   :  { %5065 = vmatprep.subr.bf16.mxu0 %v7785_v62  ;;  %5557 = vmatprep.subr.bf16.mxu1 %v7788_v63  ;;  %v7875_v62 = vld [vmem:[#allocation5 + $0x10e4] ss:$16 sps:$4 sm:$0xff]   ;;  %v7878_v63 = vld [vmem:[#allocation5 + $0x10ec] ss:$16 sps:$4 sm:$0xff]  }
 0x23d   :  { %5066 = vmatpush1.bf16.msra.mxu0 %v7783_v0  ;;  %5558 = vmatpush1.bf16.msra.mxu1 %v7786_v1  ;;  %v7873_v0 = vld [vmem:[#allocation5 + $0x10e0] ss:$16 sps:$4 sm:$0xff]   ;;  %v7876_v1 = vld [vmem:[#allocation5 + $0x10e8] ss:$16 sps:$4 sm:$0xff]  }
 0x23e   :  { %5067 = vmatprep.subr.bf16.mxu0 %v7791_v2  ;;  %5559 = vmatprep.subr.bf16.mxu1 %v7794_v3  ;;  %v7881_v2 = vld [vmem:[#allocation5 + $0x1104] ss:$16 sps:$4 sm:$0xff]   ;;  %v7884_v3 = vld [vmem:[#allocation5 + $0x110c] ss:$16 sps:$4 sm:$0xff]  }
 0x241   :  { %5068 = vmatpush1.bf16.msra.mxu0 %v7789_v4  ;;  %5560 = vmatpush1.bf16.msra.mxu1 %v7792_v5  ;;  %v7879_v4 = vld [vmem:[#allocation5 + $0x1100] ss:$16 sps:$4 sm:$0xff]   ;;  %v7882_v5 = vld [vmem:[#allocation5 + $0x1108] ss:$16 sps:$4 sm:$0xff]  }
 0x242   :  { %5069 = vmatprep.subr.bf16.mxu0 %v7797_v6  ;;  %5561 = vmatprep.subr.bf16.mxu1 %v7800_v7  ;;  %v7887_v6 = vld [vmem:[#allocation5 + $0x1124] ss:$16 sps:$4 sm:$0xff]   ;;  %v7890_v7 = vld [vmem:[#allocation5 + $0x112c] ss:$16 sps:$4 sm:$0xff]  }
 0x245   :  { %5070 = vmatpush1.bf16.msra.mxu0 %v7795_v8  ;;  %5562 = vmatpush1.bf16.msra.mxu1 %v7798_v9  ;;  %v7885_v8 = vld [vmem:[#allocation5 + $0x1120] ss:$16 sps:$4 sm:$0xff]   ;;  %v7888_v9 = vld [vmem:[#allocation5 + $0x1128] ss:$16 sps:$4 sm:$0xff]  }
 0x246   :  { %5071 = vmatprep.subr.bf16.mxu0 %v7803_v10  ;;  %5563 = vmatprep.subr.bf16.mxu1 %v7806_v11  ;;  %v7893_v10 = vld [vmem:[#allocation5 + $0x1144] ss:$16 sps:$4 sm:$0xff]   ;;  %v7896_v11 = vld [vmem:[#allocation5 + $0x114c] ss:$16 sps:$4 sm:$0xff]  }
 0x249   :  { %5072 = vmatpush1.bf16.msra.mxu0 %v7801_v12  ;;  %5564 = vmatpush1.bf16.msra.mxu1 %v7804_v13  ;;  %v7891_v12 = vld [vmem:[#allocation5 + $0x1140] ss:$16 sps:$4 sm:$0xff]   ;;  %v7894_v13 = vld [vmem:[#allocation5 + $0x1148] ss:$16 sps:$4 sm:$0xff]  }
 0x24a   :  { %5073 = vmatprep.subr.bf16.mxu0 %v7809_v14  ;;  %5565 = vmatprep.subr.bf16.mxu1 %v7812_v15  ;;  %v7899_v14 = vld [vmem:[#allocation5 + $0x1164] ss:$16 sps:$4 sm:$0xff]   ;;  %v7902_v15 = vld [vmem:[#allocation5 + $0x116c] ss:$16 sps:$4 sm:$0xff]  }
 0x24d   :  { %5074 = vmatpush1.bf16.msra.mxu0 %v7807_v16  ;;  %5566 = vmatpush1.bf16.msra.mxu1 %v7810_v17  ;;  %v7897_v16 = vld [vmem:[#allocation5 + $0x1160] ss:$16 sps:$4 sm:$0xff]   ;;  %v7900_v17 = vld [vmem:[#allocation5 + $0x1168] ss:$16 sps:$4 sm:$0xff]  }
 0x24e   :  { %5075 = vmatprep.subr.bf16.mxu0 %v7815_v18  ;;  %5567 = vmatprep.subr.bf16.mxu1 %v7818_v19  ;;  %v7905_v18 = vld [vmem:[#allocation5 + $0x1184] ss:$16 sps:$4 sm:$0xff]   ;;  %v7908_v19 = vld [vmem:[#allocation5 + $0x118c] ss:$16 sps:$4 sm:$0xff]  }
 0x251   :  { %5076 = vmatpush1.bf16.msra.mxu0 %v7813_v20  ;;  %5568 = vmatpush1.bf16.msra.mxu1 %v7816_v21  ;;  %v7903_v20 = vld [vmem:[#allocation5 + $0x1180] ss:$16 sps:$4 sm:$0xff]   ;;  %v7906_v21 = vld [vmem:[#allocation5 + $0x1188] ss:$16 sps:$4 sm:$0xff]  }
 0x252   :  { %5077 = vmatprep.subr.bf16.mxu0 %v7821_v22  ;;  %5569 = vmatprep.subr.bf16.mxu1 %v7824_v23  ;;  %v7911_v22 = vld [vmem:[#allocation5 + $0x11a4] ss:$16 sps:$4 sm:$0xff]   ;;  %v7914_v23 = vld [vmem:[#allocation5 + $0x11ac] ss:$16 sps:$4 sm:$0xff]  }
 0x255   :  { %5078 = vmatpush1.bf16.msra.mxu0 %v7819_v24  ;;  %5570 = vmatpush1.bf16.msra.mxu1 %v7822_v25  ;;  %v7909_v24 = vld [vmem:[#allocation5 + $0x11a0] ss:$16 sps:$4 sm:$0xff]   ;;  %v7912_v25 = vld [vmem:[#allocation5 + $0x11a8] ss:$16 sps:$4 sm:$0xff]  }
 0x256   :  { %5079 = vmatprep.subr.bf16.mxu0 %v7827_v26  ;;  %5571 = vmatprep.subr.bf16.mxu1 %v7830_v27  ;;  %v7917_v26 = vld [vmem:[#allocation5 + $0x11c4] ss:$16 sps:$4 sm:$0xff]   ;;  %v7920_v27 = vld [vmem:[#allocation5 + $0x11cc] ss:$16 sps:$4 sm:$0xff]  }
 0x259   :  { %5080 = vmatpush1.bf16.msra.mxu0 %v7825_v28  ;;  %5572 = vmatpush1.bf16.msra.mxu1 %v7828_v29  ;;  %v7915_v28 = vld [vmem:[#allocation5 + $0x11c0] ss:$16 sps:$4 sm:$0xff]   ;;  %v7918_v29 = vld [vmem:[#allocation5 + $0x11c8] ss:$16 sps:$4 sm:$0xff]  }
 0x25a   :  { %5090 = vmatprep.subr.bf16.mxu0 %v7833_v31  ;;  %5582 = vmatprep.subr.bf16.mxu1 %v7836_v32  ;;  %v7926_v31 = vld [vmem:[#allocation5 + $0x11ec] ss:$16 sps:$4 sm:$0xff]   ;;  %v7921_v32 = vld [vmem:[#allocation5 + $0x11e0] ss:$16 sps:$4 sm:$0xff]  }
 0x25c   :  { %5082 = vmatmul.mubr.bf16.vlgmr.msra.gmra.mrb[0].mxu0 %v122_v33  ;;  %5574 = vmatmul.mubr.bf16.vlgmr.msra.gmra.mrb[0].mxu1 %v122_v33  ;;  %v7924_v33 = vld [vmem:[#allocation5 + $0x11e8] ss:$16 sps:$4 sm:$0xff]  }
 0x25d   :  { %5091 = vmatpush1.bf16.msra.mxu0 %v7831_v35  ;;  %5583 = vmatpush1.bf16.msra.mxu1 %v7834_v36  ;;  %v7929_v35 = vld [vmem:[#allocation5 + $0x1204] ss:$16 sps:$4 sm:$0xff]   ;;  %v7932_v36 = vld [vmem:[#allocation5 + $0x120c] ss:$16 sps:$4 sm:$0xff]  }
 0x25e   :  { %5092 = vmatprep.subr.bf16.mxu0 %v7839_v37  ;;  %5584 = vmatprep.subr.bf16.mxu1 %v7842_v38  ;;  %v124_v37 = vpack.c.bf16 %v100_v34, %v100_v34  ;;  %v103_v38 = vld [vmem:[#allocation2 + $0x98] sm:$0xff]  ;;  %v8019_v34 = vld [vmem:[#allocation5 + $0x13e4] ss:$16 sps:$4 sm:$0xff]  }
 0x25f   :  { %5122 = vmatprep.mubr.bf16.mxu0 %v125_v39  ;;  %5614 = vmatprep.mubr.bf16.mxu1 %v125_v39  ;;  %v7927_v39 = vld [vmem:[#allocation5 + $0x1200] ss:$16 sps:$4 sm:$0xff]  }
 0x261   :  { %5093 = vmatpush1.bf16.msra.mxu0 %v7837_v40  ;;  %5585 = vmatpush1.bf16.msra.mxu1 %v7840_v41  ;;  %v7930_v40 = vld [vmem:[#allocation5 + $0x1208] ss:$16 sps:$4 sm:$0xff]   ;;  %v7935_v41 = vld [vmem:[#allocation5 + $0x1224] ss:$16 sps:$4 sm:$0xff]  }
 0x262   :  { %5094 = vmatprep.subr.bf16.mxu0 %v7845_v42  ;;  %5586 = vmatprep.subr.bf16.mxu1 %v7848_v43  ;;  %v7938_v42 = vld [vmem:[#allocation5 + $0x122c] ss:$16 sps:$4 sm:$0xff]   ;;  %v127_v43 = vpack.c.bf16 %v103_v38, %v103_v38  ;;  %v102_v38 = vld [vmem:[#allocation2 + $0x90] sm:$0xff] }
 0x265   :  { %5095 = vmatpush1.bf16.msra.mxu0 %v7843_v44  ;;  %5587 = vmatpush1.bf16.msra.mxu1 %v7846_v45  ;;  %v7933_v44 = vld [vmem:[#allocation5 + $0x1220] ss:$16 sps:$4 sm:$0xff]   ;;  %v7936_v45 = vld [vmem:[#allocation5 + $0x1228] ss:$16 sps:$4 sm:$0xff]  }
 0x266   :  { %5096 = vmatprep.subr.bf16.mxu0 %v7851_v46  ;;  %5588 = vmatprep.subr.bf16.mxu1 %v7854_v47  ;;  %v7941_v46 = vld [vmem:[#allocation5 + $0x1244] ss:$16 sps:$4 sm:$0xff]   ;;  %v7944_v47 = vld [vmem:[#allocation5 + $0x124c] ss:$16 sps:$4 sm:$0xff]  }
 0x269   :  { %5097 = vmatpush1.bf16.msra.mxu0 %v7849_v48  ;;  %5589 = vmatpush1.bf16.msra.mxu1 %v7852_v49  ;;  %v7939_v48 = vld [vmem:[#allocation5 + $0x1240] ss:$16 sps:$4 sm:$0xff]   ;;  %v7942_v49 = vld [vmem:[#allocation5 + $0x1248] ss:$16 sps:$4 sm:$0xff]  }
 0x26a   :  { %5098 = vmatprep.subr.bf16.mxu0 %v7857_v50  ;;  %5590 = vmatprep.subr.bf16.mxu1 %v7860_v51  ;;  %v7947_v50 = vld [vmem:[#allocation5 + $0x1264] ss:$16 sps:$4 sm:$0xff]   ;;  %v7950_v51 = vld [vmem:[#allocation5 + $0x126c] ss:$16 sps:$4 sm:$0xff]  }
 0x26d   :  { %5099 = vmatpush1.bf16.msra.mxu0 %v7855_v52  ;;  %5591 = vmatpush1.bf16.msra.mxu1 %v7858_v53  ;;  %v7945_v52 = vld [vmem:[#allocation5 + $0x1260] ss:$16 sps:$4 sm:$0xff]   ;;  %v7948_v53 = vld [vmem:[#allocation5 + $0x1268] ss:$16 sps:$4 sm:$0xff]  }
 0x26e   :  { %5100 = vmatprep.subr.bf16.mxu0 %v7863_v54  ;;  %5592 = vmatprep.subr.bf16.mxu1 %v7866_v55  ;;  %v7953_v54 = vld [vmem:[#allocation5 + $0x1284] ss:$16 sps:$4 sm:$0xff]   ;;  %v7956_v55 = vld [vmem:[#allocation5 + $0x128c] ss:$16 sps:$4 sm:$0xff]  }
 0x271   :  { %5101 = vmatpush1.bf16.msra.mxu0 %v7861_v56  ;;  %5593 = vmatpush1.bf16.msra.mxu1 %v7864_v57  ;;  %v7951_v56 = vld [vmem:[#allocation5 + $0x1280] ss:$16 sps:$4 sm:$0xff]   ;;  %v7954_v57 = vld [vmem:[#allocation5 + $0x1288] ss:$16 sps:$4 sm:$0xff]  }
 0x272   :  { %5102 = vmatprep.subr.bf16.mxu0 %v7869_v58  ;;  %5594 = vmatprep.subr.bf16.mxu1 %v7872_v59  ;;  %v7959_v58 = vld [vmem:[#allocation5 + $0x12a4] ss:$16 sps:$4 sm:$0xff]   ;;  %v7962_v59 = vld [vmem:[#allocation5 + $0x12ac] ss:$16 sps:$4 sm:$0xff]  }
 0x275   :  { %5103 = vmatpush1.bf16.msra.mxu0 %v7867_v60  ;;  %5595 = vmatpush1.bf16.msra.mxu1 %v7870_v61  ;;  %v7957_v60 = vld [vmem:[#allocation5 + $0x12a0] ss:$16 sps:$4 sm:$0xff]   ;;  %v7960_v61 = vld [vmem:[#allocation5 + $0x12a8] ss:$16 sps:$4 sm:$0xff]  }
 0x276   :  { %5104 = vmatprep.subr.bf16.mxu0 %v7875_v62  ;;  %5596 = vmatprep.subr.bf16.mxu1 %v7878_v63  ;;  %v7965_v62 = vld [vmem:[#allocation5 + $0x12c4] ss:$16 sps:$4 sm:$0xff]   ;;  %v7968_v63 = vld [vmem:[#allocation5 + $0x12cc] ss:$16 sps:$4 sm:$0xff]  }
 0x279   :  { %5105 = vmatpush1.bf16.msra.mxu0 %v7873_v0  ;;  %5597 = vmatpush1.bf16.msra.mxu1 %v7876_v1  ;;  %v7963_v0 = vld [vmem:[#allocation5 + $0x12c0] ss:$16 sps:$4 sm:$0xff]   ;;  %v7966_v1 = vld [vmem:[#allocation5 + $0x12c8] ss:$16 sps:$4 sm:$0xff]  }
 0x27a   :  { %5106 = vmatprep.subr.bf16.mxu0 %v7881_v2  ;;  %5598 = vmatprep.subr.bf16.mxu1 %v7884_v3  ;;  %v7971_v2 = vld [vmem:[#allocation5 + $0x12e4] ss:$16 sps:$4 sm:$0xff]   ;;  %v7974_v3 = vld [vmem:[#allocation5 + $0x12ec] ss:$16 sps:$4 sm:$0xff]  }
 0x27d   :  { %5107 = vmatpush1.bf16.msra.mxu0 %v7879_v4  ;;  %5599 = vmatpush1.bf16.msra.mxu1 %v7882_v5  ;;  %v7969_v4 = vld [vmem:[#allocation5 + $0x12e0] ss:$16 sps:$4 sm:$0xff]   ;;  %v7972_v5 = vld [vmem:[#allocation5 + $0x12e8] ss:$16 sps:$4 sm:$0xff]  }
 0x27e   :  { %5108 = vmatprep.subr.bf16.mxu0 %v7887_v6  ;;  %5600 = vmatprep.subr.bf16.mxu1 %v7890_v7  ;;  %v7977_v6 = vld [vmem:[#allocation5 + $0x1304] ss:$16 sps:$4 sm:$0xff]   ;;  %v7980_v7 = vld [vmem:[#allocation5 + $0x130c] ss:$16 sps:$4 sm:$0xff]  }
 0x281   :  { %5109 = vmatpush1.bf16.msra.mxu0 %v7885_v8  ;;  %5601 = vmatpush1.bf16.msra.mxu1 %v7888_v9  ;;  %v7975_v8 = vld [vmem:[#allocation5 + $0x1300] ss:$16 sps:$4 sm:$0xff]   ;;  %v7978_v9 = vld [vmem:[#allocation5 + $0x1308] ss:$16 sps:$4 sm:$0xff]  }
 0x282   :  { %5110 = vmatprep.subr.bf16.mxu0 %v7893_v10  ;;  %5602 = vmatprep.subr.bf16.mxu1 %v7896_v11  ;;  %v7983_v10 = vld [vmem:[#allocation5 + $0x1324] ss:$16 sps:$4 sm:$0xff]   ;;  %v7986_v11 = vld [vmem:[#allocation5 + $0x132c] ss:$16 sps:$4 sm:$0xff]  }
 0x285   :  { %5111 = vmatpush1.bf16.msra.mxu0 %v7891_v12  ;;  %5603 = vmatpush1.bf16.msra.mxu1 %v7894_v13  ;;  %v7981_v12 = vld [vmem:[#allocation5 + $0x1320] ss:$16 sps:$4 sm:$0xff]   ;;  %v7984_v13 = vld [vmem:[#allocation5 + $0x1328] ss:$16 sps:$4 sm:$0xff]  }
 0x286   :  { %5112 = vmatprep.subr.bf16.mxu0 %v7899_v14  ;;  %5604 = vmatprep.subr.bf16.mxu1 %v7902_v15  ;;  %v7989_v14 = vld [vmem:[#allocation5 + $0x1344] ss:$16 sps:$4 sm:$0xff]   ;;  %v7992_v15 = vld [vmem:[#allocation5 + $0x134c] ss:$16 sps:$4 sm:$0xff]  }
 0x289   :  { %5113 = vmatpush1.bf16.msra.mxu0 %v7897_v16  ;;  %5605 = vmatpush1.bf16.msra.mxu1 %v7900_v17  ;;  %v7987_v16 = vld [vmem:[#allocation5 + $0x1340] ss:$16 sps:$4 sm:$0xff]   ;;  %v7990_v17 = vld [vmem:[#allocation5 + $0x1348] ss:$16 sps:$4 sm:$0xff]  }
 0x28a   :  { %5114 = vmatprep.subr.bf16.mxu0 %v7905_v18  ;;  %5606 = vmatprep.subr.bf16.mxu1 %v7908_v19  ;;  %v7995_v18 = vld [vmem:[#allocation5 + $0x1364] ss:$16 sps:$4 sm:$0xff]   ;;  %v7998_v19 = vld [vmem:[#allocation5 + $0x136c] ss:$16 sps:$4 sm:$0xff]  }
 0x28d   :  { %5115 = vmatpush1.bf16.msra.mxu0 %v7903_v20  ;;  %5607 = vmatpush1.bf16.msra.mxu1 %v7906_v21  ;;  %v7993_v20 = vld [vmem:[#allocation5 + $0x1360] ss:$16 sps:$4 sm:$0xff]   ;;  %v7996_v21 = vld [vmem:[#allocation5 + $0x1368] ss:$16 sps:$4 sm:$0xff]  }
 0x28e   :  { %5116 = vmatprep.subr.bf16.mxu0 %v7911_v22  ;;  %5608 = vmatprep.subr.bf16.mxu1 %v7914_v23  ;;  %v8001_v22 = vld [vmem:[#allocation5 + $0x1384] ss:$16 sps:$4 sm:$0xff]   ;;  %v8004_v23 = vld [vmem:[#allocation5 + $0x138c] ss:$16 sps:$4 sm:$0xff]  }
 0x291   :  { %5117 = vmatpush1.bf16.msra.mxu0 %v7909_v24  ;;  %5609 = vmatpush1.bf16.msra.mxu1 %v7912_v25  ;;  %v7999_v24 = vld [vmem:[#allocation5 + $0x1380] ss:$16 sps:$4 sm:$0xff]   ;;  %v8002_v25 = vld [vmem:[#allocation5 + $0x1388] ss:$16 sps:$4 sm:$0xff]  }
 0x292   :  { %5118 = vmatprep.subr.bf16.mxu0 %v7917_v26  ;;  %5610 = vmatprep.subr.bf16.mxu1 %v7920_v27  ;;  %v8007_v26 = vld [vmem:[#allocation5 + $0x13a4] ss:$16 sps:$4 sm:$0xff]   ;;  %v8010_v27 = vld [vmem:[#allocation5 + $0x13ac] ss:$16 sps:$4 sm:$0xff]  }
 0x295   :  { %5119 = vmatpush1.bf16.msra.mxu0 %v7915_v28  ;;  %5611 = vmatpush1.bf16.msra.mxu1 %v7918_v29  ;;  %v8005_v28 = vld [vmem:[#allocation5 + $0x13a0] ss:$16 sps:$4 sm:$0xff]   ;;  %v8008_v29 = vld [vmem:[#allocation5 + $0x13a8] ss:$16 sps:$4 sm:$0xff]  }
 0x296   :  { %5120 = vmatprep.subr.bf16.mxu0 %v7923_v30  ;;  %5612 = vmatprep.subr.bf16.mxu1 %v7926_v31  ;;  %v8013_v30 = vld [vmem:[#allocation5 + $0x13c4] ss:$16 sps:$4 sm:$0xff]   ;;  %v8016_v31 = vld [vmem:[#allocation5 + $0x13cc] ss:$16 sps:$4 sm:$0xff]  }
 0x299   :  { %5121 = vmatpush1.bf16.msra.mxu0 %v7921_v32  ;;  %5613 = vmatpush1.bf16.msra.mxu1 %v7924_v33  ;;  %v8011_v32 = vld [vmem:[#allocation5 + $0x13c0] ss:$16 sps:$4 sm:$0xff]   ;;  %v8014_v33 = vld [vmem:[#allocation5 + $0x13c8] ss:$16 sps:$4 sm:$0xff]  }
 0x29a   :  { %5131 = vmatprep.subr.bf16.mxu0 %v7929_v35  ;;  %5623 = vmatprep.subr.bf16.mxu1 %v7932_v36  ;;  %v8022_v35 = vld [vmem:[#allocation5 + $0x13ec] ss:$16 sps:$4 sm:$0xff]   ;;  %v8017_v36 = vld [vmem:[#allocation5 + $0x13e0] ss:$16 sps:$4 sm:$0xff]  }
 0x29c   :  { %5123 = vmatmul.mubr.bf16.vlgmr.msra.gmra.mrb[0].mxu0 %v124_v37  ;;  %5615 = vmatmul.mubr.bf16.vlgmr.msra.gmra.mrb[0].mxu1 %v124_v37  ;;  %v8020_v37 = vld [vmem:[#allocation5 + $0x13e8] ss:$16 sps:$4 sm:$0xff]  }
 0x29d   :  { %5132 = vmatpush1.bf16.msra.mxu0 %v7927_v39  ;;  %5624 = vmatpush1.bf16.msra.mxu1 %v7930_v40  ;;  %v8025_v39 = vld [vmem:[#allocation5 + $0x1404] ss:$16 sps:$4 sm:$0xff]   ;;  %v8028_v40 = vld [vmem:[#allocation5 + $0x140c] ss:$16 sps:$4 sm:$0xff]  }
 0x29e   :  { %5133 = vmatprep.subr.bf16.mxu0 %v7935_v41  ;;  %5625 = vmatprep.subr.bf16.mxu1 %v7938_v42  ;;  %v126_v41 = vpack.c.bf16 %v102_v38, %v102_v38  ;;  %v105_v42 = vld [vmem:[#allocation2 + $0xa8] sm:$0xff]  ;;  %v8115_v38 = vld [vmem:[#allocation5 + $0x15e4] ss:$16 sps:$4 sm:$0xff]  }
 0x29f   :  { %5163 = vmatprep.mubr.bf16.mxu0 %v127_v43  ;;  %5655 = vmatprep.mubr.bf16.mxu1 %v127_v43  ;;  %v8023_v43 = vld [vmem:[#allocation5 + $0x1400] ss:$16 sps:$4 sm:$0xff]  }
 0x2a1   :  { %5134 = vmatpush1.bf16.msra.mxu0 %v7933_v44  ;;  %5626 = vmatpush1.bf16.msra.mxu1 %v7936_v45  ;;  %v8026_v44 = vld [vmem:[#allocation5 + $0x1408] ss:$16 sps:$4 sm:$0xff]   ;;  %v8031_v45 = vld [vmem:[#allocation5 + $0x1424] ss:$16 sps:$4 sm:$0xff]  }
 0x2a2   :  { %5135 = vmatprep.subr.bf16.mxu0 %v7941_v46  ;;  %5627 = vmatprep.subr.bf16.mxu1 %v7944_v47  ;;  %v8034_v46 = vld [vmem:[#allocation5 + $0x142c] ss:$16 sps:$4 sm:$0xff]   ;;  %v129_v47 = vpack.c.bf16 %v105_v42, %v105_v42  ;;  %v104_v42 = vld [vmem:[#allocation2 + $0xa0] sm:$0xff] }
 0x2a5   :  { %5136 = vmatpush1.bf16.msra.mxu0 %v7939_v48  ;;  %5628 = vmatpush1.bf16.msra.mxu1 %v7942_v49  ;;  %v8029_v48 = vld [vmem:[#allocation5 + $0x1420] ss:$16 sps:$4 sm:$0xff]   ;;  %v8032_v49 = vld [vmem:[#allocation5 + $0x1428] ss:$16 sps:$4 sm:$0xff]  }
 0x2a6   :  { %5137 = vmatprep.subr.bf16.mxu0 %v7947_v50  ;;  %5629 = vmatprep.subr.bf16.mxu1 %v7950_v51  ;;  %v8037_v50 = vld [vmem:[#allocation5 + $0x1444] ss:$16 sps:$4 sm:$0xff]   ;;  %v8040_v51 = vld [vmem:[#allocation5 + $0x144c] ss:$16 sps:$4 sm:$0xff]  }
 0x2a9   :  { %5138 = vmatpush1.bf16.msra.mxu0 %v7945_v52  ;;  %5630 = vmatpush1.bf16.msra.mxu1 %v7948_v53  ;;  %v8035_v52 = vld [vmem:[#allocation5 + $0x1440] ss:$16 sps:$4 sm:$0xff]   ;;  %v8038_v53 = vld [vmem:[#allocation5 + $0x1448] ss:$16 sps:$4 sm:$0xff]  }
 0x2aa   :  { %5139 = vmatprep.subr.bf16.mxu0 %v7953_v54  ;;  %5631 = vmatprep.subr.bf16.mxu1 %v7956_v55  ;;  %v8043_v54 = vld [vmem:[#allocation5 + $0x1464] ss:$16 sps:$4 sm:$0xff]   ;;  %v8046_v55 = vld [vmem:[#allocation5 + $0x146c] ss:$16 sps:$4 sm:$0xff]  }
 0x2ad   :  { %5140 = vmatpush1.bf16.msra.mxu0 %v7951_v56  ;;  %5632 = vmatpush1.bf16.msra.mxu1 %v7954_v57  ;;  %v8041_v56 = vld [vmem:[#allocation5 + $0x1460] ss:$16 sps:$4 sm:$0xff]   ;;  %v8044_v57 = vld [vmem:[#allocation5 + $0x1468] ss:$16 sps:$4 sm:$0xff]  }
 0x2ae   :  { %5141 = vmatprep.subr.bf16.mxu0 %v7959_v58  ;;  %5633 = vmatprep.subr.bf16.mxu1 %v7962_v59  ;;  %v8049_v58 = vld [vmem:[#allocation5 + $0x1484] ss:$16 sps:$4 sm:$0xff]   ;;  %v8052_v59 = vld [vmem:[#allocation5 + $0x148c] ss:$16 sps:$4 sm:$0xff]  }
 0x2b1   :  { %5142 = vmatpush1.bf16.msra.mxu0 %v7957_v60  ;;  %5634 = vmatpush1.bf16.msra.mxu1 %v7960_v61  ;;  %v8047_v60 = vld [vmem:[#allocation5 + $0x1480] ss:$16 sps:$4 sm:$0xff]   ;;  %v8050_v61 = vld [vmem:[#allocation5 + $0x1488] ss:$16 sps:$4 sm:$0xff]  }
 0x2b2   :  { %5143 = vmatprep.subr.bf16.mxu0 %v7965_v62  ;;  %5635 = vmatprep.subr.bf16.mxu1 %v7968_v63  ;;  %v8055_v62 = vld [vmem:[#allocation5 + $0x14a4] ss:$16 sps:$4 sm:$0xff]   ;;  %v8058_v63 = vld [vmem:[#allocation5 + $0x14ac] ss:$16 sps:$4 sm:$0xff]  }
 0x2b5   :  { %5144 = vmatpush1.bf16.msra.mxu0 %v7963_v0  ;;  %5636 = vmatpush1.bf16.msra.mxu1 %v7966_v1  ;;  %v8053_v0 = vld [vmem:[#allocation5 + $0x14a0] ss:$16 sps:$4 sm:$0xff]   ;;  %v8056_v1 = vld [vmem:[#allocation5 + $0x14a8] ss:$16 sps:$4 sm:$0xff]  }
 0x2b6   :  { %5145 = vmatprep.subr.bf16.mxu0 %v7971_v2  ;;  %5637 = vmatprep.subr.bf16.mxu1 %v7974_v3  ;;  %v8061_v2 = vld [vmem:[#allocation5 + $0x14c4] ss:$16 sps:$4 sm:$0xff]   ;;  %v8064_v3 = vld [vmem:[#allocation5 + $0x14cc] ss:$16 sps:$4 sm:$0xff]  }
 0x2b9   :  { %5146 = vmatpush1.bf16.msra.mxu0 %v7969_v4  ;;  %5638 = vmatpush1.bf16.msra.mxu1 %v7972_v5  ;;  %v8059_v4 = vld [vmem:[#allocation5 + $0x14c0] ss:$16 sps:$4 sm:$0xff]   ;;  %v8062_v5 = vld [vmem:[#allocation5 + $0x14c8] ss:$16 sps:$4 sm:$0xff]  }
 0x2ba   :  { %5147 = vmatprep.subr.bf16.mxu0 %v7977_v6  ;;  %5639 = vmatprep.subr.bf16.mxu1 %v7980_v7  ;;  %v8067_v6 = vld [vmem:[#allocation5 + $0x14e4] ss:$16 sps:$4 sm:$0xff]   ;;  %v8070_v7 = vld [vmem:[#allocation5 + $0x14ec] ss:$16 sps:$4 sm:$0xff]  }
 0x2bd   :  { %5148 = vmatpush1.bf16.msra.mxu0 %v7975_v8  ;;  %5640 = vmatpush1.bf16.msra.mxu1 %v7978_v9  ;;  %v8065_v8 = vld [vmem:[#allocation5 + $0x14e0] ss:$16 sps:$4 sm:$0xff]   ;;  %v8068_v9 = vld [vmem:[#allocation5 + $0x14e8] ss:$16 sps:$4 sm:$0xff]  }
 0x2be   :  { %5149 = vmatprep.subr.bf16.mxu0 %v7983_v10  ;;  %5641 = vmatprep.subr.bf16.mxu1 %v7986_v11  ;;  %v8073_v10 = vld [vmem:[#allocation5 + $0x1504] ss:$16 sps:$4 sm:$0xff]   ;;  %v8076_v11 = vld [vmem:[#allocation5 + $0x150c] ss:$16 sps:$4 sm:$0xff]  }
 0x2c1   :  { %5150 = vmatpush1.bf16.msra.mxu0 %v7981_v12  ;;  %5642 = vmatpush1.bf16.msra.mxu1 %v7984_v13  ;;  %v8071_v12 = vld [vmem:[#allocation5 + $0x1500] ss:$16 sps:$4 sm:$0xff]   ;;  %v8074_v13 = vld [vmem:[#allocation5 + $0x1508] ss:$16 sps:$4 sm:$0xff]  }
 0x2c2   :  { %5151 = vmatprep.subr.bf16.mxu0 %v7989_v14  ;;  %5643 = vmatprep.subr.bf16.mxu1 %v7992_v15  ;;  %v8079_v14 = vld [vmem:[#allocation5 + $0x1524] ss:$16 sps:$4 sm:$0xff]   ;;  %v8082_v15 = vld [vmem:[#allocation5 + $0x152c] ss:$16 sps:$4 sm:$0xff]  }
 0x2c5   :  { %5152 = vmatpush1.bf16.msra.mxu0 %v7987_v16  ;;  %5644 = vmatpush1.bf16.msra.mxu1 %v7990_v17  ;;  %v8077_v16 = vld [vmem:[#allocation5 + $0x1520] ss:$16 sps:$4 sm:$0xff]   ;;  %v8080_v17 = vld [vmem:[#allocation5 + $0x1528] ss:$16 sps:$4 sm:$0xff]  }
 0x2c6   :  { %5153 = vmatprep.subr.bf16.mxu0 %v7995_v18  ;;  %5645 = vmatprep.subr.bf16.mxu1 %v7998_v19  ;;  %v8085_v18 = vld [vmem:[#allocation5 + $0x1544] ss:$16 sps:$4 sm:$0xff]   ;;  %v8088_v19 = vld [vmem:[#allocation5 + $0x154c] ss:$16 sps:$4 sm:$0xff]  }
 0x2c9   :  { %5154 = vmatpush1.bf16.msra.mxu0 %v7993_v20  ;;  %5646 = vmatpush1.bf16.msra.mxu1 %v7996_v21  ;;  %v8083_v20 = vld [vmem:[#allocation5 + $0x1540] ss:$16 sps:$4 sm:$0xff]   ;;  %v8086_v21 = vld [vmem:[#allocation5 + $0x1548] ss:$16 sps:$4 sm:$0xff]  }
 0x2ca   :  { %5155 = vmatprep.subr.bf16.mxu0 %v8001_v22  ;;  %5647 = vmatprep.subr.bf16.mxu1 %v8004_v23  ;;  %v8091_v22 = vld [vmem:[#allocation5 + $0x1564] ss:$16 sps:$4 sm:$0xff]   ;;  %v8094_v23 = vld [vmem:[#allocation5 + $0x156c] ss:$16 sps:$4 sm:$0xff]  }
 0x2cd   :  { %5156 = vmatpush1.bf16.msra.mxu0 %v7999_v24  ;;  %5648 = vmatpush1.bf16.msra.mxu1 %v8002_v25  ;;  %v8089_v24 = vld [vmem:[#allocation5 + $0x1560] ss:$16 sps:$4 sm:$0xff]   ;;  %v8092_v25 = vld [vmem:[#allocation5 + $0x1568] ss:$16 sps:$4 sm:$0xff]  }
 0x2ce   :  { %5157 = vmatprep.subr.bf16.mxu0 %v8007_v26  ;;  %5649 = vmatprep.subr.bf16.mxu1 %v8010_v27  ;;  %v8097_v26 = vld [vmem:[#allocation5 + $0x1584] ss:$16 sps:$4 sm:$0xff]   ;;  %v8100_v27 = vld [vmem:[#allocation5 + $0x158c] ss:$16 sps:$4 sm:$0xff]  }
 0x2d1   :  { %5158 = vmatpush1.bf16.msra.mxu0 %v8005_v28  ;;  %5650 = vmatpush1.bf16.msra.mxu1 %v8008_v29  ;;  %v8095_v28 = vld [vmem:[#allocation5 + $0x1580] ss:$16 sps:$4 sm:$0xff]   ;;  %v8098_v29 = vld [vmem:[#allocation5 + $0x1588] ss:$16 sps:$4 sm:$0xff]  }
 0x2d2   :  { %5159 = vmatprep.subr.bf16.mxu0 %v8013_v30  ;;  %5651 = vmatprep.subr.bf16.mxu1 %v8016_v31  ;;  %v8103_v30 = vld [vmem:[#allocation5 + $0x15a4] ss:$16 sps:$4 sm:$0xff]   ;;  %v8106_v31 = vld [vmem:[#allocation5 + $0x15ac] ss:$16 sps:$4 sm:$0xff]  }
 0x2d5   :  { %5160 = vmatpush1.bf16.msra.mxu0 %v8011_v32  ;;  %5652 = vmatpush1.bf16.msra.mxu1 %v8014_v33  ;;  %v8101_v32 = vld [vmem:[#allocation5 + $0x15a0] ss:$16 sps:$4 sm:$0xff]   ;;  %v8104_v33 = vld [vmem:[#allocation5 + $0x15a8] ss:$16 sps:$4 sm:$0xff]  }
 0x2d6   :  { %5161 = vmatprep.subr.bf16.mxu0 %v8019_v34  ;;  %5653 = vmatprep.subr.bf16.mxu1 %v8022_v35  ;;  %v8109_v34 = vld [vmem:[#allocation5 + $0x15c4] ss:$16 sps:$4 sm:$0xff]   ;;  %v8112_v35 = vld [vmem:[#allocation5 + $0x15cc] ss:$16 sps:$4 sm:$0xff]  }
 0x2d9   :  { %5162 = vmatpush1.bf16.msra.mxu0 %v8017_v36  ;;  %5654 = vmatpush1.bf16.msra.mxu1 %v8020_v37  ;;  %v8107_v36 = vld [vmem:[#allocation5 + $0x15c0] ss:$16 sps:$4 sm:$0xff]   ;;  %v8110_v37 = vld [vmem:[#allocation5 + $0x15c8] ss:$16 sps:$4 sm:$0xff]  }
 0x2da   :  { %5172 = vmatprep.subr.bf16.mxu0 %v8025_v39  ;;  %5664 = vmatprep.subr.bf16.mxu1 %v8028_v40  ;;  %v8118_v39 = vld [vmem:[#allocation5 + $0x15ec] ss:$16 sps:$4 sm:$0xff]   ;;  %v8113_v40 = vld [vmem:[#allocation5 + $0x15e0] ss:$16 sps:$4 sm:$0xff]  }
 0x2dc   :  { %5164 = vmatmul.mubr.bf16.vlgmr.msra.gmra.mrb[0].mxu0 %v126_v41  ;;  %5656 = vmatmul.mubr.bf16.vlgmr.msra.gmra.mrb[0].mxu1 %v126_v41  ;;  %v8116_v41 = vld [vmem:[#allocation5 + $0x15e8] ss:$16 sps:$4 sm:$0xff]  }
 0x2dd   :  { %5173 = vmatpush1.bf16.msra.mxu0 %v8023_v43  ;;  %5665 = vmatpush1.bf16.msra.mxu1 %v8026_v44  ;;  %v8121_v43 = vld [vmem:[#allocation5 + $0x1604] ss:$16 sps:$4 sm:$0xff]   ;;  %v8124_v44 = vld [vmem:[#allocation5 + $0x160c] ss:$16 sps:$4 sm:$0xff]  }
 0x2de   :  { %5174 = vmatprep.subr.bf16.mxu0 %v8031_v45  ;;  %5666 = vmatprep.subr.bf16.mxu1 %v8034_v46  ;;  %v128_v45 = vpack.c.bf16 %v104_v42, %v104_v42  ;;  %v107_v46 = vld [vmem:[#allocation2 + $0xb8] sm:$0xff]  ;;  %v8211_v42 = vld [vmem:[#allocation5 + $0x17e4] ss:$16 sps:$4 sm:$0xff]  }
 0x2df   :  { %5204 = vmatprep.mubr.bf16.mxu0 %v129_v47  ;;  %5696 = vmatprep.mubr.bf16.mxu1 %v129_v47  ;;  %v8119_v47 = vld [vmem:[#allocation5 + $0x1600] ss:$16 sps:$4 sm:$0xff]  }
 0x2e1   :  { %5175 = vmatpush1.bf16.msra.mxu0 %v8029_v48  ;;  %5667 = vmatpush1.bf16.msra.mxu1 %v8032_v49  ;;  %v8122_v48 = vld [vmem:[#allocation5 + $0x1608] ss:$16 sps:$4 sm:$0xff]   ;;  %v8127_v49 = vld [vmem:[#allocation5 + $0x1624] ss:$16 sps:$4 sm:$0xff]  }
 0x2e2   :  { %5176 = vmatprep.subr.bf16.mxu0 %v8037_v50  ;;  %5668 = vmatprep.subr.bf16.mxu1 %v8040_v51  ;;  %v8130_v50 = vld [vmem:[#allocation5 + $0x162c] ss:$16 sps:$4 sm:$0xff]   ;;  %v131_v51 = vpack.c.bf16 %v107_v46, %v107_v46  ;;  %v106_v46 = vld [vmem:[#allocation2 + $0xb0] sm:$0xff] }
 0x2e5   :  { %5177 = vmatpush1.bf16.msra.mxu0 %v8035_v52  ;;  %5669 = vmatpush1.bf16.msra.mxu1 %v8038_v53  ;;  %v8125_v52 = vld [vmem:[#allocation5 + $0x1620] ss:$16 sps:$4 sm:$0xff]   ;;  %v8128_v53 = vld [vmem:[#allocation5 + $0x1628] ss:$16 sps:$4 sm:$0xff]  }
 0x2e6   :  { %5178 = vmatprep.subr.bf16.mxu0 %v8043_v54  ;;  %5670 = vmatprep.subr.bf16.mxu1 %v8046_v55  ;;  %v8133_v54 = vld [vmem:[#allocation5 + $0x1644] ss:$16 sps:$4 sm:$0xff]   ;;  %v8136_v55 = vld [vmem:[#allocation5 + $0x164c] ss:$16 sps:$4 sm:$0xff]  }
 0x2e9   :  { %5179 = vmatpush1.bf16.msra.mxu0 %v8041_v56  ;;  %5671 = vmatpush1.bf16.msra.mxu1 %v8044_v57  ;;  %v8131_v56 = vld [vmem:[#allocation5 + $0x1640] ss:$16 sps:$4 sm:$0xff]   ;;  %v8134_v57 = vld [vmem:[#allocation5 + $0x1648] ss:$16 sps:$4 sm:$0xff]  }
 0x2ea   :  { %5180 = vmatprep.subr.bf16.mxu0 %v8049_v58  ;;  %5672 = vmatprep.subr.bf16.mxu1 %v8052_v59  ;;  %v8139_v58 = vld [vmem:[#allocation5 + $0x1664] ss:$16 sps:$4 sm:$0xff]   ;;  %v8142_v59 = vld [vmem:[#allocation5 + $0x166c] ss:$16 sps:$4 sm:$0xff]  }
 0x2ed   :  { %5181 = vmatpush1.bf16.msra.mxu0 %v8047_v60  ;;  %5673 = vmatpush1.bf16.msra.mxu1 %v8050_v61  ;;  %v8137_v60 = vld [vmem:[#allocation5 + $0x1660] ss:$16 sps:$4 sm:$0xff]   ;;  %v8140_v61 = vld [vmem:[#allocation5 + $0x1668] ss:$16 sps:$4 sm:$0xff]  }
 0x2ee   :  { %5182 = vmatprep.subr.bf16.mxu0 %v8055_v62  ;;  %5674 = vmatprep.subr.bf16.mxu1 %v8058_v63  ;;  %v8145_v62 = vld [vmem:[#allocation5 + $0x1684] ss:$16 sps:$4 sm:$0xff]   ;;  %v8148_v63 = vld [vmem:[#allocation5 + $0x168c] ss:$16 sps:$4 sm:$0xff]  }
 0x2f1   :  { %5183 = vmatpush1.bf16.msra.mxu0 %v8053_v0  ;;  %5675 = vmatpush1.bf16.msra.mxu1 %v8056_v1  ;;  %v8143_v0 = vld [vmem:[#allocation5 + $0x1680] ss:$16 sps:$4 sm:$0xff]   ;;  %v8146_v1 = vld [vmem:[#allocation5 + $0x1688] ss:$16 sps:$4 sm:$0xff]  }
 0x2f2   :  { %5184 = vmatprep.subr.bf16.mxu0 %v8061_v2  ;;  %5676 = vmatprep.subr.bf16.mxu1 %v8064_v3  ;;  %v8151_v2 = vld [vmem:[#allocation5 + $0x16a4] ss:$16 sps:$4 sm:$0xff]   ;;  %v8154_v3 = vld [vmem:[#allocation5 + $0x16ac] ss:$16 sps:$4 sm:$0xff]  }
 0x2f5   :  { %5185 = vmatpush1.bf16.msra.mxu0 %v8059_v4  ;;  %5677 = vmatpush1.bf16.msra.mxu1 %v8062_v5  ;;  %v8149_v4 = vld [vmem:[#allocation5 + $0x16a0] ss:$16 sps:$4 sm:$0xff]   ;;  %v8152_v5 = vld [vmem:[#allocation5 + $0x16a8] ss:$16 sps:$4 sm:$0xff]  }
 0x2f6   :  { %5186 = vmatprep.subr.bf16.mxu0 %v8067_v6  ;;  %5678 = vmatprep.subr.bf16.mxu1 %v8070_v7  ;;  %v8157_v6 = vld [vmem:[#allocation5 + $0x16c4] ss:$16 sps:$4 sm:$0xff]   ;;  %v8160_v7 = vld [vmem:[#allocation5 + $0x16cc] ss:$16 sps:$4 sm:$0xff]  }
 0x2f9   :  { %5187 = vmatpush1.bf16.msra.mxu0 %v8065_v8  ;;  %5679 = vmatpush1.bf16.msra.mxu1 %v8068_v9  ;;  %v8155_v8 = vld [vmem:[#allocation5 + $0x16c0] ss:$16 sps:$4 sm:$0xff]   ;;  %v8158_v9 = vld [vmem:[#allocation5 + $0x16c8] ss:$16 sps:$4 sm:$0xff]  }
 0x2fa   :  { %5188 = vmatprep.subr.bf16.mxu0 %v8073_v10  ;;  %5680 = vmatprep.subr.bf16.mxu1 %v8076_v11  ;;  %v8163_v10 = vld [vmem:[#allocation5 + $0x16e4] ss:$16 sps:$4 sm:$0xff]   ;;  %v8166_v11 = vld [vmem:[#allocation5 + $0x16ec] ss:$16 sps:$4 sm:$0xff]  }
 0x2fd   :  { %5189 = vmatpush1.bf16.msra.mxu0 %v8071_v12  ;;  %5681 = vmatpush1.bf16.msra.mxu1 %v8074_v13  ;;  %v8161_v12 = vld [vmem:[#allocation5 + $0x16e0] ss:$16 sps:$4 sm:$0xff]   ;;  %v8164_v13 = vld [vmem:[#allocation5 + $0x16e8] ss:$16 sps:$4 sm:$0xff]  }
 0x2fe   :  { %5190 = vmatprep.subr.bf16.mxu0 %v8079_v14  ;;  %5682 = vmatprep.subr.bf16.mxu1 %v8082_v15  ;;  %v8169_v14 = vld [vmem:[#allocation5 + $0x1704] ss:$16 sps:$4 sm:$0xff]   ;;  %v8172_v15 = vld [vmem:[#allocation5 + $0x170c] ss:$16 sps:$4 sm:$0xff]  }
 0x301   :  { %5191 = vmatpush1.bf16.msra.mxu0 %v8077_v16  ;;  %5683 = vmatpush1.bf16.msra.mxu1 %v8080_v17  ;;  %v8167_v16 = vld [vmem:[#allocation5 + $0x1700] ss:$16 sps:$4 sm:$0xff]   ;;  %v8170_v17 = vld [vmem:[#allocation5 + $0x1708] ss:$16 sps:$4 sm:$0xff]  }
 0x302   :  { %5192 = vmatprep.subr.bf16.mxu0 %v8085_v18  ;;  %5684 = vmatprep.subr.bf16.mxu1 %v8088_v19  ;;  %v8175_v18 = vld [vmem:[#allocation5 + $0x1724] ss:$16 sps:$4 sm:$0xff]   ;;  %v8178_v19 = vld [vmem:[#allocation5 + $0x172c] ss:$16 sps:$4 sm:$0xff]  }
 0x305   :  { %5193 = vmatpush1.bf16.msra.mxu0 %v8083_v20  ;;  %5685 = vmatpush1.bf16.msra.mxu1 %v8086_v21  ;;  %v8173_v20 = vld [vmem:[#allocation5 + $0x1720] ss:$16 sps:$4 sm:$0xff]   ;;  %v8176_v21 = vld [vmem:[#allocation5 + $0x1728] ss:$16 sps:$4 sm:$0xff]  }
 0x306   :  { %5194 = vmatprep.subr.bf16.mxu0 %v8091_v22  ;;  %5686 = vmatprep.subr.bf16.mxu1 %v8094_v23  ;;  %v8181_v22 = vld [vmem:[#allocation5 + $0x1744] ss:$16 sps:$4 sm:$0xff]   ;;  %v8184_v23 = vld [vmem:[#allocation5 + $0x174c] ss:$16 sps:$4 sm:$0xff]  }
 0x309   :  { %5195 = vmatpush1.bf16.msra.mxu0 %v8089_v24  ;;  %5687 = vmatpush1.bf16.msra.mxu1 %v8092_v25  ;;  %v8179_v24 = vld [vmem:[#allocation5 + $0x1740] ss:$16 sps:$4 sm:$0xff]   ;;  %v8182_v25 = vld [vmem:[#allocation5 + $0x1748] ss:$16 sps:$4 sm:$0xff]  }
 0x30a   :  { %5196 = vmatprep.subr.bf16.mxu0 %v8097_v26  ;;  %5688 = vmatprep.subr.bf16.mxu1 %v8100_v27  ;;  %v8187_v26 = vld [vmem:[#allocation5 + $0x1764] ss:$16 sps:$4 sm:$0xff]   ;;  %v8190_v27 = vld [vmem:[#allocation5 + $0x176c] ss:$16 sps:$4 sm:$0xff]  }
 0x30d   :  { %5197 = vmatpush1.bf16.msra.mxu0 %v8095_v28  ;;  %5689 = vmatpush1.bf16.msra.mxu1 %v8098_v29  ;;  %v8185_v28 = vld [vmem:[#allocation5 + $0x1760] ss:$16 sps:$4 sm:$0xff]   ;;  %v8188_v29 = vld [vmem:[#allocation5 + $0x1768] ss:$16 sps:$4 sm:$0xff]  }
 0x30e   :  { %5198 = vmatprep.subr.bf16.mxu0 %v8103_v30  ;;  %5690 = vmatprep.subr.bf16.mxu1 %v8106_v31  ;;  %v8193_v30 = vld [vmem:[#allocation5 + $0x1784] ss:$16 sps:$4 sm:$0xff]   ;;  %v8196_v31 = vld [vmem:[#allocation5 + $0x178c] ss:$16 sps:$4 sm:$0xff]  }
 0x311   :  { %5199 = vmatpush1.bf16.msra.mxu0 %v8101_v32  ;;  %5691 = vmatpush1.bf16.msra.mxu1 %v8104_v33  ;;  %v8191_v32 = vld [vmem:[#allocation5 + $0x1780] ss:$16 sps:$4 sm:$0xff]   ;;  %v8194_v33 = vld [vmem:[#allocation5 + $0x1788] ss:$16 sps:$4 sm:$0xff]  }
 0x312   :  { %5200 = vmatprep.subr.bf16.mxu0 %v8109_v34  ;;  %5692 = vmatprep.subr.bf16.mxu1 %v8112_v35  ;;  %v8199_v34 = vld [vmem:[#allocation5 + $0x17a4] ss:$16 sps:$4 sm:$0xff]   ;;  %v8202_v35 = vld [vmem:[#allocation5 + $0x17ac] ss:$16 sps:$4 sm:$0xff]  }
 0x315   :  { %5201 = vmatpush1.bf16.msra.mxu0 %v8107_v36  ;;  %5693 = vmatpush1.bf16.msra.mxu1 %v8110_v37  ;;  %v8197_v36 = vld [vmem:[#allocation5 + $0x17a0] ss:$16 sps:$4 sm:$0xff]   ;;  %v8200_v37 = vld [vmem:[#allocation5 + $0x17a8] ss:$16 sps:$4 sm:$0xff]  }
 0x316   :  { %5202 = vmatprep.subr.bf16.mxu0 %v8115_v38  ;;  %5694 = vmatprep.subr.bf16.mxu1 %v8118_v39  ;;  %v8205_v38 = vld [vmem:[#allocation5 + $0x17c4] ss:$16 sps:$4 sm:$0xff]   ;;  %v8208_v39 = vld [vmem:[#allocation5 + $0x17cc] ss:$16 sps:$4 sm:$0xff]  }
 0x319   :  { %5203 = vmatpush1.bf16.msra.mxu0 %v8113_v40  ;;  %5695 = vmatpush1.bf16.msra.mxu1 %v8116_v41  ;;  %v8203_v40 = vld [vmem:[#allocation5 + $0x17c0] ss:$16 sps:$4 sm:$0xff]   ;;  %v8206_v41 = vld [vmem:[#allocation5 + $0x17c8] ss:$16 sps:$4 sm:$0xff]  }
 0x31a   :  { %5213 = vmatprep.subr.bf16.mxu0 %v8121_v43  ;;  %5705 = vmatprep.subr.bf16.mxu1 %v8124_v44  ;;  %v8214_v43 = vld [vmem:[#allocation5 + $0x17ec] ss:$16 sps:$4 sm:$0xff]   ;;  %v8209_v44 = vld [vmem:[#allocation5 + $0x17e0] ss:$16 sps:$4 sm:$0xff]  }
 0x31c   :  { %5205 = vmatmul.mubr.bf16.vlgmr.msra.gmra.mrb[0].mxu0 %v128_v45  ;;  %5697 = vmatmul.mubr.bf16.vlgmr.msra.gmra.mrb[0].mxu1 %v128_v45  ;;  %v8212_v45 = vld [vmem:[#allocation5 + $0x17e8] ss:$16 sps:$4 sm:$0xff]  }
 0x31d   :  { %5214 = vmatpush1.bf16.msra.mxu0 %v8119_v47  ;;  %5706 = vmatpush1.bf16.msra.mxu1 %v8122_v48  ;;  %v8215_v47 = vld [vmem:[#allocation8 + $0x40] sm:$0xff]  }
 0x31e   :  { %5215 = vmatprep.subr.bf16.mxu0 %v8127_v49  ;;  %5707 = vmatprep.subr.bf16.mxu1 %v8130_v50  ;;  %v8216_v48 = vld [vmem:[#allocation8 + $0xc0] sm:$0xff]   ;;  %v130_v49 = vpack.c.bf16 %v106_v46, %v106_v46 }
 0x31f   :  { %5245 = vmatprep.mubr.bf16.mxu0 %v131_v51  ;;  %5737 = vmatprep.mubr.bf16.mxu1 %v131_v51  ;;  %v8217_v50 = vld [vmem:[#allocation8] sm:$0xff]  }
 0x320   :  { %v8218_v51 = vld [vmem:[#allocation8 + $0x80] sm:$0xff]  }
 0x321   :  { %5216 = vmatpush1.bf16.msra.mxu0 %v8125_v52  ;;  %5708 = vmatpush1.bf16.msra.mxu1 %v8128_v53  ;;  %v8219_v52 = vld [vmem:[#allocation8 + $0x48] sm:$0xff]  }
 0x322   :  { %5217 = vmatprep.subr.bf16.mxu0 %v8133_v54  ;;  %5709 = vmatprep.subr.bf16.mxu1 %v8136_v55  ;;  %v8220_v53 = vld [vmem:[#allocation8 + $0xc8] sm:$0xff]  }
 0x323   :  { %v8221_v54 = vld [vmem:[#allocation8 + $0x8] sm:$0xff]  }
 0x324   :  { %v8222_v55 = vld [vmem:[#allocation8 + $0x88] sm:$0xff]  }
 0x325   :  { %5218 = vmatpush1.bf16.msra.mxu0 %v8131_v56  ;;  %5710 = vmatpush1.bf16.msra.mxu1 %v8134_v57  ;;  %v8223_v56 = vld [vmem:[#allocation8 + $0x50] sm:$0xff]  }
 0x326   :  { %5219 = vmatprep.subr.bf16.mxu0 %v8139_v58  ;;  %5711 = vmatprep.subr.bf16.mxu1 %v8142_v59  ;;  %v8224_v57 = vld [vmem:[#allocation8 + $0xd0] sm:$0xff]  }
 0x327   :  { %v8225_v58 = vld [vmem:[#allocation8 + $0x10] sm:$0xff]  }
 0x328   :  { %v8226_v59 = vld [vmem:[#allocation8 + $0x90] sm:$0xff]  }
 0x329   :  { %5220 = vmatpush1.bf16.msra.mxu0 %v8137_v60  ;;  %5712 = vmatpush1.bf16.msra.mxu1 %v8140_v61  ;;  %v8227_v60 = vld [vmem:[#allocation8 + $0x58] sm:$0xff]  }
 0x32a   :  { %5221 = vmatprep.subr.bf16.mxu0 %v8145_v62  ;;  %5713 = vmatprep.subr.bf16.mxu1 %v8148_v63  ;;  %v8228_v61 = vld [vmem:[#allocation8 + $0xd8] sm:$0xff]  }
 0x32b   :  { %v8229_v62 = vld [vmem:[#allocation8 + $0x18] sm:$0xff]  }
 0x32c   :  { %v8230_v63 = vld [vmem:[#allocation8 + $0x98] sm:$0xff]  }
 0x32d   :  { %5222 = vmatpush1.bf16.msra.mxu0 %v8143_v0  ;;  %5714 = vmatpush1.bf16.msra.mxu1 %v8146_v1  ;;  %v8231_v0 = vld [vmem:[#allocation8 + $0x60] sm:$0xff]  }
 0x32e   :  { %5223 = vmatprep.subr.bf16.mxu0 %v8151_v2  ;;  %5715 = vmatprep.subr.bf16.mxu1 %v8154_v3  ;;  %v8232_v1 = vld [vmem:[#allocation8 + $0xe0] sm:$0xff]  }
 0x32f   :  { %v8233_v2 = vld [vmem:[#allocation8 + $0x20] sm:$0xff]  }
 0x330   :  { %v8234_v3 = vld [vmem:[#allocation8 + $0xa0] sm:$0xff]  }
 0x331   :  { %5224 = vmatpush1.bf16.msra.mxu0 %v8149_v4  ;;  %5716 = vmatpush1.bf16.msra.mxu1 %v8152_v5  ;;  %v8235_v4 = vld [vmem:[#allocation8 + $0x68] sm:$0xff]  }
 0x332   :  { %5225 = vmatprep.subr.bf16.mxu0 %v8157_v6  ;;  %5717 = vmatprep.subr.bf16.mxu1 %v8160_v7  ;;  %v8236_v5 = vld [vmem:[#allocation8 + $0xe8] sm:$0xff]  }
 0x333   :  { %v8237_v6 = vld [vmem:[#allocation8 + $0x28] sm:$0xff]  }
 0x334   :  { %v8238_v7 = vld [vmem:[#allocation8 + $0xa8] sm:$0xff]  }
 0x335   :  { %5226 = vmatpush1.bf16.msra.mxu0 %v8155_v8  ;;  %5718 = vmatpush1.bf16.msra.mxu1 %v8158_v9  ;;  %v8239_v8 = vld [vmem:[#allocation8 + $0x70] sm:$0xff]  }
 0x336   :  { %5227 = vmatprep.subr.bf16.mxu0 %v8163_v10  ;;  %5719 = vmatprep.subr.bf16.mxu1 %v8166_v11  ;;  %v8240_v9 = vld [vmem:[#allocation8 + $0xf0] sm:$0xff]  }
 0x337   :  { %v8241_v10 = vld [vmem:[#allocation8 + $0x30] sm:$0xff]  }
 0x338   :  { %v8242_v11 = vld [vmem:[#allocation8 + $0xb0] sm:$0xff]  }
 0x339   :  { %5228 = vmatpush1.bf16.msra.mxu0 %v8161_v12  ;;  %5720 = vmatpush1.bf16.msra.mxu1 %v8164_v13  ;;  %v8243_v12 = vld [vmem:[#allocation8 + $0x78] sm:$0xff]  }
 0x33a   :  { %5229 = vmatprep.subr.bf16.mxu0 %v8169_v14  ;;  %5721 = vmatprep.subr.bf16.mxu1 %v8172_v15  ;;  %v8244_v13 = vld [vmem:[#allocation8 + $0xf8] sm:$0xff]  }
 0x33b   :  { %v8245_v14 = vld [vmem:[#allocation8 + $0x38] sm:$0xff]  }
 0x33c   :  { %v8246_v15 = vld [vmem:[#allocation8 + $0xb8] sm:$0xff]  }
 0x33d   :  { %5230 = vmatpush1.bf16.msra.mxu0 %v8167_v16  ;;  %5722 = vmatpush1.bf16.msra.mxu1 %v8170_v17  ;;  %v902_v16 = vlaneseq }
 0x33e   :  { %5231 = vmatprep.subr.bf16.mxu0 %v8175_v18  ;;  %5723 = vmatprep.subr.bf16.mxu1 %v8178_v19 }
 0x33f   :  { %v903_v17 = vshrl.u32 %v902_v16, 7 }
 0x341   :  { %5232 = vmatpush1.bf16.msra.mxu0 %v8173_v20  ;;  %5724 = vmatpush1.bf16.msra.mxu1 %v8176_v21  ;;  %v904_v18 = vsub.s32 0, %v903_v17  ;;  %v912_v19 = vsub.s32 2, %v903_v17  ;;  %v900_v20 = vld [vmem:[#allocation7] sm:$0xf]  ;;  %v908_v21 = vsub.s32 1, %v903_v17 }
 0x342   :  { %5233 = vmatprep.subr.bf16.mxu0 %v8181_v22  ;;  %5725 = vmatprep.subr.bf16.mxu1 %v8184_v23  ;;  %v916_v22 = vsub.s32 3, %v903_v17 }
 0x343   :  { %v905_v23 = vrot.slane %v900_v20, %v904_v18 }
 0x345   :  { %5234 = vmatpush1.bf16.msra.mxu0 %v8179_v24  ;;  %5726 = vmatpush1.bf16.msra.mxu1 %v8182_v25  ;;  %v913_v24 = vrot.slane %v900_v20, %v912_v19  ;;  %v909_v25 = vrot.slane %v900_v20, %v908_v21 }
 0x346   :  { %5235 = vmatprep.subr.bf16.mxu0 %v8187_v26  ;;  %5727 = vmatprep.subr.bf16.mxu1 %v8190_v27  ;;  %v917_v26 = vrot.slane %v900_v20, %v916_v22 }
 0x349   :  { %5236 = vmatpush1.bf16.msra.mxu0 %v8185_v28  ;;  %5728 = vmatpush1.bf16.msra.mxu1 %v8188_v29 }
 0x34a   :  { %5237 = vmatprep.subr.bf16.mxu0 %v8193_v30  ;;  %5729 = vmatprep.subr.bf16.mxu1 %v8196_v31 }
 0x34d   :  { %5238 = vmatpush1.bf16.msra.mxu0 %v8191_v32  ;;  %5730 = vmatpush1.bf16.msra.mxu1 %v8194_v33 }
 0x34e   :  { %5239 = vmatprep.subr.bf16.mxu0 %v8199_v34  ;;  %5731 = vmatprep.subr.bf16.mxu1 %v8202_v35 }
 0x351   :  { %5240 = vmatpush1.bf16.msra.mxu0 %v8197_v36  ;;  %5732 = vmatpush1.bf16.msra.mxu1 %v8200_v37 }
 0x352   :  { %5241 = vmatprep.subr.bf16.mxu0 %v8205_v38  ;;  %5733 = vmatprep.subr.bf16.mxu1 %v8208_v39 }
 0x355   :  { %5242 = vmatpush1.bf16.msra.mxu0 %v8203_v40  ;;  %5734 = vmatpush1.bf16.msra.mxu1 %v8206_v41 }
 0x356   :  { %5243 = vmatprep.subr.bf16.mxu0 %v8211_v42  ;;  %5735 = vmatprep.subr.bf16.mxu1 %v8214_v43 }
 0x359   :  { %5244 = vmatpush1.bf16.msra.mxu0 %v8209_v44  ;;  %5736 = vmatpush1.bf16.msra.mxu1 %v8212_v45 }
 0x35a   :  { %6917 = vmatprep.subr.bf16.mxu0 %v8215_v47  ;;  %6939 = vmatprep.subr.bf16.mxu1 %v8216_v48 }
 0x35c   :  { %5246 = vmatmul.mubr.bf16.vlgmr.msra.gmra.mrb[0].mxu0 %v130_v49  ;;  %5738 = vmatmul.mubr.bf16.vlgmr.msra.gmra.mrb[0].mxu1 %v130_v49  ;;  %v6884_v49 = vld [vmem:[#allocation10] ss:$0 sm:$0xff] }
 0x35d   :  { %6918 = vmatpush3.bf16.msra.mxu0 %v8217_v50  ;;  %6940 = vmatpush3.bf16.msra.mxu1 %v8218_v51 }
 0x35e   :  { %6919 = vmatprep.subr.bf16.mxu0 %v8219_v52  ;;  %6941 = vmatprep.subr.bf16.mxu1 %v8220_v53 }
 0x361   :  { %6920 = vmatpush3.bf16.msra.mxu0 %v8221_v54  ;;  %6942 = vmatpush3.bf16.msra.mxu1 %v8222_v55 }
 0x362   :  { %6921 = vmatprep.subr.bf16.mxu0 %v8223_v56  ;;  %6943 = vmatprep.subr.bf16.mxu1 %v8224_v57 }
 0x365   :  { %6922 = vmatpush3.bf16.msra.mxu0 %v8225_v58  ;;  %6944 = vmatpush3.bf16.msra.mxu1 %v8226_v59 }
 0x366   :  { %6923 = vmatprep.subr.bf16.mxu0 %v8227_v60  ;;  %6945 = vmatprep.subr.bf16.mxu1 %v8228_v61 }
 0x369   :  { %6924 = vmatpush3.bf16.msra.mxu0 %v8229_v62  ;;  %6946 = vmatpush3.bf16.msra.mxu1 %v8230_v63 }
 0x36a   :  { %6925 = vmatprep.subr.bf16.mxu0 %v8231_v0  ;;  %6947 = vmatprep.subr.bf16.mxu1 %v8232_v1 }
 0x36d   :  { %6926 = vmatpush3.bf16.msra.mxu0 %v8233_v2  ;;  %6948 = vmatpush3.bf16.msra.mxu1 %v8234_v3 }
 0x36e   :  { %6927 = vmatprep.subr.bf16.mxu0 %v8235_v4  ;;  %6949 = vmatprep.subr.bf16.mxu1 %v8236_v5 }
 0x371   :  { %6928 = vmatpush3.bf16.msra.mxu0 %v8237_v6  ;;  %6950 = vmatpush3.bf16.msra.mxu1 %v8238_v7 }
 0x372   :  { %6929 = vmatprep.subr.bf16.mxu0 %v8239_v8  ;;  %6951 = vmatprep.subr.bf16.mxu1 %v8240_v9 }
 0x375   :  { %6930 = vmatpush3.bf16.msra.mxu0 %v8241_v10  ;;  %6952 = vmatpush3.bf16.msra.mxu1 %v8242_v11 }
 0x376   :  { %6931 = vmatprep.subr.bf16.mxu0 %v8243_v12  ;;  %6953 = vmatprep.subr.bf16.mxu1 %v8244_v13 }
 0x379   :  { %6932 = vmatpush3.bf16.msra.mxu0 %v8245_v14  ;;  %6954 = vmatpush3.bf16.msra.mxu1 %v8246_v15 }
 0x42f   :  { %v5247_v27 = vpop.f32.mrb[0].mxu0  ;;  %v5739_v28 = vpop.f32.mrb[0].mxu1 }
 0x430   :  { %v6961_v29 = vadd.f32 %v5247_v27, %v905_v23  ;;  %v6963_v30 = vadd.f32 %v5739_v28, %v913_v24  ;;  %v5249_v31 = vpop.f32.mrb[1].mxu0  ;;  %v5741_v32 = vpop.f32.mrb[1].mxu1 }
 0x431   :  { %v6962_v33 = vadd.f32 %v5249_v31, %v909_v25  ;;  %v6964_v34 = vadd.f32 %v5741_v32, %v917_v26  ;;  %v5251_v35 = vpop.f32.mrb[2].mxu0  ;;  %v5743_v36 = vpop.f32.mrb[2].mxu1 }
 0x432   :  { %v5746_v37 = vmax.f32 %v6961_v29, 0.0  ;;  %v5748_v38 = vmax.f32 %v6963_v30, 0.0  ;;  %v5252_v39 = vpop.f32.mrb[3].mxu0  ;;  %v5744_v40 = vpop.f32.mrb[3].mxu1 }
 0x433   :  { %v5747_v41 = vmax.f32 %v6962_v33, 0.0  ;;  %v5749_v42 = vmax.f32 %v6964_v34, 0.0 }
 0x434   :  { %v5750_v45 = vpack.c.bf16 %v5746_v37, %v5746_v37  ;;  %v5752_v46 = vpack.c.bf16 %v5748_v38, %v5748_v38 }
 0x435   :  { %v5751_v43 = vpack.c.bf16 %v5747_v41, %v5747_v41  ;;  %v5753_v44 = vpack.c.bf16 %v5749_v42, %v5749_v42 }
 0x437   :  { %6049 = vmatprep.mubr.bf16.mxu0 %v5751_v43  ;;  %6089 = vmatprep.mubr.bf16.mxu1 %v5753_v44 }
 0x438   :  { %6050 = vmatmul.mubr.bf16.vlgmr.msra.gmra.mrb[4].mxu0 %v5750_v45  ;;  %6090 = vmatmul.mubr.bf16.vlgmr.msra.gmra.mrb[4].mxu1 %v5752_v46 }
 0x50b   :  { %v6933_v47 = vpop.f32.mrb[4].mxu0  ;;  %v6955_v48 = vpop.f32.mrb[4].mxu1 }
 0x50c   :  { %v6934_v50 = vpop.f32.mrb[5].mxu0  ;;  %v6956_v51 = vpop.f32.mrb[5].mxu1 }
 0x50d   :  { %v6935_v52 = vadd.f32 %v6934_v50, %v6933_v47  ;;  %v6957_v53 = vadd.f32 %v6956_v51, %v6955_v48  ;;  %v6936_v54 = vpop.f32.mrb[6].mxu0  ;;  %v6958_v55 = vpop.f32.mrb[6].mxu1 }
 0x50e   :  { %v6937_v56 = vpop.f32.mrb[7].mxu0  ;;  %v6959_v57 = vpop.f32.mrb[7].mxu1 }
 0x50f   :  { %v6052_v58 = vadd.f32 %v6935_v52, %v6884_v49 }
 0x511   :  { %v6092_v59 = vadd.f32 %v6957_v53, %v6052_v58 }
 0x513   :  { %v6097_v60 = vmax.f32 %v6092_v59, 0.0 }
 0x515   :  { %6098 = vst [vmem:[#allocation11] sm:$0xff] %v6097_v60 }
 0x516   :  { %8368 = shalt.err (!%p8365_p2)
}
 0x517   :  { %s8369_s6 = scalar_lea.hbm %s8504_s5, 128 }
 0x518   :  { %p8370_p3 = scmp.ne.s32.totalorder %s8504_s5, %s8369_s6  ;;  %p8373_p4 = scmp.lt.u32.totalorder %s8369_s6, %s8504_s5 }
 0x51a   :  { %p8375_p5 = pnand %p8373_p4, %p8370_p3 }
 0x51c   :  { %8378 = shalt.err (!%p8375_p5)
}
 0x51d   :  { %6108 = dma.vmem_to_hbm [thread:$0]  %s6106_s28, 128, %s8504_s5, [#allocation4]  }
 0x51e   :  { %8385 = dma.done.wait [#allocation4], 128  }
 0x51f   :  { %8386 = vsyncadd [#allocation4], 4294967168 }
 0x520   :  { %6112 = vsyncpa [#allocation3], 1 }
 0x521   :  { %6113 = vsyncpa [#allocation6], 1 }
 0x522   :  { %6114 = vsyncpa [#allocation9], 1 }
 0x523   :  { %6115 = vsyncpa [#allocation4], 1 }

// kernel: tpu_custom_call.1
= control target key start
LH: loop header
LB: loop body
LE: loop exit
PB: predicated region body
PF: predicated region fallthrough
CT: control target
= control target key end

     0   :  { %10 = vsyncpa [#allocation3], 0  ;;  %s8499_s0 = inlined_call_operand.hbm [shape: f32[8,3072], index: 0, kind: input, shape index: {}]   ;;  %s8500_s1 = inlined_call_operand.hbm [shape: bf16[3072,512], index: 1, kind: input, shape index: {}]   ;;  %s8501_s2 = inlined_call_operand.hbm [shape: f32[1,512], index: 2, kind: input, shape index: {}]   ;;  %s8502_s3 = inlined_call_operand.hbm [shape: bf16[512,128], index: 3, kind: input, shape index: {}]   ;;  %s8503_s4 = inlined_call_operand.hbm [shape: f32[1,128], index: 4, kind: input, shape index: {}]   ;;  %s8504_s5 = inlined_call_operand.hbm [shape: f32[8,128], index: 5, kind: output, shape index: {}]  }
   0x1   :  { %11 = vsyncpa [#allocation6], 0 }
   0x2   :  { %12 = vsyncpa [#allocation9], 0 }
   0x3   :  { %13 = vsyncpa [#allocation4], 0  ;;  %s8387_s18 = smov [#allocation5]   ;;  %s8247_s22 = scalar_lea.hbm %s8500_s1, 98304 }
   0x4   :  { %s29_s19 = sshll.u32 %s8387_s18, 4  ;;  %p8248_p0 = scmp.ne.s32.totalorder %s8500_s1, %s8247_s22  ;;  %s30_s19 = int_to_ptr.vmem [resolvable:$true] %s29_s19 }
   0x5   :  { %p8251_p1 = scmp.lt.u32.totalorder %s8247_s22, %s8500_s1 }
   0x7   :  { %p8253_p2 = pnand %p8251_p1, %p8248_p0 }
   0x9   :  { %8256 = shalt.err (!%p8253_p2)
}
   0xa   :  { %s8257_s27 = scalar_lea.vmem %s30_s19, 98304  ;;  %p8262_p4 = scmp.lt.s32.totalorder %s30_s19, %s30_s19 }
   0xb   :  { %p8258_p3 = scmp.ne.s32.totalorder %s30_s19, %s8257_s27  ;;  %p8263_p5 = scmp.lt.s32.totalorder %s8257_s27, %s8257_s27 }
   0xd   :  { %p8264_p6 = por %p8263_p5, %p8262_p4 }
   0xf   :  { %p8265_p7 = pnand %p8264_p6, %p8258_p3 }
  0x11   :  { %8268 = shalt.err (!%p8265_p7)
}
  0x12   :  { %s8388_s28 = smov 256   ;;  %s8389_s29 = smov 16  }
  0x13   :  { %35 = dma.hbm_to_vmem [thread:$0]  %s8500_s1, 98304, %s30_s19, [#allocation6], %s8388_s28, %s8388_s28, %s8389_s29  }
  0x14   :  { %s8390_s7 = smov [#allocation8]   ;;  %s8269_s11 = scalar_lea.hbm %s8502_s3, 4096 }
  0x15   :  { %s51_s8 = sshll.u32 %s8390_s7, 4  ;;  %p8270_p8 = scmp.ne.s32.totalorder %s8502_s3, %s8269_s11  ;;  %s52_s8 = int_to_ptr.vmem [resolvable:$true] %s51_s8 }
  0x16   :  { %p8273_p9 = scmp.lt.u32.totalorder %s8269_s11, %s8502_s3 }
  0x18   :  { %p8275_p10 = pnand %p8273_p9, %p8270_p8 }
  0x1a   :  { %8278 = shalt.err (!%p8275_p10)
}
  0x1b   :  { %s8279_s16 = scalar_lea.vmem %s52_s8, 4096  ;;  %p8284_p12 = scmp.lt.s32.totalorder %s52_s8, %s52_s8 }
  0x1c   :  { %p8280_p11 = scmp.ne.s32.totalorder %s52_s8, %s8279_s16  ;;  %p8285_p13 = scmp.lt.s32.totalorder %s8279_s16, %s8279_s16 }
  0x1e   :  { %p8286_p0 = por %p8285_p13, %p8284_p12 }
  0x20   :  { %p8287_p1 = pnand %p8286_p0, %p8280_p11 }
  0x22   :  { %8290 = shalt.err (!%p8287_p1)
}
  0x23   :  { %s8391_s1 = smov 64   ;;  %s8392_s17 = smov 4  }
  0x24   :  { %57 = dma.hbm_to_vmem [thread:$0]  %s8502_s3, 4096, %s52_s8, [#allocation9], %s8391_s1, %s8391_s1, %s8392_s17  }
  0x25   :  { %s8393_s20 = smov [#allocation2]   ;;  %s8394_s22 = smov [#allocation7]  }
  0x26   :  { %s20_s21 = sshll.u32 %s8393_s20, 4  ;;  %s42_s23 = sshll.u32 %s8394_s22, 4  ;;  %s21_s21 = int_to_ptr.vmem [resolvable:$true] %s20_s21  ;;  %s43_s23 = int_to_ptr.vmem [resolvable:$true] %s42_s23 }
  0x27   :  { %s8291_s26 = scalar_lea.hbm %s8499_s0, 3072 }
  0x28   :  { %p8292_p2 = scmp.ne.s32.totalorder %s8499_s0, %s8291_s26  ;;  %p8295_p3 = scmp.lt.u32.totalorder %s8291_s26, %s8499_s0 }
  0x2a   :  { %p8297_p4 = pnand %p8295_p3, %p8292_p2 }
  0x2c   :  { %8300 = shalt.err (!%p8297_p4)
}
  0x2d   :  { %s8301_s3 = scalar_lea.vmem %s21_s21, 3072  ;;  %p8306_p6 = scmp.lt.s32.totalorder %s21_s21, %s21_s21 }
  0x2e   :  { %p8302_p5 = scmp.ne.s32.totalorder %s21_s21, %s8301_s3  ;;  %p8307_p7 = scmp.lt.s32.totalorder %s8301_s3, %s8301_s3 }
  0x30   :  { %p8308_p8 = por %p8307_p7, %p8306_p6 }
  0x32   :  { %p8309_p9 = pnand %p8308_p8, %p8302_p5 }
  0x34   :  { %8312 = shalt.err (!%p8309_p9)
}
  0x35   :  { %23 = dma.hbm_to_vmem [thread:$0]  %s8499_s0, 3072, %s21_s21, [#allocation3]  }
  0x36   :  { %s8313_s10 = scalar_lea.hbm %s8501_s2, 64 }
  0x37   :  { %p8314_p10 = scmp.ne.s32.totalorder %s8501_s2, %s8313_s10  ;;  %p8317_p11 = scmp.lt.u32.totalorder %s8313_s10, %s8501_s2 }
  0x39   :  { %p8319_p12 = pnand %p8317_p11, %p8314_p10 }
  0x3b   :  { %8322 = shalt.err (!%p8319_p12)
}
  0x3c   :  { %s8323_s15 = scalar_lea.vmem %s43_s23, 64  ;;  %p8328_p0 = scmp.lt.s32.totalorder %s43_s23, %s43_s23 }
  0x3d   :  { %p8324_p13 = scmp.ne.s32.totalorder %s43_s23, %s8323_s15  ;;  %p8329_p1 = scmp.lt.s32.totalorder %s8323_s15, %s8323_s15 }
  0x3f   :  { %p8330_p2 = por %p8329_p1, %p8328_p0 }
  0x41   :  { %p8331_p3 = pnand %p8330_p2, %p8324_p13 }
  0x43   :  { %8334 = shalt.err (!%p8331_p3)
}
  0x44   :  { %45 = dma.hbm_to_vmem [thread:$0]  %s8501_s2, 64, %s43_s23, [#allocation6]  }
  0x45   :  { %s8395_s1 = smov [#allocation10]   ;;  %s8335_s20 = scalar_lea.hbm %s8503_s4, 16 }
  0x46   :  { %s64_s17 = sshll.u32 %s8395_s1, 4  ;;  %p8336_p4 = scmp.ne.s32.totalorder %s8503_s4, %s8335_s20  ;;  %s65_s17 = int_to_ptr.vmem [resolvable:$true] %s64_s17 }
  0x47   :  { %p8339_p5 = scmp.lt.u32.totalorder %s8335_s20, %s8503_s4 }
  0x49   :  { %p8341_p6 = pnand %p8339_p5, %p8336_p4 }
  0x4b   :  { %8344 = shalt.err (!%p8341_p6)
}
  0x4c   :  { %s8345_s26 = scalar_lea.vmem %s65_s17, 16  ;;  %s8349_s2 = scalar_lea.vmem %s65_s17, 32 }
  0x4d   :  { %p8346_p7 = scmp.ne.s32.totalorder %s65_s17, %s8345_s26  ;;  %p8350_p8 = scmp.lt.s32.totalorder %s65_s17, %s65_s17 }
  0x4e   :  { %p8351_p9 = scmp.lt.s32.totalorder %s8349_s2, %s8345_s26 }
  0x50   :  { %p8352_p10 = por %p8351_p9, %p8350_p8 }
  0x52   :  { %p8353_p11 = pnand %p8352_p10, %p8346_p7 }
  0x54   :  { %8356 = shalt.err (!%p8353_p11)
}
  0x55   :  { %67 = dma.hbm_to_vmem [thread:$0]  %s8503_s4, 16, %s65_s17, [#allocation9]  }
  0x56   :  { %8379 = dma.done.wait [#allocation3], 3072  }
  0x57   :  { %8380 = vsyncadd [#allocation3], 4294964224 }
  0x58   :  { %8381 = dma.done.wait [#allocation6], 98368  }
  0x59   :  { %8382 = vsyncadd [#allocation6], 4294868928 }
  0x5a   :  { %8383 = dma.done.wait [#allocation9], 4112  }
  0x5b   :  { %8384 = vsyncadd [#allocation9], 4294963184  ;;  %v7063_v0 = vld [vmem:[#allocation5 + $0x4] ss:$16 sps:$4 sm:$0xff]   ;;  %v7065_v1 = vld [vmem:[#allocation5 + $0xc] ss:$16 sps:$4 sm:$0xff]  }
  0x5c   :  { %4762 = vmatprep.subr.bf16.mxu0 %v7063_v0  ;;  %v7067_v2 = vld [vmem:[#allocation5] ss:$16 sps:$4 sm:$0xff]   ;;  %v7068_v3 = vld [vmem:[#allocation5 + $0x8] ss:$16 sps:$4 sm:$0xff]   ;;  %5254 = vmatprep.subr.bf16.mxu1 %v7065_v1  ;;  %v7069_v4 = vld [vmem:[#allocation5 + $0x24] ss:$16 sps:$4 sm:$0xff]  }
  0x5d   :  { %4763 = vmatpush1.bf16.msra.mxu0 %v7067_v2  ;;  %5255 = vmatpush1.bf16.msra.mxu1 %v7068_v3  ;;  %v7071_v5 = vld [vmem:[#allocation5 + $0x2c] ss:$16 sps:$4 sm:$0xff]   ;;  %v7073_v6 = vld [vmem:[#allocation5 + $0x20] ss:$16 sps:$4 sm:$0xff]   ;;  %v7074_v7 = vld [vmem:[#allocation5 + $0x28] ss:$16 sps:$4 sm:$0xff]  }
  0x5e   :  { %4764 = vmatprep.subr.bf16.mxu0 %v7069_v4  ;;  %5256 = vmatprep.subr.bf16.mxu1 %v7071_v5  ;;  %v7075_v8 = vld [vmem:[#allocation5 + $0x44] ss:$16 sps:$4 sm:$0xff]   ;;  %v7077_v9 = vld [vmem:[#allocation5 + $0x4c] ss:$16 sps:$4 sm:$0xff]   ;;  %v7079_v10 = vld [vmem:[#allocation5 + $0x40] ss:$16 sps:$4 sm:$0xff]  }
  0x5f   :  { %v7080_v11 = vld [vmem:[#allocation5 + $0x48] ss:$16 sps:$4 sm:$0xff]   ;;  %v7081_v12 = vld [vmem:[#allocation5 + $0x64] ss:$16 sps:$4 sm:$0xff]   ;;  %v7083_v13 = vld [vmem:[#allocation5 + $0x6c] ss:$16 sps:$4 sm:$0xff]  }
  0x60   :  { %v7085_v14 = vld [vmem:[#allocation5 + $0x60] ss:$16 sps:$4 sm:$0xff]   ;;  %v7086_v15 = vld [vmem:[#allocation5 + $0x68] ss:$16 sps:$4 sm:$0xff]   ;;  %v7087_v16 = vld [vmem:[#allocation5 + $0x84] ss:$16 sps:$4 sm:$0xff]  }
  0x61   :  { %4765 = vmatpush1.bf16.msra.mxu0 %v7073_v6  ;;  %5257 = vmatpush1.bf16.msra.mxu1 %v7074_v7  ;;  %v7089_v17 = vld [vmem:[#allocation5 + $0x8c] ss:$16 sps:$4 sm:$0xff]   ;;  %v7091_v18 = vld [vmem:[#allocation5 + $0x80] ss:$16 sps:$4 sm:$0xff]   ;;  %v7092_v19 = vld [vmem:[#allocation5 + $0x88] ss:$16 sps:$4 sm:$0xff]  }
  0x62   :  { %4766 = vmatprep.subr.bf16.mxu0 %v7075_v8  ;;  %5258 = vmatprep.subr.bf16.mxu1 %v7077_v9  ;;  %v7093_v20 = vld [vmem:[#allocation5 + $0xa4] ss:$16 sps:$4 sm:$0xff]   ;;  %v7095_v21 = vld [vmem:[#allocation5 + $0xac] ss:$16 sps:$4 sm:$0xff]   ;;  %v7097_v22 = vld [vmem:[#allocation5 + $0xa0] ss:$16 sps:$4 sm:$0xff]  }
  0x63   :  { %v7098_v23 = vld [vmem:[#allocation5 + $0xa8] ss:$16 sps:$4 sm:$0xff]   ;;  %v7099_v24 = vld [vmem:[#allocation5 + $0xc4] ss:$16 sps:$4 sm:$0xff]   ;;  %v7101_v25 = vld [vmem:[#allocation5 + $0xcc] ss:$16 sps:$4 sm:$0xff]  }
  0x64   :  { %v7103_v26 = vld [vmem:[#allocation5 + $0xc0] ss:$16 sps:$4 sm:$0xff]   ;;  %v7104_v27 = vld [vmem:[#allocation5 + $0xc8] ss:$16 sps:$4 sm:$0xff]   ;;  %v7105_v28 = vld [vmem:[#allocation5 + $0xe4] ss:$16 sps:$4 sm:$0xff]  }
  0x65   :  { %4767 = vmatpush1.bf16.msra.mxu0 %v7079_v10  ;;  %5259 = vmatpush1.bf16.msra.mxu1 %v7080_v11  ;;  %v7107_v29 = vld [vmem:[#allocation5 + $0xec] ss:$16 sps:$4 sm:$0xff]   ;;  %v7109_v30 = vld [vmem:[#allocation5 + $0xe0] ss:$16 sps:$4 sm:$0xff]   ;;  %v7110_v31 = vld [vmem:[#allocation5 + $0xe8] ss:$16 sps:$4 sm:$0xff]  }
  0x66   :  { %4768 = vmatprep.subr.bf16.mxu0 %v7081_v12  ;;  %5260 = vmatprep.subr.bf16.mxu1 %v7083_v13  ;;  %v7111_v32 = vld [vmem:[#allocation5 + $0x104] ss:$16 sps:$4 sm:$0xff]   ;;  %v7113_v33 = vld [vmem:[#allocation5 + $0x10c] ss:$16 sps:$4 sm:$0xff]   ;;  %v7115_v34 = vld [vmem:[#allocation5 + $0x100] ss:$16 sps:$4 sm:$0xff]  }
  0x67   :  { %v7116_v35 = vld [vmem:[#allocation5 + $0x108] ss:$16 sps:$4 sm:$0xff]   ;;  %v7117_v36 = vld [vmem:[#allocation5 + $0x124] ss:$16 sps:$4 sm:$0xff]   ;;  %v7119_v37 = vld [vmem:[#allocation5 + $0x12c] ss:$16 sps:$4 sm:$0xff]  }
  0x68   :  { %v7121_v38 = vld [vmem:[#allocation5 + $0x120] ss:$16 sps:$4 sm:$0xff]   ;;  %v7122_v39 = vld [vmem:[#allocation5 + $0x128] ss:$16 sps:$4 sm:$0xff]   ;;  %v7123_v40 = vld [vmem:[#allocation5 + $0x144] ss:$16 sps:$4 sm:$0xff]  }
  0x69   :  { %4769 = vmatpush1.bf16.msra.mxu0 %v7085_v14  ;;  %5261 = vmatpush1.bf16.msra.mxu1 %v7086_v15  ;;  %v7125_v41 = vld [vmem:[#allocation5 + $0x14c] ss:$16 sps:$4 sm:$0xff]   ;;  %v7127_v42 = vld [vmem:[#allocation5 + $0x140] ss:$16 sps:$4 sm:$0xff]   ;;  %v7128_v43 = vld [vmem:[#allocation5 + $0x148] ss:$16 sps:$4 sm:$0xff]  }
  0x6a   :  { %4770 = vmatprep.subr.bf16.mxu0 %v7087_v16  ;;  %5262 = vmatprep.subr.bf16.mxu1 %v7089_v17  ;;  %v7129_v44 = vld [vmem:[#allocation5 + $0x164] ss:$16 sps:$4 sm:$0xff]   ;;  %v7131_v45 = vld [vmem:[#allocation5 + $0x16c] ss:$16 sps:$4 sm:$0xff]   ;;  %v7133_v47 = vld [vmem:[#allocation5 + $0x160] ss:$16 sps:$4 sm:$0xff]  }
  0x6b   :  { %v85_v46 = vld [vmem:[#allocation2 + $0x8] sm:$0xff]  ;;  %v7135_v50 = vld [vmem:[#allocation5 + $0x184] ss:$16 sps:$4 sm:$0xff]   ;;  %v7139_v52 = vld [vmem:[#allocation5 + $0x180] ss:$16 sps:$4 sm:$0xff]   ;;  %s8396_s4 = smov [#allocation11]  }
  0x6c   :  { %v109_v48 = vpack.c.bf16 %v85_v46, %v85_v46  ;;  %v7134_v49 = vld [vmem:[#allocation5 + $0x168] ss:$16 sps:$4 sm:$0xff]   ;;  %v7137_v51 = vld [vmem:[#allocation5 + $0x18c] ss:$16 sps:$4 sm:$0xff]   ;;  %v7141_v54 = vld [vmem:[#allocation5 + $0x1a4] ss:$16 sps:$4 sm:$0xff]  }
  0x6d   :  { %4771 = vmatpush1.bf16.msra.mxu0 %v7091_v18  ;;  %5263 = vmatpush1.bf16.msra.mxu1 %v7092_v19  ;;  %v7140_v53 = vld [vmem:[#allocation5 + $0x188] ss:$16 sps:$4 sm:$0xff]   ;;  %v7143_v55 = vld [vmem:[#allocation5 + $0x1ac] ss:$16 sps:$4 sm:$0xff]   ;;  %v7145_v56 = vld [vmem:[#allocation5 + $0x1a0] ss:$16 sps:$4 sm:$0xff]  }
  0x6e   :  { %4772 = vmatprep.subr.bf16.mxu0 %v7093_v20  ;;  %5264 = vmatprep.subr.bf16.mxu1 %v7095_v21  ;;  %v7146_v57 = vld [vmem:[#allocation5 + $0x1a8] ss:$16 sps:$4 sm:$0xff]   ;;  %v7147_v58 = vld [vmem:[#allocation5 + $0x1c4] ss:$16 sps:$4 sm:$0xff]   ;;  %v7149_v59 = vld [vmem:[#allocation5 + $0x1cc] ss:$16 sps:$4 sm:$0xff]  }
  0x6f   :  { %4794 = vmatprep.mubr.bf16.mxu0 %v109_v48  ;;  %5286 = vmatprep.mubr.bf16.mxu1 %v109_v48  ;;  %v7151_v60 = vld [vmem:[#allocation5 + $0x1c0] ss:$16 sps:$4 sm:$0xff]   ;;  %v7152_v61 = vld [vmem:[#allocation5 + $0x1c8] ss:$16 sps:$4 sm:$0xff]   ;;  %v7153_v62 = vld [vmem:[#allocation5 + $0x1e4] ss:$16 sps:$4 sm:$0xff]  }
  0x70   :  { %v7155_v63 = vld [vmem:[#allocation5 + $0x1ec] ss:$16 sps:$4 sm:$0xff]   ;;  %v7157_v0 = vld [vmem:[#allocation5 + $0x1e0] ss:$16 sps:$4 sm:$0xff]   ;;  %v7158_v1 = vld [vmem:[#allocation5 + $0x1e8] ss:$16 sps:$4 sm:$0xff]  }
  0x71   :  { %4773 = vmatpush1.bf16.msra.mxu0 %v7097_v22  ;;  %5265 = vmatpush1.bf16.msra.mxu1 %v7098_v23  ;;  %v84_v2 = vld [vmem:[#allocation2] sm:$0xff]  ;;  %v7164_v4 = vld [vmem:[#allocation5 + $0x20c] ss:$16 sps:$4 sm:$0xff]   ;;  %v7162_v7 = vld [vmem:[#allocation5 + $0x208] ss:$16 sps:$4 sm:$0xff]   ;;  %s6105_s28 = sshll.u32 %s8396_s4, 4  ;;  %s6106_s28 = int_to_ptr.vmem [resolvable:$true] %s6105_s28 }
  0x72   :  { %4774 = vmatprep.subr.bf16.mxu0 %v7099_v24  ;;  %5266 = vmatprep.subr.bf16.mxu1 %v7101_v25  ;;  %v7161_v3 = vld [vmem:[#allocation5 + $0x204] ss:$16 sps:$4 sm:$0xff]   ;;  %v108_v5 = vpack.c.bf16 %v84_v2, %v84_v2  ;;  %v7159_v6 = vld [vmem:[#allocation5 + $0x200] ss:$16 sps:$4 sm:$0xff]   ;;  %v7170_v9 = vld [vmem:[#allocation5 + $0x22c] ss:$16 sps:$4 sm:$0xff]   ;;  %p8362_p13 = scmp.lt.s32.totalorder %s6106_s28, %s6106_s28 }
  0x73   :  { %v7167_v8 = vld [vmem:[#allocation5 + $0x224] ss:$16 sps:$4 sm:$0xff]   ;;  %v7165_v10 = vld [vmem:[#allocation5 + $0x220] ss:$16 sps:$4 sm:$0xff]   ;;  %v7168_v11 = vld [vmem:[#allocation5 + $0x228] ss:$16 sps:$4 sm:$0xff]  }
  0x74   :  { %v7173_v12 = vld [vmem:[#allocation5 + $0x244] ss:$16 sps:$4 sm:$0xff]   ;;  %v7176_v13 = vld [vmem:[#allocation5 + $0x24c] ss:$16 sps:$4 sm:$0xff]   ;;  %v7171_v14 = vld [vmem:[#allocation5 + $0x240] ss:$16 sps:$4 sm:$0xff]  }
  0x75   :  { %4775 = vmatpush1.bf16.msra.mxu0 %v7103_v26  ;;  %5267 = vmatpush1.bf16.msra.mxu1 %v7104_v27  ;;  %v7174_v15 = vld [vmem:[#allocation5 + $0x248] ss:$16 sps:$4 sm:$0xff]   ;;  %v7179_v16 = vld [vmem:[#allocation5 + $0x264] ss:$16 sps:$4 sm:$0xff]   ;;  %v7182_v17 = vld [vmem:[#allocation5 + $0x26c] ss:$16 sps:$4 sm:$0xff]  }
  0x76   :  { %4776 = vmatprep.subr.bf16.mxu0 %v7105_v28  ;;  %5268 = vmatprep.subr.bf16.mxu1 %v7107_v29  ;;  %v7177_v18 = vld [vmem:[#allocation5 + $0x260] ss:$16 sps:$4 sm:$0xff]   ;;  %v7180_v19 = vld [vmem:[#allocation5 + $0x268] ss:$16 sps:$4 sm:$0xff]   ;;  %v7185_v20 = vld [vmem:[#allocation5 + $0x284] ss:$16 sps:$4 sm:$0xff]  }
  0x77   :  { %v7188_v21 = vld [vmem:[#allocation5 + $0x28c] ss:$16 sps:$4 sm:$0xff]   ;;  %v7183_v22 = vld [vmem:[#allocation5 + $0x280] ss:$16 sps:$4 sm:$0xff]   ;;  %v7186_v23 = vld [vmem:[#allocation5 + $0x288] ss:$16 sps:$4 sm:$0xff]  }
  0x78   :  { %v7191_v24 = vld [vmem:[#allocation5 + $0x2a4] ss:$16 sps:$4 sm:$0xff]   ;;  %v7194_v25 = vld [vmem:[#allocation5 + $0x2ac] ss:$16 sps:$4 sm:$0xff]   ;;  %v7189_v26 = vld [vmem:[#allocation5 + $0x2a0] ss:$16 sps:$4 sm:$0xff]  }
  0x79   :  { %4777 = vmatpush1.bf16.msra.mxu0 %v7109_v30  ;;  %5269 = vmatpush1.bf16.msra.mxu1 %v7110_v31  ;;  %v7192_v27 = vld [vmem:[#allocation5 + $0x2a8] ss:$16 sps:$4 sm:$0xff]   ;;  %v7197_v28 = vld [vmem:[#allocation5 + $0x2c4] ss:$16 sps:$4 sm:$0xff]   ;;  %v7200_v29 = vld [vmem:[#allocation5 + $0x2cc] ss:$16 sps:$4 sm:$0xff]  }
  0x7a   :  { %4778 = vmatprep.subr.bf16.mxu0 %v7111_v32  ;;  %5270 = vmatprep.subr.bf16.mxu1 %v7113_v33  ;;  %v87_v30 = vld [vmem:[#allocation2 + $0x18] sm:$0xff]  ;;  %v7195_v31 = vld [vmem:[#allocation5 + $0x2c0] ss:$16 sps:$4 sm:$0xff]   ;;  %v7221_v46 = vld [vmem:[#allocation5 + $0x344] ss:$16 sps:$4 sm:$0xff]   ;;  %s8357_s29 = scalar_lea.vmem %s6106_s28, 128 }
  0x7b   :  { %v111_v32 = vpack.c.bf16 %v87_v30, %v87_v30  ;;  %v7198_v33 = vld [vmem:[#allocation5 + $0x2c8] ss:$16 sps:$4 sm:$0xff]   ;;  %v7219_v48 = vld [vmem:[#allocation5 + $0x340] ss:$16 sps:$4 sm:$0xff]   ;;  %v7251_v2 = vld [vmem:[#allocation5 + $0x3e4] ss:$16 sps:$4 sm:$0xff]   ;;  %p8358_p12 = scmp.ne.s32.totalorder %s6106_s28, %s8357_s29  ;;  %p8363_p0 = scmp.lt.s32.totalorder %s8357_s29, %s8357_s29 }
  0x7c   :  { %v7287_v30 = vld [vmem:[#allocation5 + $0x4a4] ss:$16 sps:$4 sm:$0xff]  }
  0x7d   :  { %4779 = vmatpush1.bf16.msra.mxu0 %v7115_v34  ;;  %5271 = vmatpush1.bf16.msra.mxu1 %v7116_v35  ;;  %v7203_v34 = vld [vmem:[#allocation5 + $0x2e4] ss:$16 sps:$4 sm:$0xff]   ;;  %v7206_v35 = vld [vmem:[#allocation5 + $0x2ec] ss:$16 sps:$4 sm:$0xff]   ;;  %p8364_p1 = por %p8363_p0, %p8362_p13 }
  0x7e   :  { %4780 = vmatprep.subr.bf16.mxu0 %v7117_v36  ;;  %5272 = vmatprep.subr.bf16.mxu1 %v7119_v37  ;;  %v7201_v36 = vld [vmem:[#allocation5 + $0x2e0] ss:$16 sps:$4 sm:$0xff]   ;;  %v7204_v37 = vld [vmem:[#allocation5 + $0x2e8] ss:$16 sps:$4 sm:$0xff]  }
  0x7f   :  { %p8365_p2 = pnand %p8364_p1, %p8358_p12 }
  0x81   :  { %4781 = vmatpush1.bf16.msra.mxu0 %v7121_v38  ;;  %5273 = vmatpush1.bf16.msra.mxu1 %v7122_v39  ;;  %v7209_v38 = vld [vmem:[#allocation5 + $0x304] ss:$16 sps:$4 sm:$0xff]   ;;  %v7212_v39 = vld [vmem:[#allocation5 + $0x30c] ss:$16 sps:$4 sm:$0xff]  }
  0x82   :  { %4782 = vmatprep.subr.bf16.mxu0 %v7123_v40  ;;  %5274 = vmatprep.subr.bf16.mxu1 %v7125_v41  ;;  %v7207_v40 = vld [vmem:[#allocation5 + $0x300] ss:$16 sps:$4 sm:$0xff]   ;;  %v7210_v41 = vld [vmem:[#allocation5 + $0x308] ss:$16 sps:$4 sm:$0xff]  }
  0x85   :  { %4783 = vmatpush1.bf16.msra.mxu0 %v7127_v42  ;;  %5275 = vmatpush1.bf16.msra.mxu1 %v7128_v43  ;;  %v7215_v42 = vld [vmem:[#allocation5 + $0x324] ss:$16 sps:$4 sm:$0xff]   ;;  %v7218_v43 = vld [vmem:[#allocation5 + $0x32c] ss:$16 sps:$4 sm:$0xff]  }
  0x86   :  { %4784 = vmatprep.subr.bf16.mxu0 %v7129_v44  ;;  %5276 = vmatprep.subr.bf16.mxu1 %v7131_v45  ;;  %v7213_v44 = vld [vmem:[#allocation5 + $0x320] ss:$16 sps:$4 sm:$0xff]   ;;  %v7216_v45 = vld [vmem:[#allocation5 + $0x328] ss:$16 sps:$4 sm:$0xff]  }
  0x89   :  { %4785 = vmatpush1.bf16.msra.mxu0 %v7133_v47  ;;  %5277 = vmatpush1.bf16.msra.mxu1 %v7134_v49  ;;  %v7224_v47 = vld [vmem:[#allocation5 + $0x34c] ss:$16 sps:$4 sm:$0xff]   ;;  %v7222_v49 = vld [vmem:[#allocation5 + $0x348] ss:$16 sps:$4 sm:$0xff]  }
  0x8a   :  { %4786 = vmatprep.subr.bf16.mxu0 %v7135_v50  ;;  %5278 = vmatprep.subr.bf16.mxu1 %v7137_v51  ;;  %v7227_v50 = vld [vmem:[#allocation5 + $0x364] ss:$16 sps:$4 sm:$0xff]   ;;  %v7230_v51 = vld [vmem:[#allocation5 + $0x36c] ss:$16 sps:$4 sm:$0xff]  }
  0x8d   :  { %4787 = vmatpush1.bf16.msra.mxu0 %v7139_v52  ;;  %5279 = vmatpush1.bf16.msra.mxu1 %v7140_v53  ;;  %v7225_v52 = vld [vmem:[#allocation5 + $0x360] ss:$16 sps:$4 sm:$0xff]   ;;  %v7228_v53 = vld [vmem:[#allocation5 + $0x368] ss:$16 sps:$4 sm:$0xff]  }
  0x8e   :  { %4788 = vmatprep.subr.bf16.mxu0 %v7141_v54  ;;  %5280 = vmatprep.subr.bf16.mxu1 %v7143_v55  ;;  %v7233_v54 = vld [vmem:[#allocation5 + $0x384] ss:$16 sps:$4 sm:$0xff]   ;;  %v7236_v55 = vld [vmem:[#allocation5 + $0x38c] ss:$16 sps:$4 sm:$0xff]  }
  0x91   :  { %4789 = vmatpush1.bf16.msra.mxu0 %v7145_v56  ;;  %5281 = vmatpush1.bf16.msra.mxu1 %v7146_v57  ;;  %v7231_v56 = vld [vmem:[#allocation5 + $0x380] ss:$16 sps:$4 sm:$0xff]   ;;  %v7234_v57 = vld [vmem:[#allocation5 + $0x388] ss:$16 sps:$4 sm:$0xff]  }
  0x92   :  { %4790 = vmatprep.subr.bf16.mxu0 %v7147_v58  ;;  %5282 = vmatprep.subr.bf16.mxu1 %v7149_v59  ;;  %v7239_v58 = vld [vmem:[#allocation5 + $0x3a4] ss:$16 sps:$4 sm:$0xff]   ;;  %v7242_v59 = vld [vmem:[#allocation5 + $0x3ac] ss:$16 sps:$4 sm:$0xff]  }
  0x95   :  { %4791 = vmatpush1.bf16.msra.mxu0 %v7151_v60  ;;  %5283 = vmatpush1.bf16.msra.mxu1 %v7152_v61  ;;  %v7237_v60 = vld [vmem:[#allocation5 + $0x3a0] ss:$16 sps:$4 sm:$0xff]   ;;  %v7240_v61 = vld [vmem:[#allocation5 + $0x3a8] ss:$16 sps:$4 sm:$0xff]  }
  0x96   :  { %4792 = vmatprep.subr.bf16.mxu0 %v7153_v62  ;;  %5284 = vmatprep.subr.bf16.mxu1 %v7155_v63  ;;  %v7245_v62 = vld [vmem:[#allocation5 + $0x3c4] ss:$16 sps:$4 sm:$0xff]   ;;  %v7248_v63 = vld [vmem:[#allocation5 + $0x3cc] ss:$16 sps:$4 sm:$0xff]  }
  0x99   :  { %4793 = vmatpush1.bf16.msra.mxu0 %v7157_v0  ;;  %5285 = vmatpush1.bf16.msra.mxu1 %v7158_v1  ;;  %v7243_v0 = vld [vmem:[#allocation5 + $0x3c0] ss:$16 sps:$4 sm:$0xff]   ;;  %v7246_v1 = vld [vmem:[#allocation5 + $0x3c8] ss:$16 sps:$4 sm:$0xff]  }
  0x9a   :  { %4803 = vmatprep.subr.bf16.mxu0 %v7161_v3  ;;  %5295 = vmatprep.subr.bf16.mxu1 %v7164_v4  ;;  %v7254_v3 = vld [vmem:[#allocation5 + $0x3ec] ss:$16 sps:$4 sm:$0xff]   ;;  %v7249_v4 = vld [vmem:[#allocation5 + $0x3e0] ss:$16 sps:$4 sm:$0xff]  }
  0x9c   :  { %4795 = vmatmul.mubr.bf16.vlgmr.msra.gmra.mrb[0].mxu0 %v108_v5  ;;  %5287 = vmatmul.mubr.bf16.vlgmr.msra.gmra.mrb[0].mxu1 %v108_v5  ;;  %v7252_v5 = vld [vmem:[#allocation5 + $0x3e8] ss:$16 sps:$4 sm:$0xff]  }
  0x9d   :  { %4804 = vmatpush1.bf16.msra.mxu0 %v7159_v6  ;;  %5296 = vmatpush1.bf16.msra.mxu1 %v7162_v7  ;;  %v7257_v6 = vld [vmem:[#allocation5 + $0x404] ss:$16 sps:$4 sm:$0xff]  }
  0x9e   :  { %4805 = vmatprep.subr.bf16.mxu0 %v7167_v8  ;;  %5297 = vmatprep.subr.bf16.mxu1 %v7170_v9  ;;  %v86_v7 = vld [vmem:[#allocation2 + $0x10] sm:$0xff]  ;;  %v7260_v8 = vld [vmem:[#allocation5 + $0x40c] ss:$16 sps:$4 sm:$0xff]  }
  0x9f   :  { %4835 = vmatprep.mubr.bf16.mxu0 %v111_v32  ;;  %5327 = vmatprep.mubr.bf16.mxu1 %v111_v32  ;;  %v7255_v9 = vld [vmem:[#allocation5 + $0x400] ss:$16 sps:$4 sm:$0xff]  }
  0xa0   :  { %v7285_v32 = vld [vmem:[#allocation5 + $0x4a0] ss:$16 sps:$4 sm:$0xff]  }
  0xa1   :  { %4806 = vmatpush1.bf16.msra.mxu0 %v7165_v10  ;;  %5298 = vmatpush1.bf16.msra.mxu1 %v7168_v11  ;;  %v7258_v10 = vld [vmem:[#allocation5 + $0x408] ss:$16 sps:$4 sm:$0xff]   ;;  %v110_v11 = vpack.c.bf16 %v86_v7, %v86_v7  ;;  %v7350_v7 = vld [vmem:[#allocation5 + $0x5ec] ss:$16 sps:$4 sm:$0xff]  }
  0xa2   :  { %4807 = vmatprep.subr.bf16.mxu0 %v7173_v12  ;;  %5299 = vmatprep.subr.bf16.mxu1 %v7176_v13  ;;  %v7263_v12 = vld [vmem:[#allocation5 + $0x424] ss:$16 sps:$4 sm:$0xff]   ;;  %v7266_v13 = vld [vmem:[#allocation5 + $0x42c] ss:$16 sps:$4 sm:$0xff]  }
  0xa5   :  { %4808 = vmatpush1.bf16.msra.mxu0 %v7171_v14  ;;  %5300 = vmatpush1.bf16.msra.mxu1 %v7174_v15  ;;  %v89_v14 = vld [vmem:[#allocation2 + $0x28] sm:$0xff] }
  0xa6   :  { %4809 = vmatprep.subr.bf16.mxu0 %v7179_v16  ;;  %5301 = vmatprep.subr.bf16.mxu1 %v7182_v17  ;;  %v113_v15 = vpack.c.bf16 %v89_v14, %v89_v14  ;;  %v7261_v16 = vld [vmem:[#allocation5 + $0x420] ss:$16 sps:$4 sm:$0xff]   ;;  %v7264_v17 = vld [vmem:[#allocation5 + $0x428] ss:$16 sps:$4 sm:$0xff]  }
  0xa7   :  { %v7354_v14 = vld [vmem:[#allocation5 + $0x608] ss:$16 sps:$4 sm:$0xff]  }
  0xa9   :  { %4810 = vmatpush1.bf16.msra.mxu0 %v7177_v18  ;;  %5302 = vmatpush1.bf16.msra.mxu1 %v7180_v19  ;;  %v7269_v18 = vld [vmem:[#allocation5 + $0x444] ss:$16 sps:$4 sm:$0xff]   ;;  %v7272_v19 = vld [vmem:[#allocation5 + $0x44c] ss:$16 sps:$4 sm:$0xff]  }
  0xaa   :  { %4811 = vmatprep.subr.bf16.mxu0 %v7185_v20  ;;  %5303 = vmatprep.subr.bf16.mxu1 %v7188_v21  ;;  %v7267_v20 = vld [vmem:[#allocation5 + $0x440] ss:$16 sps:$4 sm:$0xff]   ;;  %v7270_v21 = vld [vmem:[#allocation5 + $0x448] ss:$16 sps:$4 sm:$0xff]  }
  0xad   :  { %4812 = vmatpush1.bf16.msra.mxu0 %v7183_v22  ;;  %5304 = vmatpush1.bf16.msra.mxu1 %v7186_v23  ;;  %v7275_v22 = vld [vmem:[#allocation5 + $0x464] ss:$16 sps:$4 sm:$0xff]   ;;  %v7278_v23 = vld [vmem:[#allocation5 + $0x46c] ss:$16 sps:$4 sm:$0xff]  }
  0xae   :  { %4813 = vmatprep.subr.bf16.mxu0 %v7191_v24  ;;  %5305 = vmatprep.subr.bf16.mxu1 %v7194_v25  ;;  %v7273_v24 = vld [vmem:[#allocation5 + $0x460] ss:$16 sps:$4 sm:$0xff]   ;;  %v7276_v25 = vld [vmem:[#allocation5 + $0x468] ss:$16 sps:$4 sm:$0xff]  }
  0xb1   :  { %4814 = vmatpush1.bf16.msra.mxu0 %v7189_v26  ;;  %5306 = vmatpush1.bf16.msra.mxu1 %v7192_v27  ;;  %v7281_v26 = vld [vmem:[#allocation5 + $0x484] ss:$16 sps:$4 sm:$0xff]   ;;  %v7284_v27 = vld [vmem:[#allocation5 + $0x48c] ss:$16 sps:$4 sm:$0xff]  }
  0xb2   :  { %4815 = vmatprep.subr.bf16.mxu0 %v7197_v28  ;;  %5307 = vmatprep.subr.bf16.mxu1 %v7200_v29  ;;  %v7279_v28 = vld [vmem:[#allocation5 + $0x480] ss:$16 sps:$4 sm:$0xff]   ;;  %v7282_v29 = vld [vmem:[#allocation5 + $0x488] ss:$16 sps:$4 sm:$0xff]  }
  0xb5   :  { %4816 = vmatpush1.bf16.msra.mxu0 %v7195_v31  ;;  %5308 = vmatpush1.bf16.msra.mxu1 %v7198_v33  ;;  %v7290_v31 = vld [vmem:[#allocation5 + $0x4ac] ss:$16 sps:$4 sm:$0xff]   ;;  %v7288_v33 = vld [vmem:[#allocation5 + $0x4a8] ss:$16 sps:$4 sm:$0xff]  }
  0xb6   :  { %4817 = vmatprep.subr.bf16.mxu0 %v7203_v34  ;;  %5309 = vmatprep.subr.bf16.mxu1 %v7206_v35  ;;  %v7293_v34 = vld [vmem:[#allocation5 + $0x4c4] ss:$16 sps:$4 sm:$0xff]   ;;  %v7296_v35 = vld [vmem:[#allocation5 + $0x4cc] ss:$16 sps:$4 sm:$0xff]  }
  0xb9   :  { %4818 = vmatpush1.bf16.msra.mxu0 %v7201_v36  ;;  %5310 = vmatpush1.bf16.msra.mxu1 %v7204_v37  ;;  %v7291_v36 = vld [vmem:[#allocation5 + $0x4c0] ss:$16 sps:$4 sm:$0xff]   ;;  %v7294_v37 = vld [vmem:[#allocation5 + $0x4c8] ss:$16 sps:$4 sm:$0xff]  }
  0xba   :  { %4819 = vmatprep.subr.bf16.mxu0 %v7209_v38  ;;  %5311 = vmatprep.subr.bf16.mxu1 %v7212_v39  ;;  %v7299_v38 = vld [vmem:[#allocation5 + $0x4e4] ss:$16 sps:$4 sm:$0xff]   ;;  %v7302_v39 = vld [vmem:[#allocation5 + $0x4ec] ss:$16 sps:$4 sm:$0xff]  }
  0xbd   :  { %4820 = vmatpush1.bf16.msra.mxu0 %v7207_v40  ;;  %5312 = vmatpush1.bf16.msra.mxu1 %v7210_v41  ;;  %v7297_v40 = vld [vmem:[#allocation5 + $0x4e0] ss:$16 sps:$4 sm:$0xff]   ;;  %v7300_v41 = vld [vmem:[#allocation5 + $0x4e8] ss:$16 sps:$4 sm:$0xff]  }
  0xbe   :  { %4821 = vmatprep.subr.bf16.mxu0 %v7215_v42  ;;  %5313 = vmatprep.subr.bf16.mxu1 %v7218_v43  ;;  %v7305_v42 = vld [vmem:[#allocation5 + $0x504] ss:$16 sps:$4 sm:$0xff]   ;;  %v7308_v43 = vld [vmem:[#allocation5 + $0x50c] ss:$16 sps:$4 sm:$0xff]  }
  0xc1   :  { %4822 = vmatpush1.bf16.msra.mxu0 %v7213_v44  ;;  %5314 = vmatpush1.bf16.msra.mxu1 %v7216_v45  ;;  %v7303_v44 = vld [vmem:[#allocation5 + $0x500] ss:$16 sps:$4 sm:$0xff]   ;;  %v7306_v45 = vld [vmem:[#allocation5 + $0x508] ss:$16 sps:$4 sm:$0xff]  }
  0xc2   :  { %4823 = vmatprep.subr.bf16.mxu0 %v7221_v46  ;;  %5315 = vmatprep.subr.bf16.mxu1 %v7224_v47  ;;  %v7311_v46 = vld [vmem:[#allocation5 + $0x524] ss:$16 sps:$4 sm:$0xff]   ;;  %v7314_v47 = vld [vmem:[#allocation5 + $0x52c] ss:$16 sps:$4 sm:$0xff]  }
  0xc5   :  { %4824 = vmatpush1.bf16.msra.mxu0 %v7219_v48  ;;  %5316 = vmatpush1.bf16.msra.mxu1 %v7222_v49  ;;  %v7309_v48 = vld [vmem:[#allocation5 + $0x520] ss:$16 sps:$4 sm:$0xff]   ;;  %v7312_v49 = vld [vmem:[#allocation5 + $0x528] ss:$16 sps:$4 sm:$0xff]  }
  0xc6   :  { %4825 = vmatprep.subr.bf16.mxu0 %v7227_v50  ;;  %5317 = vmatprep.subr.bf16.mxu1 %v7230_v51  ;;  %v7317_v50 = vld [vmem:[#allocation5 + $0x544] ss:$16 sps:$4 sm:$0xff]   ;;  %v7320_v51 = vld [vmem:[#allocation5 + $0x54c] ss:$16 sps:$4 sm:$0xff]  }
  0xc9   :  { %4826 = vmatpush1.bf16.msra.mxu0 %v7225_v52  ;;  %5318 = vmatpush1.bf16.msra.mxu1 %v7228_v53  ;;  %v7315_v52 = vld [vmem:[#allocation5 + $0x540] ss:$16 sps:$4 sm:$0xff]   ;;  %v7318_v53 = vld [vmem:[#allocation5 + $0x548] ss:$16 sps:$4 sm:$0xff]  }
  0xca   :  { %4827 = vmatprep.subr.bf16.mxu0 %v7233_v54  ;;  %5319 = vmatprep.subr.bf16.mxu1 %v7236_v55  ;;  %v7323_v54 = vld [vmem:[#allocation5 + $0x564] ss:$16 sps:$4 sm:$0xff]   ;;  %v7326_v55 = vld [vmem:[#allocation5 + $0x56c] ss:$16 sps:$4 sm:$0xff]  }
  0xcd   :  { %4828 = vmatpush1.bf16.msra.mxu0 %v7231_v56  ;;  %5320 = vmatpush1.bf16.msra.mxu1 %v7234_v57  ;;  %v7321_v56 = vld [vmem:[#allocation5 + $0x560] ss:$16 sps:$4 sm:$0xff]   ;;  %v7324_v57 = vld [vmem:[#allocation5 + $0x568] ss:$16 sps:$4 sm:$0xff]  }
  0xce   :  { %4829 = vmatprep.subr.bf16.mxu0 %v7239_v58  ;;  %5321 = vmatprep.subr.bf16.mxu1 %v7242_v59  ;;  %v7329_v58 = vld [vmem:[#allocation5 + $0x584] ss:$16 sps:$4 sm:$0xff]   ;;  %v7332_v59 = vld [vmem:[#allocation5 + $0x58c] ss:$16 sps:$4 sm:$0xff]  }
  0xd1   :  { %4830 = vmatpush1.bf16.msra.mxu0 %v7237_v60  ;;  %5322 = vmatpush1.bf16.msra.mxu1 %v7240_v61  ;;  %v7327_v60 = vld [vmem:[#allocation5 + $0x580] ss:$16 sps:$4 sm:$0xff]   ;;  %v7330_v61 = vld [vmem:[#allocation5 + $0x588] ss:$16 sps:$4 sm:$0xff]  }
  0xd2   :  { %4831 = vmatprep.subr.bf16.mxu0 %v7245_v62  ;;  %5323 = vmatprep.subr.bf16.mxu1 %v7248_v63  ;;  %v7335_v62 = vld [vmem:[#allocation5 + $0x5a4] ss:$16 sps:$4 sm:$0xff]   ;;  %v7338_v63 = vld [vmem:[#allocation5 + $0x5ac] ss:$16 sps:$4 sm:$0xff]  }
  0xd5   :  { %4832 = vmatpush1.bf16.msra.mxu0 %v7243_v0  ;;  %5324 = vmatpush1.bf16.msra.mxu1 %v7246_v1  ;;  %v7333_v0 = vld [vmem:[#allocation5 + $0x5a0] ss:$16 sps:$4 sm:$0xff]   ;;  %v7336_v1 = vld [vmem:[#allocation5 + $0x5a8] ss:$16 sps:$4 sm:$0xff]  }
  0xd6   :  { %4833 = vmatprep.subr.bf16.mxu0 %v7251_v2  ;;  %5325 = vmatprep.subr.bf16.mxu1 %v7254_v3  ;;  %v7341_v2 = vld [vmem:[#allocation5 + $0x5c4] ss:$16 sps:$4 sm:$0xff]   ;;  %v7344_v3 = vld [vmem:[#allocation5 + $0x5cc] ss:$16 sps:$4 sm:$0xff]  }
  0xd9   :  { %4834 = vmatpush1.bf16.msra.mxu0 %v7249_v4  ;;  %5326 = vmatpush1.bf16.msra.mxu1 %v7252_v5  ;;  %v7339_v4 = vld [vmem:[#allocation5 + $0x5c0] ss:$16 sps:$4 sm:$0xff]   ;;  %v7342_v5 = vld [vmem:[#allocation5 + $0x5c8] ss:$16 sps:$4 sm:$0xff]  }
  0xda   :  { %4844 = vmatprep.subr.bf16.mxu0 %v7257_v6  ;;  %5336 = vmatprep.subr.bf16.mxu1 %v7260_v8  ;;  %v7347_v6 = vld [vmem:[#allocation5 + $0x5e4] ss:$16 sps:$4 sm:$0xff]   ;;  %v7345_v8 = vld [vmem:[#allocation5 + $0x5e0] ss:$16 sps:$4 sm:$0xff]  }
  0xdc   :  { %4836 = vmatmul.mubr.bf16.vlgmr.msra.gmra.mrb[0].mxu0 %v110_v11  ;;  %5328 = vmatmul.mubr.bf16.vlgmr.msra.gmra.mrb[0].mxu1 %v110_v11  ;;  %v88_v11 = vld [vmem:[#allocation2 + $0x20] sm:$0xff] }
  0xdd   :  { %4845 = vmatpush1.bf16.msra.mxu0 %v7255_v9  ;;  %5337 = vmatpush1.bf16.msra.mxu1 %v7258_v10  ;;  %v7348_v9 = vld [vmem:[#allocation5 + $0x5e8] ss:$16 sps:$4 sm:$0xff]   ;;  %v7353_v10 = vld [vmem:[#allocation5 + $0x604] ss:$16 sps:$4 sm:$0xff]  }
  0xde   :  { %4846 = vmatprep.subr.bf16.mxu0 %v7263_v12  ;;  %5338 = vmatprep.subr.bf16.mxu1 %v7266_v13  ;;  %v7356_v12 = vld [vmem:[#allocation5 + $0x60c] ss:$16 sps:$4 sm:$0xff]   ;;  %v7351_v13 = vld [vmem:[#allocation5 + $0x600] ss:$16 sps:$4 sm:$0xff]  }
  0xdf   :  { %4876 = vmatprep.mubr.bf16.mxu0 %v113_v15  ;;  %5368 = vmatprep.mubr.bf16.mxu1 %v113_v15  ;;  %v112_v15 = vpack.c.bf16 %v88_v11, %v88_v11  ;;  %v7446_v11 = vld [vmem:[#allocation5 + $0x7ec] ss:$16 sps:$4 sm:$0xff]  }
  0xe1   :  { %4847 = vmatpush1.bf16.msra.mxu0 %v7261_v16  ;;  %5339 = vmatpush1.bf16.msra.mxu1 %v7264_v17  ;;  %v91_v16 = vld [vmem:[#allocation2 + $0x38] sm:$0xff]  ;;  %v7359_v17 = vld [vmem:[#allocation5 + $0x624] ss:$16 sps:$4 sm:$0xff]  }
  0xe2   :  { %4848 = vmatprep.subr.bf16.mxu0 %v7269_v18  ;;  %5340 = vmatprep.subr.bf16.mxu1 %v7272_v19  ;;  %v7362_v18 = vld [vmem:[#allocation5 + $0x62c] ss:$16 sps:$4 sm:$0xff]   ;;  %v115_v19 = vpack.c.bf16 %v91_v16, %v91_v16 }
  0xe3   :  { %v7452_v16 = vld [vmem:[#allocation5 + $0x80c] ss:$16 sps:$4 sm:$0xff]  }
  0xe5   :  { %4849 = vmatpush1.bf16.msra.mxu0 %v7267_v20  ;;  %5341 = vmatpush1.bf16.msra.mxu1 %v7270_v21  ;;  %v7357_v20 = vld [vmem:[#allocation5 + $0x620] ss:$16 sps:$4 sm:$0xff]   ;;  %v7360_v21 = vld [vmem:[#allocation5 + $0x628] ss:$16 sps:$4 sm:$0xff]  }
  0xe6   :  { %4850 = vmatprep.subr.bf16.mxu0 %v7275_v22  ;;  %5342 = vmatprep.subr.bf16.mxu1 %v7278_v23  ;;  %v7365_v22 = vld [vmem:[#allocation5 + $0x644] ss:$16 sps:$4 sm:$0xff]   ;;  %v7368_v23 = vld [vmem:[#allocation5 + $0x64c] ss:$16 sps:$4 sm:$0xff]  }
  0xe9   :  { %4851 = vmatpush1.bf16.msra.mxu0 %v7273_v24  ;;  %5343 = vmatpush1.bf16.msra.mxu1 %v7276_v25  ;;  %v7363_v24 = vld [vmem:[#allocation5 + $0x640] ss:$16 sps:$4 sm:$0xff]   ;;  %v7366_v25 = vld [vmem:[#allocation5 + $0x648] ss:$16 sps:$4 sm:$0xff]  }
  0xea   :  { %4852 = vmatprep.subr.bf16.mxu0 %v7281_v26  ;;  %5344 = vmatprep.subr.bf16.mxu1 %v7284_v27  ;;  %v7371_v26 = vld [vmem:[#allocation5 + $0x664] ss:$16 sps:$4 sm:$0xff]   ;;  %v7374_v27 = vld [vmem:[#allocation5 + $0x66c] ss:$16 sps:$4 sm:$0xff]  }
  0xed   :  { %4853 = vmatpush1.bf16.msra.mxu0 %v7279_v28  ;;  %5345 = vmatpush1.bf16.msra.mxu1 %v7282_v29  ;;  %v7369_v28 = vld [vmem:[#allocation5 + $0x660] ss:$16 sps:$4 sm:$0xff]   ;;  %v7372_v29 = vld [vmem:[#allocation5 + $0x668] ss:$16 sps:$4 sm:$0xff]  }
  0xee   :  { %4854 = vmatprep.subr.bf16.mxu0 %v7287_v30  ;;  %5346 = vmatprep.subr.bf16.mxu1 %v7290_v31  ;;  %v7377_v30 = vld [vmem:[#allocation5 + $0x684] ss:$16 sps:$4 sm:$0xff]   ;;  %v7380_v31 = vld [vmem:[#allocation5 + $0x68c] ss:$16 sps:$4 sm:$0xff]  }
  0xf1   :  { %4855 = vmatpush1.bf16.msra.mxu0 %v7285_v32  ;;  %5347 = vmatpush1.bf16.msra.mxu1 %v7288_v33  ;;  %v7375_v32 = vld [vmem:[#allocation5 + $0x680] ss:$16 sps:$4 sm:$0xff]   ;;  %v7378_v33 = vld [vmem:[#allocation5 + $0x688] ss:$16 sps:$4 sm:$0xff]  }
  0xf2   :  { %4856 = vmatprep.subr.bf16.mxu0 %v7293_v34  ;;  %5348 = vmatprep.subr.bf16.mxu1 %v7296_v35  ;;  %v7383_v34 = vld [vmem:[#allocation5 + $0x6a4] ss:$16 sps:$4 sm:$0xff]   ;;  %v7386_v35 = vld [vmem:[#allocation5 + $0x6ac] ss:$16 sps:$4 sm:$0xff]  }
  0xf5   :  { %4857 = vmatpush1.bf16.msra.mxu0 %v7291_v36  ;;  %5349 = vmatpush1.bf16.msra.mxu1 %v7294_v37  ;;  %v7381_v36 = vld [vmem:[#allocation5 + $0x6a0] ss:$16 sps:$4 sm:$0xff]   ;;  %v7384_v37 = vld [vmem:[#allocation5 + $0x6a8] ss:$16 sps:$4 sm:$0xff]  }
  0xf6   :  { %4858 = vmatprep.subr.bf16.mxu0 %v7299_v38  ;;  %5350 = vmatprep.subr.bf16.mxu1 %v7302_v39  ;;  %v7389_v38 = vld [vmem:[#allocation5 + $0x6c4] ss:$16 sps:$4 sm:$0xff]   ;;  %v7392_v39 = vld [vmem:[#allocation5 + $0x6cc] ss:$16 sps:$4 sm:$0xff]  }
  0xf9   :  { %4859 = vmatpush1.bf16.msra.mxu0 %v7297_v40  ;;  %5351 = vmatpush1.bf16.msra.mxu1 %v7300_v41  ;;  %v7387_v40 = vld [vmem:[#allocation5 + $0x6c0] ss:$16 sps:$4 sm:$0xff]   ;;  %v7390_v41 = vld [vmem:[#allocation5 + $0x6c8] ss:$16 sps:$4 sm:$0xff]  }
  0xfa   :  { %4860 = vmatprep.subr.bf16.mxu0 %v7305_v42  ;;  %5352 = vmatprep.subr.bf16.mxu1 %v7308_v43  ;;  %v7395_v42 = vld [vmem:[#allocation5 + $0x6e4] ss:$16 sps:$4 sm:$0xff]   ;;  %v7398_v43 = vld [vmem:[#allocation5 + $0x6ec] ss:$16 sps:$4 sm:$0xff]  }
  0xfd   :  { %4861 = vmatpush1.bf16.msra.mxu0 %v7303_v44  ;;  %5353 = vmatpush1.bf16.msra.mxu1 %v7306_v45  ;;  %v7393_v44 = vld [vmem:[#allocation5 + $0x6e0] ss:$16 sps:$4 sm:$0xff]   ;;  %v7396_v45 = vld [vmem:[#allocation5 + $0x6e8] ss:$16 sps:$4 sm:$0xff]  }
  0xfe   :  { %4862 = vmatprep.subr.bf16.mxu0 %v7311_v46  ;;  %5354 = vmatprep.subr.bf16.mxu1 %v7314_v47  ;;  %v7401_v46 = vld [vmem:[#allocation5 + $0x704] ss:$16 sps:$4 sm:$0xff]   ;;  %v7404_v47 = vld [vmem:[#allocation5 + $0x70c] ss:$16 sps:$4 sm:$0xff]  }
 0x101   :  { %4863 = vmatpush1.bf16.msra.mxu0 %v7309_v48  ;;  %5355 = vmatpush1.bf16.msra.mxu1 %v7312_v49  ;;  %v7399_v48 = vld [vmem:[#allocation5 + $0x700] ss:$16 sps:$4 sm:$0xff]   ;;  %v7402_v49 = vld [vmem:[#allocation5 + $0x708] ss:$16 sps:$4 sm:$0xff]  }
 0x102   :  { %4864 = vmatprep.subr.bf16.mxu0 %v7317_v50  ;;  %5356 = vmatprep.subr.bf16.mxu1 %v7320_v51  ;;  %v7407_v50 = vld [vmem:[#allocation5 + $0x724] ss:$16 sps:$4 sm:$0xff]   ;;  %v7410_v51 = vld [vmem:[#allocation5 + $0x72c] ss:$16 sps:$4 sm:$0xff]  }
 0x105   :  { %4865 = vmatpush1.bf16.msra.mxu0 %v7315_v52  ;;  %5357 = vmatpush1.bf16.msra.mxu1 %v7318_v53  ;;  %v7405_v52 = vld [vmem:[#allocation5 + $0x720] ss:$16 sps:$4 sm:$0xff]   ;;  %v7408_v53 = vld [vmem:[#allocation5 + $0x728] ss:$16 sps:$4 sm:$0xff]  }
 0x106   :  { %4866 = vmatprep.subr.bf16.mxu0 %v7323_v54  ;;  %5358 = vmatprep.subr.bf16.mxu1 %v7326_v55  ;;  %v7413_v54 = vld [vmem:[#allocation5 + $0x744] ss:$16 sps:$4 sm:$0xff]   ;;  %v7416_v55 = vld [vmem:[#allocation5 + $0x74c] ss:$16 sps:$4 sm:$0xff]  }
 0x109   :  { %4867 = vmatpush1.bf16.msra.mxu0 %v7321_v56  ;;  %5359 = vmatpush1.bf16.msra.mxu1 %v7324_v57  ;;  %v7411_v56 = vld [vmem:[#allocation5 + $0x740] ss:$16 sps:$4 sm:$0xff]   ;;  %v7414_v57 = vld [vmem:[#allocation5 + $0x748] ss:$16 sps:$4 sm:$0xff]  }
 0x10a   :  { %4868 = vmatprep.subr.bf16.mxu0 %v7329_v58  ;;  %5360 = vmatprep.subr.bf16.mxu1 %v7332_v59  ;;  %v7419_v58 = vld [vmem:[#allocation5 + $0x764] ss:$16 sps:$4 sm:$0xff]   ;;  %v7422_v59 = vld [vmem:[#allocation5 + $0x76c] ss:$16 sps:$4 sm:$0xff]  }
 0x10d   :  { %4869 = vmatpush1.bf16.msra.mxu0 %v7327_v60  ;;  %5361 = vmatpush1.bf16.msra.mxu1 %v7330_v61  ;;  %v7417_v60 = vld [vmem:[#allocation5 + $0x760] ss:$16 sps:$4 sm:$0xff]   ;;  %v7420_v61 = vld [vmem:[#allocation5 + $0x768] ss:$16 sps:$4 sm:$0xff]  }
 0x10e   :  { %4870 = vmatprep.subr.bf16.mxu0 %v7335_v62  ;;  %5362 = vmatprep.subr.bf16.mxu1 %v7338_v63  ;;  %v7425_v62 = vld [vmem:[#allocation5 + $0x784] ss:$16 sps:$4 sm:$0xff]   ;;  %v7428_v63 = vld [vmem:[#allocation5 + $0x78c] ss:$16 sps:$4 sm:$0xff]  }
 0x111   :  { %4871 = vmatpush1.bf16.msra.mxu0 %v7333_v0  ;;  %5363 = vmatpush1.bf16.msra.mxu1 %v7336_v1  ;;  %v7423_v0 = vld [vmem:[#allocation5 + $0x780] ss:$16 sps:$4 sm:$0xff]   ;;  %v7426_v1 = vld [vmem:[#allocation5 + $0x788] ss:$16 sps:$4 sm:$0xff]  }
 0x112   :  { %4872 = vmatprep.subr.bf16.mxu0 %v7341_v2  ;;  %5364 = vmatprep.subr.bf16.mxu1 %v7344_v3  ;;  %v7431_v2 = vld [vmem:[#allocation5 + $0x7a4] ss:$16 sps:$4 sm:$0xff]   ;;  %v7434_v3 = vld [vmem:[#allocation5 + $0x7ac] ss:$16 sps:$4 sm:$0xff]  }
 0x115   :  { %4873 = vmatpush1.bf16.msra.mxu0 %v7339_v4  ;;  %5365 = vmatpush1.bf16.msra.mxu1 %v7342_v5  ;;  %v7429_v4 = vld [vmem:[#allocation5 + $0x7a0] ss:$16 sps:$4 sm:$0xff]   ;;  %v7432_v5 = vld [vmem:[#allocation5 + $0x7a8] ss:$16 sps:$4 sm:$0xff]  }
 0x116   :  { %4874 = vmatprep.subr.bf16.mxu0 %v7347_v6  ;;  %5366 = vmatprep.subr.bf16.mxu1 %v7350_v7  ;;  %v7437_v6 = vld [vmem:[#allocation5 + $0x7c4] ss:$16 sps:$4 sm:$0xff]   ;;  %v7440_v7 = vld [vmem:[#allocation5 + $0x7cc] ss:$16 sps:$4 sm:$0xff]  }
 0x119   :  { %4875 = vmatpush1.bf16.msra.mxu0 %v7345_v8  ;;  %5367 = vmatpush1.bf16.msra.mxu1 %v7348_v9  ;;  %v7435_v8 = vld [vmem:[#allocation5 + $0x7c0] ss:$16 sps:$4 sm:$0xff]   ;;  %v7438_v9 = vld [vmem:[#allocation5 + $0x7c8] ss:$16 sps:$4 sm:$0xff]  }
 0x11a   :  { %4885 = vmatprep.subr.bf16.mxu0 %v7353_v10  ;;  %5377 = vmatprep.subr.bf16.mxu1 %v7356_v12  ;;  %v7443_v10 = vld [vmem:[#allocation5 + $0x7e4] ss:$16 sps:$4 sm:$0xff]   ;;  %v7441_v12 = vld [vmem:[#allocation5 + $0x7e0] ss:$16 sps:$4 sm:$0xff]  }
 0x11c   :  { %4877 = vmatmul.mubr.bf16.vlgmr.msra.gmra.mrb[0].mxu0 %v112_v15  ;;  %5369 = vmatmul.mubr.bf16.vlgmr.msra.gmra.mrb[0].mxu1 %v112_v15  ;;  %v7449_v15 = vld [vmem:[#allocation5 + $0x804] ss:$16 sps:$4 sm:$0xff]  }
 0x11d   :  { %4886 = vmatpush1.bf16.msra.mxu0 %v7351_v13  ;;  %5378 = vmatpush1.bf16.msra.mxu1 %v7354_v14  ;;  %v7444_v13 = vld [vmem:[#allocation5 + $0x7e8] ss:$16 sps:$4 sm:$0xff]   ;;  %v90_v14 = vld [vmem:[#allocation2 + $0x30] sm:$0xff] }
 0x11e   :  { %4887 = vmatprep.subr.bf16.mxu0 %v7359_v17  ;;  %5379 = vmatprep.subr.bf16.mxu1 %v7362_v18  ;;  %v114_v17 = vpack.c.bf16 %v90_v14, %v90_v14  ;;  %v93_v18 = vld [vmem:[#allocation2 + $0x48] sm:$0xff]  ;;  %v7539_v14 = vld [vmem:[#allocation5 + $0x9e4] ss:$16 sps:$4 sm:$0xff]  }
 0x11f   :  { %4917 = vmatprep.mubr.bf16.mxu0 %v115_v19  ;;  %5409 = vmatprep.mubr.bf16.mxu1 %v115_v19  ;;  %v7447_v19 = vld [vmem:[#allocation5 + $0x800] ss:$16 sps:$4 sm:$0xff]  }
 0x121   :  { %4888 = vmatpush1.bf16.msra.mxu0 %v7357_v20  ;;  %5380 = vmatpush1.bf16.msra.mxu1 %v7360_v21  ;;  %v7450_v20 = vld [vmem:[#allocation5 + $0x808] ss:$16 sps:$4 sm:$0xff]   ;;  %v7455_v21 = vld [vmem:[#allocation5 + $0x824] ss:$16 sps:$4 sm:$0xff]  }
 0x122   :  { %4889 = vmatprep.subr.bf16.mxu0 %v7365_v22  ;;  %5381 = vmatprep.subr.bf16.mxu1 %v7368_v23  ;;  %v7458_v22 = vld [vmem:[#allocation5 + $0x82c] ss:$16 sps:$4 sm:$0xff]   ;;  %v117_v23 = vpack.c.bf16 %v93_v18, %v93_v18  ;;  %v7545_v18 = vld [vmem:[#allocation5 + $0xa04] ss:$16 sps:$4 sm:$0xff]  }
 0x125   :  { %4890 = vmatpush1.bf16.msra.mxu0 %v7363_v24  ;;  %5382 = vmatpush1.bf16.msra.mxu1 %v7366_v25  ;;  %v7453_v24 = vld [vmem:[#allocation5 + $0x820] ss:$16 sps:$4 sm:$0xff]   ;;  %v7456_v25 = vld [vmem:[#allocation5 + $0x828] ss:$16 sps:$4 sm:$0xff]  }
 0x126   :  { %4891 = vmatprep.subr.bf16.mxu0 %v7371_v26  ;;  %5383 = vmatprep.subr.bf16.mxu1 %v7374_v27  ;;  %v7461_v26 = vld [vmem:[#allocation5 + $0x844] ss:$16 sps:$4 sm:$0xff]   ;;  %v7464_v27 = vld [vmem:[#allocation5 + $0x84c] ss:$16 sps:$4 sm:$0xff]  }
 0x129   :  { %4892 = vmatpush1.bf16.msra.mxu0 %v7369_v28  ;;  %5384 = vmatpush1.bf16.msra.mxu1 %v7372_v29  ;;  %v7459_v28 = vld [vmem:[#allocation5 + $0x840] ss:$16 sps:$4 sm:$0xff]   ;;  %v7462_v29 = vld [vmem:[#allocation5 + $0x848] ss:$16 sps:$4 sm:$0xff]  }
 0x12a   :  { %4893 = vmatprep.subr.bf16.mxu0 %v7377_v30  ;;  %5385 = vmatprep.subr.bf16.mxu1 %v7380_v31  ;;  %v7467_v30 = vld [vmem:[#allocation5 + $0x864] ss:$16 sps:$4 sm:$0xff]   ;;  %v7470_v31 = vld [vmem:[#allocation5 + $0x86c] ss:$16 sps:$4 sm:$0xff]  }
 0x12d   :  { %4894 = vmatpush1.bf16.msra.mxu0 %v7375_v32  ;;  %5386 = vmatpush1.bf16.msra.mxu1 %v7378_v33  ;;  %v7465_v32 = vld [vmem:[#allocation5 + $0x860] ss:$16 sps:$4 sm:$0xff]   ;;  %v7468_v33 = vld [vmem:[#allocation5 + $0x868] ss:$16 sps:$4 sm:$0xff]  }
 0x12e   :  { %4895 = vmatprep.subr.bf16.mxu0 %v7383_v34  ;;  %5387 = vmatprep.subr.bf16.mxu1 %v7386_v35  ;;  %v7473_v34 = vld [vmem:[#allocation5 + $0x884] ss:$16 sps:$4 sm:$0xff]   ;;  %v7476_v35 = vld [vmem:[#allocation5 + $0x88c] ss:$16 sps:$4 sm:$0xff]  }
 0x131   :  { %4896 = vmatpush1.bf16.msra.mxu0 %v7381_v36  ;;  %5388 = vmatpush1.bf16.msra.mxu1 %v7384_v37  ;;  %v7471_v36 = vld [vmem:[#allocation5 + $0x880] ss:$16 sps:$4 sm:$0xff]   ;;  %v7474_v37 = vld [vmem:[#allocation5 + $0x888] ss:$16 sps:$4 sm:$0xff]  }
 0x132   :  { %4897 = vmatprep.subr.bf16.mxu0 %v7389_v38  ;;  %5389 = vmatprep.subr.bf16.mxu1 %v7392_v39  ;;  %v7479_v38 = vld [vmem:[#allocation5 + $0x8a4] ss:$16 sps:$4 sm:$0xff]   ;;  %v7482_v39 = vld [vmem:[#allocation5 + $0x8ac] ss:$16 sps:$4 sm:$0xff]  }
 0x135   :  { %4898 = vmatpush1.bf16.msra.mxu0 %v7387_v40  ;;  %5390 = vmatpush1.bf16.msra.mxu1 %v7390_v41  ;;  %v7477_v40 = vld [vmem:[#allocation5 + $0x8a0] ss:$16 sps:$4 sm:$0xff]   ;;  %v7480_v41 = vld [vmem:[#allocation5 + $0x8a8] ss:$16 sps:$4 sm:$0xff]  }
 0x136   :  { %4899 = vmatprep.subr.bf16.mxu0 %v7395_v42  ;;  %5391 = vmatprep.subr.bf16.mxu1 %v7398_v43  ;;  %v7485_v42 = vld [vmem:[#allocation5 + $0x8c4] ss:$16 sps:$4 sm:$0xff]   ;;  %v7488_v43 = vld [vmem:[#allocation5 + $0x8cc] ss:$16 sps:$4 sm:$0xff]  }
 0x139   :  { %4900 = vmatpush1.bf16.msra.mxu0 %v7393_v44  ;;  %5392 = vmatpush1.bf16.msra.mxu1 %v7396_v45  ;;  %v7483_v44 = vld [vmem:[#allocation5 + $0x8c0] ss:$16 sps:$4 sm:$0xff]   ;;  %v7486_v45 = vld [vmem:[#allocation5 + $0x8c8] ss:$16 sps:$4 sm:$0xff]  }
 0x13a   :  { %4901 = vmatprep.subr.bf16.mxu0 %v7401_v46  ;;  %5393 = vmatprep.subr.bf16.mxu1 %v7404_v47  ;;  %v7491_v46 = vld [vmem:[#allocation5 + $0x8e4] ss:$16 sps:$4 sm:$0xff]   ;;  %v7494_v47 = vld [vmem:[#allocation5 + $0x8ec] ss:$16 sps:$4 sm:$0xff]  }
 0x13d   :  { %4902 = vmatpush1.bf16.msra.mxu0 %v7399_v48  ;;  %5394 = vmatpush1.bf16.msra.mxu1 %v7402_v49  ;;  %v7489_v48 = vld [vmem:[#allocation5 + $0x8e0] ss:$16 sps:$4 sm:$0xff]   ;;  %v7492_v49 = vld [vmem:[#allocation5 + $0x8e8] ss:$16 sps:$4 sm:$0xff]  }
 0x13e   :  { %4903 = vmatprep.subr.bf16.mxu0 %v7407_v50  ;;  %5395 = vmatprep.subr.bf16.mxu1 %v7410_v51  ;;  %v7497_v50 = vld [vmem:[#allocation5 + $0x904] ss:$16 sps:$4 sm:$0xff]   ;;  %v7500_v51 = vld [vmem:[#allocation5 + $0x90c] ss:$16 sps:$4 sm:$0xff]  }
 0x141   :  { %4904 = vmatpush1.bf16.msra.mxu0 %v7405_v52  ;;  %5396 = vmatpush1.bf16.msra.mxu1 %v7408_v53  ;;  %v7495_v52 = vld [vmem:[#allocation5 + $0x900] ss:$16 sps:$4 sm:$0xff]   ;;  %v7498_v53 = vld [vmem:[#allocation5 + $0x908] ss:$16 sps:$4 sm:$0xff]  }
 0x142   :  { %4905 = vmatprep.subr.bf16.mxu0 %v7413_v54  ;;  %5397 = vmatprep.subr.bf16.mxu1 %v7416_v55  ;;  %v7503_v54 = vld [vmem:[#allocation5 + $0x924] ss:$16 sps:$4 sm:$0xff]   ;;  %v7506_v55 = vld [vmem:[#allocation5 + $0x92c] ss:$16 sps:$4 sm:$0xff]  }
 0x145   :  { %4906 = vmatpush1.bf16.msra.mxu0 %v7411_v56  ;;  %5398 = vmatpush1.bf16.msra.mxu1 %v7414_v57  ;;  %v7501_v56 = vld [vmem:[#allocation5 + $0x920] ss:$16 sps:$4 sm:$0xff]   ;;  %v7504_v57 = vld [vmem:[#allocation5 + $0x928] ss:$16 sps:$4 sm:$0xff]  }
 0x146   :  { %4907 = vmatprep.subr.bf16.mxu0 %v7419_v58  ;;  %5399 = vmatprep.subr.bf16.mxu1 %v7422_v59  ;;  %v7509_v58 = vld [vmem:[#allocation5 + $0x944] ss:$16 sps:$4 sm:$0xff]   ;;  %v7512_v59 = vld [vmem:[#allocation5 + $0x94c] ss:$16 sps:$4 sm:$0xff]  }
 0x149   :  { %4908 = vmatpush1.bf16.msra.mxu0 %v7417_v60  ;;  %5400 = vmatpush1.bf16.msra.mxu1 %v7420_v61  ;;  %v7507_v60 = vld [vmem:[#allocation5 + $0x940] ss:$16 sps:$4 sm:$0xff]   ;;  %v7510_v61 = vld [vmem:[#allocation5 + $0x948] ss:$16 sps:$4 sm:$0xff]  }
 0x14a   :  { %4909 = vmatprep.subr.bf16.mxu0 %v7425_v62  ;;  %5401 = vmatprep.subr.bf16.mxu1 %v7428_v63  ;;  %v7515_v62 = vld [vmem:[#allocation5 + $0x964] ss:$16 sps:$4 sm:$0xff]   ;;  %v7518_v63 = vld [vmem:[#allocation5 + $0x96c] ss:$16 sps:$4 sm:$0xff]  }
 0x14d   :  { %4910 = vmatpush1.bf16.msra.mxu0 %v7423_v0  ;;  %5402 = vmatpush1.bf16.msra.mxu1 %v7426_v1  ;;  %v7513_v0 = vld [vmem:[#allocation5 + $0x960] ss:$16 sps:$4 sm:$0xff]   ;;  %v7516_v1 = vld [vmem:[#allocation5 + $0x968] ss:$16 sps:$4 sm:$0xff]  }
 0x14e   :  { %4911 = vmatprep.subr.bf16.mxu0 %v7431_v2  ;;  %5403 = vmatprep.subr.bf16.mxu1 %v7434_v3  ;;  %v7521_v2 = vld [vmem:[#allocation5 + $0x984] ss:$16 sps:$4 sm:$0xff]   ;;  %v7524_v3 = vld [vmem:[#allocation5 + $0x98c] ss:$16 sps:$4 sm:$0xff]  }
 0x151   :  { %4912 = vmatpush1.bf16.msra.mxu0 %v7429_v4  ;;  %5404 = vmatpush1.bf16.msra.mxu1 %v7432_v5  ;;  %v7519_v4 = vld [vmem:[#allocation5 + $0x980] ss:$16 sps:$4 sm:$0xff]   ;;  %v7522_v5 = vld [vmem:[#allocation5 + $0x988] ss:$16 sps:$4 sm:$0xff]  }
 0x152   :  { %4913 = vmatprep.subr.bf16.mxu0 %v7437_v6  ;;  %5405 = vmatprep.subr.bf16.mxu1 %v7440_v7  ;;  %v7527_v6 = vld [vmem:[#allocation5 + $0x9a4] ss:$16 sps:$4 sm:$0xff]   ;;  %v7530_v7 = vld [vmem:[#allocation5 + $0x9ac] ss:$16 sps:$4 sm:$0xff]  }
 0x155   :  { %4914 = vmatpush1.bf16.msra.mxu0 %v7435_v8  ;;  %5406 = vmatpush1.bf16.msra.mxu1 %v7438_v9  ;;  %v7525_v8 = vld [vmem:[#allocation5 + $0x9a0] ss:$16 sps:$4 sm:$0xff]   ;;  %v7528_v9 = vld [vmem:[#allocation5 + $0x9a8] ss:$16 sps:$4 sm:$0xff]  }
 0x156   :  { %4915 = vmatprep.subr.bf16.mxu0 %v7443_v10  ;;  %5407 = vmatprep.subr.bf16.mxu1 %v7446_v11  ;;  %v7533_v10 = vld [vmem:[#allocation5 + $0x9c4] ss:$16 sps:$4 sm:$0xff]   ;;  %v7536_v11 = vld [vmem:[#allocation5 + $0x9cc] ss:$16 sps:$4 sm:$0xff]  }
 0x159   :  { %4916 = vmatpush1.bf16.msra.mxu0 %v7441_v12  ;;  %5408 = vmatpush1.bf16.msra.mxu1 %v7444_v13  ;;  %v7531_v12 = vld [vmem:[#allocation5 + $0x9c0] ss:$16 sps:$4 sm:$0xff]   ;;  %v7534_v13 = vld [vmem:[#allocation5 + $0x9c8] ss:$16 sps:$4 sm:$0xff]  }
 0x15a   :  { %4926 = vmatprep.subr.bf16.mxu0 %v7449_v15  ;;  %5418 = vmatprep.subr.bf16.mxu1 %v7452_v16  ;;  %v7542_v15 = vld [vmem:[#allocation5 + $0x9ec] ss:$16 sps:$4 sm:$0xff]   ;;  %v7537_v16 = vld [vmem:[#allocation5 + $0x9e0] ss:$16 sps:$4 sm:$0xff]  }
 0x15c   :  { %4918 = vmatmul.mubr.bf16.vlgmr.msra.gmra.mrb[0].mxu0 %v114_v17  ;;  %5410 = vmatmul.mubr.bf16.vlgmr.msra.gmra.mrb[0].mxu1 %v114_v17  ;;  %v7540_v17 = vld [vmem:[#allocation5 + $0x9e8] ss:$16 sps:$4 sm:$0xff]  }
 0x15d   :  { %4927 = vmatpush1.bf16.msra.mxu0 %v7447_v19  ;;  %5419 = vmatpush1.bf16.msra.mxu1 %v7450_v20  ;;  %v92_v19 = vld [vmem:[#allocation2 + $0x40] sm:$0xff]  ;;  %v7548_v20 = vld [vmem:[#allocation5 + $0xa0c] ss:$16 sps:$4 sm:$0xff]  }
 0x15e   :  { %4928 = vmatprep.subr.bf16.mxu0 %v7455_v21  ;;  %5420 = vmatprep.subr.bf16.mxu1 %v7458_v22  ;;  %v95_v21 = vld [vmem:[#allocation2 + $0x58] sm:$0xff]  ;;  %v116_v22 = vpack.c.bf16 %v92_v19, %v92_v19 }
 0x15f   :  { %4958 = vmatprep.mubr.bf16.mxu0 %v117_v23  ;;  %5450 = vmatprep.mubr.bf16.mxu1 %v117_v23  ;;  %v7543_v23 = vld [vmem:[#allocation5 + $0xa00] ss:$16 sps:$4 sm:$0xff]   ;;  %v7638_v19 = vld [vmem:[#allocation5 + $0xbec] ss:$16 sps:$4 sm:$0xff]  }
 0x161   :  { %4929 = vmatpush1.bf16.msra.mxu0 %v7453_v24  ;;  %5421 = vmatpush1.bf16.msra.mxu1 %v7456_v25  ;;  %v7546_v24 = vld [vmem:[#allocation5 + $0xa08] ss:$16 sps:$4 sm:$0xff]   ;;  %v7551_v25 = vld [vmem:[#allocation5 + $0xa24] ss:$16 sps:$4 sm:$0xff]  }
 0x162   :  { %4930 = vmatprep.subr.bf16.mxu0 %v7461_v26  ;;  %5422 = vmatprep.subr.bf16.mxu1 %v7464_v27  ;;  %v7554_v26 = vld [vmem:[#allocation5 + $0xa2c] ss:$16 sps:$4 sm:$0xff]   ;;  %v119_v27 = vpack.c.bf16 %v95_v21, %v95_v21  ;;  %v7636_v21 = vld [vmem:[#allocation5 + $0xbe8] ss:$16 sps:$4 sm:$0xff]  }
 0x165   :  { %4931 = vmatpush1.bf16.msra.mxu0 %v7459_v28  ;;  %5423 = vmatpush1.bf16.msra.mxu1 %v7462_v29  ;;  %v7549_v28 = vld [vmem:[#allocation5 + $0xa20] ss:$16 sps:$4 sm:$0xff]   ;;  %v7552_v29 = vld [vmem:[#allocation5 + $0xa28] ss:$16 sps:$4 sm:$0xff]  }
 0x166   :  { %4932 = vmatprep.subr.bf16.mxu0 %v7467_v30  ;;  %5424 = vmatprep.subr.bf16.mxu1 %v7470_v31  ;;  %v7557_v30 = vld [vmem:[#allocation5 + $0xa44] ss:$16 sps:$4 sm:$0xff]   ;;  %v7560_v31 = vld [vmem:[#allocation5 + $0xa4c] ss:$16 sps:$4 sm:$0xff]  }
 0x169   :  { %4933 = vmatpush1.bf16.msra.mxu0 %v7465_v32  ;;  %5425 = vmatpush1.bf16.msra.mxu1 %v7468_v33  ;;  %v7555_v32 = vld [vmem:[#allocation5 + $0xa40] ss:$16 sps:$4 sm:$0xff]   ;;  %v7558_v33 = vld [vmem:[#allocation5 + $0xa48] ss:$16 sps:$4 sm:$0xff]  }
 0x16a   :  { %4934 = vmatprep.subr.bf16.mxu0 %v7473_v34  ;;  %5426 = vmatprep.subr.bf16.mxu1 %v7476_v35  ;;  %v7563_v34 = vld [vmem:[#allocation5 + $0xa64] ss:$16 sps:$4 sm:$0xff]   ;;  %v7566_v35 = vld [vmem:[#allocation5 + $0xa6c] ss:$16 sps:$4 sm:$0xff]  }
 0x16d   :  { %4935 = vmatpush1.bf16.msra.mxu0 %v7471_v36  ;;  %5427 = vmatpush1.bf16.msra.mxu1 %v7474_v37  ;;  %v7561_v36 = vld [vmem:[#allocation5 + $0xa60] ss:$16 sps:$4 sm:$0xff]   ;;  %v7564_v37 = vld [vmem:[#allocation5 + $0xa68] ss:$16 sps:$4 sm:$0xff]  }
 0x16e   :  { %4936 = vmatprep.subr.bf16.mxu0 %v7479_v38  ;;  %5428 = vmatprep.subr.bf16.mxu1 %v7482_v39  ;;  %v7569_v38 = vld [vmem:[#allocation5 + $0xa84] ss:$16 sps:$4 sm:$0xff]   ;;  %v7572_v39 = vld [vmem:[#allocation5 + $0xa8c] ss:$16 sps:$4 sm:$0xff]  }
 0x171   :  { %4937 = vmatpush1.bf16.msra.mxu0 %v7477_v40  ;;  %5429 = vmatpush1.bf16.msra.mxu1 %v7480_v41  ;;  %v7567_v40 = vld [vmem:[#allocation5 + $0xa80] ss:$16 sps:$4 sm:$0xff]   ;;  %v7570_v41 = vld [vmem:[#allocation5 + $0xa88] ss:$16 sps:$4 sm:$0xff]  }
 0x172   :  { %4938 = vmatprep.subr.bf16.mxu0 %v7485_v42  ;;  %5430 = vmatprep.subr.bf16.mxu1 %v7488_v43  ;;  %v7575_v42 = vld [vmem:[#allocation5 + $0xaa4] ss:$16 sps:$4 sm:$0xff]   ;;  %v7578_v43 = vld [vmem:[#allocation5 + $0xaac] ss:$16 sps:$4 sm:$0xff]  }
 0x175   :  { %4939 = vmatpush1.bf16.msra.mxu0 %v7483_v44  ;;  %5431 = vmatpush1.bf16.msra.mxu1 %v7486_v45  ;;  %v7573_v44 = vld [vmem:[#allocation5 + $0xaa0] ss:$16 sps:$4 sm:$0xff]   ;;  %v7576_v45 = vld [vmem:[#allocation5 + $0xaa8] ss:$16 sps:$4 sm:$0xff]  }
 0x176   :  { %4940 = vmatprep.subr.bf16.mxu0 %v7491_v46  ;;  %5432 = vmatprep.subr.bf16.mxu1 %v7494_v47  ;;  %v7581_v46 = vld [vmem:[#allocation5 + $0xac4] ss:$16 sps:$4 sm:$0xff]   ;;  %v7584_v47 = vld [vmem:[#allocation5 + $0xacc] ss:$16 sps:$4 sm:$0xff]  }
 0x179   :  { %4941 = vmatpush1.bf16.msra.mxu0 %v7489_v48  ;;  %5433 = vmatpush1.bf16.msra.mxu1 %v7492_v49  ;;  %v7579_v48 = vld [vmem:[#allocation5 + $0xac0] ss:$16 sps:$4 sm:$0xff]   ;;  %v7582_v49 = vld [vmem:[#allocation5 + $0xac8] ss:$16 sps:$4 sm:$0xff]  }
 0x17a   :  { %4942 = vmatprep.subr.bf16.mxu0 %v7497_v50  ;;  %5434 = vmatprep.subr.bf16.mxu1 %v7500_v51  ;;  %v7587_v50 = vld [vmem:[#allocation5 + $0xae4] ss:$16 sps:$4 sm:$0xff]   ;;  %v7590_v51 = vld [vmem:[#allocation5 + $0xaec] ss:$16 sps:$4 sm:$0xff]  }
 0x17d   :  { %4943 = vmatpush1.bf16.msra.mxu0 %v7495_v52  ;;  %5435 = vmatpush1.bf16.msra.mxu1 %v7498_v53  ;;  %v7585_v52 = vld [vmem:[#allocation5 + $0xae0] ss:$16 sps:$4 sm:$0xff]   ;;  %v7588_v53 = vld [vmem:[#allocation5 + $0xae8] ss:$16 sps:$4 sm:$0xff]  }
 0x17e   :  { %4944 = vmatprep.subr.bf16.mxu0 %v7503_v54  ;;  %5436 = vmatprep.subr.bf16.mxu1 %v7506_v55  ;;  %v7593_v54 = vld [vmem:[#allocation5 + $0xb04] ss:$16 sps:$4 sm:$0xff]   ;;  %v7596_v55 = vld [vmem:[#allocation5 + $0xb0c] ss:$16 sps:$4 sm:$0xff]  }
 0x181   :  { %4945 = vmatpush1.bf16.msra.mxu0 %v7501_v56  ;;  %5437 = vmatpush1.bf16.msra.mxu1 %v7504_v57  ;;  %v7591_v56 = vld [vmem:[#allocation5 + $0xb00] ss:$16 sps:$4 sm:$0xff]   ;;  %v7594_v57 = vld [vmem:[#allocation5 + $0xb08] ss:$16 sps:$4 sm:$0xff]  }
 0x182   :  { %4946 = vmatprep.subr.bf16.mxu0 %v7509_v58  ;;  %5438 = vmatprep.subr.bf16.mxu1 %v7512_v59  ;;  %v7599_v58 = vld [vmem:[#allocation5 + $0xb24] ss:$16 sps:$4 sm:$0xff]   ;;  %v7602_v59 = vld [vmem:[#allocation5 + $0xb2c] ss:$16 sps:$4 sm:$0xff]  }
 0x185   :  { %4947 = vmatpush1.bf16.msra.mxu0 %v7507_v60  ;;  %5439 = vmatpush1.bf16.msra.mxu1 %v7510_v61  ;;  %v7597_v60 = vld [vmem:[#allocation5 + $0xb20] ss:$16 sps:$4 sm:$0xff]   ;;  %v7600_v61 = vld [vmem:[#allocation5 + $0xb28] ss:$16 sps:$4 sm:$0xff]  }
 0x186   :  { %4948 = vmatprep.subr.bf16.mxu0 %v7515_v62  ;;  %5440 = vmatprep.subr.bf16.mxu1 %v7518_v63  ;;  %v7605_v62 = vld [vmem:[#allocation5 + $0xb44] ss:$16 sps:$4 sm:$0xff]   ;;  %v7608_v63 = vld [vmem:[#allocation5 + $0xb4c] ss:$16 sps:$4 sm:$0xff]  }
 0x189   :  { %4949 = vmatpush1.bf16.msra.mxu0 %v7513_v0  ;;  %5441 = vmatpush1.bf16.msra.mxu1 %v7516_v1  ;;  %v7603_v0 = vld [vmem:[#allocation5 + $0xb40] ss:$16 sps:$4 sm:$0xff]   ;;  %v7606_v1 = vld [vmem:[#allocation5 + $0xb48] ss:$16 sps:$4 sm:$0xff]  }
 0x18a   :  { %4950 = vmatprep.subr.bf16.mxu0 %v7521_v2  ;;  %5442 = vmatprep.subr.bf16.mxu1 %v7524_v3  ;;  %v7611_v2 = vld [vmem:[#allocation5 + $0xb64] ss:$16 sps:$4 sm:$0xff]   ;;  %v7614_v3 = vld [vmem:[#allocation5 + $0xb6c] ss:$16 sps:$4 sm:$0xff]  }
 0x18d   :  { %4951 = vmatpush1.bf16.msra.mxu0 %v7519_v4  ;;  %5443 = vmatpush1.bf16.msra.mxu1 %v7522_v5  ;;  %v7609_v4 = vld [vmem:[#allocation5 + $0xb60] ss:$16 sps:$4 sm:$0xff]   ;;  %v7612_v5 = vld [vmem:[#allocation5 + $0xb68] ss:$16 sps:$4 sm:$0xff]  }
 0x18e   :  { %4952 = vmatprep.subr.bf16.mxu0 %v7527_v6  ;;  %5444 = vmatprep.subr.bf16.mxu1 %v7530_v7  ;;  %v7617_v6 = vld [vmem:[#allocation5 + $0xb84] ss:$16 sps:$4 sm:$0xff]   ;;  %v7620_v7 = vld [vmem:[#allocation5 + $0xb8c] ss:$16 sps:$4 sm:$0xff]  }
 0x191   :  { %4953 = vmatpush1.bf16.msra.mxu0 %v7525_v8  ;;  %5445 = vmatpush1.bf16.msra.mxu1 %v7528_v9  ;;  %v7615_v8 = vld [vmem:[#allocation5 + $0xb80] ss:$16 sps:$4 sm:$0xff]   ;;  %v7618_v9 = vld [vmem:[#allocation5 + $0xb88] ss:$16 sps:$4 sm:$0xff]  }
 0x192   :  { %4954 = vmatprep.subr.bf16.mxu0 %v7533_v10  ;;  %5446 = vmatprep.subr.bf16.mxu1 %v7536_v11  ;;  %v7623_v10 = vld [vmem:[#allocation5 + $0xba4] ss:$16 sps:$4 sm:$0xff]   ;;  %v7626_v11 = vld [vmem:[#allocation5 + $0xbac] ss:$16 sps:$4 sm:$0xff]  }
 0x195   :  { %4955 = vmatpush1.bf16.msra.mxu0 %v7531_v12  ;;  %5447 = vmatpush1.bf16.msra.mxu1 %v7534_v13  ;;  %v7621_v12 = vld [vmem:[#allocation5 + $0xba0] ss:$16 sps:$4 sm:$0xff]   ;;  %v7624_v13 = vld [vmem:[#allocation5 + $0xba8] ss:$16 sps:$4 sm:$0xff]  }
 0x196   :  { %4956 = vmatprep.subr.bf16.mxu0 %v7539_v14  ;;  %5448 = vmatprep.subr.bf16.mxu1 %v7542_v15  ;;  %v7629_v14 = vld [vmem:[#allocation5 + $0xbc4] ss:$16 sps:$4 sm:$0xff]   ;;  %v7632_v15 = vld [vmem:[#allocation5 + $0xbcc] ss:$16 sps:$4 sm:$0xff]  }
 0x199   :  { %4957 = vmatpush1.bf16.msra.mxu0 %v7537_v16  ;;  %5449 = vmatpush1.bf16.msra.mxu1 %v7540_v17  ;;  %v7627_v16 = vld [vmem:[#allocation5 + $0xbc0] ss:$16 sps:$4 sm:$0xff]   ;;  %v7630_v17 = vld [vmem:[#allocation5 + $0xbc8] ss:$16 sps:$4 sm:$0xff]  }
 0x19a   :  { %4967 = vmatprep.subr.bf16.mxu0 %v7545_v18  ;;  %5459 = vmatprep.subr.bf16.mxu1 %v7548_v20  ;;  %v7635_v18 = vld [vmem:[#allocation5 + $0xbe4] ss:$16 sps:$4 sm:$0xff]   ;;  %v7633_v20 = vld [vmem:[#allocation5 + $0xbe0] ss:$16 sps:$4 sm:$0xff]  }
 0x19c   :  { %4959 = vmatmul.mubr.bf16.vlgmr.msra.gmra.mrb[0].mxu0 %v116_v22  ;;  %5451 = vmatmul.mubr.bf16.vlgmr.msra.gmra.mrb[0].mxu1 %v116_v22  ;;  %v7641_v22 = vld [vmem:[#allocation5 + $0xc04] ss:$16 sps:$4 sm:$0xff]  }
 0x19d   :  { %4968 = vmatpush1.bf16.msra.mxu0 %v7543_v23  ;;  %5460 = vmatpush1.bf16.msra.mxu1 %v7546_v24  ;;  %v94_v23 = vld [vmem:[#allocation2 + $0x50] sm:$0xff]  ;;  %v7644_v24 = vld [vmem:[#allocation5 + $0xc0c] ss:$16 sps:$4 sm:$0xff]  }
 0x19e   :  { %4969 = vmatprep.subr.bf16.mxu0 %v7551_v25  ;;  %5461 = vmatprep.subr.bf16.mxu1 %v7554_v26  ;;  %v97_v25 = vld [vmem:[#allocation2 + $0x68] sm:$0xff]  ;;  %v118_v26 = vpack.c.bf16 %v94_v23, %v94_v23 }
 0x19f   :  { %4999 = vmatprep.mubr.bf16.mxu0 %v119_v27  ;;  %5491 = vmatprep.mubr.bf16.mxu1 %v119_v27  ;;  %v7639_v27 = vld [vmem:[#allocation5 + $0xc00] ss:$16 sps:$4 sm:$0xff]   ;;  %v7734_v23 = vld [vmem:[#allocation5 + $0xdec] ss:$16 sps:$4 sm:$0xff]  }
 0x1a1   :  { %4970 = vmatpush1.bf16.msra.mxu0 %v7549_v28  ;;  %5462 = vmatpush1.bf16.msra.mxu1 %v7552_v29  ;;  %v7642_v28 = vld [vmem:[#allocation5 + $0xc08] ss:$16 sps:$4 sm:$0xff]   ;;  %v7647_v29 = vld [vmem:[#allocation5 + $0xc24] ss:$16 sps:$4 sm:$0xff]  }
 0x1a2   :  { %4971 = vmatprep.subr.bf16.mxu0 %v7557_v30  ;;  %5463 = vmatprep.subr.bf16.mxu1 %v7560_v31  ;;  %v7650_v30 = vld [vmem:[#allocation5 + $0xc2c] ss:$16 sps:$4 sm:$0xff]   ;;  %v121_v31 = vpack.c.bf16 %v97_v25, %v97_v25  ;;  %v7732_v25 = vld [vmem:[#allocation5 + $0xde8] ss:$16 sps:$4 sm:$0xff]  }
 0x1a5   :  { %4972 = vmatpush1.bf16.msra.mxu0 %v7555_v32  ;;  %5464 = vmatpush1.bf16.msra.mxu1 %v7558_v33  ;;  %v7645_v32 = vld [vmem:[#allocation5 + $0xc20] ss:$16 sps:$4 sm:$0xff]   ;;  %v7648_v33 = vld [vmem:[#allocation5 + $0xc28] ss:$16 sps:$4 sm:$0xff]  }
 0x1a6   :  { %4973 = vmatprep.subr.bf16.mxu0 %v7563_v34  ;;  %5465 = vmatprep.subr.bf16.mxu1 %v7566_v35  ;;  %v7653_v34 = vld [vmem:[#allocation5 + $0xc44] ss:$16 sps:$4 sm:$0xff]   ;;  %v7656_v35 = vld [vmem:[#allocation5 + $0xc4c] ss:$16 sps:$4 sm:$0xff]  }
 0x1a9   :  { %4974 = vmatpush1.bf16.msra.mxu0 %v7561_v36  ;;  %5466 = vmatpush1.bf16.msra.mxu1 %v7564_v37  ;;  %v7651_v36 = vld [vmem:[#allocation5 + $0xc40] ss:$16 sps:$4 sm:$0xff]   ;;  %v7654_v37 = vld [vmem:[#allocation5 + $0xc48] ss:$16 sps:$4 sm:$0xff]  }
 0x1aa   :  { %4975 = vmatprep.subr.bf16.mxu0 %v7569_v38  ;;  %5467 = vmatprep.subr.bf16.mxu1 %v7572_v39  ;;  %v7659_v38 = vld [vmem:[#allocation5 + $0xc64] ss:$16 sps:$4 sm:$0xff]   ;;  %v7662_v39 = vld [vmem:[#allocation5 + $0xc6c] ss:$16 sps:$4 sm:$0xff]  }
 0x1ad   :  { %4976 = vmatpush1.bf16.msra.mxu0 %v7567_v40  ;;  %5468 = vmatpush1.bf16.msra.mxu1 %v7570_v41  ;;  %v7657_v40 = vld [vmem:[#allocation5 + $0xc60] ss:$16 sps:$4 sm:$0xff]   ;;  %v7660_v41 = vld [vmem:[#allocation5 + $0xc68] ss:$16 sps:$4 sm:$0xff]  }
 0x1ae   :  { %4977 = vmatprep.subr.bf16.mxu0 %v7575_v42  ;;  %5469 = vmatprep.subr.bf16.mxu1 %v7578_v43  ;;  %v7665_v42 = vld [vmem:[#allocation5 + $0xc84] ss:$16 sps:$4 sm:$0xff]   ;;  %v7668_v43 = vld [vmem:[#allocation5 + $0xc8c] ss:$16 sps:$4 sm:$0xff]  }
 0x1b1   :  { %4978 = vmatpush1.bf16.msra.mxu0 %v7573_v44  ;;  %5470 = vmatpush1.bf16.msra.mxu1 %v7576_v45  ;;  %v7663_v44 = vld [vmem:[#allocation5 + $0xc80] ss:$16 sps:$4 sm:$0xff]   ;;  %v7666_v45 = vld [vmem:[#allocation5 + $0xc88] ss:$16 sps:$4 sm:$0xff]  }
 0x1b2   :  { %4979 = vmatprep.subr.bf16.mxu0 %v7581_v46  ;;  %5471 = vmatprep.subr.bf16.mxu1 %v7584_v47  ;;  %v7671_v46 = vld [vmem:[#allocation5 + $0xca4] ss:$16 sps:$4 sm:$0xff]   ;;  %v7674_v47 = vld [vmem:[#allocation5 + $0xcac] ss:$16 sps:$4 sm:$0xff]  }
 0x1b5   :  { %4980 = vmatpush1.bf16.msra.mxu0 %v7579_v48  ;;  %5472 = vmatpush1.bf16.msra.mxu1 %v7582_v49  ;;  %v7669_v48 = vld [vmem:[#allocation5 + $0xca0] ss:$16 sps:$4 sm:$0xff]   ;;  %v7672_v49 = vld [vmem:[#allocation5 + $0xca8] ss:$16 sps:$4 sm:$0xff]  }
 0x1b6   :  { %4981 = vmatprep.subr.bf16.mxu0 %v7587_v50  ;;  %5473 = vmatprep.subr.bf16.mxu1 %v7590_v51  ;;  %v7677_v50 = vld [vmem:[#allocation5 + $0xcc4] ss:$16 sps:$4 sm:$0xff]   ;;  %v7680_v51 = vld [vmem:[#allocation5 + $0xccc] ss:$16 sps:$4 sm:$0xff]  }
 0x1b9   :  { %4982 = vmatpush1.bf16.msra.mxu0 %v7585_v52  ;;  %5474 = vmatpush1.bf16.msra.mxu1 %v7588_v53  ;;  %v7675_v52 = vld [vmem:[#allocation5 + $0xcc0] ss:$16 sps:$4 sm:$0xff]   ;;  %v7678_v53 = vld [vmem:[#allocation5 + $0xcc8] ss:$16 sps:$4 sm:$0xff]  }
 0x1ba   :  { %4983 = vmatprep.subr.bf16.mxu0 %v7593_v54  ;;  %5475 = vmatprep.subr.bf16.mxu1 %v7596_v55  ;;  %v7683_v54 = vld [vmem:[#allocation5 + $0xce4] ss:$16 sps:$4 sm:$0xff]   ;;  %v7686_v55 = vld [vmem:[#allocation5 + $0xcec] ss:$16 sps:$4 sm:$0xff]  }
 0x1bd   :  { %4984 = vmatpush1.bf16.msra.mxu0 %v7591_v56  ;;  %5476 = vmatpush1.bf16.msra.mxu1 %v7594_v57  ;;  %v7681_v56 = vld [vmem:[#allocation5 + $0xce0] ss:$16 sps:$4 sm:$0xff]   ;;  %v7684_v57 = vld [vmem:[#allocation5 + $0xce8] ss:$16 sps:$4 sm:$0xff]  }
 0x1be   :  { %4985 = vmatprep.subr.bf16.mxu0 %v7599_v58  ;;  %5477 = vmatprep.subr.bf16.mxu1 %v7602_v59  ;;  %v7689_v58 = vld [vmem:[#allocation5 + $0xd04] ss:$16 sps:$4 sm:$0xff]   ;;  %v7692_v59 = vld [vmem:[#allocation5 + $0xd0c] ss:$16 sps:$4 sm:$0xff]  }
 0x1c1   :  { %4986 = vmatpush1.bf16.msra.mxu0 %v7597_v60  ;;  %5478 = vmatpush1.bf16.msra.mxu1 %v7600_v61  ;;  %v7687_v60 = vld [vmem:[#allocation5 + $0xd00] ss:$16 sps:$4 sm:$0xff]   ;;  %v7690_v61 = vld [vmem:[#allocation5 + $0xd08] ss:$16 sps:$4 sm:$0xff]  }
 0x1c2   :  { %4987 = vmatprep.subr.bf16.mxu0 %v7605_v62  ;;  %5479 = vmatprep.subr.bf16.mxu1 %v7608_v63  ;;  %v7695_v62 = vld [vmem:[#allocation5 + $0xd24] ss:$16 sps:$4 sm:$0xff]   ;;  %v7698_v63 = vld [vmem:[#allocation5 + $0xd2c] ss:$16 sps:$4 sm:$0xff]  }
 0x1c5   :  { %4988 = vmatpush1.bf16.msra.mxu0 %v7603_v0  ;;  %5480 = vmatpush1.bf16.msra.mxu1 %v7606_v1  ;;  %v7693_v0 = vld [vmem:[#allocation5 + $0xd20] ss:$16 sps:$4 sm:$0xff]   ;;  %v7696_v1 = vld [vmem:[#allocation5 + $0xd28] ss:$16 sps:$4 sm:$0xff]  }
 0x1c6   :  { %4989 = vmatprep.subr.bf16.mxu0 %v7611_v2  ;;  %5481 = vmatprep.subr.bf16.mxu1 %v7614_v3  ;;  %v7701_v2 = vld [vmem:[#allocation5 + $0xd44] ss:$16 sps:$4 sm:$0xff]   ;;  %v7704_v3 = vld [vmem:[#allocation5 + $0xd4c] ss:$16 sps:$4 sm:$0xff]  }
 0x1c9   :  { %4990 = vmatpush1.bf16.msra.mxu0 %v7609_v4  ;;  %5482 = vmatpush1.bf16.msra.mxu1 %v7612_v5  ;;  %v7699_v4 = vld [vmem:[#allocation5 + $0xd40] ss:$16 sps:$4 sm:$0xff]   ;;  %v7702_v5 = vld [vmem:[#allocation5 + $0xd48] ss:$16 sps:$4 sm:$0xff]  }
 0x1ca   :  { %4991 = vmatprep.subr.bf16.mxu0 %v7617_v6  ;;  %5483 = vmatprep.subr.bf16.mxu1 %v7620_v7  ;;  %v7707_v6 = vld [vmem:[#allocation5 + $0xd64] ss:$16 sps:$4 sm:$0xff]   ;;  %v7710_v7 = vld [vmem:[#allocation5 + $0xd6c] ss:$16 sps:$4 sm:$0xff]  }
 0x1cd   :  { %4992 = vmatpush1.bf16.msra.mxu0 %v7615_v8  ;;  %5484 = vmatpush1.bf16.msra.mxu1 %v7618_v9  ;;  %v7705_v8 = vld [vmem:[#allocation5 + $0xd60] ss:$16 sps:$4 sm:$0xff]   ;;  %v7708_v9 = vld [vmem:[#allocation5 + $0xd68] ss:$16 sps:$4 sm:$0xff]  }
 0x1ce   :  { %4993 = vmatprep.subr.bf16.mxu0 %v7623_v10  ;;  %5485 = vmatprep.subr.bf16.mxu1 %v7626_v11  ;;  %v7713_v10 = vld [vmem:[#allocation5 + $0xd84] ss:$16 sps:$4 sm:$0xff]   ;;  %v7716_v11 = vld [vmem:[#allocation5 + $0xd8c] ss:$16 sps:$4 sm:$0xff]  }
 0x1d1   :  { %4994 = vmatpush1.bf16.msra.mxu0 %v7621_v12  ;;  %5486 = vmatpush1.bf16.msra.mxu1 %v7624_v13  ;;  %v7711_v12 = vld [vmem:[#allocation5 + $0xd80] ss:$16 sps:$4 sm:$0xff]   ;;  %v7714_v13 = vld [vmem:[#allocation5 + $0xd88] ss:$16 sps:$4 sm:$0xff]  }
 0x1d2   :  { %4995 = vmatprep.subr.bf16.mxu0 %v7629_v14  ;;  %5487 = vmatprep.subr.bf16.mxu1 %v7632_v15  ;;  %v7719_v14 = vld [vmem:[#allocation5 + $0xda4] ss:$16 sps:$4 sm:$0xff]   ;;  %v7722_v15 = vld [vmem:[#allocation5 + $0xdac] ss:$16 sps:$4 sm:$0xff]  }
 0x1d5   :  { %4996 = vmatpush1.bf16.msra.mxu0 %v7627_v16  ;;  %5488 = vmatpush1.bf16.msra.mxu1 %v7630_v17  ;;  %v7717_v16 = vld [vmem:[#allocation5 + $0xda0] ss:$16 sps:$4 sm:$0xff]   ;;  %v7720_v17 = vld [vmem:[#allocation5 + $0xda8] ss:$16 sps:$4 sm:$0xff]  }
 0x1d6   :  { %4997 = vmatprep.subr.bf16.mxu0 %v7635_v18  ;;  %5489 = vmatprep.subr.bf16.mxu1 %v7638_v19  ;;  %v7725_v18 = vld [vmem:[#allocation5 + $0xdc4] ss:$16 sps:$4 sm:$0xff]   ;;  %v7728_v19 = vld [vmem:[#allocation5 + $0xdcc] ss:$16 sps:$4 sm:$0xff]  }
 0x1d9   :  { %4998 = vmatpush1.bf16.msra.mxu0 %v7633_v20  ;;  %5490 = vmatpush1.bf16.msra.mxu1 %v7636_v21  ;;  %v7723_v20 = vld [vmem:[#allocation5 + $0xdc0] ss:$16 sps:$4 sm:$0xff]   ;;  %v7726_v21 = vld [vmem:[#allocation5 + $0xdc8] ss:$16 sps:$4 sm:$0xff]  }
 0x1da   :  { %5008 = vmatprep.subr.bf16.mxu0 %v7641_v22  ;;  %5500 = vmatprep.subr.bf16.mxu1 %v7644_v24  ;;  %v7731_v22 = vld [vmem:[#allocation5 + $0xde4] ss:$16 sps:$4 sm:$0xff]   ;;  %v7729_v24 = vld [vmem:[#allocation5 + $0xde0] ss:$16 sps:$4 sm:$0xff]  }
 0x1dc   :  { %5000 = vmatmul.mubr.bf16.vlgmr.msra.gmra.mrb[0].mxu0 %v118_v26  ;;  %5492 = vmatmul.mubr.bf16.vlgmr.msra.gmra.mrb[0].mxu1 %v118_v26  ;;  %v7737_v26 = vld [vmem:[#allocation5 + $0xe04] ss:$16 sps:$4 sm:$0xff]  }
 0x1dd   :  { %5009 = vmatpush1.bf16.msra.mxu0 %v7639_v27  ;;  %5501 = vmatpush1.bf16.msra.mxu1 %v7642_v28  ;;  %v96_v27 = vld [vmem:[#allocation2 + $0x60] sm:$0xff]  ;;  %v7740_v28 = vld [vmem:[#allocation5 + $0xe0c] ss:$16 sps:$4 sm:$0xff]  }
 0x1de   :  { %5010 = vmatprep.subr.bf16.mxu0 %v7647_v29  ;;  %5502 = vmatprep.subr.bf16.mxu1 %v7650_v30  ;;  %v99_v29 = vld [vmem:[#allocation2 + $0x78] sm:$0xff]  ;;  %v120_v30 = vpack.c.bf16 %v96_v27, %v96_v27 }
 0x1df   :  { %5040 = vmatprep.mubr.bf16.mxu0 %v121_v31  ;;  %5532 = vmatprep.mubr.bf16.mxu1 %v121_v31  ;;  %v7735_v31 = vld [vmem:[#allocation5 + $0xe00] ss:$16 sps:$4 sm:$0xff]   ;;  %v7830_v27 = vld [vmem:[#allocation5 + $0xfec] ss:$16 sps:$4 sm:$0xff]  }
 0x1e1   :  { %5011 = vmatpush1.bf16.msra.mxu0 %v7645_v32  ;;  %5503 = vmatpush1.bf16.msra.mxu1 %v7648_v33  ;;  %v7738_v32 = vld [vmem:[#allocation5 + $0xe08] ss:$16 sps:$4 sm:$0xff]   ;;  %v7743_v33 = vld [vmem:[#allocation5 + $0xe24] ss:$16 sps:$4 sm:$0xff]  }
 0x1e2   :  { %5012 = vmatprep.subr.bf16.mxu0 %v7653_v34  ;;  %5504 = vmatprep.subr.bf16.mxu1 %v7656_v35  ;;  %v7746_v34 = vld [vmem:[#allocation5 + $0xe2c] ss:$16 sps:$4 sm:$0xff]   ;;  %v123_v35 = vpack.c.bf16 %v99_v29, %v99_v29  ;;  %v7828_v29 = vld [vmem:[#allocation5 + $0xfe8] ss:$16 sps:$4 sm:$0xff]  }
 0x1e5   :  { %5013 = vmatpush1.bf16.msra.mxu0 %v7651_v36  ;;  %5505 = vmatpush1.bf16.msra.mxu1 %v7654_v37  ;;  %v7741_v36 = vld [vmem:[#allocation5 + $0xe20] ss:$16 sps:$4 sm:$0xff]   ;;  %v7744_v37 = vld [vmem:[#allocation5 + $0xe28] ss:$16 sps:$4 sm:$0xff]  }
 0x1e6   :  { %5014 = vmatprep.subr.bf16.mxu0 %v7659_v38  ;;  %5506 = vmatprep.subr.bf16.mxu1 %v7662_v39  ;;  %v7749_v38 = vld [vmem:[#allocation5 + $0xe44] ss:$16 sps:$4 sm:$0xff]   ;;  %v7752_v39 = vld [vmem:[#allocation5 + $0xe4c] ss:$16 sps:$4 sm:$0xff]  }
 0x1e9   :  { %5015 = vmatpush1.bf16.msra.mxu0 %v7657_v40  ;;  %5507 = vmatpush1.bf16.msra.mxu1 %v7660_v41  ;;  %v7747_v40 = vld [vmem:[#allocation5 + $0xe40] ss:$16 sps:$4 sm:$0xff]   ;;  %v7750_v41 = vld [vmem:[#allocation5 + $0xe48] ss:$16 sps:$4 sm:$0xff]  }
 0x1ea   :  { %5016 = vmatprep.subr.bf16.mxu0 %v7665_v42  ;;  %5508 = vmatprep.subr.bf16.mxu1 %v7668_v43  ;;  %v7755_v42 = vld [vmem:[#allocation5 + $0xe64] ss:$16 sps:$4 sm:$0xff]   ;;  %v7758_v43 = vld [vmem:[#allocation5 + $0xe6c] ss:$16 sps:$4 sm:$0xff]  }
 0x1ed   :  { %5017 = vmatpush1.bf16.msra.mxu0 %v7663_v44  ;;  %5509 = vmatpush1.bf16.msra.mxu1 %v7666_v45  ;;  %v7753_v44 = vld [vmem:[#allocation5 + $0xe60] ss:$16 sps:$4 sm:$0xff]   ;;  %v7756_v45 = vld [vmem:[#allocation5 + $0xe68] ss:$16 sps:$4 sm:$0xff]  }
 0x1ee   :  { %5018 = vmatprep.subr.bf16.mxu0 %v7671_v46  ;;  %5510 = vmatprep.subr.bf16.mxu1 %v7674_v47  ;;  %v7761_v46 = vld [vmem:[#allocation5 + $0xe84] ss:$16 sps:$4 sm:$0xff]   ;;  %v7764_v47 = vld [vmem:[#allocation5 + $0xe8c] ss:$16 sps:$4 sm:$0xff]  }
 0x1f1   :  { %5019 = vmatpush1.bf16.msra.mxu0 %v7669_v48  ;;  %5511 = vmatpush1.bf16.msra.mxu1 %v7672_v49  ;;  %v7759_v48 = vld [vmem:[#allocation5 + $0xe80] ss:$16 sps:$4 sm:$0xff]   ;;  %v7762_v49 = vld [vmem:[#allocation5 + $0xe88] ss:$16 sps:$4 sm:$0xff]  }
 0x1f2   :  { %5020 = vmatprep.subr.bf16.mxu0 %v7677_v50  ;;  %5512 = vmatprep.subr.bf16.mxu1 %v7680_v51  ;;  %v7767_v50 = vld [vmem:[#allocation5 + $0xea4] ss:$16 sps:$4 sm:$0xff]   ;;  %v7770_v51 = vld [vmem:[#allocation5 + $0xeac] ss:$16 sps:$4 sm:$0xff]  }
 0x1f5   :  { %5021 = vmatpush1.bf16.msra.mxu0 %v7675_v52  ;;  %5513 = vmatpush1.bf16.msra.mxu1 %v7678_v53  ;;  %v7765_v52 = vld [vmem:[#allocation5 + $0xea0] ss:$16 sps:$4 sm:$0xff]   ;;  %v7768_v53 = vld [vmem:[#allocation5 + $0xea8] ss:$16 sps:$4 sm:$0xff]  }
 0x1f6   :  { %5022 = vmatprep.subr.bf16.mxu0 %v7683_v54  ;;  %5514 = vmatprep.subr.bf16.mxu1 %v7686_v55  ;;  %v7773_v54 = vld [vmem:[#allocation5 + $0xec4] ss:$16 sps:$4 sm:$0xff]   ;;  %v7776_v55 = vld [vmem:[#allocation5 + $0xecc] ss:$16 sps:$4 sm:$0xff]  }
 0x1f9   :  { %5023 = vmatpush1.bf16.msra.mxu0 %v7681_v56  ;;  %5515 = vmatpush1.bf16.msra.mxu1 %v7684_v57  ;;  %v7771_v56 = vld [vmem:[#allocation5 + $0xec0] ss:$16 sps:$4 sm:$0xff]   ;;  %v7774_v57 = vld [vmem:[#allocation5 + $0xec8] ss:$16 sps:$4 sm:$0xff]  }
 0x1fa   :  { %5024 = vmatprep.subr.bf16.mxu0 %v7689_v58  ;;  %5516 = vmatprep.subr.bf16.mxu1 %v7692_v59  ;;  %v7779_v58 = vld [vmem:[#allocation5 + $0xee4] ss:$16 sps:$4 sm:$0xff]   ;;  %v7782_v59 = vld [vmem:[#allocation5 + $0xeec] ss:$16 sps:$4 sm:$0xff]  }
 0x1fd   :  { %5025 = vmatpush1.bf16.msra.mxu0 %v7687_v60  ;;  %5517 = vmatpush1.bf16.msra.mxu1 %v7690_v61  ;;  %v7777_v60 = vld [vmem:[#allocation5 + $0xee0] ss:$16 sps:$4 sm:$0xff]   ;;  %v7780_v61 = vld [vmem:[#allocation5 + $0xee8] ss:$16 sps:$4 sm:$0xff]  }
 0x1fe   :  { %5026 = vmatprep.subr.bf16.mxu0 %v7695_v62  ;;  %5518 = vmatprep.subr.bf16.mxu1 %v7698_v63  ;;  %v7785_v62 = vld [vmem:[#allocation5 + $0xf04] ss:$16 sps:$4 sm:$0xff]   ;;  %v7788_v63 = vld [vmem:[#allocation5 + $0xf0c] ss:$16 sps:$4 sm:$0xff]  }
 0x201   :  { %5027 = vmatpush1.bf16.msra.mxu0 %v7693_v0  ;;  %5519 = vmatpush1.bf16.msra.mxu1 %v7696_v1  ;;  %v7783_v0 = vld [vmem:[#allocation5 + $0xf00] ss:$16 sps:$4 sm:$0xff]   ;;  %v7786_v1 = vld [vmem:[#allocation5 + $0xf08] ss:$16 sps:$4 sm:$0xff]  }
 0x202   :  { %5028 = vmatprep.subr.bf16.mxu0 %v7701_v2  ;;  %5520 = vmatprep.subr.bf16.mxu1 %v7704_v3  ;;  %v7791_v2 = vld [vmem:[#allocation5 + $0xf24] ss:$16 sps:$4 sm:$0xff]   ;;  %v7794_v3 = vld [vmem:[#allocation5 + $0xf2c] ss:$16 sps:$4 sm:$0xff]  }
 0x205   :  { %5029 = vmatpush1.bf16.msra.mxu0 %v7699_v4  ;;  %5521 = vmatpush1.bf16.msra.mxu1 %v7702_v5  ;;  %v7789_v4 = vld [vmem:[#allocation5 + $0xf20] ss:$16 sps:$4 sm:$0xff]   ;;  %v7792_v5 = vld [vmem:[#allocation5 + $0xf28] ss:$16 sps:$4 sm:$0xff]  }
 0x206   :  { %5030 = vmatprep.subr.bf16.mxu0 %v7707_v6  ;;  %5522 = vmatprep.subr.bf16.mxu1 %v7710_v7  ;;  %v7797_v6 = vld [vmem:[#allocation5 + $0xf44] ss:$16 sps:$4 sm:$0xff]   ;;  %v7800_v7 = vld [vmem:[#allocation5 + $0xf4c] ss:$16 sps:$4 sm:$0xff]  }
 0x209   :  { %5031 = vmatpush1.bf16.msra.mxu0 %v7705_v8  ;;  %5523 = vmatpush1.bf16.msra.mxu1 %v7708_v9  ;;  %v7795_v8 = vld [vmem:[#allocation5 + $0xf40] ss:$16 sps:$4 sm:$0xff]   ;;  %v7798_v9 = vld [vmem:[#allocation5 + $0xf48] ss:$16 sps:$4 sm:$0xff]  }
 0x20a   :  { %5032 = vmatprep.subr.bf16.mxu0 %v7713_v10  ;;  %5524 = vmatprep.subr.bf16.mxu1 %v7716_v11  ;;  %v7803_v10 = vld [vmem:[#allocation5 + $0xf64] ss:$16 sps:$4 sm:$0xff]   ;;  %v7806_v11 = vld [vmem:[#allocation5 + $0xf6c] ss:$16 sps:$4 sm:$0xff]  }
 0x20d   :  { %5033 = vmatpush1.bf16.msra.mxu0 %v7711_v12  ;;  %5525 = vmatpush1.bf16.msra.mxu1 %v7714_v13  ;;  %v7801_v12 = vld [vmem:[#allocation5 + $0xf60] ss:$16 sps:$4 sm:$0xff]   ;;  %v7804_v13 = vld [vmem:[#allocation5 + $0xf68] ss:$16 sps:$4 sm:$0xff]  }
 0x20e   :  { %5034 = vmatprep.subr.bf16.mxu0 %v7719_v14  ;;  %5526 = vmatprep.subr.bf16.mxu1 %v7722_v15  ;;  %v7809_v14 = vld [vmem:[#allocation5 + $0xf84] ss:$16 sps:$4 sm:$0xff]   ;;  %v7812_v15 = vld [vmem:[#allocation5 + $0xf8c] ss:$16 sps:$4 sm:$0xff]  }
 0x211   :  { %5035 = vmatpush1.bf16.msra.mxu0 %v7717_v16  ;;  %5527 = vmatpush1.bf16.msra.mxu1 %v7720_v17  ;;  %v7807_v16 = vld [vmem:[#allocation5 + $0xf80] ss:$16 sps:$4 sm:$0xff]   ;;  %v7810_v17 = vld [vmem:[#allocation5 + $0xf88] ss:$16 sps:$4 sm:$0xff]  }
 0x212   :  { %5036 = vmatprep.subr.bf16.mxu0 %v7725_v18  ;;  %5528 = vmatprep.subr.bf16.mxu1 %v7728_v19  ;;  %v7815_v18 = vld [vmem:[#allocation5 + $0xfa4] ss:$16 sps:$4 sm:$0xff]   ;;  %v7818_v19 = vld [vmem:[#allocation5 + $0xfac] ss:$16 sps:$4 sm:$0xff]  }
 0x215   :  { %5037 = vmatpush1.bf16.msra.mxu0 %v7723_v20  ;;  %5529 = vmatpush1.bf16.msra.mxu1 %v7726_v21  ;;  %v7813_v20 = vld [vmem:[#allocation5 + $0xfa0] ss:$16 sps:$4 sm:$0xff]   ;;  %v7816_v21 = vld [vmem:[#allocation5 + $0xfa8] ss:$16 sps:$4 sm:$0xff]  }
 0x216   :  { %5038 = vmatprep.subr.bf16.mxu0 %v7731_v22  ;;  %5530 = vmatprep.subr.bf16.mxu1 %v7734_v23  ;;  %v7821_v22 = vld [vmem:[#allocation5 + $0xfc4] ss:$16 sps:$4 sm:$0xff]   ;;  %v7824_v23 = vld [vmem:[#allocation5 + $0xfcc] ss:$16 sps:$4 sm:$0xff]  }
 0x219   :  { %5039 = vmatpush1.bf16.msra.mxu0 %v7729_v24  ;;  %5531 = vmatpush1.bf16.msra.mxu1 %v7732_v25  ;;  %v7819_v24 = vld [vmem:[#allocation5 + $0xfc0] ss:$16 sps:$4 sm:$0xff]   ;;  %v7822_v25 = vld [vmem:[#allocation5 + $0xfc8] ss:$16 sps:$4 sm:$0xff]  }
 0x21a   :  { %5049 = vmatprep.subr.bf16.mxu0 %v7737_v26  ;;  %5541 = vmatprep.subr.bf16.mxu1 %v7740_v28  ;;  %v7827_v26 = vld [vmem:[#allocation5 + $0xfe4] ss:$16 sps:$4 sm:$0xff]   ;;  %v7825_v28 = vld [vmem:[#allocation5 + $0xfe0] ss:$16 sps:$4 sm:$0xff]  }
 0x21c   :  { %5041 = vmatmul.mubr.bf16.vlgmr.msra.gmra.mrb[0].mxu0 %v120_v30  ;;  %5533 = vmatmul.mubr.bf16.vlgmr.msra.gmra.mrb[0].mxu1 %v120_v30  ;;  %v98_v30 = vld [vmem:[#allocation2 + $0x70] sm:$0xff] }
 0x21d   :  { %5050 = vmatpush1.bf16.msra.mxu0 %v7735_v31  ;;  %5542 = vmatpush1.bf16.msra.mxu1 %v7738_v32  ;;  %v7833_v31 = vld [vmem:[#allocation5 + $0x1004] ss:$16 sps:$4 sm:$0xff]   ;;  %v7836_v32 = vld [vmem:[#allocation5 + $0x100c] ss:$16 sps:$4 sm:$0xff]  }
 0x21e   :  { %5051 = vmatprep.subr.bf16.mxu0 %v7743_v33  ;;  %5543 = vmatprep.subr.bf16.mxu1 %v7746_v34  ;;  %v122_v33 = vpack.c.bf16 %v98_v30, %v98_v30  ;;  %v101_v34 = vld [vmem:[#allocation2 + $0x88] sm:$0xff]  ;;  %v7923_v30 = vld [vmem:[#allocation5 + $0x11e4] ss:$16 sps:$4 sm:$0xff]  }
 0x21f   :  { %5081 = vmatprep.mubr.bf16.mxu0 %v123_v35  ;;  %5573 = vmatprep.mubr.bf16.mxu1 %v123_v35  ;;  %v7831_v35 = vld [vmem:[#allocation5 + $0x1000] ss:$16 sps:$4 sm:$0xff]  }
 0x221   :  { %5052 = vmatpush1.bf16.msra.mxu0 %v7741_v36  ;;  %5544 = vmatpush1.bf16.msra.mxu1 %v7744_v37  ;;  %v7834_v36 = vld [vmem:[#allocation5 + $0x1008] ss:$16 sps:$4 sm:$0xff]   ;;  %v7839_v37 = vld [vmem:[#allocation5 + $0x1024] ss:$16 sps:$4 sm:$0xff]  }
 0x222   :  { %5053 = vmatprep.subr.bf16.mxu0 %v7749_v38  ;;  %5545 = vmatprep.subr.bf16.mxu1 %v7752_v39  ;;  %v7842_v38 = vld [vmem:[#allocation5 + $0x102c] ss:$16 sps:$4 sm:$0xff]   ;;  %v125_v39 = vpack.c.bf16 %v101_v34, %v101_v34  ;;  %v100_v34 = vld [vmem:[#allocation2 + $0x80] sm:$0xff] }
 0x225   :  { %5054 = vmatpush1.bf16.msra.mxu0 %v7747_v40  ;;  %5546 = vmatpush1.bf16.msra.mxu1 %v7750_v41  ;;  %v7837_v40 = vld [vmem:[#allocation5 + $0x1020] ss:$16 sps:$4 sm:$0xff]   ;;  %v7840_v41 = vld [vmem:[#allocation5 + $0x1028] ss:$16 sps:$4 sm:$0xff]  }
 0x226   :  { %5055 = vmatprep.subr.bf16.mxu0 %v7755_v42  ;;  %5547 = vmatprep.subr.bf16.mxu1 %v7758_v43  ;;  %v7845_v42 = vld [vmem:[#allocation5 + $0x1044] ss:$16 sps:$4 sm:$0xff]   ;;  %v7848_v43 = vld [vmem:[#allocation5 + $0x104c] ss:$16 sps:$4 sm:$0xff]  }
 0x229   :  { %5056 = vmatpush1.bf16.msra.mxu0 %v7753_v44  ;;  %5548 = vmatpush1.bf16.msra.mxu1 %v7756_v45  ;;  %v7843_v44 = vld [vmem:[#allocation5 + $0x1040] ss:$16 sps:$4 sm:$0xff]   ;;  %v7846_v45 = vld [vmem:[#allocation5 + $0x1048] ss:$16 sps:$4 sm:$0xff]  }
 0x22a   :  { %5057 = vmatprep.subr.bf16.mxu0 %v7761_v46  ;;  %5549 = vmatprep.subr.bf16.mxu1 %v7764_v47  ;;  %v7851_v46 = vld [vmem:[#allocation5 + $0x1064] ss:$16 sps:$4 sm:$0xff]   ;;  %v7854_v47 = vld [vmem:[#allocation5 + $0x106c] ss:$16 sps:$4 sm:$0xff]  }
 0x22d   :  { %5058 = vmatpush1.bf16.msra.mxu0 %v7759_v48  ;;  %5550 = vmatpush1.bf16.msra.mxu1 %v7762_v49  ;;  %v7849_v48 = vld [vmem:[#allocation5 + $0x1060] ss:$16 sps:$4 sm:$0xff]   ;;  %v7852_v49 = vld [vmem:[#allocation5 + $0x1068] ss:$16 sps:$4 sm:$0xff]  }
 0x22e   :  { %5059 = vmatprep.subr.bf16.mxu0 %v7767_v50  ;;  %5551 = vmatprep.subr.bf16.mxu1 %v7770_v51  ;;  %v7857_v50 = vld [vmem:[#allocation5 + $0x1084] ss:$16 sps:$4 sm:$0xff]   ;;  %v7860_v51 = vld [vmem:[#allocation5 + $0x108c] ss:$16 sps:$4 sm:$0xff]  }
 0x231   :  { %5060 = vmatpush1.bf16.msra.mxu0 %v7765_v52  ;;  %5552 = vmatpush1.bf16.msra.mxu1 %v7768_v53  ;;  %v7855_v52 = vld [vmem:[#allocation5 + $0x1080] ss:$16 sps:$4 sm:$0xff]   ;;  %v7858_v53 = vld [vmem:[#allocation5 + $0x1088] ss:$16 sps:$4 sm:$0xff]  }
 0x232   :  { %5061 = vmatprep.subr.bf16.mxu0 %v7773_v54  ;;  %5553 = vmatprep.subr.bf16.mxu1 %v7776_v55  ;;  %v7863_v54 = vld [vmem:[#allocation5 + $0x10a4] ss:$16 sps:$4 sm:$0xff]   ;;  %v7866_v55 = vld [vmem:[#allocation5 + $0x10ac] ss:$16 sps:$4 sm:$0xff]  }
 0x235   :  { %5062 = vmatpush1.bf16.msra.mxu0 %v7771_v56  ;;  %5554 = vmatpush1.bf16.msra.mxu1 %v7774_v57  ;;  %v7861_v56 = vld [vmem:[#allocation5 + $0x10a0] ss:$16 sps:$4 sm:$0xff]   ;;  %v7864_v57 = vld [vmem:[#allocation5 + $0x10a8] ss:$16 sps:$4 sm:$0xff]  }
 0x236   :  { %5063 = vmatprep.subr.bf16.mxu0 %v7779_v58  ;;  %5555 = vmatprep.subr.bf16.mxu1 %v7782_v59  ;;  %v7869_v58 = vld [vmem:[#allocation5 + $0x10c4] ss:$16 sps:$4 sm:$0xff]   ;;  %v7872_v59 = vld [vmem:[#allocation5 + $0x10cc] ss:$16 sps:$4 sm:$0xff]  }
 0x239   :  { %5064 = vmatpush1.bf16.msra.mxu0 %v7777_v60  ;;  %5556 = vmatpush1.bf16.msra.mxu1 %v7780_v61  ;;  %v7867_v60 = vld [vmem:[#allocation5 + $0x10c0] ss:$16 sps:$4 sm:$0xff]   ;;  %v7870_v61 = vld [vmem:[#allocation5 + $0x10c8] ss:$16 sps:$4 sm:$0xff]  }
 0x23a   :  { %5065 = vmatprep.subr.bf16.mxu0 %v7785_v62  ;;  %5557 = vmatprep.subr.bf16.mxu1 %v7788_v63  ;;  %v7875_v62 = vld [vmem:[#allocation5 + $0x10e4] ss:$16 sps:$4 sm:$0xff]   ;;  %v7878_v63 = vld [vmem:[#allocation5 + $0x10ec] ss:$16 sps:$4 sm:$0xff]  }
 0x23d   :  { %5066 = vmatpush1.bf16.msra.mxu0 %v7783_v0  ;;  %5558 = vmatpush1.bf16.msra.mxu1 %v7786_v1  ;;  %v7873_v0 = vld [vmem:[#allocation5 + $0x10e0] ss:$16 sps:$4 sm:$0xff]   ;;  %v7876_v1 = vld [vmem:[#allocation5 + $0x10e8] ss:$16 sps:$4 sm:$0xff]  }
 0x23e   :  { %5067 = vmatprep.subr.bf16.mxu0 %v7791_v2  ;;  %5559 = vmatprep.subr.bf16.mxu1 %v7794_v3  ;;  %v7881_v2 = vld [vmem:[#allocation5 + $0x1104] ss:$16 sps:$4 sm:$0xff]   ;;  %v7884_v3 = vld [vmem:[#allocation5 + $0x110c] ss:$16 sps:$4 sm:$0xff]  }
 0x241   :  { %5068 = vmatpush1.bf16.msra.mxu0 %v7789_v4  ;;  %5560 = vmatpush1.bf16.msra.mxu1 %v7792_v5  ;;  %v7879_v4 = vld [vmem:[#allocation5 + $0x1100] ss:$16 sps:$4 sm:$0xff]   ;;  %v7882_v5 = vld [vmem:[#allocation5 + $0x1108] ss:$16 sps:$4 sm:$0xff]  }
 0x242   :  { %5069 = vmatprep.subr.bf16.mxu0 %v7797_v6  ;;  %5561 = vmatprep.subr.bf16.mxu1 %v7800_v7  ;;  %v7887_v6 = vld [vmem:[#allocation5 + $0x1124] ss:$16 sps:$4 sm:$0xff]   ;;  %v7890_v7 = vld [vmem:[#allocation5 + $0x112c] ss:$16 sps:$4 sm:$0xff]  }
 0x245   :  { %5070 = vmatpush1.bf16.msra.mxu0 %v7795_v8  ;;  %5562 = vmatpush1.bf16.msra.mxu1 %v7798_v9  ;;  %v7885_v8 = vld [vmem:[#allocation5 + $0x1120] ss:$16 sps:$4 sm:$0xff]   ;;  %v7888_v9 = vld [vmem:[#allocation5 + $0x1128] ss:$16 sps:$4 sm:$0xff]  }
 0x246   :  { %5071 = vmatprep.subr.bf16.mxu0 %v7803_v10  ;;  %5563 = vmatprep.subr.bf16.mxu1 %v7806_v11  ;;  %v7893_v10 = vld [vmem:[#allocation5 + $0x1144] ss:$16 sps:$4 sm:$0xff]   ;;  %v7896_v11 = vld [vmem:[#allocation5 + $0x114c] ss:$16 sps:$4 sm:$0xff]  }
 0x249   :  { %5072 = vmatpush1.bf16.msra.mxu0 %v7801_v12  ;;  %5564 = vmatpush1.bf16.msra.mxu1 %v7804_v13  ;;  %v7891_v12 = vld [vmem:[#allocation5 + $0x1140] ss:$16 sps:$4 sm:$0xff]   ;;  %v7894_v13 = vld [vmem:[#allocation5 + $0x1148] ss:$16 sps:$4 sm:$0xff]  }
 0x24a   :  { %5073 = vmatprep.subr.bf16.mxu0 %v7809_v14  ;;  %5565 = vmatprep.subr.bf16.mxu1 %v7812_v15  ;;  %v7899_v14 = vld [vmem:[#allocation5 + $0x1164] ss:$16 sps:$4 sm:$0xff]   ;;  %v7902_v15 = vld [vmem:[#allocation5 + $0x116c] ss:$16 sps:$4 sm:$0xff]  }
 0x24d   :  { %5074 = vmatpush1.bf16.msra.mxu0 %v7807_v16  ;;  %5566 = vmatpush1.bf16.msra.mxu1 %v7810_v17  ;;  %v7897_v16 = vld [vmem:[#allocation5 + $0x1160] ss:$16 sps:$4 sm:$0xff]   ;;  %v7900_v17 = vld [vmem:[#allocation5 + $0x1168] ss:$16 sps:$4 sm:$0xff]  }
 0x24e   :  { %5075 = vmatprep.subr.bf16.mxu0 %v7815_v18  ;;  %5567 = vmatprep.subr.bf16.mxu1 %v7818_v19  ;;  %v7905_v18 = vld [vmem:[#allocation5 + $0x1184] ss:$16 sps:$4 sm:$0xff]   ;;  %v7908_v19 = vld [vmem:[#allocation5 + $0x118c] ss:$16 sps:$4 sm:$0xff]  }
 0x251   :  { %5076 = vmatpush1.bf16.msra.mxu0 %v7813_v20  ;;  %5568 = vmatpush1.bf16.msra.mxu1 %v7816_v21  ;;  %v7903_v20 = vld [vmem:[#allocation5 + $0x1180] ss:$16 sps:$4 sm:$0xff]   ;;  %v7906_v21 = vld [vmem:[#allocation5 + $0x1188] ss:$16 sps:$4 sm:$0xff]  }
 0x252   :  { %5077 = vmatprep.subr.bf16.mxu0 %v7821_v22  ;;  %5569 = vmatprep.subr.bf16.mxu1 %v7824_v23  ;;  %v7911_v22 = vld [vmem:[#allocation5 + $0x11a4] ss:$16 sps:$4 sm:$0xff]   ;;  %v7914_v23 = vld [vmem:[#allocation5 + $0x11ac] ss:$16 sps:$4 sm:$0xff]  }
 0x255   :  { %5078 = vmatpush1.bf16.msra.mxu0 %v7819_v24  ;;  %5570 = vmatpush1.bf16.msra.mxu1 %v7822_v25  ;;  %v7909_v24 = vld [vmem:[#allocation5 + $0x11a0] ss:$16 sps:$4 sm:$0xff]   ;;  %v7912_v25 = vld [vmem:[#allocation5 + $0x11a8] ss:$16 sps:$4 sm:$0xff]  }
 0x256   :  { %5079 = vmatprep.subr.bf16.mxu0 %v7827_v26  ;;  %5571 = vmatprep.subr.bf16.mxu1 %v7830_v27  ;;  %v7917_v26 = vld [vmem:[#allocation5 + $0x11c4] ss:$16 sps:$4 sm:$0xff]   ;;  %v7920_v27 = vld [vmem:[#allocation5 + $0x11cc] ss:$16 sps:$4 sm:$0xff]  }
 0x259   :  { %5080 = vmatpush1.bf16.msra.mxu0 %v7825_v28  ;;  %5572 = vmatpush1.bf16.msra.mxu1 %v7828_v29  ;;  %v7915_v28 = vld [vmem:[#allocation5 + $0x11c0] ss:$16 sps:$4 sm:$0xff]   ;;  %v7918_v29 = vld [vmem:[#allocation5 + $0x11c8] ss:$16 sps:$4 sm:$0xff]  }
 0x25a   :  { %5090 = vmatprep.subr.bf16.mxu0 %v7833_v31  ;;  %5582 = vmatprep.subr.bf16.mxu1 %v7836_v32  ;;  %v7926_v31 = vld [vmem:[#allocation5 + $0x11ec] ss:$16 sps:$4 sm:$0xff]   ;;  %v7921_v32 = vld [vmem:[#allocation5 + $0x11e0] ss:$16 sps:$4 sm:$0xff]  }
 0x25c   :  { %5082 = vmatmul.mubr.bf16.vlgmr.msra.gmra.mrb[0].mxu0 %v122_v33  ;;  %5574 = vmatmul.mubr.bf16.vlgmr.msra.gmra.mrb[0].mxu1 %v122_v33  ;;  %v7924_v33 = vld [vmem:[#allocation5 + $0x11e8] ss:$16 sps:$4 sm:$0xff]  }
 0x25d   :  { %5091 = vmatpush1.bf16.msra.mxu0 %v7831_v35  ;;  %5583 = vmatpush1.bf16.msra.mxu1 %v7834_v36  ;;  %v7929_v35 = vld [vmem:[#allocation5 + $0x1204] ss:$16 sps:$4 sm:$0xff]   ;;  %v7932_v36 = vld [vmem:[#allocation5 + $0x120c] ss:$16 sps:$4 sm:$0xff]  }
 0x25e   :  { %5092 = vmatprep.subr.bf16.mxu0 %v7839_v37  ;;  %5584 = vmatprep.subr.bf16.mxu1 %v7842_v38  ;;  %v124_v37 = vpack.c.bf16 %v100_v34, %v100_v34  ;;  %v103_v38 = vld [vmem:[#allocation2 + $0x98] sm:$0xff]  ;;  %v8019_v34 = vld [vmem:[#allocation5 + $0x13e4] ss:$16 sps:$4 sm:$0xff]  }
 0x25f   :  { %5122 = vmatprep.mubr.bf16.mxu0 %v125_v39  ;;  %5614 = vmatprep.mubr.bf16.mxu1 %v125_v39  ;;  %v7927_v39 = vld [vmem:[#allocation5 + $0x1200] ss:$16 sps:$4 sm:$0xff]  }
 0x261   :  { %5093 = vmatpush1.bf16.msra.mxu0 %v7837_v40  ;;  %5585 = vmatpush1.bf16.msra.mxu1 %v7840_v41  ;;  %v7930_v40 = vld [vmem:[#allocation5 + $0x1208] ss:$16 sps:$4 sm:$0xff]   ;;  %v7935_v41 = vld [vmem:[#allocation5 + $0x1224] ss:$16 sps:$4 sm:$0xff]  }
 0x262   :  { %5094 = vmatprep.subr.bf16.mxu0 %v7845_v42  ;;  %5586 = vmatprep.subr.bf16.mxu1 %v7848_v43  ;;  %v7938_v42 = vld [vmem:[#allocation5 + $0x122c] ss:$16 sps:$4 sm:$0xff]   ;;  %v127_v43 = vpack.c.bf16 %v103_v38, %v103_v38  ;;  %v102_v38 = vld [vmem:[#allocation2 + $0x90] sm:$0xff] }
 0x265   :  { %5095 = vmatpush1.bf16.msra.mxu0 %v7843_v44  ;;  %5587 = vmatpush1.bf16.msra.mxu1 %v7846_v45  ;;  %v7933_v44 = vld [vmem:[#allocation5 + $0x1220] ss:$16 sps:$4 sm:$0xff]   ;;  %v7936_v45 = vld [vmem:[#allocation5 + $0x1228] ss:$16 sps:$4 sm:$0xff]  }
 0x266   :  { %5096 = vmatprep.subr.bf16.mxu0 %v7851_v46  ;;  %5588 = vmatprep.subr.bf16.mxu1 %v7854_v47  ;;  %v7941_v46 = vld [vmem:[#allocation5 + $0x1244] ss:$16 sps:$4 sm:$0xff]   ;;  %v7944_v47 = vld [vmem:[#allocation5 + $0x124c] ss:$16 sps:$4 sm:$0xff]  }
 0x269   :  { %5097 = vmatpush1.bf16.msra.mxu0 %v7849_v48  ;;  %5589 = vmatpush1.bf16.msra.mxu1 %v7852_v49  ;;  %v7939_v48 = vld [vmem:[#allocation5 + $0x1240] ss:$16 sps:$4 sm:$0xff]   ;;  %v7942_v49 = vld [vmem:[#allocation5 + $0x1248] ss:$16 sps:$4 sm:$0xff]  }
 0x26a   :  { %5098 = vmatprep.subr.bf16.mxu0 %v7857_v50  ;;  %5590 = vmatprep.subr.bf16.mxu1 %v7860_v51  ;;  %v7947_v50 = vld [vmem:[#allocation5 + $0x1264] ss:$16 sps:$4 sm:$0xff]   ;;  %v7950_v51 = vld [vmem:[#allocation5 + $0x126c] ss:$16 sps:$4 sm:$0xff]  }
 0x26d   :  { %5099 = vmatpush1.bf16.msra.mxu0 %v7855_v52  ;;  %5591 = vmatpush1.bf16.msra.mxu1 %v7858_v53  ;;  %v7945_v52 = vld [vmem:[#allocation5 + $0x1260] ss:$16 sps:$4 sm:$0xff]   ;;  %v7948_v53 = vld [vmem:[#allocation5 + $0x1268] ss:$16 sps:$4 sm:$0xff]  }
 0x26e   :  { %5100 = vmatprep.subr.bf16.mxu0 %v7863_v54  ;;  %5592 = vmatprep.subr.bf16.mxu1 %v7866_v55  ;;  %v7953_v54 = vld [vmem:[#allocation5 + $0x1284] ss:$16 sps:$4 sm:$0xff]   ;;  %v7956_v55 = vld [vmem:[#allocation5 + $0x128c] ss:$16 sps:$4 sm:$0xff]  }
 0x271   :  { %5101 = vmatpush1.bf16.msra.mxu0 %v7861_v56  ;;  %5593 = vmatpush1.bf16.msra.mxu1 %v7864_v57  ;;  %v7951_v56 = vld [vmem:[#allocation5 + $0x1280] ss:$16 sps:$4 sm:$0xff]   ;;  %v7954_v57 = vld [vmem:[#allocation5 + $0x1288] ss:$16 sps:$4 sm:$0xff]  }
 0x272   :  { %5102 = vmatprep.subr.bf16.mxu0 %v7869_v58  ;;  %5594 = vmatprep.subr.bf16.mxu1 %v7872_v59  ;;  %v7959_v58 = vld [vmem:[#allocation5 + $0x12a4] ss:$16 sps:$4 sm:$0xff]   ;;  %v7962_v59 = vld [vmem:[#allocation5 + $0x12ac] ss:$16 sps:$4 sm:$0xff]  }
 0x275   :  { %5103 = vmatpush1.bf16.msra.mxu0 %v7867_v60  ;;  %5595 = vmatpush1.bf16.msra.mxu1 %v7870_v61  ;;  %v7957_v60 = vld [vmem:[#allocation5 + $0x12a0] ss:$16 sps:$4 sm:$0xff]   ;;  %v7960_v61 = vld [vmem:[#allocation5 + $0x12a8] ss:$16 sps:$4 sm:$0xff]  }
 0x276   :  { %5104 = vmatprep.subr.bf16.mxu0 %v7875_v62  ;;  %5596 = vmatprep.subr.bf16.mxu1 %v7878_v63  ;;  %v7965_v62 = vld [vmem:[#allocation5 + $0x12c4] ss:$16 sps:$4 sm:$0xff]   ;;  %v7968_v63 = vld [vmem:[#allocation5 + $0x12cc] ss:$16 sps:$4 sm:$0xff]  }
 0x279   :  { %5105 = vmatpush1.bf16.msra.mxu0 %v7873_v0  ;;  %5597 = vmatpush1.bf16.msra.mxu1 %v7876_v1  ;;  %v7963_v0 = vld [vmem:[#allocation5 + $0x12c0] ss:$16 sps:$4 sm:$0xff]   ;;  %v7966_v1 = vld [vmem:[#allocation5 + $0x12c8] ss:$16 sps:$4 sm:$0xff]  }
 0x27a   :  { %5106 = vmatprep.subr.bf16.mxu0 %v7881_v2  ;;  %5598 = vmatprep.subr.bf16.mxu1 %v7884_v3  ;;  %v7971_v2 = vld [vmem:[#allocation5 + $0x12e4] ss:$16 sps:$4 sm:$0xff]   ;;  %v7974_v3 = vld [vmem:[#allocation5 + $0x12ec] ss:$16 sps:$4 sm:$0xff]  }
 0x27d   :  { %5107 = vmatpush1.bf16.msra.mxu0 %v7879_v4  ;;  %5599 = vmatpush1.bf16.msra.mxu1 %v7882_v5  ;;  %v7969_v4 = vld [vmem:[#allocation5 + $0x12e0] ss:$16 sps:$4 sm:$0xff]   ;;  %v7972_v5 = vld [vmem:[#allocation5 + $0x12e8] ss:$16 sps:$4 sm:$0xff]  }
 0x27e   :  { %5108 = vmatprep.subr.bf16.mxu0 %v7887_v6  ;;  %5600 = vmatprep.subr.bf16.mxu1 %v7890_v7  ;;  %v7977_v6 = vld [vmem:[#allocation5 + $0x1304] ss:$16 sps:$4 sm:$0xff]   ;;  %v7980_v7 = vld [vmem:[#allocation5 + $0x130c] ss:$16 sps:$4 sm:$0xff]  }
 0x281   :  { %5109 = vmatpush1.bf16.msra.mxu0 %v7885_v8  ;;  %5601 = vmatpush1.bf16.msra.mxu1 %v7888_v9  ;;  %v7975_v8 = vld [vmem:[#allocation5 + $0x1300] ss:$16 sps:$4 sm:$0xff]   ;;  %v7978_v9 = vld [vmem:[#allocation5 + $0x1308] ss:$16 sps:$4 sm:$0xff]  }
 0x282   :  { %5110 = vmatprep.subr.bf16.mxu0 %v7893_v10  ;;  %5602 = vmatprep.subr.bf16.mxu1 %v7896_v11  ;;  %v7983_v10 = vld [vmem:[#allocation5 + $0x1324] ss:$16 sps:$4 sm:$0xff]   ;;  %v7986_v11 = vld [vmem:[#allocation5 + $0x132c] ss:$16 sps:$4 sm:$0xff]  }
 0x285   :  { %5111 = vmatpush1.bf16.msra.mxu0 %v7891_v12  ;;  %5603 = vmatpush1.bf16.msra.mxu1 %v7894_v13  ;;  %v7981_v12 = vld [vmem:[#allocation5 + $0x1320] ss:$16 sps:$4 sm:$0xff]   ;;  %v7984_v13 = vld [vmem:[#allocation5 + $0x1328] ss:$16 sps:$4 sm:$0xff]  }
 0x286   :  { %5112 = vmatprep.subr.bf16.mxu0 %v7899_v14  ;;  %5604 = vmatprep.subr.bf16.mxu1 %v7902_v15  ;;  %v7989_v14 = vld [vmem:[#allocation5 + $0x1344] ss:$16 sps:$4 sm:$0xff]   ;;  %v7992_v15 = vld [vmem:[#allocation5 + $0x134c] ss:$16 sps:$4 sm:$0xff]  }
 0x289   :  { %5113 = vmatpush1.bf16.msra.mxu0 %v7897_v16  ;;  %5605 = vmatpush1.bf16.msra.mxu1 %v7900_v17  ;;  %v7987_v16 = vld [vmem:[#allocation5 + $0x1340] ss:$16 sps:$4 sm:$0xff]   ;;  %v7990_v17 = vld [vmem:[#allocation5 + $0x1348] ss:$16 sps:$4 sm:$0xff]  }
 0x28a   :  { %5114 = vmatprep.subr.bf16.mxu0 %v7905_v18  ;;  %5606 = vmatprep.subr.bf16.mxu1 %v7908_v19  ;;  %v7995_v18 = vld [vmem:[#allocation5 + $0x1364] ss:$16 sps:$4 sm:$0xff]   ;;  %v7998_v19 = vld [vmem:[#allocation5 + $0x136c] ss:$16 sps:$4 sm:$0xff]  }
 0x28d   :  { %5115 = vmatpush1.bf16.msra.mxu0 %v7903_v20  ;;  %5607 = vmatpush1.bf16.msra.mxu1 %v7906_v21  ;;  %v7993_v20 = vld [vmem:[#allocation5 + $0x1360] ss:$16 sps:$4 sm:$0xff]   ;;  %v7996_v21 = vld [vmem:[#allocation5 + $0x1368] ss:$16 sps:$4 sm:$0xff]  }
 0x28e   :  { %5116 = vmatprep.subr.bf16.mxu0 %v7911_v22  ;;  %5608 = vmatprep.subr.bf16.mxu1 %v7914_v23  ;;  %v8001_v22 = vld [vmem:[#allocation5 + $0x1384] ss:$16 sps:$4 sm:$0xff]   ;;  %v8004_v23 = vld [vmem:[#allocation5 + $0x138c] ss:$16 sps:$4 sm:$0xff]  }
 0x291   :  { %5117 = vmatpush1.bf16.msra.mxu0 %v7909_v24  ;;  %5609 = vmatpush1.bf16.msra.mxu1 %v7912_v25  ;;  %v7999_v24 = vld [vmem:[#allocation5 + $0x1380] ss:$16 sps:$4 sm:$0xff]   ;;  %v8002_v25 = vld [vmem:[#allocation5 + $0x1388] ss:$16 sps:$4 sm:$0xff]  }
 0x292   :  { %5118 = vmatprep.subr.bf16.mxu0 %v7917_v26  ;;  %5610 = vmatprep.subr.bf16.mxu1 %v7920_v27  ;;  %v8007_v26 = vld [vmem:[#allocation5 + $0x13a4] ss:$16 sps:$4 sm:$0xff]   ;;  %v8010_v27 = vld [vmem:[#allocation5 + $0x13ac] ss:$16 sps:$4 sm:$0xff]  }
 0x295   :  { %5119 = vmatpush1.bf16.msra.mxu0 %v7915_v28  ;;  %5611 = vmatpush1.bf16.msra.mxu1 %v7918_v29  ;;  %v8005_v28 = vld [vmem:[#allocation5 + $0x13a0] ss:$16 sps:$4 sm:$0xff]   ;;  %v8008_v29 = vld [vmem:[#allocation5 + $0x13a8] ss:$16 sps:$4 sm:$0xff]  }
 0x296   :  { %5120 = vmatprep.subr.bf16.mxu0 %v7923_v30  ;;  %5612 = vmatprep.subr.bf16.mxu1 %v7926_v31  ;;  %v8013_v30 = vld [vmem:[#allocation5 + $0x13c4] ss:$16 sps:$4 sm:$0xff]   ;;  %v8016_v31 = vld [vmem:[#allocation5 + $0x13cc] ss:$16 sps:$4 sm:$0xff]  }
 0x299   :  { %5121 = vmatpush1.bf16.msra.mxu0 %v7921_v32  ;;  %5613 = vmatpush1.bf16.msra.mxu1 %v7924_v33  ;;  %v8011_v32 = vld [vmem:[#allocation5 + $0x13c0] ss:$16 sps:$4 sm:$0xff]   ;;  %v8014_v33 = vld [vmem:[#allocation5 + $0x13c8] ss:$16 sps:$4 sm:$0xff]  }
 0x29a   :  { %5131 = vmatprep.subr.bf16.mxu0 %v7929_v35  ;;  %5623 = vmatprep.subr.bf16.mxu1 %v7932_v36  ;;  %v8022_v35 = vld [vmem:[#allocation5 + $0x13ec] ss:$16 sps:$4 sm:$0xff]   ;;  %v8017_v36 = vld [vmem:[#allocation5 + $0x13e0] ss:$16 sps:$4 sm:$0xff]  }
 0x29c   :  { %5123 = vmatmul.mubr.bf16.vlgmr.msra.gmra.mrb[0].mxu0 %v124_v37  ;;  %5615 = vmatmul.mubr.bf16.vlgmr.msra.gmra.mrb[0].mxu1 %v124_v37  ;;  %v8020_v37 = vld [vmem:[#allocation5 + $0x13e8] ss:$16 sps:$4 sm:$0xff]  }
 0x29d   :  { %5132 = vmatpush1.bf16.msra.mxu0 %v7927_v39  ;;  %5624 = vmatpush1.bf16.msra.mxu1 %v7930_v40  ;;  %v8025_v39 = vld [vmem:[#allocation5 + $0x1404] ss:$16 sps:$4 sm:$0xff]   ;;  %v8028_v40 = vld [vmem:[#allocation5 + $0x140c] ss:$16 sps:$4 sm:$0xff]  }
 0x29e   :  { %5133 = vmatprep.subr.bf16.mxu0 %v7935_v41  ;;  %5625 = vmatprep.subr.bf16.mxu1 %v7938_v42  ;;  %v126_v41 = vpack.c.bf16 %v102_v38, %v102_v38  ;;  %v105_v42 = vld [vmem:[#allocation2 + $0xa8] sm:$0xff]  ;;  %v8115_v38 = vld [vmem:[#allocation5 + $0x15e4] ss:$16 sps:$4 sm:$0xff]  }
 0x29f   :  { %5163 = vmatprep.mubr.bf16.mxu0 %v127_v43  ;;  %5655 = vmatprep.mubr.bf16.mxu1 %v127_v43  ;;  %v8023_v43 = vld [vmem:[#allocation5 + $0x1400] ss:$16 sps:$4 sm:$0xff]  }
 0x2a1   :  { %5134 = vmatpush1.bf16.msra.mxu0 %v7933_v44  ;;  %5626 = vmatpush1.bf16.msra.mxu1 %v7936_v45  ;;  %v8026_v44 = vld [vmem:[#allocation5 + $0x1408] ss:$16 sps:$4 sm:$0xff]   ;;  %v8031_v45 = vld [vmem:[#allocation5 + $0x1424] ss:$16 sps:$4 sm:$0xff]  }
 0x2a2   :  { %5135 = vmatprep.subr.bf16.mxu0 %v7941_v46  ;;  %5627 = vmatprep.subr.bf16.mxu1 %v7944_v47  ;;  %v8034_v46 = vld [vmem:[#allocation5 + $0x142c] ss:$16 sps:$4 sm:$0xff]   ;;  %v129_v47 = vpack.c.bf16 %v105_v42, %v105_v42  ;;  %v104_v42 = vld [vmem:[#allocation2 + $0xa0] sm:$0xff] }
 0x2a5   :  { %5136 = vmatpush1.bf16.msra.mxu0 %v7939_v48  ;;  %5628 = vmatpush1.bf16.msra.mxu1 %v7942_v49  ;;  %v8029_v48 = vld [vmem:[#allocation5 + $0x1420] ss:$16 sps:$4 sm:$0xff]   ;;  %v8032_v49 = vld [vmem:[#allocation5 + $0x1428] ss:$16 sps:$4 sm:$0xff]  }
 0x2a6   :  { %5137 = vmatprep.subr.bf16.mxu0 %v7947_v50  ;;  %5629 = vmatprep.subr.bf16.mxu1 %v7950_v51  ;;  %v8037_v50 = vld [vmem:[#allocation5 + $0x1444] ss:$16 sps:$4 sm:$0xff]   ;;  %v8040_v51 = vld [vmem:[#allocation5 + $0x144c] ss:$16 sps:$4 sm:$0xff]  }
 0x2a9   :  { %5138 = vmatpush1.bf16.msra.mxu0 %v7945_v52  ;;  %5630 = vmatpush1.bf16.msra.mxu1 %v7948_v53  ;;  %v8035_v52 = vld [vmem:[#allocation5 + $0x1440] ss:$16 sps:$4 sm:$0xff]   ;;  %v8038_v53 = vld [vmem:[#allocation5 + $0x1448] ss:$16 sps:$4 sm:$0xff]  }
 0x2aa   :  { %5139 = vmatprep.subr.bf16.mxu0 %v7953_v54  ;;  %5631 = vmatprep.subr.bf16.mxu1 %v7956_v55  ;;  %v8043_v54 = vld [vmem:[#allocation5 + $0x1464] ss:$16 sps:$4 sm:$0xff]   ;;  %v8046_v55 = vld [vmem:[#allocation5 + $0x146c] ss:$16 sps:$4 sm:$0xff]  }
 0x2ad   :  { %5140 = vmatpush1.bf16.msra.mxu0 %v7951_v56  ;;  %5632 = vmatpush1.bf16.msra.mxu1 %v7954_v57  ;;  %v8041_v56 = vld [vmem:[#allocation5 + $0x1460] ss:$16 sps:$4 sm:$0xff]   ;;  %v8044_v57 = vld [vmem:[#allocation5 + $0x1468] ss:$16 sps:$4 sm:$0xff]  }
 0x2ae   :  { %5141 = vmatprep.subr.bf16.mxu0 %v7959_v58  ;;  %5633 = vmatprep.subr.bf16.mxu1 %v7962_v59  ;;  %v8049_v58 = vld [vmem:[#allocation5 + $0x1484] ss:$16 sps:$4 sm:$0xff]   ;;  %v8052_v59 = vld [vmem:[#allocation5 + $0x148c] ss:$16 sps:$4 sm:$0xff]  }
 0x2b1   :  { %5142 = vmatpush1.bf16.msra.mxu0 %v7957_v60  ;;  %5634 = vmatpush1.bf16.msra.mxu1 %v7960_v61  ;;  %v8047_v60 = vld [vmem:[#allocation5 + $0x1480] ss:$16 sps:$4 sm:$0xff]   ;;  %v8050_v61 = vld [vmem:[#allocation5 + $0x1488] ss:$16 sps:$4 sm:$0xff]  }
 0x2b2   :  { %5143 = vmatprep.subr.bf16.mxu0 %v7965_v62  ;;  %5635 = vmatprep.subr.bf16.mxu1 %v7968_v63  ;;  %v8055_v62 = vld [vmem:[#allocation5 + $0x14a4] ss:$16 sps:$4 sm:$0xff]   ;;  %v8058_v63 = vld [vmem:[#allocation5 + $0x14ac] ss:$16 sps:$4 sm:$0xff]  }
 0x2b5   :  { %5144 = vmatpush1.bf16.msra.mxu0 %v7963_v0  ;;  %5636 = vmatpush1.bf16.msra.mxu1 %v7966_v1  ;;  %v8053_v0 = vld [vmem:[#allocation5 + $0x14a0] ss:$16 sps:$4 sm:$0xff]   ;;  %v8056_v1 = vld [vmem:[#allocation5 + $0x14a8] ss:$16 sps:$4 sm:$0xff]  }
 0x2b6   :  { %5145 = vmatprep.subr.bf16.mxu0 %v7971_v2  ;;  %5637 = vmatprep.subr.bf16.mxu1 %v7974_v3  ;;  %v8061_v2 = vld [vmem:[#allocation5 + $0x14c4] ss:$16 sps:$4 sm:$0xff]   ;;  %v8064_v3 = vld [vmem:[#allocation5 + $0x14cc] ss:$16 sps:$4 sm:$0xff]  }
 0x2b9   :  { %5146 = vmatpush1.bf16.msra.mxu0 %v7969_v4  ;;  %5638 = vmatpush1.bf16.msra.mxu1 %v7972_v5  ;;  %v8059_v4 = vld [vmem:[#allocation5 + $0x14c0] ss:$16 sps:$4 sm:$0xff]   ;;  %v8062_v5 = vld [vmem:[#allocation5 + $0x14c8] ss:$16 sps:$4 sm:$0xff]  }
 0x2ba   :  { %5147 = vmatprep.subr.bf16.mxu0 %v7977_v6  ;;  %5639 = vmatprep.subr.bf16.mxu1 %v7980_v7  ;;  %v8067_v6 = vld [vmem:[#allocation5 + $0x14e4] ss:$16 sps:$4 sm:$0xff]   ;;  %v8070_v7 = vld [vmem:[#allocation5 + $0x14ec] ss:$16 sps:$4 sm:$0xff]  }
 0x2bd   :  { %5148 = vmatpush1.bf16.msra.mxu0 %v7975_v8  ;;  %5640 = vmatpush1.bf16.msra.mxu1 %v7978_v9  ;;  %v8065_v8 = vld [vmem:[#allocation5 + $0x14e0] ss:$16 sps:$4 sm:$0xff]   ;;  %v8068_v9 = vld [vmem:[#allocation5 + $0x14e8] ss:$16 sps:$4 sm:$0xff]  }
 0x2be   :  { %5149 = vmatprep.subr.bf16.mxu0 %v7983_v10  ;;  %5641 = vmatprep.subr.bf16.mxu1 %v7986_v11  ;;  %v8073_v10 = vld [vmem:[#allocation5 + $0x1504] ss:$16 sps:$4 sm:$0xff]   ;;  %v8076_v11 = vld [vmem:[#allocation5 + $0x150c] ss:$16 sps:$4 sm:$0xff]  }
 0x2c1   :  { %5150 = vmatpush1.bf16.msra.mxu0 %v7981_v12  ;;  %5642 = vmatpush1.bf16.msra.mxu1 %v7984_v13  ;;  %v8071_v12 = vld [vmem:[#allocation5 + $0x1500] ss:$16 sps:$4 sm:$0xff]   ;;  %v8074_v13 = vld [vmem:[#allocation5 + $0x1508] ss:$16 sps:$4 sm:$0xff]  }
 0x2c2   :  { %5151 = vmatprep.subr.bf16.mxu0 %v7989_v14  ;;  %5643 = vmatprep.subr.bf16.mxu1 %v7992_v15  ;;  %v8079_v14 = vld [vmem:[#allocation5 + $0x1524] ss:$16 sps:$4 sm:$0xff]   ;;  %v8082_v15 = vld [vmem:[#allocation5 + $0x152c] ss:$16 sps:$4 sm:$0xff]  }
 0x2c5   :  { %5152 = vmatpush1.bf16.msra.mxu0 %v7987_v16  ;;  %5644 = vmatpush1.bf16.msra.mxu1 %v7990_v17  ;;  %v8077_v16 = vld [vmem:[#allocation5 + $0x1520] ss:$16 sps:$4 sm:$0xff]   ;;  %v8080_v17 = vld [vmem:[#allocation5 + $0x1528] ss:$16 sps:$4 sm:$0xff]  }
 0x2c6   :  { %5153 = vmatprep.subr.bf16.mxu0 %v7995_v18  ;;  %5645 = vmatprep.subr.bf16.mxu1 %v7998_v19  ;;  %v8085_v18 = vld [vmem:[#allocation5 + $0x1544] ss:$16 sps:$4 sm:$0xff]   ;;  %v8088_v19 = vld [vmem:[#allocation5 + $0x154c] ss:$16 sps:$4 sm:$0xff]  }
 0x2c9   :  { %5154 = vmatpush1.bf16.msra.mxu0 %v7993_v20  ;;  %5646 = vmatpush1.bf16.msra.mxu1 %v7996_v21  ;;  %v8083_v20 = vld [vmem:[#allocation5 + $0x1540] ss:$16 sps:$4 sm:$0xff]   ;;  %v8086_v21 = vld [vmem:[#allocation5 + $0x1548] ss:$16 sps:$4 sm:$0xff]  }
 0x2ca   :  { %5155 = vmatprep.subr.bf16.mxu0 %v8001_v22  ;;  %5647 = vmatprep.subr.bf16.mxu1 %v8004_v23  ;;  %v8091_v22 = vld [vmem:[#allocation5 + $0x1564] ss:$16 sps:$4 sm:$0xff]   ;;  %v8094_v23 = vld [vmem:[#allocation5 + $0x156c] ss:$16 sps:$4 sm:$0xff]  }
 0x2cd   :  { %5156 = vmatpush1.bf16.msra.mxu0 %v7999_v24  ;;  %5648 = vmatpush1.bf16.msra.mxu1 %v8002_v25  ;;  %v8089_v24 = vld [vmem:[#allocation5 + $0x1560] ss:$16 sps:$4 sm:$0xff]   ;;  %v8092_v25 = vld [vmem:[#allocation5 + $0x1568] ss:$16 sps:$4 sm:$0xff]  }
 0x2ce   :  { %5157 = vmatprep.subr.bf16.mxu0 %v8007_v26  ;;  %5649 = vmatprep.subr.bf16.mxu1 %v8010_v27  ;;  %v8097_v26 = vld [vmem:[#allocation5 + $0x1584] ss:$16 sps:$4 sm:$0xff]   ;;  %v8100_v27 = vld [vmem:[#allocation5 + $0x158c] ss:$16 sps:$4 sm:$0xff]  }
 0x2d1   :  { %5158 = vmatpush1.bf16.msra.mxu0 %v8005_v28  ;;  %5650 = vmatpush1.bf16.msra.mxu1 %v8008_v29  ;;  %v8095_v28 = vld [vmem:[#allocation5 + $0x1580] ss:$16 sps:$4 sm:$0xff]   ;;  %v8098_v29 = vld [vmem:[#allocation5 + $0x1588] ss:$16 sps:$4 sm:$0xff]  }
 0x2d2   :  { %5159 = vmatprep.subr.bf16.mxu0 %v8013_v30  ;;  %5651 = vmatprep.subr.bf16.mxu1 %v8016_v31  ;;  %v8103_v30 = vld [vmem:[#allocation5 + $0x15a4] ss:$16 sps:$4 sm:$0xff]   ;;  %v8106_v31 = vld [vmem:[#allocation5 + $0x15ac] ss:$16 sps:$4 sm:$0xff]  }
 0x2d5   :  { %5160 = vmatpush1.bf16.msra.mxu0 %v8011_v32  ;;  %5652 = vmatpush1.bf16.msra.mxu1 %v8014_v33  ;;  %v8101_v32 = vld [vmem:[#allocation5 + $0x15a0] ss:$16 sps:$4 sm:$0xff]   ;;  %v8104_v33 = vld [vmem:[#allocation5 + $0x15a8] ss:$16 sps:$4 sm:$0xff]  }
 0x2d6   :  { %5161 = vmatprep.subr.bf16.mxu0 %v8019_v34  ;;  %5653 = vmatprep.subr.bf16.mxu1 %v8022_v35  ;;  %v8109_v34 = vld [vmem:[#allocation5 + $0x15c4] ss:$16 sps:$4 sm:$0xff]   ;;  %v8112_v35 = vld [vmem:[#allocation5 + $0x15cc] ss:$16 sps:$4 sm:$0xff]  }
 0x2d9   :  { %5162 = vmatpush1.bf16.msra.mxu0 %v8017_v36  ;;  %5654 = vmatpush1.bf16.msra.mxu1 %v8020_v37  ;;  %v8107_v36 = vld [vmem:[#allocation5 + $0x15c0] ss:$16 sps:$4 sm:$0xff]   ;;  %v8110_v37 = vld [vmem:[#allocation5 + $0x15c8] ss:$16 sps:$4 sm:$0xff]  }
 0x2da   :  { %5172 = vmatprep.subr.bf16.mxu0 %v8025_v39  ;;  %5664 = vmatprep.subr.bf16.mxu1 %v8028_v40  ;;  %v8118_v39 = vld [vmem:[#allocation5 + $0x15ec] ss:$16 sps:$4 sm:$0xff]   ;;  %v8113_v40 = vld [vmem:[#allocation5 + $0x15e0] ss:$16 sps:$4 sm:$0xff]  }
 0x2dc   :  { %5164 = vmatmul.mubr.bf16.vlgmr.msra.gmra.mrb[0].mxu0 %v126_v41  ;;  %5656 = vmatmul.mubr.bf16.vlgmr.msra.gmra.mrb[0].mxu1 %v126_v41  ;;  %v8116_v41 = vld [vmem:[#allocation5 + $0x15e8] ss:$16 sps:$4 sm:$0xff]  }
 0x2dd   :  { %5173 = vmatpush1.bf16.msra.mxu0 %v8023_v43  ;;  %5665 = vmatpush1.bf16.msra.mxu1 %v8026_v44  ;;  %v8121_v43 = vld [vmem:[#allocation5 + $0x1604] ss:$16 sps:$4 sm:$0xff]   ;;  %v8124_v44 = vld [vmem:[#allocation5 + $0x160c] ss:$16 sps:$4 sm:$0xff]  }
 0x2de   :  { %5174 = vmatprep.subr.bf16.mxu0 %v8031_v45  ;;  %5666 = vmatprep.subr.bf16.mxu1 %v8034_v46  ;;  %v128_v45 = vpack.c.bf16 %v104_v42, %v104_v42  ;;  %v107_v46 = vld [vmem:[#allocation2 + $0xb8] sm:$0xff]  ;;  %v8211_v42 = vld [vmem:[#allocation5 + $0x17e4] ss:$16 sps:$4 sm:$0xff]  }
 0x2df   :  { %5204 = vmatprep.mubr.bf16.mxu0 %v129_v47  ;;  %5696 = vmatprep.mubr.bf16.mxu1 %v129_v47  ;;  %v8119_v47 = vld [vmem:[#allocation5 + $0x1600] ss:$16 sps:$4 sm:$0xff]  }
 0x2e1   :  { %5175 = vmatpush1.bf16.msra.mxu0 %v8029_v48  ;;  %5667 = vmatpush1.bf16.msra.mxu1 %v8032_v49  ;;  %v8122_v48 = vld [vmem:[#allocation5 + $0x1608] ss:$16 sps:$4 sm:$0xff]   ;;  %v8127_v49 = vld [vmem:[#allocation5 + $0x1624] ss:$16 sps:$4 sm:$0xff]  }
 0x2e2   :  { %5176 = vmatprep.subr.bf16.mxu0 %v8037_v50  ;;  %5668 = vmatprep.subr.bf16.mxu1 %v8040_v51  ;;  %v8130_v50 = vld [vmem:[#allocation5 + $0x162c] ss:$16 sps:$4 sm:$0xff]   ;;  %v131_v51 = vpack.c.bf16 %v107_v46, %v107_v46  ;;  %v106_v46 = vld [vmem:[#allocation2 + $0xb0] sm:$0xff] }
 0x2e5   :  { %5177 = vmatpush1.bf16.msra.mxu0 %v8035_v52  ;;  %5669 = vmatpush1.bf16.msra.mxu1 %v8038_v53  ;;  %v8125_v52 = vld [vmem:[#allocation5 + $0x1620] ss:$16 sps:$4 sm:$0xff]   ;;  %v8128_v53 = vld [vmem:[#allocation5 + $0x1628] ss:$16 sps:$4 sm:$0xff]  }
 0x2e6   :  { %5178 = vmatprep.subr.bf16.mxu0 %v8043_v54  ;;  %5670 = vmatprep.subr.bf16.mxu1 %v8046_v55  ;;  %v8133_v54 = vld [vmem:[#allocation5 + $0x1644] ss:$16 sps:$4 sm:$0xff]   ;;  %v8136_v55 = vld [vmem:[#allocation5 + $0x164c] ss:$16 sps:$4 sm:$0xff]  }
 0x2e9   :  { %5179 = vmatpush1.bf16.msra.mxu0 %v8041_v56  ;;  %5671 = vmatpush1.bf16.msra.mxu1 %v8044_v57  ;;  %v8131_v56 = vld [vmem:[#allocation5 + $0x1640] ss:$16 sps:$4 sm:$0xff]   ;;  %v8134_v57 = vld [vmem:[#allocation5 + $0x1648] ss:$16 sps:$4 sm:$0xff]  }
 0x2ea   :  { %5180 = vmatprep.subr.bf16.mxu0 %v8049_v58  ;;  %5672 = vmatprep.subr.bf16.mxu1 %v8052_v59  ;;  %v8139_v58 = vld [vmem:[#allocation5 + $0x1664] ss:$16 sps:$4 sm:$0xff]   ;;  %v8142_v59 = vld [vmem:[#allocation5 + $0x166c] ss:$16 sps:$4 sm:$0xff]  }
 0x2ed   :  { %5181 = vmatpush1.bf16.msra.mxu0 %v8047_v60  ;;  %5673 = vmatpush1.bf16.msra.mxu1 %v8050_v61  ;;  %v8137_v60 = vld [vmem:[#allocation5 + $0x1660] ss:$16 sps:$4 sm:$0xff]   ;;  %v8140_v61 = vld [vmem:[#allocation5 + $0x1668] ss:$16 sps:$4 sm:$0xff]  }
 0x2ee   :  { %5182 = vmatprep.subr.bf16.mxu0 %v8055_v62  ;;  %5674 = vmatprep.subr.bf16.mxu1 %v8058_v63  ;;  %v8145_v62 = vld [vmem:[#allocation5 + $0x1684] ss:$16 sps:$4 sm:$0xff]   ;;  %v8148_v63 = vld [vmem:[#allocation5 + $0x168c] ss:$16 sps:$4 sm:$0xff]  }
 0x2f1   :  { %5183 = vmatpush1.bf16.msra.mxu0 %v8053_v0  ;;  %5675 = vmatpush1.bf16.msra.mxu1 %v8056_v1  ;;  %v8143_v0 = vld [vmem:[#allocation5 + $0x1680] ss:$16 sps:$4 sm:$0xff]   ;;  %v8146_v1 = vld [vmem:[#allocation5 + $0x1688] ss:$16 sps:$4 sm:$0xff]  }
 0x2f2   :  { %5184 = vmatprep.subr.bf16.mxu0 %v8061_v2  ;;  %5676 = vmatprep.subr.bf16.mxu1 %v8064_v3  ;;  %v8151_v2 = vld [vmem:[#allocation5 + $0x16a4] ss:$16 sps:$4 sm:$0xff]   ;;  %v8154_v3 = vld [vmem:[#allocation5 + $0x16ac] ss:$16 sps:$4 sm:$0xff]  }
 0x2f5   :  { %5185 = vmatpush1.bf16.msra.mxu0 %v8059_v4  ;;  %5677 = vmatpush1.bf16.msra.mxu1 %v8062_v5  ;;  %v8149_v4 = vld [vmem:[#allocation5 + $0x16a0] ss:$16 sps:$4 sm:$0xff]   ;;  %v8152_v5 = vld [vmem:[#allocation5 + $0x16a8] ss:$16 sps:$4 sm:$0xff]  }
 0x2f6   :  { %5186 = vmatprep.subr.bf16.mxu0 %v8067_v6  ;;  %5678 = vmatprep.subr.bf16.mxu1 %v8070_v7  ;;  %v8157_v6 = vld [vmem:[#allocation5 + $0x16c4] ss:$16 sps:$4 sm:$0xff]   ;;  %v8160_v7 = vld [vmem:[#allocation5 + $0x16cc] ss:$16 sps:$4 sm:$0xff]  }
 0x2f9   :  { %5187 = vmatpush1.bf16.msra.mxu0 %v8065_v8  ;;  %5679 = vmatpush1.bf16.msra.mxu1 %v8068_v9  ;;  %v8155_v8 = vld [vmem:[#allocation5 + $0x16c0] ss:$16 sps:$4 sm:$0xff]   ;;  %v8158_v9 = vld [vmem:[#allocation5 + $0x16c8] ss:$16 sps:$4 sm:$0xff]  }
 0x2fa   :  { %5188 = vmatprep.subr.bf16.mxu0 %v8073_v10  ;;  %5680 = vmatprep.subr.bf16.mxu1 %v8076_v11  ;;  %v8163_v10 = vld [vmem:[#allocation5 + $0x16e4] ss:$16 sps:$4 sm:$0xff]   ;;  %v8166_v11 = vld [vmem:[#allocation5 + $0x16ec] ss:$16 sps:$4 sm:$0xff]  }
 0x2fd   :  { %5189 = vmatpush1.bf16.msra.mxu0 %v8071_v12  ;;  %5681 = vmatpush1.bf16.msra.mxu1 %v8074_v13  ;;  %v8161_v12 = vld [vmem:[#allocation5 + $0x16e0] ss:$16 sps:$4 sm:$0xff]   ;;  %v8164_v13 = vld [vmem:[#allocation5 + $0x16e8] ss:$16 sps:$4 sm:$0xff]  }
 0x2fe   :  { %5190 = vmatprep.subr.bf16.mxu0 %v8079_v14  ;;  %5682 = vmatprep.subr.bf16.mxu1 %v8082_v15  ;;  %v8169_v14 = vld [vmem:[#allocation5 + $0x1704] ss:$16 sps:$4 sm:$0xff]   ;;  %v8172_v15 = vld [vmem:[#allocation5 + $0x170c] ss:$16 sps:$4 sm:$0xff]  }
 0x301   :  { %5191 = vmatpush1.bf16.msra.mxu0 %v8077_v16  ;;  %5683 = vmatpush1.bf16.msra.mxu1 %v8080_v17  ;;  %v8167_v16 = vld [vmem:[#allocation5 + $0x1700] ss:$16 sps:$4 sm:$0xff]   ;;  %v8170_v17 = vld [vmem:[#allocation5 + $0x1708] ss:$16 sps:$4 sm:$0xff]  }
 0x302   :  { %5192 = vmatprep.subr.bf16.mxu0 %v8085_v18  ;;  %5684 = vmatprep.subr.bf16.mxu1 %v8088_v19  ;;  %v8175_v18 = vld [vmem:[#allocation5 + $0x1724] ss:$16 sps:$4 sm:$0xff]   ;;  %v8178_v19 = vld [vmem:[#allocation5 + $0x172c] ss:$16 sps:$4 sm:$0xff]  }
 0x305   :  { %5193 = vmatpush1.bf16.msra.mxu0 %v8083_v20  ;;  %5685 = vmatpush1.bf16.msra.mxu1 %v8086_v21  ;;  %v8173_v20 = vld [vmem:[#allocation5 + $0x1720] ss:$16 sps:$4 sm:$0xff]   ;;  %v8176_v21 = vld [vmem:[#allocation5 + $0x1728] ss:$16 sps:$4 sm:$0xff]  }
 0x306   :  { %5194 = vmatprep.subr.bf16.mxu0 %v8091_v22  ;;  %5686 = vmatprep.subr.bf16.mxu1 %v8094_v23  ;;  %v8181_v22 = vld [vmem:[#allocation5 + $0x1744] ss:$16 sps:$4 sm:$0xff]   ;;  %v8184_v23 = vld [vmem:[#allocation5 + $0x174c] ss:$16 sps:$4 sm:$0xff]  }
 0x309   :  { %5195 = vmatpush1.bf16.msra.mxu0 %v8089_v24  ;;  %5687 = vmatpush1.bf16.msra.mxu1 %v8092_v25  ;;  %v8179_v24 = vld [vmem:[#allocation5 + $0x1740] ss:$16 sps:$4 sm:$0xff]   ;;  %v8182_v25 = vld [vmem:[#allocation5 + $0x1748] ss:$16 sps:$4 sm:$0xff]  }
 0x30a   :  { %5196 = vmatprep.subr.bf16.mxu0 %v8097_v26  ;;  %5688 = vmatprep.subr.bf16.mxu1 %v8100_v27  ;;  %v8187_v26 = vld [vmem:[#allocation5 + $0x1764] ss:$16 sps:$4 sm:$0xff]   ;;  %v8190_v27 = vld [vmem:[#allocation5 + $0x176c] ss:$16 sps:$4 sm:$0xff]  }
 0x30d   :  { %5197 = vmatpush1.bf16.msra.mxu0 %v8095_v28  ;;  %5689 = vmatpush1.bf16.msra.mxu1 %v8098_v29  ;;  %v8185_v28 = vld [vmem:[#allocation5 + $0x1760] ss:$16 sps:$4 sm:$0xff]   ;;  %v8188_v29 = vld [vmem:[#allocation5 + $0x1768] ss:$16 sps:$4 sm:$0xff]  }
 0x30e   :  { %5198 = vmatprep.subr.bf16.mxu0 %v8103_v30  ;;  %5690 = vmatprep.subr.bf16.mxu1 %v8106_v31  ;;  %v8193_v30 = vld [vmem:[#allocation5 + $0x1784] ss:$16 sps:$4 sm:$0xff]   ;;  %v8196_v31 = vld [vmem:[#allocation5 + $0x178c] ss:$16 sps:$4 sm:$0xff]  }
 0x311   :  { %5199 = vmatpush1.bf16.msra.mxu0 %v8101_v32  ;;  %5691 = vmatpush1.bf16.msra.mxu1 %v8104_v33  ;;  %v8191_v32 = vld [vmem:[#allocation5 + $0x1780] ss:$16 sps:$4 sm:$0xff]   ;;  %v8194_v33 = vld [vmem:[#allocation5 + $0x1788] ss:$16 sps:$4 sm:$0xff]  }
 0x312   :  { %5200 = vmatprep.subr.bf16.mxu0 %v8109_v34  ;;  %5692 = vmatprep.subr.bf16.mxu1 %v8112_v35  ;;  %v8199_v34 = vld [vmem:[#allocation5 + $0x17a4] ss:$16 sps:$4 sm:$0xff]   ;;  %v8202_v35 = vld [vmem:[#allocation5 + $0x17ac] ss:$16 sps:$4 sm:$0xff]  }
 0x315   :  { %5201 = vmatpush1.bf16.msra.mxu0 %v8107_v36  ;;  %5693 = vmatpush1.bf16.msra.mxu1 %v8110_v37  ;;  %v8197_v36 = vld [vmem:[#allocation5 + $0x17a0] ss:$16 sps:$4 sm:$0xff]   ;;  %v8200_v37 = vld [vmem:[#allocation5 + $0x17a8] ss:$16 sps:$4 sm:$0xff]  }
 0x316   :  { %5202 = vmatprep.subr.bf16.mxu0 %v8115_v38  ;;  %5694 = vmatprep.subr.bf16.mxu1 %v8118_v39  ;;  %v8205_v38 = vld [vmem:[#allocation5 + $0x17c4] ss:$16 sps:$4 sm:$0xff]   ;;  %v8208_v39 = vld [vmem:[#allocation5 + $0x17cc] ss:$16 sps:$4 sm:$0xff]  }
 0x319   :  { %5203 = vmatpush1.bf16.msra.mxu0 %v8113_v40  ;;  %5695 = vmatpush1.bf16.msra.mxu1 %v8116_v41  ;;  %v8203_v40 = vld [vmem:[#allocation5 + $0x17c0] ss:$16 sps:$4 sm:$0xff]   ;;  %v8206_v41 = vld [vmem:[#allocation5 + $0x17c8] ss:$16 sps:$4 sm:$0xff]  }
 0x31a   :  { %5213 = vmatprep.subr.bf16.mxu0 %v8121_v43  ;;  %5705 = vmatprep.subr.bf16.mxu1 %v8124_v44  ;;  %v8214_v43 = vld [vmem:[#allocation5 + $0x17ec] ss:$16 sps:$4 sm:$0xff]   ;;  %v8209_v44 = vld [vmem:[#allocation5 + $0x17e0] ss:$16 sps:$4 sm:$0xff]  }
 0x31c   :  { %5205 = vmatmul.mubr.bf16.vlgmr.msra.gmra.mrb[0].mxu0 %v128_v45  ;;  %5697 = vmatmul.mubr.bf16.vlgmr.msra.gmra.mrb[0].mxu1 %v128_v45  ;;  %v8212_v45 = vld [vmem:[#allocation5 + $0x17e8] ss:$16 sps:$4 sm:$0xff]  }
 0x31d   :  { %5214 = vmatpush1.bf16.msra.mxu0 %v8119_v47  ;;  %5706 = vmatpush1.bf16.msra.mxu1 %v8122_v48  ;;  %v8215_v47 = vld [vmem:[#allocation8 + $0x40] sm:$0xff]  }
 0x31e   :  { %5215 = vmatprep.subr.bf16.mxu0 %v8127_v49  ;;  %5707 = vmatprep.subr.bf16.mxu1 %v8130_v50  ;;  %v8216_v48 = vld [vmem:[#allocation8 + $0xc0] sm:$0xff]   ;;  %v130_v49 = vpack.c.bf16 %v106_v46, %v106_v46 }
 0x31f   :  { %5245 = vmatprep.mubr.bf16.mxu0 %v131_v51  ;;  %5737 = vmatprep.mubr.bf16.mxu1 %v131_v51  ;;  %v8217_v50 = vld [vmem:[#allocation8] sm:$0xff]  }
 0x320   :  { %v8218_v51 = vld [vmem:[#allocation8 + $0x80] sm:$0xff]  }
 0x321   :  { %5216 = vmatpush1.bf16.msra.mxu0 %v8125_v52  ;;  %5708 = vmatpush1.bf16.msra.mxu1 %v8128_v53  ;;  %v8219_v52 = vld [vmem:[#allocation8 + $0x48] sm:$0xff]  }
 0x322   :  { %5217 = vmatprep.subr.bf16.mxu0 %v8133_v54  ;;  %5709 = vmatprep.subr.bf16.mxu1 %v8136_v55  ;;  %v8220_v53 = vld [vmem:[#allocation8 + $0xc8] sm:$0xff]  }
 0x323   :  { %v8221_v54 = vld [vmem:[#allocation8 + $0x8] sm:$0xff]  }
 0x324   :  { %v8222_v55 = vld [vmem:[#allocation8 + $0x88] sm:$0xff]  }
 0x325   :  { %5218 = vmatpush1.bf16.msra.mxu0 %v8131_v56  ;;  %5710 = vmatpush1.bf16.msra.mxu1 %v8134_v57  ;;  %v8223_v56 = vld [vmem:[#allocation8 + $0x50] sm:$0xff]  }
 0x326   :  { %5219 = vmatprep.subr.bf16.mxu0 %v8139_v58  ;;  %5711 = vmatprep.subr.bf16.mxu1 %v8142_v59  ;;  %v8224_v57 = vld [vmem:[#allocation8 + $0xd0] sm:$0xff]  }
 0x327   :  { %v8225_v58 = vld [vmem:[#allocation8 + $0x10] sm:$0xff]  }
 0x328   :  { %v8226_v59 = vld [vmem:[#allocation8 + $0x90] sm:$0xff]  }
 0x329   :  { %5220 = vmatpush1.bf16.msra.mxu0 %v8137_v60  ;;  %5712 = vmatpush1.bf16.msra.mxu1 %v8140_v61  ;;  %v8227_v60 = vld [vmem:[#allocation8 + $0x58] sm:$0xff]  }
 0x32a   :  { %5221 = vmatprep.subr.bf16.mxu0 %v8145_v62  ;;  %5713 = vmatprep.subr.bf16.mxu1 %v8148_v63  ;;  %v8228_v61 = vld [vmem:[#allocation8 + $0xd8] sm:$0xff]  }
 0x32b   :  { %v8229_v62 = vld [vmem:[#allocation8 + $0x18] sm:$0xff]  }
 0x32c   :  { %v8230_v63 = vld [vmem:[#allocation8 + $0x98] sm:$0xff]  }
 0x32d   :  { %5222 = vmatpush1.bf16.msra.mxu0 %v8143_v0  ;;  %5714 = vmatpush1.bf16.msra.mxu1 %v8146_v1  ;;  %v8231_v0 = vld [vmem:[#allocation8 + $0x60] sm:$0xff]  }
 0x32e   :  { %5223 = vmatprep.subr.bf16.mxu0 %v8151_v2  ;;  %5715 = vmatprep.subr.bf16.mxu1 %v8154_v3  ;;  %v8232_v1 = vld [vmem:[#allocation8 + $0xe0] sm:$0xff]  }
 0x32f   :  { %v8233_v2 = vld [vmem:[#allocation8 + $0x20] sm:$0xff]  }
 0x330   :  { %v8234_v3 = vld [vmem:[#allocation8 + $0xa0] sm:$0xff]  }
 0x331   :  { %5224 = vmatpush1.bf16.msra.mxu0 %v8149_v4  ;;  %5716 = vmatpush1.bf16.msra.mxu1 %v8152_v5  ;;  %v8235_v4 = vld [vmem:[#allocation8 + $0x68] sm:$0xff]  }
 0x332   :  { %5225 = vmatprep.subr.bf16.mxu0 %v8157_v6  ;;  %5717 = vmatprep.subr.bf16.mxu1 %v8160_v7  ;;  %v8236_v5 = vld [vmem:[#allocation8 + $0xe8] sm:$0xff]  }
 0x333   :  { %v8237_v6 = vld [vmem:[#allocation8 + $0x28] sm:$0xff]  }
 0x334   :  { %v8238_v7 = vld [vmem:[#allocation8 + $0xa8] sm:$0xff]  }
 0x335   :  { %5226 = vmatpush1.bf16.msra.mxu0 %v8155_v8  ;;  %5718 = vmatpush1.bf16.msra.mxu1 %v8158_v9  ;;  %v8239_v8 = vld [vmem:[#allocation8 + $0x70] sm:$0xff]  }
 0x336   :  { %5227 = vmatprep.subr.bf16.mxu0 %v8163_v10  ;;  %5719 = vmatprep.subr.bf16.mxu1 %v8166_v11  ;;  %v8240_v9 = vld [vmem:[#allocation8 + $0xf0] sm:$0xff]  }
 0x337   :  { %v8241_v10 = vld [vmem:[#allocation8 + $0x30] sm:$0xff]  }
 0x338   :  { %v8242_v11 = vld [vmem:[#allocation8 + $0xb0] sm:$0xff]  }
 0x339   :  { %5228 = vmatpush1.bf16.msra.mxu0 %v8161_v12  ;;  %5720 = vmatpush1.bf16.msra.mxu1 %v8164_v13  ;;  %v8243_v12 = vld [vmem:[#allocation8 + $0x78] sm:$0xff]  }
 0x33a   :  { %5229 = vmatprep.subr.bf16.mxu0 %v8169_v14  ;;  %5721 = vmatprep.subr.bf16.mxu1 %v8172_v15  ;;  %v8244_v13 = vld [vmem:[#allocation8 + $0xf8] sm:$0xff]  }
 0x33b   :  { %v8245_v14 = vld [vmem:[#allocation8 + $0x38] sm:$0xff]  }
 0x33c   :  { %v8246_v15 = vld [vmem:[#allocation8 + $0xb8] sm:$0xff]  }
 0x33d   :  { %5230 = vmatpush1.bf16.msra.mxu0 %v8167_v16  ;;  %5722 = vmatpush1.bf16.msra.mxu1 %v8170_v17  ;;  %v902_v16 = vlaneseq }
 0x33e   :  { %5231 = vmatprep.subr.bf16.mxu0 %v8175_v18  ;;  %5723 = vmatprep.subr.bf16.mxu1 %v8178_v19 }
 0x33f   :  { %v903_v17 = vshrl.u32 %v902_v16, 7 }
 0x341   :  { %5232 = vmatpush1.bf16.msra.mxu0 %v8173_v20  ;;  %5724 = vmatpush1.bf16.msra.mxu1 %v8176_v21  ;;  %v904_v18 = vsub.s32 0, %v903_v17  ;;  %v912_v19 = vsub.s32 2, %v903_v17  ;;  %v900_v20 = vld [vmem:[#allocation7] sm:$0xf]  ;;  %v908_v21 = vsub.s32 1, %v903_v17 }
 0x342   :  { %5233 = vmatprep.subr.bf16.mxu0 %v8181_v22  ;;  %5725 = vmatprep.subr.bf16.mxu1 %v8184_v23  ;;  %v916_v22 = vsub.s32 3, %v903_v17 }
 0x343   :  { %v905_v23 = vrot.slane %v900_v20, %v904_v18 }
 0x345   :  { %5234 = vmatpush1.bf16.msra.mxu0 %v8179_v24  ;;  %5726 = vmatpush1.bf16.msra.mxu1 %v8182_v25  ;;  %v913_v24 = vrot.slane %v900_v20, %v912_v19  ;;  %v909_v25 = vrot.slane %v900_v20, %v908_v21 }
 0x346   :  { %5235 = vmatprep.subr.bf16.mxu0 %v8187_v26  ;;  %5727 = vmatprep.subr.bf16.mxu1 %v8190_v27  ;;  %v917_v26 = vrot.slane %v900_v20, %v916_v22 }
 0x349   :  { %5236 = vmatpush1.bf16.msra.mxu0 %v8185_v28  ;;  %5728 = vmatpush1.bf16.msra.mxu1 %v8188_v29 }
 0x34a   :  { %5237 = vmatprep.subr.bf16.mxu0 %v8193_v30  ;;  %5729 = vmatprep.subr.bf16.mxu1 %v8196_v31 }
 0x34d   :  { %5238 = vmatpush1.bf16.msra.mxu0 %v8191_v32  ;;  %5730 = vmatpush1.bf16.msra.mxu1 %v8194_v33 }
 0x34e   :  { %5239 = vmatprep.subr.bf16.mxu0 %v8199_v34  ;;  %5731 = vmatprep.subr.bf16.mxu1 %v8202_v35 }
 0x351   :  { %5240 = vmatpush1.bf16.msra.mxu0 %v8197_v36  ;;  %5732 = vmatpush1.bf16.msra.mxu1 %v8200_v37 }
 0x352   :  { %5241 = vmatprep.subr.bf16.mxu0 %v8205_v38  ;;  %5733 = vmatprep.subr.bf16.mxu1 %v8208_v39 }
 0x355   :  { %5242 = vmatpush1.bf16.msra.mxu0 %v8203_v40  ;;  %5734 = vmatpush1.bf16.msra.mxu1 %v8206_v41 }
 0x356   :  { %5243 = vmatprep.subr.bf16.mxu0 %v8211_v42  ;;  %5735 = vmatprep.subr.bf16.mxu1 %v8214_v43 }
 0x359   :  { %5244 = vmatpush1.bf16.msra.mxu0 %v8209_v44  ;;  %5736 = vmatpush1.bf16.msra.mxu1 %v8212_v45 }
 0x35a   :  { %6917 = vmatprep.subr.bf16.mxu0 %v8215_v47  ;;  %6939 = vmatprep.subr.bf16.mxu1 %v8216_v48 }
 0x35c   :  { %5246 = vmatmul.mubr.bf16.vlgmr.msra.gmra.mrb[0].mxu0 %v130_v49  ;;  %5738 = vmatmul.mubr.bf16.vlgmr.msra.gmra.mrb[0].mxu1 %v130_v49  ;;  %v6884_v49 = vld [vmem:[#allocation10] ss:$0 sm:$0xff] }
 0x35d   :  { %6918 = vmatpush3.bf16.msra.mxu0 %v8217_v50  ;;  %6940 = vmatpush3.bf16.msra.mxu1 %v8218_v51 }
 0x35e   :  { %6919 = vmatprep.subr.bf16.mxu0 %v8219_v52  ;;  %6941 = vmatprep.subr.bf16.mxu1 %v8220_v53 }
 0x361   :  { %6920 = vmatpush3.bf16.msra.mxu0 %v8221_v54  ;;  %6942 = vmatpush3.bf16.msra.mxu1 %v8222_v55 }
 0x362   :  { %6921 = vmatprep.subr.bf16.mxu0 %v8223_v56  ;;  %6943 = vmatprep.subr.bf16.mxu1 %v8224_v57 }
 0x365   :  { %6922 = vmatpush3.bf16.msra.mxu0 %v8225_v58  ;;  %6944 = vmatpush3.bf16.msra.mxu1 %v8226_v59 }
 0x366   :  { %6923 = vmatprep.subr.bf16.mxu0 %v8227_v60  ;;  %6945 = vmatprep.subr.bf16.mxu1 %v8228_v61 }
 0x369   :  { %6924 = vmatpush3.bf16.msra.mxu0 %v8229_v62  ;;  %6946 = vmatpush3.bf16.msra.mxu1 %v8230_v63 }
 0x36a   :  { %6925 = vmatprep.subr.bf16.mxu0 %v8231_v0  ;;  %6947 = vmatprep.subr.bf16.mxu1 %v8232_v1 }
 0x36d   :  { %6926 = vmatpush3.bf16.msra.mxu0 %v8233_v2  ;;  %6948 = vmatpush3.bf16.msra.mxu1 %v8234_v3 }
 0x36e   :  { %6927 = vmatprep.subr.bf16.mxu0 %v8235_v4  ;;  %6949 = vmatprep.subr.bf16.mxu1 %v8236_v5 }
 0x371   :  { %6928 = vmatpush3.bf16.msra.mxu0 %v8237_v6  ;;  %6950 = vmatpush3.bf16.msra.mxu1 %v8238_v7 }
 0x372   :  { %6929 = vmatprep.subr.bf16.mxu0 %v8239_v8  ;;  %6951 = vmatprep.subr.bf16.mxu1 %v8240_v9 }
 0x375   :  { %6930 = vmatpush3.bf16.msra.mxu0 %v8241_v10  ;;  %6952 = vmatpush3.bf16.msra.mxu1 %v8242_v11 }
 0x376   :  { %6931 = vmatprep.subr.bf16.mxu0 %v8243_v12  ;;  %6953 = vmatprep.subr.bf16.mxu1 %v8244_v13 }
 0x379   :  { %6932 = vmatpush3.bf16.msra.mxu0 %v8245_v14  ;;  %6954 = vmatpush3.bf16.msra.mxu1 %v8246_v15 }
 0x42f   :  { %v5247_v27 = vpop.f32.mrb[0].mxu0  ;;  %v5739_v28 = vpop.f32.mrb[0].mxu1 }
 0x430   :  { %v6961_v29 = vadd.f32 %v5247_v27, %v905_v23  ;;  %v6963_v30 = vadd.f32 %v5739_v28, %v913_v24  ;;  %v5249_v31 = vpop.f32.mrb[1].mxu0  ;;  %v5741_v32 = vpop.f32.mrb[1].mxu1 }
 0x431   :  { %v6962_v33 = vadd.f32 %v5249_v31, %v909_v25  ;;  %v6964_v34 = vadd.f32 %v5741_v32, %v917_v26  ;;  %v5251_v35 = vpop.f32.mrb[2].mxu0  ;;  %v5743_v36 = vpop.f32.mrb[2].mxu1 }
 0x432   :  { %v5746_v37 = vmax.f32 %v6961_v29, 0.0  ;;  %v5748_v38 = vmax.f32 %v6963_v30, 0.0  ;;  %v5252_v39 = vpop.f32.mrb[3].mxu0  ;;  %v5744_v40 = vpop.f32.mrb[3].mxu1 }
 0x433   :  { %v5747_v41 = vmax.f32 %v6962_v33, 0.0  ;;  %v5749_v42 = vmax.f32 %v6964_v34, 0.0 }
 0x434   :  { %v5750_v45 = vpack.c.bf16 %v5746_v37, %v5746_v37  ;;  %v5752_v46 = vpack.c.bf16 %v5748_v38, %v5748_v38 }
 0x435   :  { %v5751_v43 = vpack.c.bf16 %v5747_v41, %v5747_v41  ;;  %v5753_v44 = vpack.c.bf16 %v5749_v42, %v5749_v42 }
 0x437   :  { %6049 = vmatprep.mubr.bf16.mxu0 %v5751_v43  ;;  %6089 = vmatprep.mubr.bf16.mxu1 %v5753_v44 }
 0x438   :  { %6050 = vmatmul.mubr.bf16.vlgmr.msra.gmra.mrb[4].mxu0 %v5750_v45  ;;  %6090 = vmatmul.mubr.bf16.vlgmr.msra.gmra.mrb[4].mxu1 %v5752_v46 }
 0x50b   :  { %v6933_v47 = vpop.f32.mrb[4].mxu0  ;;  %v6955_v48 = vpop.f32.mrb[4].mxu1 }
 0x50c   :  { %v6934_v50 = vpop.f32.mrb[5].mxu0  ;;  %v6956_v51 = vpop.f32.mrb[5].mxu1 }
 0x50d   :  { %v6935_v52 = vadd.f32 %v6934_v50, %v6933_v47  ;;  %v6957_v53 = vadd.f32 %v6956_v51, %v6955_v48  ;;  %v6936_v54 = vpop.f32.mrb[6].mxu0  ;;  %v6958_v55 = vpop.f32.mrb[6].mxu1 }
 0x50e   :  { %v6937_v56 = vpop.f32.mrb[7].mxu0  ;;  %v6959_v57 = vpop.f32.mrb[7].mxu1 }
 0x50f   :  { %v6052_v58 = vadd.f32 %v6935_v52, %v6884_v49 }
 0x511   :  { %v6092_v59 = vadd.f32 %v6957_v53, %v6052_v58 }
 0x513   :  { %v6097_v60 = vmax.f32 %v6092_v59, 0.0 }
 0x515   :  { %6098 = vst [vmem:[#allocation11] sm:$0xff] %v6097_v60 }
 0x516   :  { %8368 = shalt.err (!%p8365_p2)
}
 0x517   :  { %s8369_s6 = scalar_lea.hbm %s8504_s5, 128 }
 0x518   :  { %p8370_p3 = scmp.ne.s32.totalorder %s8504_s5, %s8369_s6  ;;  %p8373_p4 = scmp.lt.u32.totalorder %s8369_s6, %s8504_s5 }
 0x51a   :  { %p8375_p5 = pnand %p8373_p4, %p8370_p3 }
 0x51c   :  { %8378 = shalt.err (!%p8375_p5)
}
 0x51d   :  { %6108 = dma.vmem_to_hbm [thread:$0]  %s6106_s28, 128, %s8504_s5, [#allocation4]  }
 0x51e   :  { %8385 = dma.done.wait [#allocation4], 128  }
 0x51f   :  { %8386 = vsyncadd [#allocation4], 4294967168 }
 0x520   :  { %6112 = vsyncpa [#allocation3], 1 }
 0x521   :  { %6113 = vsyncpa [#allocation6], 1 }
 0x522   :  { %6114 = vsyncpa [#allocation9], 1 }
 0x523   :  { %6115 = vsyncpa [#allocation4], 1 }

</bundles_post_ra>
